<compile_context>
chip_gen: v7x
topology: tpu7x:2x2x1
jax: 0.10.0
libtpu: 0.0.40
codegen_flags: <defaults>
</compile_context>

<pallas_src>
import math

import jax
import jax.numpy as jnp
from jax import lax
from jax.experimental import pallas as pl
from jax.experimental.pallas import tpu as pltpu

# ---- model constants (from the PyTorch module defaults) ----
C_PLAQ_IN, C_RECT_IN = 2, 4
C_PLAQ_OUT, C_RECT_OUT = 4, 8
C_IN = C_PLAQ_IN + C_RECT_IN            # 6
C_OUT = C_PLAQ_OUT + C_RECT_OUT         # 12
C_HID = 14                              # hidden_channels
MID = max(2, C_HID // 4)                # 3   (ChannelAttention bottleneck)
KH = KW = 3                             # kernel_size (3, 3), circular 'same'
N_RES = 2                               # res_block1, res_block2
N_CONV = 2 * N_RES                      # 4 residual-block convs
N_GN = 1 + 2 * N_RES                    # 5 GroupNorms (input + 2 per res block)
EPS = 1e-5                              # GroupNorm eps (PyTorch default)


# ---------- elementwise helpers (only ops guaranteed to lower in Mosaic) ----------
def _sign(z):
    return jnp.where(z > 0, 1.0, jnp.where(z < 0, -1.0, 0.0))


def _erf(z):
    # Abramowitz & Stegun 7.1.26 rational approximation, |abs err| < 1.5e-7.
    a1, a2, a3, a4, a5 = (0.254829592, -0.284496736, 1.421413741,
                          -1.453152027, 1.061405429)
    p = 0.3275911
    az = jnp.abs(z)
    t = 1.0 / (1.0 + p * az)
    poly = ((((a5 * t + a4) * t + a3) * t + a2) * t + a1) * t
    return _sign(z) * (1.0 - poly * jnp.exp(-az * az))


def _gelu(z):
    # exact (erf-based) GELU, matching torch.nn.functional.gelu default
    return 0.5 * z * (1.0 + _erf(z * 0.7071067811865476))


def _silu(z):
    return z * jax.nn.sigmoid(z)


def _arctan(z):
    # Cephes atanf-style range reduction + odd polynomial (float32 accuracy).
    sgn = _sign(z)
    a = jnp.abs(z)
    big = a > 2.414213562373095            # tan(3*pi/8)
    mid = jnp.logical_and(a > 0.4142135623730951, jnp.logical_not(big))
    zr = jnp.where(big, -1.0 / jnp.maximum(a, 1e-30),
                   jnp.where(mid, (a - 1.0) / (a + 1.0), a))
    base = jnp.where(big, 0.5 * math.pi, jnp.where(mid, 0.25 * math.pi, 0.0))
    z2 = zr * zr
    poly = (((8.05374449538e-2 * z2 - 1.38776856032e-1) * z2
             + 1.99777106478e-1) * z2 - 3.33329491539e-1) * z2 * zr + zr
    return sgn * (base + poly)


# ------------------------------- kernel factory -------------------------------
def _make_kernel(H, W, BB):
    HW = H * W
    f32 = jnp.float32
    inv_cnt = 1.0 / float((C_HID // 2) * HW)

    def kernel(x_ref, w_in_ref, b_in_ref, gn_g_ref, gn_b_ref,
               rw_ref, rb_ref, alpha_ref,
               aw1_ref, ab1_ref, aw2_ref, ab2_ref,
               ow_ref, ob_ref, scale_ref, o_ref):
        # ---- per-grid-step constants (shared by all samples in this block) ----
        lane = lax.broadcasted_iota(jnp.int32, (1, HW), 1)
        if (W & (W - 1)) == 0:                      # fast path: W is a power of 2
            w_idx = lane & (W - 1)
        else:                                       # general path via float floor
            lane_f = lane.astype(f32)
            w_idx = (lane_f - float(W) * jnp.floor(lane_f * (1.0 / W))).astype(jnp.int32)
        m_pos = (w_idx >= 1).astype(f32)            # lanes valid for a +1 W-shift
        m_neg = (w_idx < (W - 1)).astype(f32)       # lanes valid for a -1 W-shift
        m_pos_c = 1.0 - m_pos
        m_neg_c = 1.0 - m_neg

        ch = lax.broadcasted_iota(jnp.int32, (C_HID, 1), 0)
        g0 = (ch < (C_HID // 2)).astype(f32)        # GroupNorm group 0 (ch 0..6)
        g1 = 1.0 - g0                               # GroupNorm group 1 (ch 7..13)

        def conv3x3(x, get_w, bias):
            # x: (C_in, HW); get_w(t) -> (C_out, C_in) for tap t = kh*KW + kw;
            # bias: (C_out, 1).  Circular 'same' padding via lane rotations:
            # H-shift is an exact flat roll by dh*W; W-shift is a flat roll with
            # the wrap column fixed by blending a second roll.
            acc = None
            for kh in range(KH):
                dh = 1 - kh
                xh = pltpu.roll(x, (dh * W) % HW, axis=1) if (dh % H) else x
                for kw in range(KW):
                    dw = 1 - kw
                    if dw == 0:
                        xt = xh
                    elif dw > 0:        # dw == +1
                        xt = (m_pos * pltpu.roll(xh, 1, axis=1)
                              + m_pos_c * pltpu.roll(xh, (1 - W) % HW, axis=1))
                    else:               # dw == -1
                        xt = (m_neg * pltpu.roll(xh, HW - 1, axis=1)
                              + m_neg_c * pltpu.roll(xh, W - 1, axis=1))
                    d = jnp.dot(get_w(kh * KW + kw), xt,
                                preferred_element_type=f32)
                    acc = d if acc is None else acc + d
            return acc + bias

        def group_norm(xf, idx):
            # GroupNorm(2, C_HID), biased variance, per sample.  xf: (C_HID, HW)
            gamma = gn_g_ref[idx]                   # (C_HID, 1)
            beta = gn_b_ref[idx]
            s = jnp.sum(xf, axis=1, keepdims=True)          # (C_HID, 1)
            ss = jnp.sum(xf * xf, axis=1, keepdims=True)
            m0 = jnp.sum(s * g0) * inv_cnt
            m1 = jnp.sum(s * g1) * inv_cnt
            v0 = jnp.maximum(jnp.sum(ss * g0) * inv_cnt - m0 * m0, 0.0)
            v1 = jnp.maximum(jnp.sum(ss * g1) * inv_cnt - m1 * m1, 0.0)
            mean = g0 * m0 + g1 * m1
            rstd = g0 * lax.rsqrt(v0 + EPS) + g1 * lax.rsqrt(v1 + EPS)
            return (xf - mean) * rstd * gamma + beta

        def sample(s, carry):
            x = x_ref[s]                                    # (C_IN, HW)

            # --- input conv (6->14, circular 3x3) + GroupNorm(2) + exact GELU ---
            h = conv3x3(x, lambda t: w_in_ref[t], b_in_ref[...])
            h = _gelu(group_norm(h, 0))

            # --- two pre-norm residual blocks:
            #     GN -> SiLU -> conv -> GN -> SiLU -> conv, then x + alpha * out ---
            for blk in range(N_RES):
                out = _silu(group_norm(h, 1 + 2 * blk))
                ci = 2 * blk
                out = conv3x3(out, lambda t, _c=ci: rw_ref[_c, t], rb_ref[ci])
                out = _silu(group_norm(out, 2 + 2 * blk))
                ci = 2 * blk + 1
                out = conv3x3(out, lambda t, _c=ci: rw_ref[_c, t], rb_ref[ci])
                h = h + alpha_ref[blk] * out

            # --- channel attention: global avg pool -> 1x1 (14->3) -> ReLU
            #     -> 1x1 (3->14) -> sigmoid gate (pure VPU/XLU, no transposes) ---
            pooled = jnp.mean(h, axis=1, keepdims=True)                    # (C_HID, 1)
            a1 = jnp.sum(aw1_ref[...] * pooled, axis=0, keepdims=True)     # (1, MID)
            a1 = jnp.maximum(a1 + ab1_ref[...], 0.0)
            gate = jax.nn.sigmoid(
                jnp.sum(aw2_ref[...] * a1, axis=1, keepdims=True) + ab2_ref[...])
            h = h * gate

            # --- output 1x1 conv, arctan squashing, learnable output scale ---
            o = jnp.dot(ow_ref[...], h, preferred_element_type=f32) + ob_ref[...]
            o = _arctan(o) * (scale_ref[0] * (1.0 / (2.0 * math.pi)))
            o_ref[s] = o                                    # lane-dense (C_OUT, HW) store
            return carry

        lax.fori_loop(0, BB, sample, 0)

    return kernel


# ------------------------------- parameters -------------------------------
def init_params(key):
    def xavier_normal(k, shape, gain=0.8):
        # shape = (out_ch, in_ch, kh, kw); matches nn.init.xavier_normal_
        rf = shape[2] * shape[3]
        fan_in, fan_out = shape[1] * rf, shape[0] * rf
        std = gain * math.sqrt(2.0 / (fan_in + fan_out))
        return std * jax.random.normal(k, shape, jnp.float32)

    ks = jax.random.split(key, 8)
    p = {}

    w = xavier_normal(ks[0], (C_HID, C_IN, KH, KW))
    p["w_in"] = jnp.transpose(w, (2, 3, 0, 1)).reshape(KH * KW, C_HID, C_IN)
    p["b_in"] = jnp.zeros((C_HID, 1), jnp.float32)

    p["gn_g"] = jnp.ones((N_GN, C_HID, 1), jnp.float32)     # GroupNorm weight = 1
    p["gn_b"] = jnp.zeros((N_GN, C_HID, 1), jnp.float32)    # GroupNorm bias = 0

    rws = []
    for i in range(N_CONV):
        w = xavier_normal(ks[1 + i], (C_HID, C_HID, KH, KW))
        rws.append(jnp.transpose(w, (2, 3, 0, 1)).reshape(KH * KW, C_HID, C_HID))
    p["rw"] = jnp.stack(rws)                                 # (4, 9, C_HID, C_HID)
    p["rb"] = jnp.zeros((N_CONV, C_HID, 1), jnp.float32)
    p["alpha"] = jnp.full((N_RES,), 0.5, jnp.float32)        # learnable residual scale

    w1 = xavier_normal(ks[5], (MID, C_HID, 1, 1))
    p["aw1"] = jnp.transpose(w1[:, :, 0, 0])                 # (C_HID, MID)
    p["ab1"] = jnp.zeros((1, MID), jnp.float32)
    w2 = xavier_normal(ks[6], (C_HID, MID, 1, 1))
    p["aw2"] = w2[:, :, 0, 0]                                # (C_HID, MID)
    p["ab2"] = jnp.zeros((C_HID, 1), jnp.float32)

    wo = 0.01 * jax.random.normal(ks[7], (C_OUT, C_HID, 1, 1), jnp.float32)
    p["ow"] = wo[:, :, 0, 0]                                 # (C_OUT, C_HID)
    p["ob"] = jnp.zeros((C_OUT, 1), jnp.float32)
    p["out_scale"] = jnp.full((1,), 0.1, jnp.float32)
    return p


# ------------------------------- forward wrapper -------------------------------
@jax.jit
def stable_hybrid_v2(plaq_features, rect_features, params):
    # NCHW in, NCHW out -- only free reshapes around the kernel (no transposes).
    x = jnp.concatenate([plaq_features, rect_features], axis=1)   # (B, 6, H, W)
    B, _, H, W = x.shape
    HW = H * W
    x = x.reshape(B, C_IN, HW).astype(jnp.float32)

    # process several samples per grid step (amortize ~0.35us/step overhead)
    BB = 1
    for d in range(min(B, 8), 0, -1):
        if B % d == 0:
            BB = d
            break

    def full(shape):
        return pl.BlockSpec(shape, lambda b, _n=len(shape): (0,) * _n)

    smem = pl.BlockSpec(memory_space=pltpu.MemorySpace.SMEM)

    out = pl.pallas_call(
        _make_kernel(H, W, BB),
        out_shape=jax.ShapeDtypeStruct((B, C_OUT, HW), jnp.float32),
        grid=(B // BB,),
        in_specs=[
            pl.BlockSpec((BB, C_IN, HW), lambda b: (b, 0, 0)),  # x (BB samples)
            full((KH * KW, C_HID, C_IN)),    # input conv taps
            full((C_HID, 1)),                # input conv bias
            full((N_GN, C_HID, 1)),          # GroupNorm gammas
            full((N_GN, C_HID, 1)),          # GroupNorm betas
            full((N_CONV, KH * KW, C_HID, C_HID)),  # res-block conv taps
            full((N_CONV, C_HID, 1)),        # res-block conv biases
            smem,                            # alphas (2,)
            full((C_HID, MID)),              # attention fc1 weight
            full((1, MID)),                  # attention fc1 bias
            full((C_HID, MID)),              # attention fc2 weight
            full((C_HID, 1)),                # attention fc2 bias
            full((C_OUT, C_HID)),            # output 1x1 conv weight
            full((C_OUT, 1)),                # output 1x1 conv bias
            smem,                            # output_scale (1,)
        ],
        out_specs=pl.BlockSpec((BB, C_OUT, HW), lambda b: (b, 0, 0)),
        compiler_params=pltpu.CompilerParams(
            dimension_semantics=("parallel",)),
    )(x, params["w_in"], params["b_in"], params["gn_g"], params["gn_b"],
      params["rw"], params["rb"], params["alpha"],
      params["aw1"], params["ab1"], params["aw2"], params["ab2"],
      params["ow"], params["ob"], params["out_scale"])

    out = out.reshape(B, C_OUT, H, W)
    return out[:, :C_PLAQ_OUT], out[:, C_PLAQ_OUT:]


if __name__ == "__main__":
    key = jax.random.PRNGKey(0)
    kp, kx1, kx2 = jax.random.split(key, 3)
    params = init_params(kp)

    B, H, W = 2, 16, 16
    plaq = jax.random.normal(kx1, (B, C_PLAQ_IN, H, W), jnp.float32)
    rect = jax.random.normal(kx2, (B, C_RECT_IN, H, W), jnp.float32)

    plaq_coeffs, rect_coeffs = stable_hybrid_v2(plaq, rect, params)
    jax.block_until_ready((plaq_coeffs, rect_coeffs))
    assert plaq_coeffs.shape == (B, C_PLAQ_OUT, H, W)
    assert rect_coeffs.shape == (B, C_RECT_OUT, H, W)
    assert bool(jnp.all(jnp.isfinite(plaq_coeffs))) and bool(jnp.all(jnp.isfinite(rect_coeffs)))
    print("KERNEL_OK")
</pallas_src>

<mosaic_0001>
module attributes {stable_mosaic.version = 11 : i64} {
  func.func @kernel(%arg0: i32, %arg1: memref<2x6x256xf32, #tpu.memory_space<vmem>>, %arg2: memref<9x14x6xf32, #tpu.memory_space<vmem>>, %arg3: memref<14x1xf32, #tpu.memory_space<vmem>>, %arg4: memref<5x14x1xf32, #tpu.memory_space<vmem>>, %arg5: memref<5x14x1xf32, #tpu.memory_space<vmem>>, %arg6: memref<4x9x14x14xf32, #tpu.memory_space<vmem>>, %arg7: memref<4x14x1xf32, #tpu.memory_space<vmem>>, %arg8: memref<2xf32, #tpu.memory_space<smem>>, %arg9: memref<14x3xf32, #tpu.memory_space<vmem>>, %arg10: memref<1x3xf32, #tpu.memory_space<vmem>>, %arg11: memref<14x3xf32, #tpu.memory_space<vmem>>, %arg12: memref<14x1xf32, #tpu.memory_space<vmem>>, %arg13: memref<12x14xf32, #tpu.memory_space<vmem>>, %arg14: memref<12x1xf32, #tpu.memory_space<vmem>>, %arg15: memref<1xf32, #tpu.memory_space<smem>>, %arg16: memref<2x12x256xf32, #tpu.memory_space<vmem>>) attributes {dimension_semantics = [#tpu.dimension_semantics<parallel>], iteration_bounds = array<i64: 1>, scalar_prefetch = 0 : i64, scratch_operands = 0 : i64, tpu.core_type = #tpu.core_type<tc>, window_params = [{transform_indices = @transform_0, window_bounds = array<i64: 2, 6, 256>}, {pipeline_mode = #tpu.pipeline_mode<synchronous>, transform_indices = @transform_1, window_bounds = array<i64: 9, 14, 6>}, {pipeline_mode = #tpu.pipeline_mode<synchronous>, transform_indices = @transform_2, window_bounds = array<i64: 14, 1>}, {pipeline_mode = #tpu.pipeline_mode<synchronous>, transform_indices = @transform_3, window_bounds = array<i64: 5, 14, 1>}, {pipeline_mode = #tpu.pipeline_mode<synchronous>, transform_indices = @transform_4, window_bounds = array<i64: 5, 14, 1>}, {pipeline_mode = #tpu.pipeline_mode<synchronous>, transform_indices = @transform_5, window_bounds = array<i64: 4, 9, 14, 14>}, {pipeline_mode = #tpu.pipeline_mode<synchronous>, transform_indices = @transform_6, window_bounds = array<i64: 4, 14, 1>}, {transform_indices = @transform_7, window_bounds = array<i64: 2>}, {pipeline_mode = #tpu.pipeline_mode<synchronous>, transform_indices = @transform_8, window_bounds = array<i64: 14, 3>}, {pipeline_mode = #tpu.pipeline_mode<synchronous>, transform_indices = @transform_9, window_bounds = array<i64: 1, 3>}, {pipeline_mode = #tpu.pipeline_mode<synchronous>, transform_indices = @transform_10, window_bounds = array<i64: 14, 3>}, {pipeline_mode = #tpu.pipeline_mode<synchronous>, transform_indices = @transform_11, window_bounds = array<i64: 14, 1>}, {pipeline_mode = #tpu.pipeline_mode<synchronous>, transform_indices = @transform_12, window_bounds = array<i64: 12, 14>}, {pipeline_mode = #tpu.pipeline_mode<synchronous>, transform_indices = @transform_13, window_bounds = array<i64: 12, 1>}, {transform_indices = @transform_14, window_bounds = array<i64: 1>}, {transform_indices = @transform_15, window_bounds = array<i64: 2, 12, 256>}]} {
    %0 = tpu.iota {dimensions = array<i32: 1>} : vector<1x256xi32>
    %c15_i32 = arith.constant 15 : i32
    %1 = vector.broadcast %c15_i32 : i32 to vector<1x256xi32>
    %2 = arith.andi %0, %1 : vector<1x256xi32>
    %c1_i32 = arith.constant 1 : i32
    %3 = vector.broadcast %c1_i32 : i32 to vector<1x256xi32>
    %4 = arith.cmpi sge, %2, %3 : vector<1x256xi32>
    %5 = arith.extui %4 : vector<1x256xi1> to vector<1x256xi32>
    %6 = arith.sitofp %5 : vector<1x256xi32> to vector<1x256xf32>
    %c15_i32_0 = arith.constant 15 : i32
    %7 = vector.broadcast %c15_i32_0 : i32 to vector<1x256xi32>
    %8 = arith.cmpi slt, %2, %7 : vector<1x256xi32>
    %9 = arith.extui %8 : vector<1x256xi1> to vector<1x256xi32>
    %10 = arith.sitofp %9 : vector<1x256xi32> to vector<1x256xf32>
    %cst = arith.constant 1.000000e+00 : f32
    %11 = vector.broadcast %cst : f32 to vector<1x256xf32>
    %12 = arith.subf %11, %6 : vector<1x256xf32>
    %cst_1 = arith.constant 1.000000e+00 : f32
    %13 = vector.broadcast %cst_1 : f32 to vector<1x256xf32>
    %14 = arith.subf %13, %10 : vector<1x256xf32>
    %15 = tpu.iota {dimensions = array<i32: 0>} : vector<14x1xi32>
    %c7_i32 = arith.constant 7 : i32
    %16 = vector.broadcast %c7_i32 : i32 to vector<14x1xi32>
    %17 = arith.cmpi slt, %15, %16 : vector<14x1xi32>
    %18 = arith.extui %17 : vector<14x1xi1> to vector<14x1xi32>
    %19 = arith.sitofp %18 : vector<14x1xi32> to vector<14x1xf32>
    %cst_2 = arith.constant 1.000000e+00 : f32
    %20 = vector.broadcast %cst_2 : f32 to vector<14x1xf32>
    %21 = arith.subf %20, %19 : vector<14x1xf32>
    %c0_i32 = arith.constant 0 : i32
    %c2_i32 = arith.constant 2 : i32
    %22 = arith.addi %c0_i32, %c2_i32 : i32
    %c1_i32_3 = arith.constant 1 : i32
    scf.for %arg17 = %c0_i32 to %22 step %c1_i32_3  : i32 {
      %23 = arith.index_cast %arg17 : i32 to index
      %c0 = arith.constant 0 : index
      %c0_5 = arith.constant 0 : index
      %24 = vector.load %arg1[%23, %c0, %c0_5] : memref<2x6x256xf32, #tpu.memory_space<vmem>>, vector<1x6x256xf32>
      %25 = vector.shape_cast %24 : vector<1x6x256xf32> to vector<6x256xf32>
      %c0_6 = arith.constant 0 : index
      %c0_7 = arith.constant 0 : index
      %26 = vector.load %arg3[%c0_6, %c0_7] : memref<14x1xf32, #tpu.memory_space<vmem>>, vector<14x1xf32>
      %c16_i32 = arith.constant 16 : i32
      %27 = tpu.dynamic_rotate %25 by %c16_i32 dim 1 : vector<6x256xf32>, i32 -> vector<6x256xf32>
      %c1_i32_8 = arith.constant 1 : i32
      %28 = tpu.dynamic_rotate %27 by %c1_i32_8 dim 1 : vector<6x256xf32>, i32 -> vector<6x256xf32>
      %29 = vector.broadcast %6 : vector<1x256xf32> to vector<6x256xf32>
      %30 = arith.mulf %29, %28 : vector<6x256xf32>
      %c241_i32 = arith.constant 241 : i32
      %31 = tpu.dynamic_rotate %27 by %c241_i32 dim 1 : vector<6x256xf32>, i32 -> vector<6x256xf32>
      %32 = vector.broadcast %12 : vector<1x256xf32> to vector<6x256xf32>
      %33 = arith.mulf %32, %31 : vector<6x256xf32>
      %34 = arith.addf %30, %33 : vector<6x256xf32>
      %c0_9 = arith.constant 0 : index
      %c0_10 = arith.constant 0 : index
      %c0_11 = arith.constant 0 : index
      %35 = vector.load %arg2[%c0_9, %c0_10, %c0_11] : memref<9x14x6xf32, #tpu.memory_space<vmem>>, vector<1x14x6xf32>
      %36 = vector.shape_cast %35 : vector<1x14x6xf32> to vector<14x6xf32>
      %cst_12 = arith.constant dense<0.000000e+00> : vector<14x256xf32>
      %37 = tpu.matmul %36, %34, %cst_12 {dimension_numbers = #tpu.dot_dimension_numbers<[1], [0], [0], [1], [0, 0, 1, 1], [], []>} : vector<14x6xf32>, vector<6x256xf32>, vector<14x256xf32> -> vector<14x256xf32>
      %c1 = arith.constant 1 : index
      %c0_13 = arith.constant 0 : index
      %c0_14 = arith.constant 0 : index
      %38 = vector.load %arg2[%c1, %c0_13, %c0_14] : memref<9x14x6xf32, #tpu.memory_space<vmem>>, vector<1x14x6xf32>
      %39 = vector.shape_cast %38 : vector<1x14x6xf32> to vector<14x6xf32>
      %cst_15 = arith.constant dense<0.000000e+00> : vector<14x256xf32>
      %40 = tpu.matmul %39, %27, %cst_15 {dimension_numbers = #tpu.dot_dimension_numbers<[1], [0], [0], [1], [0, 0, 1, 1], [], []>} : vector<14x6xf32>, vector<6x256xf32>, vector<14x256xf32> -> vector<14x256xf32>
      %41 = arith.addf %37, %40 : vector<14x256xf32>
      %c255_i32 = arith.constant 255 : i32
      %42 = tpu.dynamic_rotate %27 by %c255_i32 dim 1 : vector<6x256xf32>, i32 -> vector<6x256xf32>
      %43 = vector.broadcast %10 : vector<1x256xf32> to vector<6x256xf32>
      %44 = arith.mulf %43, %42 : vector<6x256xf32>
      %c15_i32_16 = arith.constant 15 : i32
      %45 = tpu.dynamic_rotate %27 by %c15_i32_16 dim 1 : vector<6x256xf32>, i32 -> vector<6x256xf32>
      %46 = vector.broadcast %14 : vector<1x256xf32> to vector<6x256xf32>
      %47 = arith.mulf %46, %45 : vector<6x256xf32>
      %48 = arith.addf %44, %47 : vector<6x256xf32>
      %c2 = arith.constant 2 : index
      %c0_17 = arith.constant 0 : index
      %c0_18 = arith.constant 0 : index
      %49 = vector.load %arg2[%c2, %c0_17, %c0_18] : memref<9x14x6xf32, #tpu.memory_space<vmem>>, vector<1x14x6xf32>
      %50 = vector.shape_cast %49 : vector<1x14x6xf32> to vector<14x6xf32>
      %cst_19 = arith.constant dense<0.000000e+00> : vector<14x256xf32>
      %51 = tpu.matmul %50, %48, %cst_19 {dimension_numbers = #tpu.dot_dimension_numbers<[1], [0], [0], [1], [0, 0, 1, 1], [], []>} : vector<14x6xf32>, vector<6x256xf32>, vector<14x256xf32> -> vector<14x256xf32>
      %52 = arith.addf %41, %51 : vector<14x256xf32>
      %c1_i32_20 = arith.constant 1 : i32
      %53 = tpu.dynamic_rotate %25 by %c1_i32_20 dim 1 : vector<6x256xf32>, i32 -> vector<6x256xf32>
      %54 = vector.broadcast %6 : vector<1x256xf32> to vector<6x256xf32>
      %55 = arith.mulf %54, %53 : vector<6x256xf32>
      %c241_i32_21 = arith.constant 241 : i32
      %56 = tpu.dynamic_rotate %25 by %c241_i32_21 dim 1 : vector<6x256xf32>, i32 -> vector<6x256xf32>
      %57 = vector.broadcast %12 : vector<1x256xf32> to vector<6x256xf32>
      %58 = arith.mulf %57, %56 : vector<6x256xf32>
      %59 = arith.addf %55, %58 : vector<6x256xf32>
      %c3 = arith.constant 3 : index
      %c0_22 = arith.constant 0 : index
      %c0_23 = arith.constant 0 : index
      %60 = vector.load %arg2[%c3, %c0_22, %c0_23] : memref<9x14x6xf32, #tpu.memory_space<vmem>>, vector<1x14x6xf32>
      %61 = vector.shape_cast %60 : vector<1x14x6xf32> to vector<14x6xf32>
      %cst_24 = arith.constant dense<0.000000e+00> : vector<14x256xf32>
      %62 = tpu.matmul %61, %59, %cst_24 {dimension_numbers = #tpu.dot_dimension_numbers<[1], [0], [0], [1], [0, 0, 1, 1], [], []>} : vector<14x6xf32>, vector<6x256xf32>, vector<14x256xf32> -> vector<14x256xf32>
      %63 = arith.addf %52, %62 : vector<14x256xf32>
      %c4 = arith.constant 4 : index
      %c0_25 = arith.constant 0 : index
      %c0_26 = arith.constant 0 : index
      %64 = vector.load %arg2[%c4, %c0_25, %c0_26] : memref<9x14x6xf32, #tpu.memory_space<vmem>>, vector<1x14x6xf32>
      %65 = vector.shape_cast %64 : vector<1x14x6xf32> to vector<14x6xf32>
      %cst_27 = arith.constant dense<0.000000e+00> : vector<14x256xf32>
      %66 = tpu.matmul %65, %25, %cst_27 {dimension_numbers = #tpu.dot_dimension_numbers<[1], [0], [0], [1], [0, 0, 1, 1], [], []>} : vector<14x6xf32>, vector<6x256xf32>, vector<14x256xf32> -> vector<14x256xf32>
      %67 = arith.addf %63, %66 : vector<14x256xf32>
      %c255_i32_28 = arith.constant 255 : i32
      %68 = tpu.dynamic_rotate %25 by %c255_i32_28 dim 1 : vector<6x256xf32>, i32 -> vector<6x256xf32>
      %69 = vector.broadcast %10 : vector<1x256xf32> to vector<6x256xf32>
      %70 = arith.mulf %69, %68 : vector<6x256xf32>
      %c15_i32_29 = arith.constant 15 : i32
      %71 = tpu.dynamic_rotate %25 by %c15_i32_29 dim 1 : vector<6x256xf32>, i32 -> vector<6x256xf32>
      %72 = vector.broadcast %14 : vector<1x256xf32> to vector<6x256xf32>
      %73 = arith.mulf %72, %71 : vector<6x256xf32>
      %74 = arith.addf %70, %73 : vector<6x256xf32>
      %c5 = arith.constant 5 : index
      %c0_30 = arith.constant 0 : index
      %c0_31 = arith.constant 0 : index
      %75 = vector.load %arg2[%c5, %c0_30, %c0_31] : memref<9x14x6xf32, #tpu.memory_space<vmem>>, vector<1x14x6xf32>
      %76 = vector.shape_cast %75 : vector<1x14x6xf32> to vector<14x6xf32>
      %cst_32 = arith.constant dense<0.000000e+00> : vector<14x256xf32>
      %77 = tpu.matmul %76, %74, %cst_32 {dimension_numbers = #tpu.dot_dimension_numbers<[1], [0], [0], [1], [0, 0, 1, 1], [], []>} : vector<14x6xf32>, vector<6x256xf32>, vector<14x256xf32> -> vector<14x256xf32>
      %78 = arith.addf %67, %77 : vector<14x256xf32>
      %c240_i32 = arith.constant 240 : i32
      %79 = tpu.dynamic_rotate %25 by %c240_i32 dim 1 : vector<6x256xf32>, i32 -> vector<6x256xf32>
      %c1_i32_33 = arith.constant 1 : i32
      %80 = tpu.dynamic_rotate %79 by %c1_i32_33 dim 1 : vector<6x256xf32>, i32 -> vector<6x256xf32>
      %81 = vector.broadcast %6 : vector<1x256xf32> to vector<6x256xf32>
      %82 = arith.mulf %81, %80 : vector<6x256xf32>
      %c241_i32_34 = arith.constant 241 : i32
      %83 = tpu.dynamic_rotate %79 by %c241_i32_34 dim 1 : vector<6x256xf32>, i32 -> vector<6x256xf32>
      %84 = vector.broadcast %12 : vector<1x256xf32> to vector<6x256xf32>
      %85 = arith.mulf %84, %83 : vector<6x256xf32>
      %86 = arith.addf %82, %85 : vector<6x256xf32>
      %c6 = arith.constant 6 : index
      %c0_35 = arith.constant 0 : index
      %c0_36 = arith.constant 0 : index
      %87 = vector.load %arg2[%c6, %c0_35, %c0_36] : memref<9x14x6xf32, #tpu.memory_space<vmem>>, vector<1x14x6xf32>
      %88 = vector.shape_cast %87 : vector<1x14x6xf32> to vector<14x6xf32>
      %cst_37 = arith.constant dense<0.000000e+00> : vector<14x256xf32>
      %89 = tpu.matmul %88, %86, %cst_37 {dimension_numbers = #tpu.dot_dimension_numbers<[1], [0], [0], [1], [0, 0, 1, 1], [], []>} : vector<14x6xf32>, vector<6x256xf32>, vector<14x256xf32> -> vector<14x256xf32>
      %90 = arith.addf %78, %89 : vector<14x256xf32>
      %c7 = arith.constant 7 : index
      %c0_38 = arith.constant 0 : index
      %c0_39 = arith.constant 0 : index
      %91 = vector.load %arg2[%c7, %c0_38, %c0_39] : memref<9x14x6xf32, #tpu.memory_space<vmem>>, vector<1x14x6xf32>
      %92 = vector.shape_cast %91 : vector<1x14x6xf32> to vector<14x6xf32>
      %cst_40 = arith.constant dense<0.000000e+00> : vector<14x256xf32>
      %93 = tpu.matmul %92, %79, %cst_40 {dimension_numbers = #tpu.dot_dimension_numbers<[1], [0], [0], [1], [0, 0, 1, 1], [], []>} : vector<14x6xf32>, vector<6x256xf32>, vector<14x256xf32> -> vector<14x256xf32>
      %94 = arith.addf %90, %93 : vector<14x256xf32>
      %c255_i32_41 = arith.constant 255 : i32
      %95 = tpu.dynamic_rotate %79 by %c255_i32_41 dim 1 : vector<6x256xf32>, i32 -> vector<6x256xf32>
      %96 = vector.broadcast %10 : vector<1x256xf32> to vector<6x256xf32>
      %97 = arith.mulf %96, %95 : vector<6x256xf32>
      %c15_i32_42 = arith.constant 15 : i32
      %98 = tpu.dynamic_rotate %79 by %c15_i32_42 dim 1 : vector<6x256xf32>, i32 -> vector<6x256xf32>
      %99 = vector.broadcast %14 : vector<1x256xf32> to vector<6x256xf32>
      %100 = arith.mulf %99, %98 : vector<6x256xf32>
      %101 = arith.addf %97, %100 : vector<6x256xf32>
      %c8 = arith.constant 8 : index
      %c0_43 = arith.constant 0 : index
      %c0_44 = arith.constant 0 : index
      %102 = vector.load %arg2[%c8, %c0_43, %c0_44] : memref<9x14x6xf32, #tpu.memory_space<vmem>>, vector<1x14x6xf32>
      %103 = vector.shape_cast %102 : vector<1x14x6xf32> to vector<14x6xf32>
      %cst_45 = arith.constant dense<0.000000e+00> : vector<14x256xf32>
      %104 = tpu.matmul %103, %101, %cst_45 {dimension_numbers = #tpu.dot_dimension_numbers<[1], [0], [0], [1], [0, 0, 1, 1], [], []>} : vector<14x6xf32>, vector<6x256xf32>, vector<14x256xf32> -> vector<14x256xf32>
      %105 = arith.addf %94, %104 : vector<14x256xf32>
      %106 = vector.broadcast %26 : vector<14x1xf32> to vector<14x256xf32>
      %107 = arith.addf %105, %106 : vector<14x256xf32>
      %c0_46 = arith.constant 0 : index
      %c0_47 = arith.constant 0 : index
      %c0_48 = arith.constant 0 : index
      %108 = vector.load %arg4[%c0_46, %c0_47, %c0_48] : memref<5x14x1xf32, #tpu.memory_space<vmem>>, vector<1x14x1xf32>
      %109 = vector.shape_cast %108 : vector<1x14x1xf32> to vector<14x1xf32>
      %c0_49 = arith.constant 0 : index
      %c0_50 = arith.constant 0 : index
      %c0_51 = arith.constant 0 : index
      %110 = vector.load %arg5[%c0_49, %c0_50, %c0_51] : memref<5x14x1xf32, #tpu.memory_space<vmem>>, vector<1x14x1xf32>
      %111 = vector.shape_cast %110 : vector<1x14x1xf32> to vector<14x1xf32>
      %cst_52 = arith.constant dense<0.000000e+00> : vector<14xf32>
      %112 = vector.multi_reduction <add>, %107, %cst_52 [1] : vector<14x256xf32> to vector<14xf32>
      %113 = vector.shape_cast %112 : vector<14xf32> to vector<14x1xf32>
      %114 = arith.mulf %107, %107 : vector<14x256xf32>
      %cst_53 = arith.constant dense<0.000000e+00> : vector<14xf32>
      %115 = vector.multi_reduction <add>, %114, %cst_53 [1] : vector<14x256xf32> to vector<14xf32>
      %116 = vector.shape_cast %115 : vector<14xf32> to vector<14x1xf32>
      %117 = arith.mulf %113, %19 : vector<14x1xf32>
      %118 = vector.shape_cast %117 : vector<14x1xf32> to vector<1x14x1xf32>
      %cst_54 = arith.constant dense<0.000000e+00> : vector<1xf32>
      %119 = vector.multi_reduction <add>, %118, %cst_54 [1, 2] : vector<1x14x1xf32> to vector<1xf32>
      %120 = vector.shape_cast %119 : vector<1xf32> to vector<1x1x1xf32>
      %121 = vector.extract %120[0, 0, 0] : f32 from vector<1x1x1xf32>
      %cst_55 = arith.constant 5.58035739E-4 : f32
      %122 = arith.mulf %121, %cst_55 : f32
      %123 = arith.mulf %113, %21 : vector<14x1xf32>
      %124 = vector.shape_cast %123 : vector<14x1xf32> to vector<1x14x1xf32>
      %cst_56 = arith.constant dense<0.000000e+00> : vector<1xf32>
      %125 = vector.multi_reduction <add>, %124, %cst_56 [1, 2] : vector<1x14x1xf32> to vector<1xf32>
      %126 = vector.shape_cast %125 : vector<1xf32> to vector<1x1x1xf32>
      %127 = vector.extract %126[0, 0, 0] : f32 from vector<1x1x1xf32>
      %cst_57 = arith.constant 5.58035739E-4 : f32
      %128 = arith.mulf %127, %cst_57 : f32
      %129 = arith.mulf %116, %19 : vector<14x1xf32>
      %130 = vector.shape_cast %129 : vector<14x1xf32> to vector<1x14x1xf32>
      %cst_58 = arith.constant dense<0.000000e+00> : vector<1xf32>
      %131 = vector.multi_reduction <add>, %130, %cst_58 [1, 2] : vector<1x14x1xf32> to vector<1xf32>
      %132 = vector.shape_cast %131 : vector<1xf32> to vector<1x1x1xf32>
      %133 = vector.extract %132[0, 0, 0] : f32 from vector<1x1x1xf32>
      %cst_59 = arith.constant 5.58035739E-4 : f32
      %134 = arith.mulf %133, %cst_59 : f32
      %135 = arith.mulf %122, %122 : f32
      %136 = arith.subf %134, %135 : f32
      %cst_60 = arith.constant 0.000000e+00 : f32
      %137 = arith.maximumf %136, %cst_60 : f32
      %138 = arith.mulf %116, %21 : vector<14x1xf32>
      %139 = vector.shape_cast %138 : vector<14x1xf32> to vector<1x14x1xf32>
      %cst_61 = arith.constant dense<0.000000e+00> : vector<1xf32>
      %140 = vector.multi_reduction <add>, %139, %cst_61 [1, 2] : vector<1x14x1xf32> to vector<1xf32>
      %141 = vector.shape_cast %140 : vector<1xf32> to vector<1x1x1xf32>
      %142 = vector.extract %141[0, 0, 0] : f32 from vector<1x1x1xf32>
      %cst_62 = arith.constant 5.58035739E-4 : f32
      %143 = arith.mulf %142, %cst_62 : f32
      %144 = arith.mulf %128, %128 : f32
      %145 = arith.subf %143, %144 : f32
      %cst_63 = arith.constant 0.000000e+00 : f32
      %146 = arith.maximumf %145, %cst_63 : f32
      %147 = vector.broadcast %122 : f32 to vector<14x1xf32>
      %148 = arith.mulf %19, %147 : vector<14x1xf32>
      %149 = vector.broadcast %128 : f32 to vector<14x1xf32>
      %150 = arith.mulf %21, %149 : vector<14x1xf32>
      %151 = arith.addf %148, %150 : vector<14x1xf32>
      %cst_64 = arith.constant 9.99999974E-6 : f32
      %152 = arith.addf %137, %cst_64 : f32
      %153 = math.rsqrt %152 : f32
      %154 = vector.broadcast %153 : f32 to vector<14x1xf32>
      %155 = arith.mulf %19, %154 : vector<14x1xf32>
      %cst_65 = arith.constant 9.99999974E-6 : f32
      %156 = arith.addf %146, %cst_65 : f32
      %157 = math.rsqrt %156 : f32
      %158 = vector.broadcast %157 : f32 to vector<14x1xf32>
      %159 = arith.mulf %21, %158 : vector<14x1xf32>
      %160 = arith.addf %155, %159 : vector<14x1xf32>
      %161 = vector.broadcast %151 : vector<14x1xf32> to vector<14x256xf32>
      %162 = arith.subf %107, %161 : vector<14x256xf32>
      %163 = vector.broadcast %160 : vector<14x1xf32> to vector<14x256xf32>
      %164 = arith.mulf %162, %163 : vector<14x256xf32>
      %165 = vector.broadcast %109 : vector<14x1xf32> to vector<14x256xf32>
      %166 = arith.mulf %164, %165 : vector<14x256xf32>
      %167 = vector.broadcast %111 : vector<14x1xf32> to vector<14x256xf32>
      %168 = arith.addf %166, %167 : vector<14x256xf32>
      %cst_66 = arith.constant 5.000000e-01 : f32
      %169 = vector.broadcast %cst_66 : f32 to vector<14x256xf32>
      %170 = arith.mulf %169, %168 : vector<14x256xf32>
      %cst_67 = arith.constant 0.707106769 : f32
      %171 = vector.broadcast %cst_67 : f32 to vector<14x256xf32>
      %172 = arith.mulf %168, %171 : vector<14x256xf32>
      %173 = math.absf %172 : vector<14x256xf32>
      %cst_68 = arith.constant 0.327591091 : f32
      %174 = vector.broadcast %cst_68 : f32 to vector<14x256xf32>
      %175 = arith.mulf %174, %173 : vector<14x256xf32>
      %cst_69 = arith.constant 1.000000e+00 : f32
      %176 = vector.broadcast %cst_69 : f32 to vector<14x256xf32>
      %177 = arith.addf %176, %175 : vector<14x256xf32>
      %cst_70 = arith.constant 1.000000e+00 : f32
      %178 = vector.broadcast %cst_70 : f32 to vector<14x256xf32>
      %179 = arith.divf %178, %177 : vector<14x256xf32>
      %cst_71 = arith.constant 1.06140542 : f32
      %180 = vector.broadcast %cst_71 : f32 to vector<14x256xf32>
      %181 = arith.mulf %180, %179 : vector<14x256xf32>
      %cst_72 = arith.constant -1.45315206 : f32
      %182 = vector.broadcast %cst_72 : f32 to vector<14x256xf32>
      %183 = arith.addf %181, %182 : vector<14x256xf32>
      %184 = arith.mulf %183, %179 : vector<14x256xf32>
      %cst_73 = arith.constant 1.42141378 : f32
      %185 = vector.broadcast %cst_73 : f32 to vector<14x256xf32>
      %186 = arith.addf %184, %185 : vector<14x256xf32>
      %187 = arith.mulf %186, %179 : vector<14x256xf32>
      %cst_74 = arith.constant -0.284496725 : f32
      %188 = vector.broadcast %cst_74 : f32 to vector<14x256xf32>
      %189 = arith.addf %187, %188 : vector<14x256xf32>
      %190 = arith.mulf %189, %179 : vector<14x256xf32>
      %cst_75 = arith.constant 0.254829586 : f32
      %191 = vector.broadcast %cst_75 : f32 to vector<14x256xf32>
      %192 = arith.addf %190, %191 : vector<14x256xf32>
      %193 = arith.mulf %192, %179 : vector<14x256xf32>
      %cst_76 = arith.constant 0.000000e+00 : f32
      %194 = vector.broadcast %cst_76 : f32 to vector<14x256xf32>
      %195 = arith.cmpf ogt, %172, %194 : vector<14x256xf32>
      %cst_77 = arith.constant 0.000000e+00 : f32
      %196 = vector.broadcast %cst_77 : f32 to vector<14x256xf32>
      %197 = arith.cmpf olt, %172, %196 : vector<14x256xf32>
      %cst_78 = arith.constant -1.000000e+00 : f32
      %cst_79 = arith.constant 0.000000e+00 : f32
      %198 = vector.broadcast %cst_78 : f32 to vector<14x256xf32>
      %199 = vector.broadcast %cst_79 : f32 to vector<14x256xf32>
      %200 = arith.select %197, %198, %199 : vector<14x256xi1>, vector<14x256xf32>
      %cst_80 = arith.constant 1.000000e+00 : f32
      %201 = vector.broadcast %cst_80 : f32 to vector<14x256xf32>
      %202 = arith.select %195, %201, %200 : vector<14x256xi1>, vector<14x256xf32>
      %cst_81 = arith.constant 0.000000e+00 : f32
      %203 = vector.broadcast %cst_81 : f32 to vector<14x256xf32>
      %204 = arith.subf %203, %173 : vector<14x256xf32>
      %205 = arith.mulf %204, %173 : vector<14x256xf32>
      %206 = math.exp %205 : vector<14x256xf32>
      %207 = arith.mulf %193, %206 : vector<14x256xf32>
      %cst_82 = arith.constant 1.000000e+00 : f32
      %208 = vector.broadcast %cst_82 : f32 to vector<14x256xf32>
      %209 = arith.subf %208, %207 : vector<14x256xf32>
      %210 = arith.mulf %202, %209 : vector<14x256xf32>
      %cst_83 = arith.constant 1.000000e+00 : f32
      %211 = vector.broadcast %cst_83 : f32 to vector<14x256xf32>
      %212 = arith.addf %211, %210 : vector<14x256xf32>
      %213 = arith.mulf %170, %212 : vector<14x256xf32>
      %c1_84 = arith.constant 1 : index
      %c0_85 = arith.constant 0 : index
      %c0_86 = arith.constant 0 : index
      %214 = vector.load %arg4[%c1_84, %c0_85, %c0_86] : memref<5x14x1xf32, #tpu.memory_space<vmem>>, vector<1x14x1xf32>
      %215 = vector.shape_cast %214 : vector<1x14x1xf32> to vector<14x1xf32>
      %c1_87 = arith.constant 1 : index
      %c0_88 = arith.constant 0 : index
      %c0_89 = arith.constant 0 : index
      %216 = vector.load %arg5[%c1_87, %c0_88, %c0_89] : memref<5x14x1xf32, #tpu.memory_space<vmem>>, vector<1x14x1xf32>
      %217 = vector.shape_cast %216 : vector<1x14x1xf32> to vector<14x1xf32>
      %cst_90 = arith.constant dense<0.000000e+00> : vector<14xf32>
      %218 = vector.multi_reduction <add>, %213, %cst_90 [1] : vector<14x256xf32> to vector<14xf32>
      %219 = vector.shape_cast %218 : vector<14xf32> to vector<14x1xf32>
      %220 = arith.mulf %213, %213 : vector<14x256xf32>
      %cst_91 = arith.constant dense<0.000000e+00> : vector<14xf32>
      %221 = vector.multi_reduction <add>, %220, %cst_91 [1] : vector<14x256xf32> to vector<14xf32>
      %222 = vector.shape_cast %221 : vector<14xf32> to vector<14x1xf32>
      %223 = arith.mulf %219, %19 : vector<14x1xf32>
      %224 = vector.shape_cast %223 : vector<14x1xf32> to vector<1x14x1xf32>
      %cst_92 = arith.constant dense<0.000000e+00> : vector<1xf32>
      %225 = vector.multi_reduction <add>, %224, %cst_92 [1, 2] : vector<1x14x1xf32> to vector<1xf32>
      %226 = vector.shape_cast %225 : vector<1xf32> to vector<1x1x1xf32>
      %227 = vector.extract %226[0, 0, 0] : f32 from vector<1x1x1xf32>
      %cst_93 = arith.constant 5.58035739E-4 : f32
      %228 = arith.mulf %227, %cst_93 : f32
      %229 = arith.mulf %219, %21 : vector<14x1xf32>
      %230 = vector.shape_cast %229 : vector<14x1xf32> to vector<1x14x1xf32>
      %cst_94 = arith.constant dense<0.000000e+00> : vector<1xf32>
      %231 = vector.multi_reduction <add>, %230, %cst_94 [1, 2] : vector<1x14x1xf32> to vector<1xf32>
      %232 = vector.shape_cast %231 : vector<1xf32> to vector<1x1x1xf32>
      %233 = vector.extract %232[0, 0, 0] : f32 from vector<1x1x1xf32>
      %cst_95 = arith.constant 5.58035739E-4 : f32
      %234 = arith.mulf %233, %cst_95 : f32
      %235 = arith.mulf %222, %19 : vector<14x1xf32>
      %236 = vector.shape_cast %235 : vector<14x1xf32> to vector<1x14x1xf32>
      %cst_96 = arith.constant dense<0.000000e+00> : vector<1xf32>
      %237 = vector.multi_reduction <add>, %236, %cst_96 [1, 2] : vector<1x14x1xf32> to vector<1xf32>
      %238 = vector.shape_cast %237 : vector<1xf32> to vector<1x1x1xf32>
      %239 = vector.extract %238[0, 0, 0] : f32 from vector<1x1x1xf32>
      %cst_97 = arith.constant 5.58035739E-4 : f32
      %240 = arith.mulf %239, %cst_97 : f32
      %241 = arith.mulf %228, %228 : f32
      %242 = arith.subf %240, %241 : f32
      %cst_98 = arith.constant 0.000000e+00 : f32
      %243 = arith.maximumf %242, %cst_98 : f32
      %244 = arith.mulf %222, %21 : vector<14x1xf32>
      %245 = vector.shape_cast %244 : vector<14x1xf32> to vector<1x14x1xf32>
      %cst_99 = arith.constant dense<0.000000e+00> : vector<1xf32>
      %246 = vector.multi_reduction <add>, %245, %cst_99 [1, 2] : vector<1x14x1xf32> to vector<1xf32>
      %247 = vector.shape_cast %246 : vector<1xf32> to vector<1x1x1xf32>
      %248 = vector.extract %247[0, 0, 0] : f32 from vector<1x1x1xf32>
      %cst_100 = arith.constant 5.58035739E-4 : f32
      %249 = arith.mulf %248, %cst_100 : f32
      %250 = arith.mulf %234, %234 : f32
      %251 = arith.subf %249, %250 : f32
      %cst_101 = arith.constant 0.000000e+00 : f32
      %252 = arith.maximumf %251, %cst_101 : f32
      %253 = vector.broadcast %228 : f32 to vector<14x1xf32>
      %254 = arith.mulf %19, %253 : vector<14x1xf32>
      %255 = vector.broadcast %234 : f32 to vector<14x1xf32>
      %256 = arith.mulf %21, %255 : vector<14x1xf32>
      %257 = arith.addf %254, %256 : vector<14x1xf32>
      %cst_102 = arith.constant 9.99999974E-6 : f32
      %258 = arith.addf %243, %cst_102 : f32
      %259 = math.rsqrt %258 : f32
      %260 = vector.broadcast %259 : f32 to vector<14x1xf32>
      %261 = arith.mulf %19, %260 : vector<14x1xf32>
      %cst_103 = arith.constant 9.99999974E-6 : f32
      %262 = arith.addf %252, %cst_103 : f32
      %263 = math.rsqrt %262 : f32
      %264 = vector.broadcast %263 : f32 to vector<14x1xf32>
      %265 = arith.mulf %21, %264 : vector<14x1xf32>
      %266 = arith.addf %261, %265 : vector<14x1xf32>
      %267 = vector.broadcast %257 : vector<14x1xf32> to vector<14x256xf32>
      %268 = arith.subf %213, %267 : vector<14x256xf32>
      %269 = vector.broadcast %266 : vector<14x1xf32> to vector<14x256xf32>
      %270 = arith.mulf %268, %269 : vector<14x256xf32>
      %271 = vector.broadcast %215 : vector<14x1xf32> to vector<14x256xf32>
      %272 = arith.mulf %270, %271 : vector<14x256xf32>
      %273 = vector.broadcast %217 : vector<14x1xf32> to vector<14x256xf32>
      %274 = arith.addf %272, %273 : vector<14x256xf32>
      %275 = arith.negf %274 : vector<14x256xf32>
      %276 = math.exp %275 : vector<14x256xf32>
      %cst_104 = arith.constant 1.000000e+00 : f32
      %277 = vector.broadcast %cst_104 : f32 to vector<14x256xf32>
      %278 = arith.addf %277, %276 : vector<14x256xf32>
      %279 = arith.divf %277, %278 : vector<14x256xf32>
      %280 = arith.mulf %274, %279 : vector<14x256xf32>
      %c0_105 = arith.constant 0 : index
      %c0_106 = arith.constant 0 : index
      %c0_107 = arith.constant 0 : index
      %281 = vector.load %arg7[%c0_105, %c0_106, %c0_107] : memref<4x14x1xf32, #tpu.memory_space<vmem>>, vector<1x14x1xf32>
      %282 = vector.shape_cast %281 : vector<1x14x1xf32> to vector<14x1xf32>
      %c16_i32_108 = arith.constant 16 : i32
      %283 = tpu.dynamic_rotate %280 by %c16_i32_108 dim 1 : vector<14x256xf32>, i32 -> vector<14x256xf32>
      %c1_i32_109 = arith.constant 1 : i32
      %284 = tpu.dynamic_rotate %283 by %c1_i32_109 dim 1 : vector<14x256xf32>, i32 -> vector<14x256xf32>
      %285 = vector.broadcast %6 : vector<1x256xf32> to vector<14x256xf32>
      %286 = arith.mulf %285, %284 : vector<14x256xf32>
      %c241_i32_110 = arith.constant 241 : i32
      %287 = tpu.dynamic_rotate %283 by %c241_i32_110 dim 1 : vector<14x256xf32>, i32 -> vector<14x256xf32>
      %288 = vector.broadcast %12 : vector<1x256xf32> to vector<14x256xf32>
      %289 = arith.mulf %288, %287 : vector<14x256xf32>
      %290 = arith.addf %286, %289 : vector<14x256xf32>
      %c0_111 = arith.constant 0 : index
      %c0_112 = arith.constant 0 : index
      %c0_113 = arith.constant 0 : index
      %c0_114 = arith.constant 0 : index
      %291 = vector.load %arg6[%c0_111, %c0_112, %c0_113, %c0_114] : memref<4x9x14x14xf32, #tpu.memory_space<vmem>>, vector<1x1x14x14xf32>
      %292 = vector.shape_cast %291 : vector<1x1x14x14xf32> to vector<14x14xf32>
      %cst_115 = arith.constant dense<0.000000e+00> : vector<14x256xf32>
      %293 = tpu.matmul %292, %290, %cst_115 {dimension_numbers = #tpu.dot_dimension_numbers<[1], [0], [0], [1], [0, 0, 1, 1], [], []>} : vector<14x14xf32>, vector<14x256xf32>, vector<14x256xf32> -> vector<14x256xf32>
      %c0_116 = arith.constant 0 : index
      %c1_117 = arith.constant 1 : index
      %c0_118 = arith.constant 0 : index
      %c0_119 = arith.constant 0 : index
      %294 = vector.load %arg6[%c0_116, %c1_117, %c0_118, %c0_119] : memref<4x9x14x14xf32, #tpu.memory_space<vmem>>, vector<1x1x14x14xf32>
      %295 = vector.shape_cast %294 : vector<1x1x14x14xf32> to vector<14x14xf32>
      %cst_120 = arith.constant dense<0.000000e+00> : vector<14x256xf32>
      %296 = tpu.matmul %295, %283, %cst_120 {dimension_numbers = #tpu.dot_dimension_numbers<[1], [0], [0], [1], [0, 0, 1, 1], [], []>} : vector<14x14xf32>, vector<14x256xf32>, vector<14x256xf32> -> vector<14x256xf32>
      %297 = arith.addf %293, %296 : vector<14x256xf32>
      %c255_i32_121 = arith.constant 255 : i32
      %298 = tpu.dynamic_rotate %283 by %c255_i32_121 dim 1 : vector<14x256xf32>, i32 -> vector<14x256xf32>
      %299 = vector.broadcast %10 : vector<1x256xf32> to vector<14x256xf32>
      %300 = arith.mulf %299, %298 : vector<14x256xf32>
      %c15_i32_122 = arith.constant 15 : i32
      %301 = tpu.dynamic_rotate %283 by %c15_i32_122 dim 1 : vector<14x256xf32>, i32 -> vector<14x256xf32>
      %302 = vector.broadcast %14 : vector<1x256xf32> to vector<14x256xf32>
      %303 = arith.mulf %302, %301 : vector<14x256xf32>
      %304 = arith.addf %300, %303 : vector<14x256xf32>
      %c0_123 = arith.constant 0 : index
      %c2_124 = arith.constant 2 : index
      %c0_125 = arith.constant 0 : index
      %c0_126 = arith.constant 0 : index
      %305 = vector.load %arg6[%c0_123, %c2_124, %c0_125, %c0_126] : memref<4x9x14x14xf32, #tpu.memory_space<vmem>>, vector<1x1x14x14xf32>
      %306 = vector.shape_cast %305 : vector<1x1x14x14xf32> to vector<14x14xf32>
      %cst_127 = arith.constant dense<0.000000e+00> : vector<14x256xf32>
      %307 = tpu.matmul %306, %304, %cst_127 {dimension_numbers = #tpu.dot_dimension_numbers<[1], [0], [0], [1], [0, 0, 1, 1], [], []>} : vector<14x14xf32>, vector<14x256xf32>, vector<14x256xf32> -> vector<14x256xf32>
      %308 = arith.addf %297, %307 : vector<14x256xf32>
      %c1_i32_128 = arith.constant 1 : i32
      %309 = tpu.dynamic_rotate %280 by %c1_i32_128 dim 1 : vector<14x256xf32>, i32 -> vector<14x256xf32>
      %310 = vector.broadcast %6 : vector<1x256xf32> to vector<14x256xf32>
      %311 = arith.mulf %310, %309 : vector<14x256xf32>
      %c241_i32_129 = arith.constant 241 : i32
      %312 = tpu.dynamic_rotate %280 by %c241_i32_129 dim 1 : vector<14x256xf32>, i32 -> vector<14x256xf32>
      %313 = vector.broadcast %12 : vector<1x256xf32> to vector<14x256xf32>
      %314 = arith.mulf %313, %312 : vector<14x256xf32>
      %315 = arith.addf %311, %314 : vector<14x256xf32>
      %c0_130 = arith.constant 0 : index
      %c3_131 = arith.constant 3 : index
      %c0_132 = arith.constant 0 : index
      %c0_133 = arith.constant 0 : index
      %316 = vector.load %arg6[%c0_130, %c3_131, %c0_132, %c0_133] : memref<4x9x14x14xf32, #tpu.memory_space<vmem>>, vector<1x1x14x14xf32>
      %317 = vector.shape_cast %316 : vector<1x1x14x14xf32> to vector<14x14xf32>
      %cst_134 = arith.constant dense<0.000000e+00> : vector<14x256xf32>
      %318 = tpu.matmul %317, %315, %cst_134 {dimension_numbers = #tpu.dot_dimension_numbers<[1], [0], [0], [1], [0, 0, 1, 1], [], []>} : vector<14x14xf32>, vector<14x256xf32>, vector<14x256xf32> -> vector<14x256xf32>
      %319 = arith.addf %308, %318 : vector<14x256xf32>
      %c0_135 = arith.constant 0 : index
      %c4_136 = arith.constant 4 : index
      %c0_137 = arith.constant 0 : index
      %c0_138 = arith.constant 0 : index
      %320 = vector.load %arg6[%c0_135, %c4_136, %c0_137, %c0_138] : memref<4x9x14x14xf32, #tpu.memory_space<vmem>>, vector<1x1x14x14xf32>
      %321 = vector.shape_cast %320 : vector<1x1x14x14xf32> to vector<14x14xf32>
      %cst_139 = arith.constant dense<0.000000e+00> : vector<14x256xf32>
      %322 = tpu.matmul %321, %280, %cst_139 {dimension_numbers = #tpu.dot_dimension_numbers<[1], [0], [0], [1], [0, 0, 1, 1], [], []>} : vector<14x14xf32>, vector<14x256xf32>, vector<14x256xf32> -> vector<14x256xf32>
      %323 = arith.addf %319, %322 : vector<14x256xf32>
      %c255_i32_140 = arith.constant 255 : i32
      %324 = tpu.dynamic_rotate %280 by %c255_i32_140 dim 1 : vector<14x256xf32>, i32 -> vector<14x256xf32>
      %325 = vector.broadcast %10 : vector<1x256xf32> to vector<14x256xf32>
      %326 = arith.mulf %325, %324 : vector<14x256xf32>
      %c15_i32_141 = arith.constant 15 : i32
      %327 = tpu.dynamic_rotate %280 by %c15_i32_141 dim 1 : vector<14x256xf32>, i32 -> vector<14x256xf32>
      %328 = vector.broadcast %14 : vector<1x256xf32> to vector<14x256xf32>
      %329 = arith.mulf %328, %327 : vector<14x256xf32>
      %330 = arith.addf %326, %329 : vector<14x256xf32>
      %c0_142 = arith.constant 0 : index
      %c5_143 = arith.constant 5 : index
      %c0_144 = arith.constant 0 : index
      %c0_145 = arith.constant 0 : index
      %331 = vector.load %arg6[%c0_142, %c5_143, %c0_144, %c0_145] : memref<4x9x14x14xf32, #tpu.memory_space<vmem>>, vector<1x1x14x14xf32>
      %332 = vector.shape_cast %331 : vector<1x1x14x14xf32> to vector<14x14xf32>
      %cst_146 = arith.constant dense<0.000000e+00> : vector<14x256xf32>
      %333 = tpu.matmul %332, %330, %cst_146 {dimension_numbers = #tpu.dot_dimension_numbers<[1], [0], [0], [1], [0, 0, 1, 1], [], []>} : vector<14x14xf32>, vector<14x256xf32>, vector<14x256xf32> -> vector<14x256xf32>
      %334 = arith.addf %323, %333 : vector<14x256xf32>
      %c240_i32_147 = arith.constant 240 : i32
      %335 = tpu.dynamic_rotate %280 by %c240_i32_147 dim 1 : vector<14x256xf32>, i32 -> vector<14x256xf32>
      %c1_i32_148 = arith.constant 1 : i32
      %336 = tpu.dynamic_rotate %335 by %c1_i32_148 dim 1 : vector<14x256xf32>, i32 -> vector<14x256xf32>
      %337 = vector.broadcast %6 : vector<1x256xf32> to vector<14x256xf32>
      %338 = arith.mulf %337, %336 : vector<14x256xf32>
      %c241_i32_149 = arith.constant 241 : i32
      %339 = tpu.dynamic_rotate %335 by %c241_i32_149 dim 1 : vector<14x256xf32>, i32 -> vector<14x256xf32>
      %340 = vector.broadcast %12 : vector<1x256xf32> to vector<14x256xf32>
      %341 = arith.mulf %340, %339 : vector<14x256xf32>
      %342 = arith.addf %338, %341 : vector<14x256xf32>
      %c0_150 = arith.constant 0 : index
      %c6_151 = arith.constant 6 : index
      %c0_152 = arith.constant 0 : index
      %c0_153 = arith.constant 0 : index
      %343 = vector.load %arg6[%c0_150, %c6_151, %c0_152, %c0_153] : memref<4x9x14x14xf32, #tpu.memory_space<vmem>>, vector<1x1x14x14xf32>
      %344 = vector.shape_cast %343 : vector<1x1x14x14xf32> to vector<14x14xf32>
      %cst_154 = arith.constant dense<0.000000e+00> : vector<14x256xf32>
      %345 = tpu.matmul %344, %342, %cst_154 {dimension_numbers = #tpu.dot_dimension_numbers<[1], [0], [0], [1], [0, 0, 1, 1], [], []>} : vector<14x14xf32>, vector<14x256xf32>, vector<14x256xf32> -> vector<14x256xf32>
      %346 = arith.addf %334, %345 : vector<14x256xf32>
      %c0_155 = arith.constant 0 : index
      %c7_156 = arith.constant 7 : index
      %c0_157 = arith.constant 0 : index
      %c0_158 = arith.constant 0 : index
      %347 = vector.load %arg6[%c0_155, %c7_156, %c0_157, %c0_158] : memref<4x9x14x14xf32, #tpu.memory_space<vmem>>, vector<1x1x14x14xf32>
      %348 = vector.shape_cast %347 : vector<1x1x14x14xf32> to vector<14x14xf32>
      %cst_159 = arith.constant dense<0.000000e+00> : vector<14x256xf32>
      %349 = tpu.matmul %348, %335, %cst_159 {dimension_numbers = #tpu.dot_dimension_numbers<[1], [0], [0], [1], [0, 0, 1, 1], [], []>} : vector<14x14xf32>, vector<14x256xf32>, vector<14x256xf32> -> vector<14x256xf32>
      %350 = arith.addf %346, %349 : vector<14x256xf32>
      %c255_i32_160 = arith.constant 255 : i32
      %351 = tpu.dynamic_rotate %335 by %c255_i32_160 dim 1 : vector<14x256xf32>, i32 -> vector<14x256xf32>
      %352 = vector.broadcast %10 : vector<1x256xf32> to vector<14x256xf32>
      %353 = arith.mulf %352, %351 : vector<14x256xf32>
      %c15_i32_161 = arith.constant 15 : i32
      %354 = tpu.dynamic_rotate %335 by %c15_i32_161 dim 1 : vector<14x256xf32>, i32 -> vector<14x256xf32>
      %355 = vector.broadcast %14 : vector<1x256xf32> to vector<14x256xf32>
      %356 = arith.mulf %355, %354 : vector<14x256xf32>
      %357 = arith.addf %353, %356 : vector<14x256xf32>
      %c0_162 = arith.constant 0 : index
      %c8_163 = arith.constant 8 : index
      %c0_164 = arith.constant 0 : index
      %c0_165 = arith.constant 0 : index
      %358 = vector.load %arg6[%c0_162, %c8_163, %c0_164, %c0_165] : memref<4x9x14x14xf32, #tpu.memory_space<vmem>>, vector<1x1x14x14xf32>
      %359 = vector.shape_cast %358 : vector<1x1x14x14xf32> to vector<14x14xf32>
      %cst_166 = arith.constant dense<0.000000e+00> : vector<14x256xf32>
      %360 = tpu.matmul %359, %357, %cst_166 {dimension_numbers = #tpu.dot_dimension_numbers<[1], [0], [0], [1], [0, 0, 1, 1], [], []>} : vector<14x14xf32>, vector<14x256xf32>, vector<14x256xf32> -> vector<14x256xf32>
      %361 = arith.addf %350, %360 : vector<14x256xf32>
      %362 = vector.broadcast %282 : vector<14x1xf32> to vector<14x256xf32>
      %363 = arith.addf %361, %362 : vector<14x256xf32>
      %c2_167 = arith.constant 2 : index
      %c0_168 = arith.constant 0 : index
      %c0_169 = arith.constant 0 : index
      %364 = vector.load %arg4[%c2_167, %c0_168, %c0_169] : memref<5x14x1xf32, #tpu.memory_space<vmem>>, vector<1x14x1xf32>
      %365 = vector.shape_cast %364 : vector<1x14x1xf32> to vector<14x1xf32>
      %c2_170 = arith.constant 2 : index
      %c0_171 = arith.constant 0 : index
      %c0_172 = arith.constant 0 : index
      %366 = vector.load %arg5[%c2_170, %c0_171, %c0_172] : memref<5x14x1xf32, #tpu.memory_space<vmem>>, vector<1x14x1xf32>
      %367 = vector.shape_cast %366 : vector<1x14x1xf32> to vector<14x1xf32>
      %cst_173 = arith.constant dense<0.000000e+00> : vector<14xf32>
      %368 = vector.multi_reduction <add>, %363, %cst_173 [1] : vector<14x256xf32> to vector<14xf32>
      %369 = vector.shape_cast %368 : vector<14xf32> to vector<14x1xf32>
      %370 = arith.mulf %363, %363 : vector<14x256xf32>
      %cst_174 = arith.constant dense<0.000000e+00> : vector<14xf32>
      %371 = vector.multi_reduction <add>, %370, %cst_174 [1] : vector<14x256xf32> to vector<14xf32>
      %372 = vector.shape_cast %371 : vector<14xf32> to vector<14x1xf32>
      %373 = arith.mulf %369, %19 : vector<14x1xf32>
      %374 = vector.shape_cast %373 : vector<14x1xf32> to vector<1x14x1xf32>
      %cst_175 = arith.constant dense<0.000000e+00> : vector<1xf32>
      %375 = vector.multi_reduction <add>, %374, %cst_175 [1, 2] : vector<1x14x1xf32> to vector<1xf32>
      %376 = vector.shape_cast %375 : vector<1xf32> to vector<1x1x1xf32>
      %377 = vector.extract %376[0, 0, 0] : f32 from vector<1x1x1xf32>
      %cst_176 = arith.constant 5.58035739E-4 : f32
      %378 = arith.mulf %377, %cst_176 : f32
      %379 = arith.mulf %369, %21 : vector<14x1xf32>
      %380 = vector.shape_cast %379 : vector<14x1xf32> to vector<1x14x1xf32>
      %cst_177 = arith.constant dense<0.000000e+00> : vector<1xf32>
      %381 = vector.multi_reduction <add>, %380, %cst_177 [1, 2] : vector<1x14x1xf32> to vector<1xf32>
      %382 = vector.shape_cast %381 : vector<1xf32> to vector<1x1x1xf32>
      %383 = vector.extract %382[0, 0, 0] : f32 from vector<1x1x1xf32>
      %cst_178 = arith.constant 5.58035739E-4 : f32
      %384 = arith.mulf %383, %cst_178 : f32
      %385 = arith.mulf %372, %19 : vector<14x1xf32>
      %386 = vector.shape_cast %385 : vector<14x1xf32> to vector<1x14x1xf32>
      %cst_179 = arith.constant dense<0.000000e+00> : vector<1xf32>
      %387 = vector.multi_reduction <add>, %386, %cst_179 [1, 2] : vector<1x14x1xf32> to vector<1xf32>
      %388 = vector.shape_cast %387 : vector<1xf32> to vector<1x1x1xf32>
      %389 = vector.extract %388[0, 0, 0] : f32 from vector<1x1x1xf32>
      %cst_180 = arith.constant 5.58035739E-4 : f32
      %390 = arith.mulf %389, %cst_180 : f32
      %391 = arith.mulf %378, %378 : f32
      %392 = arith.subf %390, %391 : f32
      %cst_181 = arith.constant 0.000000e+00 : f32
      %393 = arith.maximumf %392, %cst_181 : f32
      %394 = arith.mulf %372, %21 : vector<14x1xf32>
      %395 = vector.shape_cast %394 : vector<14x1xf32> to vector<1x14x1xf32>
      %cst_182 = arith.constant dense<0.000000e+00> : vector<1xf32>
      %396 = vector.multi_reduction <add>, %395, %cst_182 [1, 2] : vector<1x14x1xf32> to vector<1xf32>
      %397 = vector.shape_cast %396 : vector<1xf32> to vector<1x1x1xf32>
      %398 = vector.extract %397[0, 0, 0] : f32 from vector<1x1x1xf32>
      %cst_183 = arith.constant 5.58035739E-4 : f32
      %399 = arith.mulf %398, %cst_183 : f32
      %400 = arith.mulf %384, %384 : f32
      %401 = arith.subf %399, %400 : f32
      %cst_184 = arith.constant 0.000000e+00 : f32
      %402 = arith.maximumf %401, %cst_184 : f32
      %403 = vector.broadcast %378 : f32 to vector<14x1xf32>
      %404 = arith.mulf %19, %403 : vector<14x1xf32>
      %405 = vector.broadcast %384 : f32 to vector<14x1xf32>
      %406 = arith.mulf %21, %405 : vector<14x1xf32>
      %407 = arith.addf %404, %406 : vector<14x1xf32>
      %cst_185 = arith.constant 9.99999974E-6 : f32
      %408 = arith.addf %393, %cst_185 : f32
      %409 = math.rsqrt %408 : f32
      %410 = vector.broadcast %409 : f32 to vector<14x1xf32>
      %411 = arith.mulf %19, %410 : vector<14x1xf32>
      %cst_186 = arith.constant 9.99999974E-6 : f32
      %412 = arith.addf %402, %cst_186 : f32
      %413 = math.rsqrt %412 : f32
      %414 = vector.broadcast %413 : f32 to vector<14x1xf32>
      %415 = arith.mulf %21, %414 : vector<14x1xf32>
      %416 = arith.addf %411, %415 : vector<14x1xf32>
      %417 = vector.broadcast %407 : vector<14x1xf32> to vector<14x256xf32>
      %418 = arith.subf %363, %417 : vector<14x256xf32>
      %419 = vector.broadcast %416 : vector<14x1xf32> to vector<14x256xf32>
      %420 = arith.mulf %418, %419 : vector<14x256xf32>
      %421 = vector.broadcast %365 : vector<14x1xf32> to vector<14x256xf32>
      %422 = arith.mulf %420, %421 : vector<14x256xf32>
      %423 = vector.broadcast %367 : vector<14x1xf32> to vector<14x256xf32>
      %424 = arith.addf %422, %423 : vector<14x256xf32>
      %425 = arith.negf %424 : vector<14x256xf32>
      %426 = math.exp %425 : vector<14x256xf32>
      %cst_187 = arith.constant 1.000000e+00 : f32
      %427 = vector.broadcast %cst_187 : f32 to vector<14x256xf32>
      %428 = arith.addf %427, %426 : vector<14x256xf32>
      %429 = arith.divf %427, %428 : vector<14x256xf32>
      %430 = arith.mulf %424, %429 : vector<14x256xf32>
      %c1_188 = arith.constant 1 : index
      %c0_189 = arith.constant 0 : index
      %c0_190 = arith.constant 0 : index
      %431 = vector.load %arg7[%c1_188, %c0_189, %c0_190] : memref<4x14x1xf32, #tpu.memory_space<vmem>>, vector<1x14x1xf32>
      %432 = vector.shape_cast %431 : vector<1x14x1xf32> to vector<14x1xf32>
      %c16_i32_191 = arith.constant 16 : i32
      %433 = tpu.dynamic_rotate %430 by %c16_i32_191 dim 1 : vector<14x256xf32>, i32 -> vector<14x256xf32>
      %c1_i32_192 = arith.constant 1 : i32
      %434 = tpu.dynamic_rotate %433 by %c1_i32_192 dim 1 : vector<14x256xf32>, i32 -> vector<14x256xf32>
      %435 = vector.broadcast %6 : vector<1x256xf32> to vector<14x256xf32>
      %436 = arith.mulf %435, %434 : vector<14x256xf32>
      %c241_i32_193 = arith.constant 241 : i32
      %437 = tpu.dynamic_rotate %433 by %c241_i32_193 dim 1 : vector<14x256xf32>, i32 -> vector<14x256xf32>
      %438 = vector.broadcast %12 : vector<1x256xf32> to vector<14x256xf32>
      %439 = arith.mulf %438, %437 : vector<14x256xf32>
      %440 = arith.addf %436, %439 : vector<14x256xf32>
      %c1_194 = arith.constant 1 : index
      %c0_195 = arith.constant 0 : index
      %c0_196 = arith.constant 0 : index
      %c0_197 = arith.constant 0 : index
      %441 = vector.load %arg6[%c1_194, %c0_195, %c0_196, %c0_197] : memref<4x9x14x14xf32, #tpu.memory_space<vmem>>, vector<1x1x14x14xf32>
      %442 = vector.shape_cast %441 : vector<1x1x14x14xf32> to vector<14x14xf32>
      %cst_198 = arith.constant dense<0.000000e+00> : vector<14x256xf32>
      %443 = tpu.matmul %442, %440, %cst_198 {dimension_numbers = #tpu.dot_dimension_numbers<[1], [0], [0], [1], [0, 0, 1, 1], [], []>} : vector<14x14xf32>, vector<14x256xf32>, vector<14x256xf32> -> vector<14x256xf32>
      %c1_199 = arith.constant 1 : index
      %c1_200 = arith.constant 1 : index
      %c0_201 = arith.constant 0 : index
      %c0_202 = arith.constant 0 : index
      %444 = vector.load %arg6[%c1_199, %c1_200, %c0_201, %c0_202] : memref<4x9x14x14xf32, #tpu.memory_space<vmem>>, vector<1x1x14x14xf32>
      %445 = vector.shape_cast %444 : vector<1x1x14x14xf32> to vector<14x14xf32>
      %cst_203 = arith.constant dense<0.000000e+00> : vector<14x256xf32>
      %446 = tpu.matmul %445, %433, %cst_203 {dimension_numbers = #tpu.dot_dimension_numbers<[1], [0], [0], [1], [0, 0, 1, 1], [], []>} : vector<14x14xf32>, vector<14x256xf32>, vector<14x256xf32> -> vector<14x256xf32>
      %447 = arith.addf %443, %446 : vector<14x256xf32>
      %c255_i32_204 = arith.constant 255 : i32
      %448 = tpu.dynamic_rotate %433 by %c255_i32_204 dim 1 : vector<14x256xf32>, i32 -> vector<14x256xf32>
      %449 = vector.broadcast %10 : vector<1x256xf32> to vector<14x256xf32>
      %450 = arith.mulf %449, %448 : vector<14x256xf32>
      %c15_i32_205 = arith.constant 15 : i32
      %451 = tpu.dynamic_rotate %433 by %c15_i32_205 dim 1 : vector<14x256xf32>, i32 -> vector<14x256xf32>
      %452 = vector.broadcast %14 : vector<1x256xf32> to vector<14x256xf32>
      %453 = arith.mulf %452, %451 : vector<14x256xf32>
      %454 = arith.addf %450, %453 : vector<14x256xf32>
      %c1_206 = arith.constant 1 : index
      %c2_207 = arith.constant 2 : index
      %c0_208 = arith.constant 0 : index
      %c0_209 = arith.constant 0 : index
      %455 = vector.load %arg6[%c1_206, %c2_207, %c0_208, %c0_209] : memref<4x9x14x14xf32, #tpu.memory_space<vmem>>, vector<1x1x14x14xf32>
      %456 = vector.shape_cast %455 : vector<1x1x14x14xf32> to vector<14x14xf32>
      %cst_210 = arith.constant dense<0.000000e+00> : vector<14x256xf32>
      %457 = tpu.matmul %456, %454, %cst_210 {dimension_numbers = #tpu.dot_dimension_numbers<[1], [0], [0], [1], [0, 0, 1, 1], [], []>} : vector<14x14xf32>, vector<14x256xf32>, vector<14x256xf32> -> vector<14x256xf32>
      %458 = arith.addf %447, %457 : vector<14x256xf32>
      %c1_i32_211 = arith.constant 1 : i32
      %459 = tpu.dynamic_rotate %430 by %c1_i32_211 dim 1 : vector<14x256xf32>, i32 -> vector<14x256xf32>
      %460 = vector.broadcast %6 : vector<1x256xf32> to vector<14x256xf32>
      %461 = arith.mulf %460, %459 : vector<14x256xf32>
      %c241_i32_212 = arith.constant 241 : i32
      %462 = tpu.dynamic_rotate %430 by %c241_i32_212 dim 1 : vector<14x256xf32>, i32 -> vector<14x256xf32>
      %463 = vector.broadcast %12 : vector<1x256xf32> to vector<14x256xf32>
      %464 = arith.mulf %463, %462 : vector<14x256xf32>
      %465 = arith.addf %461, %464 : vector<14x256xf32>
      %c1_213 = arith.constant 1 : index
      %c3_214 = arith.constant 3 : index
      %c0_215 = arith.constant 0 : index
      %c0_216 = arith.constant 0 : index
      %466 = vector.load %arg6[%c1_213, %c3_214, %c0_215, %c0_216] : memref<4x9x14x14xf32, #tpu.memory_space<vmem>>, vector<1x1x14x14xf32>
      %467 = vector.shape_cast %466 : vector<1x1x14x14xf32> to vector<14x14xf32>
      %cst_217 = arith.constant dense<0.000000e+00> : vector<14x256xf32>
      %468 = tpu.matmul %467, %465, %cst_217 {dimension_numbers = #tpu.dot_dimension_numbers<[1], [0], [0], [1], [0, 0, 1, 1], [], []>} : vector<14x14xf32>, vector<14x256xf32>, vector<14x256xf32> -> vector<14x256xf32>
      %469 = arith.addf %458, %468 : vector<14x256xf32>
      %c1_218 = arith.constant 1 : index
      %c4_219 = arith.constant 4 : index
      %c0_220 = arith.constant 0 : index
      %c0_221 = arith.constant 0 : index
      %470 = vector.load %arg6[%c1_218, %c4_219, %c0_220, %c0_221] : memref<4x9x14x14xf32, #tpu.memory_space<vmem>>, vector<1x1x14x14xf32>
      %471 = vector.shape_cast %470 : vector<1x1x14x14xf32> to vector<14x14xf32>
      %cst_222 = arith.constant dense<0.000000e+00> : vector<14x256xf32>
      %472 = tpu.matmul %471, %430, %cst_222 {dimension_numbers = #tpu.dot_dimension_numbers<[1], [0], [0], [1], [0, 0, 1, 1], [], []>} : vector<14x14xf32>, vector<14x256xf32>, vector<14x256xf32> -> vector<14x256xf32>
      %473 = arith.addf %469, %472 : vector<14x256xf32>
      %c255_i32_223 = arith.constant 255 : i32
      %474 = tpu.dynamic_rotate %430 by %c255_i32_223 dim 1 : vector<14x256xf32>, i32 -> vector<14x256xf32>
      %475 = vector.broadcast %10 : vector<1x256xf32> to vector<14x256xf32>
      %476 = arith.mulf %475, %474 : vector<14x256xf32>
      %c15_i32_224 = arith.constant 15 : i32
      %477 = tpu.dynamic_rotate %430 by %c15_i32_224 dim 1 : vector<14x256xf32>, i32 -> vector<14x256xf32>
      %478 = vector.broadcast %14 : vector<1x256xf32> to vector<14x256xf32>
      %479 = arith.mulf %478, %477 : vector<14x256xf32>
      %480 = arith.addf %476, %479 : vector<14x256xf32>
      %c1_225 = arith.constant 1 : index
      %c5_226 = arith.constant 5 : index
      %c0_227 = arith.constant 0 : index
      %c0_228 = arith.constant 0 : index
      %481 = vector.load %arg6[%c1_225, %c5_226, %c0_227, %c0_228] : memref<4x9x14x14xf32, #tpu.memory_space<vmem>>, vector<1x1x14x14xf32>
      %482 = vector.shape_cast %481 : vector<1x1x14x14xf32> to vector<14x14xf32>
      %cst_229 = arith.constant dense<0.000000e+00> : vector<14x256xf32>
      %483 = tpu.matmul %482, %480, %cst_229 {dimension_numbers = #tpu.dot_dimension_numbers<[1], [0], [0], [1], [0, 0, 1, 1], [], []>} : vector<14x14xf32>, vector<14x256xf32>, vector<14x256xf32> -> vector<14x256xf32>
      %484 = arith.addf %473, %483 : vector<14x256xf32>
      %c240_i32_230 = arith.constant 240 : i32
      %485 = tpu.dynamic_rotate %430 by %c240_i32_230 dim 1 : vector<14x256xf32>, i32 -> vector<14x256xf32>
      %c1_i32_231 = arith.constant 1 : i32
      %486 = tpu.dynamic_rotate %485 by %c1_i32_231 dim 1 : vector<14x256xf32>, i32 -> vector<14x256xf32>
      %487 = vector.broadcast %6 : vector<1x256xf32> to vector<14x256xf32>
      %488 = arith.mulf %487, %486 : vector<14x256xf32>
      %c241_i32_232 = arith.constant 241 : i32
      %489 = tpu.dynamic_rotate %485 by %c241_i32_232 dim 1 : vector<14x256xf32>, i32 -> vector<14x256xf32>
      %490 = vector.broadcast %12 : vector<1x256xf32> to vector<14x256xf32>
      %491 = arith.mulf %490, %489 : vector<14x256xf32>
      %492 = arith.addf %488, %491 : vector<14x256xf32>
      %c1_233 = arith.constant 1 : index
      %c6_234 = arith.constant 6 : index
      %c0_235 = arith.constant 0 : index
      %c0_236 = arith.constant 0 : index
      %493 = vector.load %arg6[%c1_233, %c6_234, %c0_235, %c0_236] : memref<4x9x14x14xf32, #tpu.memory_space<vmem>>, vector<1x1x14x14xf32>
      %494 = vector.shape_cast %493 : vector<1x1x14x14xf32> to vector<14x14xf32>
      %cst_237 = arith.constant dense<0.000000e+00> : vector<14x256xf32>
      %495 = tpu.matmul %494, %492, %cst_237 {dimension_numbers = #tpu.dot_dimension_numbers<[1], [0], [0], [1], [0, 0, 1, 1], [], []>} : vector<14x14xf32>, vector<14x256xf32>, vector<14x256xf32> -> vector<14x256xf32>
      %496 = arith.addf %484, %495 : vector<14x256xf32>
      %c1_238 = arith.constant 1 : index
      %c7_239 = arith.constant 7 : index
      %c0_240 = arith.constant 0 : index
      %c0_241 = arith.constant 0 : index
      %497 = vector.load %arg6[%c1_238, %c7_239, %c0_240, %c0_241] : memref<4x9x14x14xf32, #tpu.memory_space<vmem>>, vector<1x1x14x14xf32>
      %498 = vector.shape_cast %497 : vector<1x1x14x14xf32> to vector<14x14xf32>
      %cst_242 = arith.constant dense<0.000000e+00> : vector<14x256xf32>
      %499 = tpu.matmul %498, %485, %cst_242 {dimension_numbers = #tpu.dot_dimension_numbers<[1], [0], [0], [1], [0, 0, 1, 1], [], []>} : vector<14x14xf32>, vector<14x256xf32>, vector<14x256xf32> -> vector<14x256xf32>
      %500 = arith.addf %496, %499 : vector<14x256xf32>
      %c255_i32_243 = arith.constant 255 : i32
      %501 = tpu.dynamic_rotate %485 by %c255_i32_243 dim 1 : vector<14x256xf32>, i32 -> vector<14x256xf32>
      %502 = vector.broadcast %10 : vector<1x256xf32> to vector<14x256xf32>
      %503 = arith.mulf %502, %501 : vector<14x256xf32>
      %c15_i32_244 = arith.constant 15 : i32
      %504 = tpu.dynamic_rotate %485 by %c15_i32_244 dim 1 : vector<14x256xf32>, i32 -> vector<14x256xf32>
      %505 = vector.broadcast %14 : vector<1x256xf32> to vector<14x256xf32>
      %506 = arith.mulf %505, %504 : vector<14x256xf32>
      %507 = arith.addf %503, %506 : vector<14x256xf32>
      %c1_245 = arith.constant 1 : index
      %c8_246 = arith.constant 8 : index
      %c0_247 = arith.constant 0 : index
      %c0_248 = arith.constant 0 : index
      %508 = vector.load %arg6[%c1_245, %c8_246, %c0_247, %c0_248] : memref<4x9x14x14xf32, #tpu.memory_space<vmem>>, vector<1x1x14x14xf32>
      %509 = vector.shape_cast %508 : vector<1x1x14x14xf32> to vector<14x14xf32>
      %cst_249 = arith.constant dense<0.000000e+00> : vector<14x256xf32>
      %510 = tpu.matmul %509, %507, %cst_249 {dimension_numbers = #tpu.dot_dimension_numbers<[1], [0], [0], [1], [0, 0, 1, 1], [], []>} : vector<14x14xf32>, vector<14x256xf32>, vector<14x256xf32> -> vector<14x256xf32>
      %511 = arith.addf %500, %510 : vector<14x256xf32>
      %512 = vector.broadcast %432 : vector<14x1xf32> to vector<14x256xf32>
      %513 = arith.addf %511, %512 : vector<14x256xf32>
      %c0_250 = arith.constant 0 : index
      %514 = memref.load %arg8[%c0_250] : memref<2xf32, #tpu.memory_space<smem>>
      %515 = vector.broadcast %514 : f32 to vector<14x256xf32>
      %516 = arith.mulf %515, %513 : vector<14x256xf32>
      %517 = arith.addf %213, %516 : vector<14x256xf32>
      %c3_251 = arith.constant 3 : index
      %c0_252 = arith.constant 0 : index
      %c0_253 = arith.constant 0 : index
      %518 = vector.load %arg4[%c3_251, %c0_252, %c0_253] : memref<5x14x1xf32, #tpu.memory_space<vmem>>, vector<1x14x1xf32>
      %519 = vector.shape_cast %518 : vector<1x14x1xf32> to vector<14x1xf32>
      %c3_254 = arith.constant 3 : index
      %c0_255 = arith.constant 0 : index
      %c0_256 = arith.constant 0 : index
      %520 = vector.load %arg5[%c3_254, %c0_255, %c0_256] : memref<5x14x1xf32, #tpu.memory_space<vmem>>, vector<1x14x1xf32>
      %521 = vector.shape_cast %520 : vector<1x14x1xf32> to vector<14x1xf32>
      %cst_257 = arith.constant dense<0.000000e+00> : vector<14xf32>
      %522 = vector.multi_reduction <add>, %517, %cst_257 [1] : vector<14x256xf32> to vector<14xf32>
      %523 = vector.shape_cast %522 : vector<14xf32> to vector<14x1xf32>
      %524 = arith.mulf %517, %517 : vector<14x256xf32>
      %cst_258 = arith.constant dense<0.000000e+00> : vector<14xf32>
      %525 = vector.multi_reduction <add>, %524, %cst_258 [1] : vector<14x256xf32> to vector<14xf32>
      %526 = vector.shape_cast %525 : vector<14xf32> to vector<14x1xf32>
      %527 = arith.mulf %523, %19 : vector<14x1xf32>
      %528 = vector.shape_cast %527 : vector<14x1xf32> to vector<1x14x1xf32>
      %cst_259 = arith.constant dense<0.000000e+00> : vector<1xf32>
      %529 = vector.multi_reduction <add>, %528, %cst_259 [1, 2] : vector<1x14x1xf32> to vector<1xf32>
      %530 = vector.shape_cast %529 : vector<1xf32> to vector<1x1x1xf32>
      %531 = vector.extract %530[0, 0, 0] : f32 from vector<1x1x1xf32>
      %cst_260 = arith.constant 5.58035739E-4 : f32
      %532 = arith.mulf %531, %cst_260 : f32
      %533 = arith.mulf %523, %21 : vector<14x1xf32>
      %534 = vector.shape_cast %533 : vector<14x1xf32> to vector<1x14x1xf32>
      %cst_261 = arith.constant dense<0.000000e+00> : vector<1xf32>
      %535 = vector.multi_reduction <add>, %534, %cst_261 [1, 2] : vector<1x14x1xf32> to vector<1xf32>
      %536 = vector.shape_cast %535 : vector<1xf32> to vector<1x1x1xf32>
      %537 = vector.extract %536[0, 0, 0] : f32 from vector<1x1x1xf32>
      %cst_262 = arith.constant 5.58035739E-4 : f32
      %538 = arith.mulf %537, %cst_262 : f32
      %539 = arith.mulf %526, %19 : vector<14x1xf32>
      %540 = vector.shape_cast %539 : vector<14x1xf32> to vector<1x14x1xf32>
      %cst_263 = arith.constant dense<0.000000e+00> : vector<1xf32>
      %541 = vector.multi_reduction <add>, %540, %cst_263 [1, 2] : vector<1x14x1xf32> to vector<1xf32>
      %542 = vector.shape_cast %541 : vector<1xf32> to vector<1x1x1xf32>
      %543 = vector.extract %542[0, 0, 0] : f32 from vector<1x1x1xf32>
      %cst_264 = arith.constant 5.58035739E-4 : f32
      %544 = arith.mulf %543, %cst_264 : f32
      %545 = arith.mulf %532, %532 : f32
      %546 = arith.subf %544, %545 : f32
      %cst_265 = arith.constant 0.000000e+00 : f32
      %547 = arith.maximumf %546, %cst_265 : f32
      %548 = arith.mulf %526, %21 : vector<14x1xf32>
      %549 = vector.shape_cast %548 : vector<14x1xf32> to vector<1x14x1xf32>
      %cst_266 = arith.constant dense<0.000000e+00> : vector<1xf32>
      %550 = vector.multi_reduction <add>, %549, %cst_266 [1, 2] : vector<1x14x1xf32> to vector<1xf32>
      %551 = vector.shape_cast %550 : vector<1xf32> to vector<1x1x1xf32>
      %552 = vector.extract %551[0, 0, 0] : f32 from vector<1x1x1xf32>
      %cst_267 = arith.constant 5.58035739E-4 : f32
      %553 = arith.mulf %552, %cst_267 : f32
      %554 = arith.mulf %538, %538 : f32
      %555 = arith.subf %553, %554 : f32
      %cst_268 = arith.constant 0.000000e+00 : f32
      %556 = arith.maximumf %555, %cst_268 : f32
      %557 = vector.broadcast %532 : f32 to vector<14x1xf32>
      %558 = arith.mulf %19, %557 : vector<14x1xf32>
      %559 = vector.broadcast %538 : f32 to vector<14x1xf32>
      %560 = arith.mulf %21, %559 : vector<14x1xf32>
      %561 = arith.addf %558, %560 : vector<14x1xf32>
      %cst_269 = arith.constant 9.99999974E-6 : f32
      %562 = arith.addf %547, %cst_269 : f32
      %563 = math.rsqrt %562 : f32
      %564 = vector.broadcast %563 : f32 to vector<14x1xf32>
      %565 = arith.mulf %19, %564 : vector<14x1xf32>
      %cst_270 = arith.constant 9.99999974E-6 : f32
      %566 = arith.addf %556, %cst_270 : f32
      %567 = math.rsqrt %566 : f32
      %568 = vector.broadcast %567 : f32 to vector<14x1xf32>
      %569 = arith.mulf %21, %568 : vector<14x1xf32>
      %570 = arith.addf %565, %569 : vector<14x1xf32>
      %571 = vector.broadcast %561 : vector<14x1xf32> to vector<14x256xf32>
      %572 = arith.subf %517, %571 : vector<14x256xf32>
      %573 = vector.broadcast %570 : vector<14x1xf32> to vector<14x256xf32>
      %574 = arith.mulf %572, %573 : vector<14x256xf32>
      %575 = vector.broadcast %519 : vector<14x1xf32> to vector<14x256xf32>
      %576 = arith.mulf %574, %575 : vector<14x256xf32>
      %577 = vector.broadcast %521 : vector<14x1xf32> to vector<14x256xf32>
      %578 = arith.addf %576, %577 : vector<14x256xf32>
      %579 = arith.negf %578 : vector<14x256xf32>
      %580 = math.exp %579 : vector<14x256xf32>
      %cst_271 = arith.constant 1.000000e+00 : f32
      %581 = vector.broadcast %cst_271 : f32 to vector<14x256xf32>
      %582 = arith.addf %581, %580 : vector<14x256xf32>
      %583 = arith.divf %581, %582 : vector<14x256xf32>
      %584 = arith.mulf %578, %583 : vector<14x256xf32>
      %c2_272 = arith.constant 2 : index
      %c0_273 = arith.constant 0 : index
      %c0_274 = arith.constant 0 : index
      %585 = vector.load %arg7[%c2_272, %c0_273, %c0_274] : memref<4x14x1xf32, #tpu.memory_space<vmem>>, vector<1x14x1xf32>
      %586 = vector.shape_cast %585 : vector<1x14x1xf32> to vector<14x1xf32>
      %c16_i32_275 = arith.constant 16 : i32
      %587 = tpu.dynamic_rotate %584 by %c16_i32_275 dim 1 : vector<14x256xf32>, i32 -> vector<14x256xf32>
      %c1_i32_276 = arith.constant 1 : i32
      %588 = tpu.dynamic_rotate %587 by %c1_i32_276 dim 1 : vector<14x256xf32>, i32 -> vector<14x256xf32>
      %589 = vector.broadcast %6 : vector<1x256xf32> to vector<14x256xf32>
      %590 = arith.mulf %589, %588 : vector<14x256xf32>
      %c241_i32_277 = arith.constant 241 : i32
      %591 = tpu.dynamic_rotate %587 by %c241_i32_277 dim 1 : vector<14x256xf32>, i32 -> vector<14x256xf32>
      %592 = vector.broadcast %12 : vector<1x256xf32> to vector<14x256xf32>
      %593 = arith.mulf %592, %591 : vector<14x256xf32>
      %594 = arith.addf %590, %593 : vector<14x256xf32>
      %c2_278 = arith.constant 2 : index
      %c0_279 = arith.constant 0 : index
      %c0_280 = arith.constant 0 : index
      %c0_281 = arith.constant 0 : index
      %595 = vector.load %arg6[%c2_278, %c0_279, %c0_280, %c0_281] : memref<4x9x14x14xf32, #tpu.memory_space<vmem>>, vector<1x1x14x14xf32>
      %596 = vector.shape_cast %595 : vector<1x1x14x14xf32> to vector<14x14xf32>
      %cst_282 = arith.constant dense<0.000000e+00> : vector<14x256xf32>
      %597 = tpu.matmul %596, %594, %cst_282 {dimension_numbers = #tpu.dot_dimension_numbers<[1], [0], [0], [1], [0, 0, 1, 1], [], []>} : vector<14x14xf32>, vector<14x256xf32>, vector<14x256xf32> -> vector<14x256xf32>
      %c2_283 = arith.constant 2 : index
      %c1_284 = arith.constant 1 : index
      %c0_285 = arith.constant 0 : index
      %c0_286 = arith.constant 0 : index
      %598 = vector.load %arg6[%c2_283, %c1_284, %c0_285, %c0_286] : memref<4x9x14x14xf32, #tpu.memory_space<vmem>>, vector<1x1x14x14xf32>
      %599 = vector.shape_cast %598 : vector<1x1x14x14xf32> to vector<14x14xf32>
      %cst_287 = arith.constant dense<0.000000e+00> : vector<14x256xf32>
      %600 = tpu.matmul %599, %587, %cst_287 {dimension_numbers = #tpu.dot_dimension_numbers<[1], [0], [0], [1], [0, 0, 1, 1], [], []>} : vector<14x14xf32>, vector<14x256xf32>, vector<14x256xf32> -> vector<14x256xf32>
      %601 = arith.addf %597, %600 : vector<14x256xf32>
      %c255_i32_288 = arith.constant 255 : i32
      %602 = tpu.dynamic_rotate %587 by %c255_i32_288 dim 1 : vector<14x256xf32>, i32 -> vector<14x256xf32>
      %603 = vector.broadcast %10 : vector<1x256xf32> to vector<14x256xf32>
      %604 = arith.mulf %603, %602 : vector<14x256xf32>
      %c15_i32_289 = arith.constant 15 : i32
      %605 = tpu.dynamic_rotate %587 by %c15_i32_289 dim 1 : vector<14x256xf32>, i32 -> vector<14x256xf32>
      %606 = vector.broadcast %14 : vector<1x256xf32> to vector<14x256xf32>
      %607 = arith.mulf %606, %605 : vector<14x256xf32>
      %608 = arith.addf %604, %607 : vector<14x256xf32>
      %c2_290 = arith.constant 2 : index
      %c2_291 = arith.constant 2 : index
      %c0_292 = arith.constant 0 : index
      %c0_293 = arith.constant 0 : index
      %609 = vector.load %arg6[%c2_290, %c2_291, %c0_292, %c0_293] : memref<4x9x14x14xf32, #tpu.memory_space<vmem>>, vector<1x1x14x14xf32>
      %610 = vector.shape_cast %609 : vector<1x1x14x14xf32> to vector<14x14xf32>
      %cst_294 = arith.constant dense<0.000000e+00> : vector<14x256xf32>
      %611 = tpu.matmul %610, %608, %cst_294 {dimension_numbers = #tpu.dot_dimension_numbers<[1], [0], [0], [1], [0, 0, 1, 1], [], []>} : vector<14x14xf32>, vector<14x256xf32>, vector<14x256xf32> -> vector<14x256xf32>
      %612 = arith.addf %601, %611 : vector<14x256xf32>
      %c1_i32_295 = arith.constant 1 : i32
      %613 = tpu.dynamic_rotate %584 by %c1_i32_295 dim 1 : vector<14x256xf32>, i32 -> vector<14x256xf32>
      %614 = vector.broadcast %6 : vector<1x256xf32> to vector<14x256xf32>
      %615 = arith.mulf %614, %613 : vector<14x256xf32>
      %c241_i32_296 = arith.constant 241 : i32
      %616 = tpu.dynamic_rotate %584 by %c241_i32_296 dim 1 : vector<14x256xf32>, i32 -> vector<14x256xf32>
      %617 = vector.broadcast %12 : vector<1x256xf32> to vector<14x256xf32>
      %618 = arith.mulf %617, %616 : vector<14x256xf32>
      %619 = arith.addf %615, %618 : vector<14x256xf32>
      %c2_297 = arith.constant 2 : index
      %c3_298 = arith.constant 3 : index
      %c0_299 = arith.constant 0 : index
      %c0_300 = arith.constant 0 : index
      %620 = vector.load %arg6[%c2_297, %c3_298, %c0_299, %c0_300] : memref<4x9x14x14xf32, #tpu.memory_space<vmem>>, vector<1x1x14x14xf32>
      %621 = vector.shape_cast %620 : vector<1x1x14x14xf32> to vector<14x14xf32>
      %cst_301 = arith.constant dense<0.000000e+00> : vector<14x256xf32>
      %622 = tpu.matmul %621, %619, %cst_301 {dimension_numbers = #tpu.dot_dimension_numbers<[1], [0], [0], [1], [0, 0, 1, 1], [], []>} : vector<14x14xf32>, vector<14x256xf32>, vector<14x256xf32> -> vector<14x256xf32>
      %623 = arith.addf %612, %622 : vector<14x256xf32>
      %c2_302 = arith.constant 2 : index
      %c4_303 = arith.constant 4 : index
      %c0_304 = arith.constant 0 : index
      %c0_305 = arith.constant 0 : index
      %624 = vector.load %arg6[%c2_302, %c4_303, %c0_304, %c0_305] : memref<4x9x14x14xf32, #tpu.memory_space<vmem>>, vector<1x1x14x14xf32>
      %625 = vector.shape_cast %624 : vector<1x1x14x14xf32> to vector<14x14xf32>
      %cst_306 = arith.constant dense<0.000000e+00> : vector<14x256xf32>
      %626 = tpu.matmul %625, %584, %cst_306 {dimension_numbers = #tpu.dot_dimension_numbers<[1], [0], [0], [1], [0, 0, 1, 1], [], []>} : vector<14x14xf32>, vector<14x256xf32>, vector<14x256xf32> -> vector<14x256xf32>
      %627 = arith.addf %623, %626 : vector<14x256xf32>
      %c255_i32_307 = arith.constant 255 : i32
      %628 = tpu.dynamic_rotate %584 by %c255_i32_307 dim 1 : vector<14x256xf32>, i32 -> vector<14x256xf32>
      %629 = vector.broadcast %10 : vector<1x256xf32> to vector<14x256xf32>
      %630 = arith.mulf %629, %628 : vector<14x256xf32>
      %c15_i32_308 = arith.constant 15 : i32
      %631 = tpu.dynamic_rotate %584 by %c15_i32_308 dim 1 : vector<14x256xf32>, i32 -> vector<14x256xf32>
      %632 = vector.broadcast %14 : vector<1x256xf32> to vector<14x256xf32>
      %633 = arith.mulf %632, %631 : vector<14x256xf32>
      %634 = arith.addf %630, %633 : vector<14x256xf32>
      %c2_309 = arith.constant 2 : index
      %c5_310 = arith.constant 5 : index
      %c0_311 = arith.constant 0 : index
      %c0_312 = arith.constant 0 : index
      %635 = vector.load %arg6[%c2_309, %c5_310, %c0_311, %c0_312] : memref<4x9x14x14xf32, #tpu.memory_space<vmem>>, vector<1x1x14x14xf32>
      %636 = vector.shape_cast %635 : vector<1x1x14x14xf32> to vector<14x14xf32>
      %cst_313 = arith.constant dense<0.000000e+00> : vector<14x256xf32>
      %637 = tpu.matmul %636, %634, %cst_313 {dimension_numbers = #tpu.dot_dimension_numbers<[1], [0], [0], [1], [0, 0, 1, 1], [], []>} : vector<14x14xf32>, vector<14x256xf32>, vector<14x256xf32> -> vector<14x256xf32>
      %638 = arith.addf %627, %637 : vector<14x256xf32>
      %c240_i32_314 = arith.constant 240 : i32
      %639 = tpu.dynamic_rotate %584 by %c240_i32_314 dim 1 : vector<14x256xf32>, i32 -> vector<14x256xf32>
      %c1_i32_315 = arith.constant 1 : i32
      %640 = tpu.dynamic_rotate %639 by %c1_i32_315 dim 1 : vector<14x256xf32>, i32 -> vector<14x256xf32>
      %641 = vector.broadcast %6 : vector<1x256xf32> to vector<14x256xf32>
      %642 = arith.mulf %641, %640 : vector<14x256xf32>
      %c241_i32_316 = arith.constant 241 : i32
      %643 = tpu.dynamic_rotate %639 by %c241_i32_316 dim 1 : vector<14x256xf32>, i32 -> vector<14x256xf32>
      %644 = vector.broadcast %12 : vector<1x256xf32> to vector<14x256xf32>
      %645 = arith.mulf %644, %643 : vector<14x256xf32>
      %646 = arith.addf %642, %645 : vector<14x256xf32>
      %c2_317 = arith.constant 2 : index
      %c6_318 = arith.constant 6 : index
      %c0_319 = arith.constant 0 : index
      %c0_320 = arith.constant 0 : index
      %647 = vector.load %arg6[%c2_317, %c6_318, %c0_319, %c0_320] : memref<4x9x14x14xf32, #tpu.memory_space<vmem>>, vector<1x1x14x14xf32>
      %648 = vector.shape_cast %647 : vector<1x1x14x14xf32> to vector<14x14xf32>
      %cst_321 = arith.constant dense<0.000000e+00> : vector<14x256xf32>
      %649 = tpu.matmul %648, %646, %cst_321 {dimension_numbers = #tpu.dot_dimension_numbers<[1], [0], [0], [1], [0, 0, 1, 1], [], []>} : vector<14x14xf32>, vector<14x256xf32>, vector<14x256xf32> -> vector<14x256xf32>
      %650 = arith.addf %638, %649 : vector<14x256xf32>
      %c2_322 = arith.constant 2 : index
      %c7_323 = arith.constant 7 : index
      %c0_324 = arith.constant 0 : index
      %c0_325 = arith.constant 0 : index
      %651 = vector.load %arg6[%c2_322, %c7_323, %c0_324, %c0_325] : memref<4x9x14x14xf32, #tpu.memory_space<vmem>>, vector<1x1x14x14xf32>
      %652 = vector.shape_cast %651 : vector<1x1x14x14xf32> to vector<14x14xf32>
      %cst_326 = arith.constant dense<0.000000e+00> : vector<14x256xf32>
      %653 = tpu.matmul %652, %639, %cst_326 {dimension_numbers = #tpu.dot_dimension_numbers<[1], [0], [0], [1], [0, 0, 1, 1], [], []>} : vector<14x14xf32>, vector<14x256xf32>, vector<14x256xf32> -> vector<14x256xf32>
      %654 = arith.addf %650, %653 : vector<14x256xf32>
      %c255_i32_327 = arith.constant 255 : i32
      %655 = tpu.dynamic_rotate %639 by %c255_i32_327 dim 1 : vector<14x256xf32>, i32 -> vector<14x256xf32>
      %656 = vector.broadcast %10 : vector<1x256xf32> to vector<14x256xf32>
      %657 = arith.mulf %656, %655 : vector<14x256xf32>
      %c15_i32_328 = arith.constant 15 : i32
      %658 = tpu.dynamic_rotate %639 by %c15_i32_328 dim 1 : vector<14x256xf32>, i32 -> vector<14x256xf32>
      %659 = vector.broadcast %14 : vector<1x256xf32> to vector<14x256xf32>
      %660 = arith.mulf %659, %658 : vector<14x256xf32>
      %661 = arith.addf %657, %660 : vector<14x256xf32>
      %c2_329 = arith.constant 2 : index
      %c8_330 = arith.constant 8 : index
      %c0_331 = arith.constant 0 : index
      %c0_332 = arith.constant 0 : index
      %662 = vector.load %arg6[%c2_329, %c8_330, %c0_331, %c0_332] : memref<4x9x14x14xf32, #tpu.memory_space<vmem>>, vector<1x1x14x14xf32>
      %663 = vector.shape_cast %662 : vector<1x1x14x14xf32> to vector<14x14xf32>
      %cst_333 = arith.constant dense<0.000000e+00> : vector<14x256xf32>
      %664 = tpu.matmul %663, %661, %cst_333 {dimension_numbers = #tpu.dot_dimension_numbers<[1], [0], [0], [1], [0, 0, 1, 1], [], []>} : vector<14x14xf32>, vector<14x256xf32>, vector<14x256xf32> -> vector<14x256xf32>
      %665 = arith.addf %654, %664 : vector<14x256xf32>
      %666 = vector.broadcast %586 : vector<14x1xf32> to vector<14x256xf32>
      %667 = arith.addf %665, %666 : vector<14x256xf32>
      %c4_334 = arith.constant 4 : index
      %c0_335 = arith.constant 0 : index
      %c0_336 = arith.constant 0 : index
      %668 = vector.load %arg4[%c4_334, %c0_335, %c0_336] : memref<5x14x1xf32, #tpu.memory_space<vmem>>, vector<1x14x1xf32>
      %669 = vector.shape_cast %668 : vector<1x14x1xf32> to vector<14x1xf32>
      %c4_337 = arith.constant 4 : index
      %c0_338 = arith.constant 0 : index
      %c0_339 = arith.constant 0 : index
      %670 = vector.load %arg5[%c4_337, %c0_338, %c0_339] : memref<5x14x1xf32, #tpu.memory_space<vmem>>, vector<1x14x1xf32>
      %671 = vector.shape_cast %670 : vector<1x14x1xf32> to vector<14x1xf32>
      %cst_340 = arith.constant dense<0.000000e+00> : vector<14xf32>
      %672 = vector.multi_reduction <add>, %667, %cst_340 [1] : vector<14x256xf32> to vector<14xf32>
      %673 = vector.shape_cast %672 : vector<14xf32> to vector<14x1xf32>
      %674 = arith.mulf %667, %667 : vector<14x256xf32>
      %cst_341 = arith.constant dense<0.000000e+00> : vector<14xf32>
      %675 = vector.multi_reduction <add>, %674, %cst_341 [1] : vector<14x256xf32> to vector<14xf32>
      %676 = vector.shape_cast %675 : vector<14xf32> to vector<14x1xf32>
      %677 = arith.mulf %673, %19 : vector<14x1xf32>
      %678 = vector.shape_cast %677 : vector<14x1xf32> to vector<1x14x1xf32>
      %cst_342 = arith.constant dense<0.000000e+00> : vector<1xf32>
      %679 = vector.multi_reduction <add>, %678, %cst_342 [1, 2] : vector<1x14x1xf32> to vector<1xf32>
      %680 = vector.shape_cast %679 : vector<1xf32> to vector<1x1x1xf32>
      %681 = vector.extract %680[0, 0, 0] : f32 from vector<1x1x1xf32>
      %cst_343 = arith.constant 5.58035739E-4 : f32
      %682 = arith.mulf %681, %cst_343 : f32
      %683 = arith.mulf %673, %21 : vector<14x1xf32>
      %684 = vector.shape_cast %683 : vector<14x1xf32> to vector<1x14x1xf32>
      %cst_344 = arith.constant dense<0.000000e+00> : vector<1xf32>
      %685 = vector.multi_reduction <add>, %684, %cst_344 [1, 2] : vector<1x14x1xf32> to vector<1xf32>
      %686 = vector.shape_cast %685 : vector<1xf32> to vector<1x1x1xf32>
      %687 = vector.extract %686[0, 0, 0] : f32 from vector<1x1x1xf32>
      %cst_345 = arith.constant 5.58035739E-4 : f32
      %688 = arith.mulf %687, %cst_345 : f32
      %689 = arith.mulf %676, %19 : vector<14x1xf32>
      %690 = vector.shape_cast %689 : vector<14x1xf32> to vector<1x14x1xf32>
      %cst_346 = arith.constant dense<0.000000e+00> : vector<1xf32>
      %691 = vector.multi_reduction <add>, %690, %cst_346 [1, 2] : vector<1x14x1xf32> to vector<1xf32>
      %692 = vector.shape_cast %691 : vector<1xf32> to vector<1x1x1xf32>
      %693 = vector.extract %692[0, 0, 0] : f32 from vector<1x1x1xf32>
      %cst_347 = arith.constant 5.58035739E-4 : f32
      %694 = arith.mulf %693, %cst_347 : f32
      %695 = arith.mulf %682, %682 : f32
      %696 = arith.subf %694, %695 : f32
      %cst_348 = arith.constant 0.000000e+00 : f32
      %697 = arith.maximumf %696, %cst_348 : f32
      %698 = arith.mulf %676, %21 : vector<14x1xf32>
      %699 = vector.shape_cast %698 : vector<14x1xf32> to vector<1x14x1xf32>
      %cst_349 = arith.constant dense<0.000000e+00> : vector<1xf32>
      %700 = vector.multi_reduction <add>, %699, %cst_349 [1, 2] : vector<1x14x1xf32> to vector<1xf32>
      %701 = vector.shape_cast %700 : vector<1xf32> to vector<1x1x1xf32>
      %702 = vector.extract %701[0, 0, 0] : f32 from vector<1x1x1xf32>
      %cst_350 = arith.constant 5.58035739E-4 : f32
      %703 = arith.mulf %702, %cst_350 : f32
      %704 = arith.mulf %688, %688 : f32
      %705 = arith.subf %703, %704 : f32
      %cst_351 = arith.constant 0.000000e+00 : f32
      %706 = arith.maximumf %705, %cst_351 : f32
      %707 = vector.broadcast %682 : f32 to vector<14x1xf32>
      %708 = arith.mulf %19, %707 : vector<14x1xf32>
      %709 = vector.broadcast %688 : f32 to vector<14x1xf32>
      %710 = arith.mulf %21, %709 : vector<14x1xf32>
      %711 = arith.addf %708, %710 : vector<14x1xf32>
      %cst_352 = arith.constant 9.99999974E-6 : f32
      %712 = arith.addf %697, %cst_352 : f32
      %713 = math.rsqrt %712 : f32
      %714 = vector.broadcast %713 : f32 to vector<14x1xf32>
      %715 = arith.mulf %19, %714 : vector<14x1xf32>
      %cst_353 = arith.constant 9.99999974E-6 : f32
      %716 = arith.addf %706, %cst_353 : f32
      %717 = math.rsqrt %716 : f32
      %718 = vector.broadcast %717 : f32 to vector<14x1xf32>
      %719 = arith.mulf %21, %718 : vector<14x1xf32>
      %720 = arith.addf %715, %719 : vector<14x1xf32>
      %721 = vector.broadcast %711 : vector<14x1xf32> to vector<14x256xf32>
      %722 = arith.subf %667, %721 : vector<14x256xf32>
      %723 = vector.broadcast %720 : vector<14x1xf32> to vector<14x256xf32>
      %724 = arith.mulf %722, %723 : vector<14x256xf32>
      %725 = vector.broadcast %669 : vector<14x1xf32> to vector<14x256xf32>
      %726 = arith.mulf %724, %725 : vector<14x256xf32>
      %727 = vector.broadcast %671 : vector<14x1xf32> to vector<14x256xf32>
      %728 = arith.addf %726, %727 : vector<14x256xf32>
      %729 = arith.negf %728 : vector<14x256xf32>
      %730 = math.exp %729 : vector<14x256xf32>
      %cst_354 = arith.constant 1.000000e+00 : f32
      %731 = vector.broadcast %cst_354 : f32 to vector<14x256xf32>
      %732 = arith.addf %731, %730 : vector<14x256xf32>
      %733 = arith.divf %731, %732 : vector<14x256xf32>
      %734 = arith.mulf %728, %733 : vector<14x256xf32>
      %c3_355 = arith.constant 3 : index
      %c0_356 = arith.constant 0 : index
      %c0_357 = arith.constant 0 : index
      %735 = vector.load %arg7[%c3_355, %c0_356, %c0_357] : memref<4x14x1xf32, #tpu.memory_space<vmem>>, vector<1x14x1xf32>
      %736 = vector.shape_cast %735 : vector<1x14x1xf32> to vector<14x1xf32>
      %c16_i32_358 = arith.constant 16 : i32
      %737 = tpu.dynamic_rotate %734 by %c16_i32_358 dim 1 : vector<14x256xf32>, i32 -> vector<14x256xf32>
      %c1_i32_359 = arith.constant 1 : i32
      %738 = tpu.dynamic_rotate %737 by %c1_i32_359 dim 1 : vector<14x256xf32>, i32 -> vector<14x256xf32>
      %739 = vector.broadcast %6 : vector<1x256xf32> to vector<14x256xf32>
      %740 = arith.mulf %739, %738 : vector<14x256xf32>
      %c241_i32_360 = arith.constant 241 : i32
      %741 = tpu.dynamic_rotate %737 by %c241_i32_360 dim 1 : vector<14x256xf32>, i32 -> vector<14x256xf32>
      %742 = vector.broadcast %12 : vector<1x256xf32> to vector<14x256xf32>
      %743 = arith.mulf %742, %741 : vector<14x256xf32>
      %744 = arith.addf %740, %743 : vector<14x256xf32>
      %c3_361 = arith.constant 3 : index
      %c0_362 = arith.constant 0 : index
      %c0_363 = arith.constant 0 : index
      %c0_364 = arith.constant 0 : index
      %745 = vector.load %arg6[%c3_361, %c0_362, %c0_363, %c0_364] : memref<4x9x14x14xf32, #tpu.memory_space<vmem>>, vector<1x1x14x14xf32>
      %746 = vector.shape_cast %745 : vector<1x1x14x14xf32> to vector<14x14xf32>
      %cst_365 = arith.constant dense<0.000000e+00> : vector<14x256xf32>
      %747 = tpu.matmul %746, %744, %cst_365 {dimension_numbers = #tpu.dot_dimension_numbers<[1], [0], [0], [1], [0, 0, 1, 1], [], []>} : vector<14x14xf32>, vector<14x256xf32>, vector<14x256xf32> -> vector<14x256xf32>
      %c3_366 = arith.constant 3 : index
      %c1_367 = arith.constant 1 : index
      %c0_368 = arith.constant 0 : index
      %c0_369 = arith.constant 0 : index
      %748 = vector.load %arg6[%c3_366, %c1_367, %c0_368, %c0_369] : memref<4x9x14x14xf32, #tpu.memory_space<vmem>>, vector<1x1x14x14xf32>
      %749 = vector.shape_cast %748 : vector<1x1x14x14xf32> to vector<14x14xf32>
      %cst_370 = arith.constant dense<0.000000e+00> : vector<14x256xf32>
      %750 = tpu.matmul %749, %737, %cst_370 {dimension_numbers = #tpu.dot_dimension_numbers<[1], [0], [0], [1], [0, 0, 1, 1], [], []>} : vector<14x14xf32>, vector<14x256xf32>, vector<14x256xf32> -> vector<14x256xf32>
      %751 = arith.addf %747, %750 : vector<14x256xf32>
      %c255_i32_371 = arith.constant 255 : i32
      %752 = tpu.dynamic_rotate %737 by %c255_i32_371 dim 1 : vector<14x256xf32>, i32 -> vector<14x256xf32>
      %753 = vector.broadcast %10 : vector<1x256xf32> to vector<14x256xf32>
      %754 = arith.mulf %753, %752 : vector<14x256xf32>
      %c15_i32_372 = arith.constant 15 : i32
      %755 = tpu.dynamic_rotate %737 by %c15_i32_372 dim 1 : vector<14x256xf32>, i32 -> vector<14x256xf32>
      %756 = vector.broadcast %14 : vector<1x256xf32> to vector<14x256xf32>
      %757 = arith.mulf %756, %755 : vector<14x256xf32>
      %758 = arith.addf %754, %757 : vector<14x256xf32>
      %c3_373 = arith.constant 3 : index
      %c2_374 = arith.constant 2 : index
      %c0_375 = arith.constant 0 : index
      %c0_376 = arith.constant 0 : index
      %759 = vector.load %arg6[%c3_373, %c2_374, %c0_375, %c0_376] : memref<4x9x14x14xf32, #tpu.memory_space<vmem>>, vector<1x1x14x14xf32>
      %760 = vector.shape_cast %759 : vector<1x1x14x14xf32> to vector<14x14xf32>
      %cst_377 = arith.constant dense<0.000000e+00> : vector<14x256xf32>
      %761 = tpu.matmul %760, %758, %cst_377 {dimension_numbers = #tpu.dot_dimension_numbers<[1], [0], [0], [1], [0, 0, 1, 1], [], []>} : vector<14x14xf32>, vector<14x256xf32>, vector<14x256xf32> -> vector<14x256xf32>
      %762 = arith.addf %751, %761 : vector<14x256xf32>
      %c1_i32_378 = arith.constant 1 : i32
      %763 = tpu.dynamic_rotate %734 by %c1_i32_378 dim 1 : vector<14x256xf32>, i32 -> vector<14x256xf32>
      %764 = vector.broadcast %6 : vector<1x256xf32> to vector<14x256xf32>
      %765 = arith.mulf %764, %763 : vector<14x256xf32>
      %c241_i32_379 = arith.constant 241 : i32
      %766 = tpu.dynamic_rotate %734 by %c241_i32_379 dim 1 : vector<14x256xf32>, i32 -> vector<14x256xf32>
      %767 = vector.broadcast %12 : vector<1x256xf32> to vector<14x256xf32>
      %768 = arith.mulf %767, %766 : vector<14x256xf32>
      %769 = arith.addf %765, %768 : vector<14x256xf32>
      %c3_380 = arith.constant 3 : index
      %c3_381 = arith.constant 3 : index
      %c0_382 = arith.constant 0 : index
      %c0_383 = arith.constant 0 : index
      %770 = vector.load %arg6[%c3_380, %c3_381, %c0_382, %c0_383] : memref<4x9x14x14xf32, #tpu.memory_space<vmem>>, vector<1x1x14x14xf32>
      %771 = vector.shape_cast %770 : vector<1x1x14x14xf32> to vector<14x14xf32>
      %cst_384 = arith.constant dense<0.000000e+00> : vector<14x256xf32>
      %772 = tpu.matmul %771, %769, %cst_384 {dimension_numbers = #tpu.dot_dimension_numbers<[1], [0], [0], [1], [0, 0, 1, 1], [], []>} : vector<14x14xf32>, vector<14x256xf32>, vector<14x256xf32> -> vector<14x256xf32>
      %773 = arith.addf %762, %772 : vector<14x256xf32>
      %c3_385 = arith.constant 3 : index
      %c4_386 = arith.constant 4 : index
      %c0_387 = arith.constant 0 : index
      %c0_388 = arith.constant 0 : index
      %774 = vector.load %arg6[%c3_385, %c4_386, %c0_387, %c0_388] : memref<4x9x14x14xf32, #tpu.memory_space<vmem>>, vector<1x1x14x14xf32>
      %775 = vector.shape_cast %774 : vector<1x1x14x14xf32> to vector<14x14xf32>
      %cst_389 = arith.constant dense<0.000000e+00> : vector<14x256xf32>
      %776 = tpu.matmul %775, %734, %cst_389 {dimension_numbers = #tpu.dot_dimension_numbers<[1], [0], [0], [1], [0, 0, 1, 1], [], []>} : vector<14x14xf32>, vector<14x256xf32>, vector<14x256xf32> -> vector<14x256xf32>
      %777 = arith.addf %773, %776 : vector<14x256xf32>
      %c255_i32_390 = arith.constant 255 : i32
      %778 = tpu.dynamic_rotate %734 by %c255_i32_390 dim 1 : vector<14x256xf32>, i32 -> vector<14x256xf32>
      %779 = vector.broadcast %10 : vector<1x256xf32> to vector<14x256xf32>
      %780 = arith.mulf %779, %778 : vector<14x256xf32>
      %c15_i32_391 = arith.constant 15 : i32
      %781 = tpu.dynamic_rotate %734 by %c15_i32_391 dim 1 : vector<14x256xf32>, i32 -> vector<14x256xf32>
      %782 = vector.broadcast %14 : vector<1x256xf32> to vector<14x256xf32>
      %783 = arith.mulf %782, %781 : vector<14x256xf32>
      %784 = arith.addf %780, %783 : vector<14x256xf32>
      %c3_392 = arith.constant 3 : index
      %c5_393 = arith.constant 5 : index
      %c0_394 = arith.constant 0 : index
      %c0_395 = arith.constant 0 : index
      %785 = vector.load %arg6[%c3_392, %c5_393, %c0_394, %c0_395] : memref<4x9x14x14xf32, #tpu.memory_space<vmem>>, vector<1x1x14x14xf32>
      %786 = vector.shape_cast %785 : vector<1x1x14x14xf32> to vector<14x14xf32>
      %cst_396 = arith.constant dense<0.000000e+00> : vector<14x256xf32>
      %787 = tpu.matmul %786, %784, %cst_396 {dimension_numbers = #tpu.dot_dimension_numbers<[1], [0], [0], [1], [0, 0, 1, 1], [], []>} : vector<14x14xf32>, vector<14x256xf32>, vector<14x256xf32> -> vector<14x256xf32>
      %788 = arith.addf %777, %787 : vector<14x256xf32>
      %c240_i32_397 = arith.constant 240 : i32
      %789 = tpu.dynamic_rotate %734 by %c240_i32_397 dim 1 : vector<14x256xf32>, i32 -> vector<14x256xf32>
      %c1_i32_398 = arith.constant 1 : i32
      %790 = tpu.dynamic_rotate %789 by %c1_i32_398 dim 1 : vector<14x256xf32>, i32 -> vector<14x256xf32>
      %791 = vector.broadcast %6 : vector<1x256xf32> to vector<14x256xf32>
      %792 = arith.mulf %791, %790 : vector<14x256xf32>
      %c241_i32_399 = arith.constant 241 : i32
      %793 = tpu.dynamic_rotate %789 by %c241_i32_399 dim 1 : vector<14x256xf32>, i32 -> vector<14x256xf32>
      %794 = vector.broadcast %12 : vector<1x256xf32> to vector<14x256xf32>
      %795 = arith.mulf %794, %793 : vector<14x256xf32>
      %796 = arith.addf %792, %795 : vector<14x256xf32>
      %c3_400 = arith.constant 3 : index
      %c6_401 = arith.constant 6 : index
      %c0_402 = arith.constant 0 : index
      %c0_403 = arith.constant 0 : index
      %797 = vector.load %arg6[%c3_400, %c6_401, %c0_402, %c0_403] : memref<4x9x14x14xf32, #tpu.memory_space<vmem>>, vector<1x1x14x14xf32>
      %798 = vector.shape_cast %797 : vector<1x1x14x14xf32> to vector<14x14xf32>
      %cst_404 = arith.constant dense<0.000000e+00> : vector<14x256xf32>
      %799 = tpu.matmul %798, %796, %cst_404 {dimension_numbers = #tpu.dot_dimension_numbers<[1], [0], [0], [1], [0, 0, 1, 1], [], []>} : vector<14x14xf32>, vector<14x256xf32>, vector<14x256xf32> -> vector<14x256xf32>
      %800 = arith.addf %788, %799 : vector<14x256xf32>
      %c3_405 = arith.constant 3 : index
      %c7_406 = arith.constant 7 : index
      %c0_407 = arith.constant 0 : index
      %c0_408 = arith.constant 0 : index
      %801 = vector.load %arg6[%c3_405, %c7_406, %c0_407, %c0_408] : memref<4x9x14x14xf32, #tpu.memory_space<vmem>>, vector<1x1x14x14xf32>
      %802 = vector.shape_cast %801 : vector<1x1x14x14xf32> to vector<14x14xf32>
      %cst_409 = arith.constant dense<0.000000e+00> : vector<14x256xf32>
      %803 = tpu.matmul %802, %789, %cst_409 {dimension_numbers = #tpu.dot_dimension_numbers<[1], [0], [0], [1], [0, 0, 1, 1], [], []>} : vector<14x14xf32>, vector<14x256xf32>, vector<14x256xf32> -> vector<14x256xf32>
      %804 = arith.addf %800, %803 : vector<14x256xf32>
      %c255_i32_410 = arith.constant 255 : i32
      %805 = tpu.dynamic_rotate %789 by %c255_i32_410 dim 1 : vector<14x256xf32>, i32 -> vector<14x256xf32>
      %806 = vector.broadcast %10 : vector<1x256xf32> to vector<14x256xf32>
      %807 = arith.mulf %806, %805 : vector<14x256xf32>
      %c15_i32_411 = arith.constant 15 : i32
      %808 = tpu.dynamic_rotate %789 by %c15_i32_411 dim 1 : vector<14x256xf32>, i32 -> vector<14x256xf32>
      %809 = vector.broadcast %14 : vector<1x256xf32> to vector<14x256xf32>
      %810 = arith.mulf %809, %808 : vector<14x256xf32>
      %811 = arith.addf %807, %810 : vector<14x256xf32>
      %c3_412 = arith.constant 3 : index
      %c8_413 = arith.constant 8 : index
      %c0_414 = arith.constant 0 : index
      %c0_415 = arith.constant 0 : index
      %812 = vector.load %arg6[%c3_412, %c8_413, %c0_414, %c0_415] : memref<4x9x14x14xf32, #tpu.memory_space<vmem>>, vector<1x1x14x14xf32>
      %813 = vector.shape_cast %812 : vector<1x1x14x14xf32> to vector<14x14xf32>
      %cst_416 = arith.constant dense<0.000000e+00> : vector<14x256xf32>
      %814 = tpu.matmul %813, %811, %cst_416 {dimension_numbers = #tpu.dot_dimension_numbers<[1], [0], [0], [1], [0, 0, 1, 1], [], []>} : vector<14x14xf32>, vector<14x256xf32>, vector<14x256xf32> -> vector<14x256xf32>
      %815 = arith.addf %804, %814 : vector<14x256xf32>
      %816 = vector.broadcast %736 : vector<14x1xf32> to vector<14x256xf32>
      %817 = arith.addf %815, %816 : vector<14x256xf32>
      %c1_417 = arith.constant 1 : index
      %818 = memref.load %arg8[%c1_417] : memref<2xf32, #tpu.memory_space<smem>>
      %819 = vector.broadcast %818 : f32 to vector<14x256xf32>
      %820 = arith.mulf %819, %817 : vector<14x256xf32>
      %821 = arith.addf %517, %820 : vector<14x256xf32>
      %cst_418 = arith.constant dense<0.000000e+00> : vector<14xf32>
      %822 = vector.multi_reduction <add>, %821, %cst_418 [1] : vector<14x256xf32> to vector<14xf32>
      %823 = vector.shape_cast %822 : vector<14xf32> to vector<14x1xf32>
      %cst_419 = arith.constant 2.560000e+02 : f32
      %824 = vector.broadcast %cst_419 : f32 to vector<14x1xf32>
      %825 = arith.divf %823, %824 : vector<14x1xf32>
      %c0_420 = arith.constant 0 : index
      %c0_421 = arith.constant 0 : index
      %826 = vector.load %arg9[%c0_420, %c0_421] : memref<14x3xf32, #tpu.memory_space<vmem>>, vector<14x3xf32>
      %827 = vector.broadcast %825 : vector<14x1xf32> to vector<14x3xf32>
      %828 = arith.mulf %826, %827 : vector<14x3xf32>
      %cst_422 = arith.constant dense<0.000000e+00> : vector<3xf32>
      %829 = vector.multi_reduction <add>, %828, %cst_422 [0] : vector<14x3xf32> to vector<3xf32>
      %830 = vector.shape_cast %829 : vector<3xf32> to vector<1x3xf32>
      %c0_423 = arith.constant 0 : index
      %c0_424 = arith.constant 0 : index
      %831 = vector.load %arg10[%c0_423, %c0_424] : memref<1x3xf32, #tpu.memory_space<vmem>>, vector<1x3xf32>
      %832 = arith.addf %830, %831 : vector<1x3xf32>
      %cst_425 = arith.constant 0.000000e+00 : f32
      %833 = vector.broadcast %cst_425 : f32 to vector<1x3xf32>
      %834 = arith.maximumf %832, %833 : vector<1x3xf32>
      %c0_426 = arith.constant 0 : index
      %c0_427 = arith.constant 0 : index
      %835 = vector.load %arg11[%c0_426, %c0_427] : memref<14x3xf32, #tpu.memory_space<vmem>>, vector<14x3xf32>
      %836 = vector.broadcast %834 : vector<1x3xf32> to vector<14x3xf32>
      %837 = arith.mulf %835, %836 : vector<14x3xf32>
      %cst_428 = arith.constant dense<0.000000e+00> : vector<14xf32>
      %838 = vector.multi_reduction <add>, %837, %cst_428 [1] : vector<14x3xf32> to vector<14xf32>
      %839 = vector.shape_cast %838 : vector<14xf32> to vector<14x1xf32>
      %c0_429 = arith.constant 0 : index
      %c0_430 = arith.constant 0 : index
      %840 = vector.load %arg12[%c0_429, %c0_430] : memref<14x1xf32, #tpu.memory_space<vmem>>, vector<14x1xf32>
      %841 = arith.addf %839, %840 : vector<14x1xf32>
      %842 = arith.negf %841 : vector<14x1xf32>
      %843 = math.exp %842 : vector<14x1xf32>
      %cst_431 = arith.constant 1.000000e+00 : f32
      %844 = vector.broadcast %cst_431 : f32 to vector<14x1xf32>
      %845 = arith.addf %844, %843 : vector<14x1xf32>
      %846 = arith.divf %844, %845 : vector<14x1xf32>
      %847 = vector.broadcast %846 : vector<14x1xf32> to vector<14x256xf32>
      %848 = arith.mulf %821, %847 : vector<14x256xf32>
      %c0_432 = arith.constant 0 : index
      %c0_433 = arith.constant 0 : index
      %849 = vector.load %arg13[%c0_432, %c0_433] : memref<12x14xf32, #tpu.memory_space<vmem>>, vector<12x14xf32>
      %cst_434 = arith.constant dense<0.000000e+00> : vector<12x256xf32>
      %850 = tpu.matmul %849, %848, %cst_434 {dimension_numbers = #tpu.dot_dimension_numbers<[1], [0], [0], [1], [0, 0, 1, 1], [], []>} : vector<12x14xf32>, vector<14x256xf32>, vector<12x256xf32> -> vector<12x256xf32>
      %c0_435 = arith.constant 0 : index
      %c0_436 = arith.constant 0 : index
      %851 = vector.load %arg14[%c0_435, %c0_436] : memref<12x1xf32, #tpu.memory_space<vmem>>, vector<12x1xf32>
      %852 = vector.broadcast %851 : vector<12x1xf32> to vector<12x256xf32>
      %853 = arith.addf %850, %852 : vector<12x256xf32>
      %cst_437 = arith.constant 0.000000e+00 : f32
      %854 = vector.broadcast %cst_437 : f32 to vector<12x256xf32>
      %855 = arith.cmpf ogt, %853, %854 : vector<12x256xf32>
      %cst_438 = arith.constant 0.000000e+00 : f32
      %856 = vector.broadcast %cst_438 : f32 to vector<12x256xf32>
      %857 = arith.cmpf olt, %853, %856 : vector<12x256xf32>
      %cst_439 = arith.constant -1.000000e+00 : f32
      %cst_440 = arith.constant 0.000000e+00 : f32
      %858 = vector.broadcast %cst_439 : f32 to vector<12x256xf32>
      %859 = vector.broadcast %cst_440 : f32 to vector<12x256xf32>
      %860 = arith.select %857, %858, %859 : vector<12x256xi1>, vector<12x256xf32>
      %cst_441 = arith.constant 1.000000e+00 : f32
      %861 = vector.broadcast %cst_441 : f32 to vector<12x256xf32>
      %862 = arith.select %855, %861, %860 : vector<12x256xi1>, vector<12x256xf32>
      %863 = math.absf %853 : vector<12x256xf32>
      %cst_442 = arith.constant 2.41421366 : f32
      %864 = vector.broadcast %cst_442 : f32 to vector<12x256xf32>
      %865 = arith.cmpf ogt, %863, %864 : vector<12x256xf32>
      %cst_443 = arith.constant 0.414213568 : f32
      %866 = vector.broadcast %cst_443 : f32 to vector<12x256xf32>
      %867 = arith.cmpf ogt, %863, %866 : vector<12x256xf32>
      %cst_444 = arith.constant dense<true> : vector<12x256xi1>
      %868 = arith.xori %865, %cst_444 : vector<12x256xi1>
      %869 = arith.andi %867, %868 : vector<12x256xi1>
      %cst_445 = arith.constant 1.000000e-30 : f32
      %870 = vector.broadcast %cst_445 : f32 to vector<12x256xf32>
      %871 = arith.maximumf %863, %870 : vector<12x256xf32>
      %cst_446 = arith.constant -1.000000e+00 : f32
      %872 = vector.broadcast %cst_446 : f32 to vector<12x256xf32>
      %873 = arith.divf %872, %871 : vector<12x256xf32>
      %cst_447 = arith.constant 1.000000e+00 : f32
      %874 = vector.broadcast %cst_447 : f32 to vector<12x256xf32>
      %875 = arith.subf %863, %874 : vector<12x256xf32>
      %cst_448 = arith.constant 1.000000e+00 : f32
      %876 = vector.broadcast %cst_448 : f32 to vector<12x256xf32>
      %877 = arith.addf %863, %876 : vector<12x256xf32>
      %878 = arith.divf %875, %877 : vector<12x256xf32>
      %879 = arith.select %869, %878, %863 : vector<12x256xi1>, vector<12x256xf32>
      %880 = arith.select %865, %873, %879 : vector<12x256xi1>, vector<12x256xf32>
      %cst_449 = arith.constant 0.785398185 : f32
      %cst_450 = arith.constant 0.000000e+00 : f32
      %881 = vector.broadcast %cst_449 : f32 to vector<12x256xf32>
      %882 = vector.broadcast %cst_450 : f32 to vector<12x256xf32>
      %883 = arith.select %869, %881, %882 : vector<12x256xi1>, vector<12x256xf32>
      %cst_451 = arith.constant 1.57079637 : f32
      %884 = vector.broadcast %cst_451 : f32 to vector<12x256xf32>
      %885 = arith.select %865, %884, %883 : vector<12x256xi1>, vector<12x256xf32>
      %886 = arith.mulf %880, %880 : vector<12x256xf32>
      %cst_452 = arith.constant 0.0805374458 : f32
      %887 = vector.broadcast %cst_452 : f32 to vector<12x256xf32>
      %888 = arith.mulf %887, %886 : vector<12x256xf32>
      %cst_453 = arith.constant 0.138776854 : f32
      %889 = vector.broadcast %cst_453 : f32 to vector<12x256xf32>
      %890 = arith.subf %888, %889 : vector<12x256xf32>
      %891 = arith.mulf %890, %886 : vector<12x256xf32>
      %cst_454 = arith.constant 0.199777111 : f32
      %892 = vector.broadcast %cst_454 : f32 to vector<12x256xf32>
      %893 = arith.addf %891, %892 : vector<12x256xf32>
      %894 = arith.mulf %893, %886 : vector<12x256xf32>
      %cst_455 = arith.constant 0.333329499 : f32
      %895 = vector.broadcast %cst_455 : f32 to vector<12x256xf32>
      %896 = arith.subf %894, %895 : vector<12x256xf32>
      %897 = arith.mulf %896, %886 : vector<12x256xf32>
      %898 = arith.mulf %897, %880 : vector<12x256xf32>
      %899 = arith.addf %898, %880 : vector<12x256xf32>
      %900 = arith.addf %885, %899 : vector<12x256xf32>
      %901 = arith.mulf %862, %900 : vector<12x256xf32>
      %c0_456 = arith.constant 0 : index
      %902 = memref.load %arg15[%c0_456] : memref<1xf32, #tpu.memory_space<smem>>
      %cst_457 = arith.constant 0.159154937 : f32
      %903 = arith.mulf %902, %cst_457 : f32
      %904 = vector.broadcast %903 : f32 to vector<12x256xf32>
      %905 = arith.mulf %901, %904 : vector<12x256xf32>
      %906 = arith.index_cast %arg17 : i32 to index
      %c0_458 = arith.constant 0 : index
      %c0_459 = arith.constant 0 : index
      %907 = vector.load %arg16[%906, %c0_458, %c0_459] : memref<2x12x256xf32, #tpu.memory_space<vmem>>, vector<1x12x256xf32>
      %908 = vector.shape_cast %907 : vector<1x12x256xf32> to vector<12x256xf32>
      %909 = vector.shape_cast %905 : vector<12x256xf32> to vector<1x12x256xf32>
      tpu.vector_store %arg16[%906, %c0_458, %c0_459], %909 {strides = array<i32>} : memref<2x12x256xf32, #tpu.memory_space<vmem>>, vector<1x12x256xf32>,
    }
    %c2_i32_4 = arith.constant 2 : i32
    return
  }
  func.func @transform_0(%arg0: i32) -> (i32, i32, i32) {
    %c0_i32 = arith.constant 0 : i32
    %c0_i32_0 = arith.constant 0 : i32
    %c0_i32_1 = arith.constant 0 : i32
    return %arg0, %c0_i32, %c0_i32_0 : i32, i32, i32
  }
  func.func @transform_1(%arg0: i32) -> (i32, i32, i32) {
    %c0_i32 = arith.constant 0 : i32
    %c0_i32_0 = arith.constant 0 : i32
    %c0_i32_1 = arith.constant 0 : i32
    %c0_i32_2 = arith.constant 0 : i32
    return %c0_i32, %c0_i32_0, %c0_i32_1 : i32, i32, i32
  }
  func.func @transform_2(%arg0: i32) -> (i32, i32) {
    %c0_i32 = arith.constant 0 : i32
    %c0_i32_0 = arith.constant 0 : i32
    %c0_i32_1 = arith.constant 0 : i32
    return %c0_i32, %c0_i32_0 : i32, i32
  }
  func.func @transform_3(%arg0: i32) -> (i32, i32, i32) {
    %c0_i32 = arith.constant 0 : i32
    %c0_i32_0 = arith.constant 0 : i32
    %c0_i32_1 = arith.constant 0 : i32
    %c0_i32_2 = arith.constant 0 : i32
    return %c0_i32, %c0_i32_0, %c0_i32_1 : i32, i32, i32
  }
  func.func @transform_4(%arg0: i32) -> (i32, i32, i32) {
    %c0_i32 = arith.constant 0 : i32
    %c0_i32_0 = arith.constant 0 : i32
    %c0_i32_1 = arith.constant 0 : i32
    %c0_i32_2 = arith.constant 0 : i32
    return %c0_i32, %c0_i32_0, %c0_i32_1 : i32, i32, i32
  }
  func.func @transform_5(%arg0: i32) -> (i32, i32, i32, i32) {
    %c0_i32 = arith.constant 0 : i32
    %c0_i32_0 = arith.constant 0 : i32
    %c0_i32_1 = arith.constant 0 : i32
    %c0_i32_2 = arith.constant 0 : i32
    %c0_i32_3 = arith.constant 0 : i32
    return %c0_i32, %c0_i32_0, %c0_i32_1, %c0_i32_2 : i32, i32, i32, i32
  }
  func.func @transform_6(%arg0: i32) -> (i32, i32, i32) {
    %c0_i32 = arith.constant 0 : i32
    %c0_i32_0 = arith.constant 0 : i32
    %c0_i32_1 = arith.constant 0 : i32
    %c0_i32_2 = arith.constant 0 : i32
    return %c0_i32, %c0_i32_0, %c0_i32_1 : i32, i32, i32
  }
  func.func @transform_7(%arg0: i32) -> i32 {
    %c0_i32 = arith.constant 0 : i32
    %c0_i32_0 = arith.constant 0 : i32
    return %c0_i32 : i32
  }
  func.func @transform_8(%arg0: i32) -> (i32, i32) {
    %c0_i32 = arith.constant 0 : i32
    %c0_i32_0 = arith.constant 0 : i32
    %c0_i32_1 = arith.constant 0 : i32
    return %c0_i32, %c0_i32_0 : i32, i32
  }
  func.func @transform_9(%arg0: i32) -> (i32, i32) {
    %c0_i32 = arith.constant 0 : i32
    %c0_i32_0 = arith.constant 0 : i32
    %c0_i32_1 = arith.constant 0 : i32
    return %c0_i32, %c0_i32_0 : i32, i32
  }
  func.func @transform_10(%arg0: i32) -> (i32, i32) {
    %c0_i32 = arith.constant 0 : i32
    %c0_i32_0 = arith.constant 0 : i32
    %c0_i32_1 = arith.constant 0 : i32
    return %c0_i32, %c0_i32_0 : i32, i32
  }
  func.func @transform_11(%arg0: i32) -> (i32, i32) {
    %c0_i32 = arith.constant 0 : i32
    %c0_i32_0 = arith.constant 0 : i32
    %c0_i32_1 = arith.constant 0 : i32
    return %c0_i32, %c0_i32_0 : i32, i32
  }
  func.func @transform_12(%arg0: i32) -> (i32, i32) {
    %c0_i32 = arith.constant 0 : i32
    %c0_i32_0 = arith.constant 0 : i32
    %c0_i32_1 = arith.constant 0 : i32
    return %c0_i32, %c0_i32_0 : i32, i32
  }
  func.func @transform_13(%arg0: i32) -> (i32, i32) {
    %c0_i32 = arith.constant 0 : i32
    %c0_i32_0 = arith.constant 0 : i32
    %c0_i32_1 = arith.constant 0 : i32
    return %c0_i32, %c0_i32_0 : i32, i32
  }
  func.func @transform_14(%arg0: i32) -> i32 {
    %c0_i32 = arith.constant 0 : i32
    %c0_i32_0 = arith.constant 0 : i32
    return %c0_i32 : i32
  }
  func.func @transform_15(%arg0: i32) -> (i32, i32, i32) {
    %c0_i32 = arith.constant 0 : i32
    %c0_i32_0 = arith.constant 0 : i32
    %c0_i32_1 = arith.constant 0 : i32
    return %arg0, %c0_i32, %c0_i32_0 : i32, i32, i32
  }
}

</mosaic_0001>

<bundles_post_ra>
// kernel: stable_hybrid_v2.1
= control target key start
LH: loop header
LB: loop body
LE: loop exit
PB: predicated region body
PF: predicated region fallthrough
CT: control target
= control target key end

     0   :  { %s10440_s0 = inlined_call_operand.vmem [shape: f32[2,6,256], index: 0, kind: input, shape index: {}]   ;;  %s10441_s1 = inlined_call_operand.vmem [shape: f32[9,14,6], index: 1, kind: input, shape index: {}]   ;;  %s10442_s2 = inlined_call_operand.vmem [shape: f32[14,1], index: 2, kind: input, shape index: {}]   ;;  %s10443_s3 = inlined_call_operand.vmem [shape: f32[5,14,1], index: 3, kind: input, shape index: {}]   ;;  %s10444_s4 = inlined_call_operand.vmem [shape: f32[5,14,1], index: 4, kind: input, shape index: {}]   ;;  %s10445_s5 = inlined_call_operand.vmem [shape: f32[4,9,14,14], index: 5, kind: input, shape index: {}]   ;;  %s10446_s6 = inlined_call_operand.vmem [shape: f32[4,14,1], index: 6, kind: input, shape index: {}]   ;;  %s10447_s7 = inlined_call_operand.vmem [shape: f32[2], index: 7, kind: input, shape index: {}]   ;;  %s10448_s8 = inlined_call_operand.vmem [shape: f32[14,3], index: 8, kind: input, shape index: {}]   ;;  %s10449_s9 = inlined_call_operand.vmem [shape: f32[1,3], index: 9, kind: input, shape index: {}]   ;;  %s10450_s10 = inlined_call_operand.vmem [shape: f32[14,3], index: 10, kind: input, shape index: {}]   ;;  %s10451_s11 = inlined_call_operand.vmem [shape: f32[14,1], index: 11, kind: input, shape index: {}]   ;;  %s10452_s12 = inlined_call_operand.vmem [shape: f32[12,14], index: 12, kind: input, shape index: {}]   ;;  %s10453_s13 = inlined_call_operand.vmem [shape: f32[12,1], index: 13, kind: input, shape index: {}]   ;;  %s10454_s14 = inlined_call_operand.<no memory space> [shape: f32[1], index: 14, kind: input, shape index: {}]   ;;  %s10455_s15 = inlined_call_operand.vmem [shape: f32[2,12,256], index: 15, kind: output, shape index: {}]  }
   0x1   :  { %10471 = sst [smem:[#allocation6_spill]] %s10440_s0 }
   0x2   :  { %10472 = sst [smem:[#allocation7_spill]] %s10441_s1 }
   0x3   :  { %10473 = sst [smem:[#allocation8_spill]] %s10442_s2 }
   0x4   :  { %10474 = sst [smem:[#allocation9_spill]] %s10455_s15 }
   0x5   :  { %20 = sst [smem:[#allocation2]] %s10454_s14 }
   0x6   :  { %21 = vsyncpa [#allocation4], 0  ;;  %s42_s22 = sshll.u32 %s10447_s7, 4  ;;  %s43_s22 = int_to_ptr.vmem [resolvable:$true] %s42_s22 }
   0x7   :  { %s7819_s23 = scalar_lea.vmem %s43_s22, 16  ;;  %p7824_p1 = scmp.lt.s32.totalorder %s43_s22, %s43_s22 }
   0x8   :  { %p7820_p0 = scmp.ne.s32.totalorder %s43_s22, %s7819_s23  ;;  %p7825_p2 = scmp.lt.s32.totalorder %s7819_s23, %s7819_s23 }
   0xa   :  { %p7826_p3 = por %p7825_p2, %p7824_p1 }
   0xc   :  { %p7827_p4 = pnand %p7826_p3, %p7820_p0 }
   0xe   :  { %7830 = shalt.err (!%p7827_p4)
}
   0xf   :  { %s7841_s24 = smov [#allocation3]  }
  0x10   :  { %45 = dma.vmem_to_smem %s43_s22, 16, %s7841_s24, [#allocation4]  }
  0x11   :  { %7835 = dma.done.wait [#allocation4], 16  }
  0x12   :  { %7836 = vsyncadd [#allocation4], 4294967280 }
  0x13   :  { %63 = sfence }
  0x14   :  { %v64_v0 = vlaneseq  ;;  %v7842_v5 = vmov 0.0   ;;  %s7971_s7 = smov 0  }
  0x16   :  { %v7939_v1 = vand.u32 127, %v64_v0  ;;  %v7941_v2 = vshrl.u32 %v64_v0, 7 }
  0x18   :  { %v66_v3 = vadd.s32 128, %v7939_v1  ;;  %v67_v4 = vand.u32 15, %v7939_v1  ;;  %vm88_vm0 = vcmp.lt.s32.totalorder %v7941_v2, 7 }
  0x19   :  { %v7946_v6 = vsel %vm88_vm0, 1.0, %v7842_v5 }
  0x1a   :  { %v68_v7 = vand.u32 15, %v66_v3  ;;  %vm69_vm1 = vcmp.ge.s32.totalorder %v67_v4, 1  ;;  %vm75_vm2 = vcmp.lt.s32.totalorder %v67_v4, 15  ;;  %v7949_v8 = vsub.f32 1.0, %v7946_v6 }
  0x1b   :  { %v7951_v9 = vsel %vm69_vm1, 1.0, %v7842_v5  ;;  %v7953_v10 = vsel %vm75_vm2, 1.0, %v7842_v5 }
  0x1c   :  { %vm70_vm3 = vcmp.ge.s32.totalorder %v68_v7, 1  ;;  %vm76_vm4 = vcmp.lt.s32.totalorder %v68_v7, 15  ;;  %v7956_v11 = vsub.f32 1.0, %v7951_v9  ;;  %v7959_v12 = vsub.f32 1.0, %v7953_v10 }
  0x1d   :  { %v7961_v13 = vsel %vm70_vm3, 1.0, %v7842_v5  ;;  %v7963_v14 = vsel %vm76_vm4, 1.0, %v7842_v5 }
  0x1e   :  { %v7966_v15 = vsub.f32 1.0, %v7961_v13  ;;  %v7969_v16 = vsub.f32 1.0, %v7963_v14 }
  0x1f LB: > { %s7229_s14 = sshll.u32 %s7839_s7, 4  ;;  %s10475_s0 = sld [smem:[#allocation6_spill]]  ;;  %vm148_vm5 = vcmask 1045504   ;;  %v7849_v20 = vmov 0.0   ;;  %vm141_vm6 = vcmask 48128   ;;  %vm113_vm7 = vcmp.lt.s32.totalorder %v7939_v1, 16  ;;  %s7839_s7 = sphi %s7971_s7, %s101_s7  }
  0x20   : > { %s10467_s28 = smov 16   ;;  %s10465_s29 = smov 112   ;;  %630 = vmatprep.mubr.f32.mxu0 %v7849_v20  ;;  %219 = vmatprep.mubr.f32.mxu1 %v7849_v20  ;;  %vm325_vm8 = vcmp.lt.s32.totalorder %v7939_v1, 127  ;;  %vm765_vm9 = vcmp.lt.s32.totalorder %v7939_v1, 112  ;;  %vm10464_vm10 = vcmp.lt.s32.totalorder %v7939_v1, 15  ;;  %v7850_v48 = vmov 0  }
  0x21   : > { %s10458_s30 = smov 127   ;;  %s10456_s16 = smov 15   ;;  %7694 = vset.pattern.permute.xlu1 %v7850_v48  ;;  %7693 = vset.pattern.permute.xlu0 %v7850_v48  ;;  %vm120_vm11 = vcmp.lt.s32.totalorder %v7939_v1, 1  ;;  %vm129_vm12 = vcmp.lt.s32.totalorder %v7939_v1, 113  ;;  %vm1132_vm13 = vcmask 7168   ;;  %vm1134_vm14 = vcmask 5120  }
  0x22   : > { %s10462_s17 = smov 1   ;;  %s10460_s18 = smov 113  }
  0x23   : > { %s10476_s1 = sld [smem:[#allocation7_spill]]  ;;  %s10477_s2 = sld [smem:[#allocation8_spill]] }
  0x25   : > { %s104_s27 = scalar_lea.vmem %s10475_s0, %s7229_s14 }
  0x26   : > { %v105_v17 = vld [vmem:[%s104_s27] sm:$0x3f]  ;;  %v106_v18 = vld [vmem:[%s104_s27 + $0x8] sm:$0x3f] }
  0x27   : > { %109 = vrot.lane.b32.xlu0 %v105_v17, %s10467_s28  ;;  %761 = vrot.lane.b32.xlu1 %v105_v17, %s10465_s29 }
  0x28   : > { %6928 = vmatprep.subr.msk.mxu0 %vm148_vm5, %v106_v18 }
  0x29   : > { %6929 = vmatpush1.msk.msra.mxu0 %vm148_vm5, %v105_v17  ;;  %v6926_v19 = vld [vmem:[%s10476_s1 + $0x40] sm:$0xff]  ;;  %v6927_v23 = vld [vmem:[%s10476_s1 + $0x48] sm:$0x3f]  ;;  %v6904_v28 = vld [vmem:[%s10476_s1 + $0x10] sm:$0xff] }
  0x2a   : > { %6930 = vmatmul.mubr.msk.f32.vlgmr.msra.gmra.mrb[0].mxu0 %vm141_vm6, %v6926_v19  ;;  %v6905_v33 = vld [vmem:[%s10476_s1 + $0x18] sm:$0x3f]  ;;  %v6932_v46 = vld [vmem:[%s10476_s1 + $0x50] sm:$0xff]  ;;  %v107_v49 = vld [vmem:[%s10477_s2] sm:$0xff] }
  0x2b   : > { %111 = vrot.lane.b32.xlu0 %v106_v18, %s10467_s28  ;;  %763 = vrot.lane.b32.xlu1 %v106_v18, %s10465_s29  ;;  %v6933_v47 = vld [vmem:[%s10476_s1 + $0x58] sm:$0x3f]  ;;  %v108_v50 = vld [vmem:[%s10477_s2 + $0x8] sm:$0x3f] }
  0x2c   : > { %636 = vmatprep.mubr.f32.mxu0 %v7849_v20  ;;  %v136_v19 = vld [vmem:[%s10476_s1] sm:$0xff] }
  0x2e   : > { %6931 = vmatmul.mubr.msk.f32.gmra.mrb[2].mxu0 %vm141_vm6, %v6927_v23 }
  0x2f   : > { %649 = vrot.lane.b32.xlu1 %v106_v18, %s10458_s30  ;;  %647 = vrot.lane.b32.xlu0 %v105_v17, %s10458_s30 }
  0x30   : > { %744 = vmatprep.mubr.f32.mxu0 %v7849_v20 }
  0x33   : > { %657 = vrot.lane.b32.xlu1 %v106_v18, %s10456_s16  ;;  %655 = vrot.lane.b32.xlu0 %v105_v17, %s10456_s16 }
  0x37   : > { %439 = vrot.lane.b32.xlu1 %v106_v18, %s10462_s17  ;;  %437 = vrot.lane.b32.xlu0 %v105_v17, %s10462_s17 }
  0x3b   : > { %447 = vrot.lane.b32.xlu1 %v106_v18, %s10460_s18  ;;  %445 = vrot.lane.b32.xlu0 %v105_v17, %s10460_s18 }
  0x99   : > { %v110_v21 = vpop.permute.xlu0 %109  ;;  %v762_v22 = vpop.permute.xlu1 %761 }
  0x9d   : > { %v112_v24 = vpop.permute.xlu0 %111  ;;  %v764_v25 = vpop.permute.xlu1 %763 }
  0x9e   : > { %v114_v26 = vsel %vm113_vm7, %v110_v21, %v112_v24  ;;  %v115_v27 = vsel %vm113_vm7, %v112_v24, %v110_v21  ;;  %v8036_v38 = vsel %vm765_vm9, %v762_v22, %v764_v25  ;;  %v8040_v39 = vsel %vm765_vm9, %v764_v25, %v762_v22 }
  0x9f   : > { %116 = vrot.lane.b32.xlu0 %v115_v27, %s10462_s17  ;;  %118 = vrot.lane.b32.xlu1 %v114_v26, %s10462_s17 }
  0xa0   : > { %6906 = vmatprep.subr.msk.mxu1 %vm148_vm5, %v114_v26 }
  0xa1   : > { %6907 = vmatpush1.msk.msra.mxu1 %vm148_vm5, %v115_v27  ;;  %v650_v29 = vpop.permute.xlu1 %649  ;;  %v648_v30 = vpop.permute.xlu0 %647 }
  0xa2   : > { %v651_v31 = vsel %vm325_vm8, %v648_v30, %v650_v29  ;;  %v652_v32 = vsel %vm325_vm8, %v650_v29, %v648_v30  ;;  %6908 = vmatmul.mubr.msk.f32.vlgmr.msra.gmra.mrb[0].mxu1 %vm141_vm6, %v6904_v28 }
  0xa3   : > { %125 = vrot.lane.b32.xlu0 %v115_v27, %s10460_s18  ;;  %127 = vrot.lane.b32.xlu1 %v114_v26, %s10460_s18  ;;  %v653_v34 = vmul.f32 %v7953_v10, %v651_v31  ;;  %v654_v35 = vmul.f32 %v7963_v14, %v652_v32 }
  0xa4   : > { %225 = vmatprep.mubr.f32.mxu1 %v7849_v20 }
  0xa5   : > { %v658_v36 = vpop.permute.xlu1 %657  ;;  %v656_v37 = vpop.permute.xlu0 %655 }
  0xa6   : > { %v659_v40 = vsel %vm10464_vm10, %v656_v37, %v658_v36  ;;  %v660_v41 = vsel %vm10464_vm10, %v658_v36, %v656_v37  ;;  %6909 = vmatmul.mubr.msk.f32.gmra.mrb[2].mxu1 %vm141_vm6, %v6905_v33  ;;  %v6938_v37 = vld [vmem:[%s10476_s1 + $0x60] sm:$0xff] }
  0xa7   : > { %768 = vrot.lane.b32.xlu0 %v8036_v38, %s10462_s17  ;;  %770 = vrot.lane.b32.xlu1 %v8040_v39, %s10462_s17  ;;  %v661_v42 = vmul.f32 %v660_v41, %v7959_v12  ;;  %v662_v43 = vmul.f32 %v659_v40, %v7969_v16 }
  0xa8   : > { %308 = vmatprep.mubr.f32.mxu1 %v7849_v20 }
  0xa9   : > { %v663_v44 = vadd.f32 %v661_v42, %v653_v34  ;;  %v664_v45 = vadd.f32 %v662_v43, %v654_v35  ;;  %v440_v51 = vpop.permute.xlu1 %439  ;;  %v438_v52 = vpop.permute.xlu0 %437 }
  0xaa   : > { %v441_v36 = vsel %vm120_vm11, %v438_v52, %v440_v51  ;;  %v442_v43 = vsel %vm120_vm11, %v440_v51, %v438_v52  ;;  %v6939_v51 = vld [vmem:[%s10476_s1 + $0x68] sm:$0x3f] }
  0xab   : > { %776 = vrot.lane.b32.xlu0 %v8036_v38, %s10460_s18  ;;  %778 = vrot.lane.b32.xlu1 %v8040_v39, %s10460_s18 }
  0xac   : > { %6934 = vmatprep.subr.msk.mxu0 %vm148_vm5, %v664_v45 }
  0xad   : > { %6935 = vmatpush1.msk.msra.mxu0 %vm148_vm5, %v663_v44  ;;  %v448_v53 = vpop.permute.xlu1 %447  ;;  %v446_v54 = vpop.permute.xlu0 %445  ;;  %v444_v44 = vmul.f32 %v7961_v13, %v441_v36 }
  0xae   : > { %6936 = vmatmul.mubr.msk.f32.vlgmr.msra.gmra.mrb[0].mxu0 %vm141_vm6, %v6932_v46  ;;  %v450_v40 = vsel %vm129_vm12, %v448_v53, %v446_v54  ;;  %v449_v45 = vsel %vm129_vm12, %v446_v54, %v448_v53 }
  0xaf   : > { %321 = vrot.lane.b32.xlu0 %v115_v27, %s10458_s30  ;;  %323 = vrot.lane.b32.xlu1 %v114_v26, %s10458_s30  ;;  %v452_v48 = vmul.f32 %v450_v40, %v7966_v15 }
  0xb0   : > { %750 = vmatprep.mubr.f32.mxu0 %v7849_v20 }
  0xb2   : > { %6937 = vmatmul.mubr.msk.f32.gmra.mrb[2].mxu0 %vm141_vm6, %v6933_v47 }
  0xb3   : > { %330 = vrot.lane.b32.xlu0 %v115_v27, %s10456_s16  ;;  %332 = vrot.lane.b32.xlu1 %v114_v26, %s10456_s16  ;;  %v137_v27 = vld [vmem:[%s10476_s1 + $0x8] sm:$0x3f] }
  0xb4   : > { %865 = vmatprep.mubr.f32.mxu0 %v7849_v20 }
  0xb7   : > { %978 = vrot.lane.b32.xlu0 %v8036_v38, %s10458_s30  ;;  %980 = vrot.lane.b32.xlu1 %v8040_v39, %s10458_s30 }
  0xbb   : > { %986 = vrot.lane.b32.xlu0 %v8036_v38, %s10456_s16  ;;  %988 = vrot.lane.b32.xlu1 %v8040_v39, %s10456_s16 }
  0xbf   : > { %1094 = vperm.xlu1 %7694, %v107_v49   ;;  %1099 = vperm.xlu0 %7693, %v108_v50  }
 0x111   : > { %v119_v55 = vpop.permute.xlu1 %118  ;;  %v117_v56 = vpop.permute.xlu0 %116 }
 0x112   : > { %v121_v57 = vsel %vm120_vm11, %v117_v56, %v119_v55  ;;  %v122_v58 = vsel %vm120_vm11, %v119_v55, %v117_v56  ;;  %v443_v55 = vmul.f32 %v7951_v9, %v442_v43  ;;  %v451_v56 = vmul.f32 %v449_v45, %v7956_v11 }
 0x113   : > { %v123_v63 = vmul.f32 %v7951_v9, %v122_v58  ;;  %v124_v0 = vmul.f32 %v7961_v13, %v121_v57 }
 0x115   : > { %v128_v59 = vpop.permute.xlu1 %127  ;;  %v126_v60 = vpop.permute.xlu0 %125 }
 0x116   : > { %v130_v61 = vsel %vm129_vm12, %v126_v60, %v128_v59  ;;  %v131_v62 = vsel %vm129_vm12, %v128_v59, %v126_v60  ;;  %v6914_v60 = vld [vmem:[%s10476_s1 + $0x20] sm:$0xff] }
 0x117   : > { %v132_v3 = vmul.f32 %v130_v61, %v7956_v11  ;;  %v133_v4 = vmul.f32 %v131_v62, %v7966_v15  ;;  %v454_v61 = vadd.f32 %v452_v48, %v444_v44 }
 0x119   : > { %v134_v5 = vadd.f32 %v132_v3, %v123_v63  ;;  %v135_v7 = vadd.f32 %v133_v4, %v124_v0  ;;  %v771_v17 = vpop.permute.xlu1 %770  ;;  %v769_v18 = vpop.permute.xlu0 %768  ;;  %v6944_v63 = vld [vmem:[%s10476_s1 + $0x70] sm:$0xff]  ;;  %v453_v0 = vadd.f32 %v451_v56, %v443_v55 }
 0x11a   : > { %v772_v21 = vsel %vm120_vm11, %v769_v18, %v771_v17  ;;  %v773_v22 = vsel %vm120_vm11, %v771_v17, %v769_v18 }
 0x11b   : > { %6910 = vmatprep.subr.msk.mxu1 %vm148_vm5, %v135_v7  ;;  %v774_v28 = vmul.f32 %v7951_v9, %v773_v22  ;;  %v775_v29 = vmul.f32 %v7961_v13, %v772_v21 }
 0x11c   : > { %6911 = vmatpush1.msk.msra.mxu1 %vm148_vm5, %v134_v5 }
 0x11d   : > { %v779_v23 = vpop.permute.xlu1 %778  ;;  %v777_v24 = vpop.permute.xlu0 %776  ;;  %6912 = vmatmul.mubr.msk.f32.vlgmr.msra.gmra.mrb[0].mxu1 %vm141_vm6, %v136_v19  ;;  %v6915_v19 = vld [vmem:[%s10476_s1 + $0x28] sm:$0x3f] }
 0x11e   : > { %v780_v25 = vsel %vm129_vm12, %v777_v24, %v779_v23  ;;  %v781_v26 = vsel %vm129_vm12, %v779_v23, %v777_v24  ;;  %314 = vmatprep.mubr.f32.mxu1 %v7849_v20  ;;  %v6945_v24 = vld [vmem:[%s10476_s1 + $0x78] sm:$0x3f] }
 0x11f   : > { %v782_v30 = vmul.f32 %v780_v25, %v7956_v11  ;;  %v783_v31 = vmul.f32 %v781_v26, %v7966_v15 }
 0x121   : > { %v784_v32 = vadd.f32 %v782_v30, %v774_v28  ;;  %v785_v33 = vadd.f32 %v783_v31, %v775_v29  ;;  %v324_v34 = vpop.permute.xlu1 %323  ;;  %v322_v35 = vpop.permute.xlu0 %321  ;;  %6913 = vmatmul.mubr.msk.f32.gmra.mrb[2].mxu1 %vm141_vm6, %v137_v27  ;;  %v6920_v27 = vld [vmem:[%s10476_s1 + $0x30] sm:$0xff]  ;;  %v6950_v28 = vld [vmem:[%s10476_s1 + $0x80] sm:$0xff]  ;;  %v6921_v29 = vld [vmem:[%s10476_s1 + $0x38] sm:$0x3f] }
 0x122   : > { %420 = vmatprep.mubr.f32.mxu1 %v7849_v20  ;;  %v326_v41 = vsel %vm325_vm8, %v322_v35, %v324_v34  ;;  %v327_v42 = vsel %vm325_vm8, %v324_v34, %v322_v35  ;;  %v6951_v30 = vld [vmem:[%s10476_s1 + $0x88] sm:$0x3f] }
 0x123   : > { %6940 = vmatprep.subr.msk.mxu0 %vm148_vm5, %v785_v33  ;;  %v328_v52 = vmul.f32 %v7953_v10, %v326_v41 }
 0x124   : > { %6941 = vmatpush1.msk.msra.mxu0 %vm148_vm5, %v784_v32 }
 0x125   : > { %v333_v46 = vpop.permute.xlu1 %332  ;;  %v331_v47 = vpop.permute.xlu0 %330  ;;  %6942 = vmatmul.mubr.msk.f32.vlgmr.msra.gmra.mrb[0].mxu0 %vm141_vm6, %v6938_v37  ;;  %6946 = vmatprep.subr.msk.mxu0 %vm148_vm5, %v8040_v39  ;;  %v329_v39 = vmul.f32 %v7963_v14, %v327_v42 }
 0x126   : > { %v335_v49 = vsel %vm10464_vm10, %v331_v47, %v333_v46  ;;  %v336_v50 = vsel %vm10464_vm10, %v333_v46, %v331_v47  ;;  %6947 = vmatpush1.msk.msra.mxu0 %vm148_vm5, %v8036_v38  ;;  %871 = vmatprep.mubr.f32.mxu0 %v7849_v20 }
 0x127   : > { %v337_v53 = vmul.f32 %v336_v50, %v7959_v12  ;;  %v338_v54 = vmul.f32 %v335_v49, %v7969_v16 }
 0x129   : > { %v339_v57 = vadd.f32 %v337_v53, %v328_v52  ;;  %v340_v38 = vadd.f32 %v338_v54, %v329_v39  ;;  %v981_v58 = vpop.permute.xlu1 %980  ;;  %v979_v59 = vpop.permute.xlu0 %978  ;;  %6943 = vmatmul.mubr.msk.f32.gmra.mrb[2].mxu0 %vm141_vm6, %v6939_v51 }
 0x12a   : > { %961 = vmatprep.mubr.f32.mxu0 %v7849_v20  ;;  %v982_v62 = vsel %vm325_vm8, %v979_v59, %v981_v58  ;;  %v983_v3 = vsel %vm325_vm8, %v981_v58, %v979_v59 }
 0x12b   : > { %6916 = vmatprep.subr.msk.mxu1 %vm148_vm5, %v340_v38  ;;  %v984_v7 = vmul.f32 %v7953_v10, %v982_v62  ;;  %v985_v21 = vmul.f32 %v7963_v14, %v983_v3 }
 0x12c   : > { %6917 = vmatpush1.msk.msra.mxu1 %vm148_vm5, %v339_v57 }
 0x12d   : > { %v989_v4 = vpop.permute.xlu1 %988  ;;  %6918 = vmatmul.mubr.msk.f32.vlgmr.msra.gmra.mrb[0].mxu1 %vm141_vm6, %v6914_v60  ;;  %6922 = vmatprep.subr.msk.mxu1 %vm148_vm5, %v454_v61  ;;  %v987_v5 = vpop.permute.xlu0 %986 }
 0x12e   : > { %v990_v17 = vsel %vm10464_vm10, %v987_v5, %v989_v4  ;;  %v991_v18 = vsel %vm10464_vm10, %v989_v4, %v987_v5  ;;  %6948 = vmatmul.mubr.msk.f32.vlgmr.msra.gmra.mrb[0].mxu0 %vm141_vm6, %v6944_v63  ;;  %6923 = vmatpush1.msk.msra.mxu1 %vm148_vm5, %v453_v0 }
 0x12f   : > { %v992_v22 = vmul.f32 %v991_v18, %v7959_v12  ;;  %v993_v23 = vmul.f32 %v990_v17, %v7969_v16  ;;  %426 = vmatprep.mubr.f32.mxu1 %v7849_v20  ;;  %967 = vmatprep.mubr.f32.mxu0 %v7849_v20 }
 0x131   : > { %v994_v25 = vadd.f32 %v992_v22, %v984_v7  ;;  %v995_v26 = vadd.f32 %v993_v23, %v985_v21  ;;  %6919 = vmatmul.mubr.msk.f32.gmra.mrb[2].mxu1 %vm141_vm6, %v6915_v19 }
 0x132   : > { %6949 = vmatmul.mubr.msk.f32.gmra.mrb[2].mxu0 %vm141_vm6, %v6945_v24  ;;  %534 = vmatprep.mubr.f32.mxu1 %v7849_v20 }
 0x133   : > { %6952 = vmatprep.subr.msk.mxu0 %vm148_vm5, %v995_v26  ;;  %1075 = vmatprep.mubr.f32.mxu0 %v7849_v20 }
 0x134   : > { %6953 = vmatpush1.msk.msra.mxu0 %vm148_vm5, %v994_v25 }
 0x135   : > { %6924 = vmatmul.mubr.msk.f32.vlgmr.msra.gmra.mrb[0].mxu1 %vm141_vm6, %v6920_v27 }
 0x136   : > { %6954 = vmatmul.mubr.msk.f32.vlgmr.msra.gmra.mrb[0].mxu0 %vm141_vm6, %v6950_v28  ;;  %540 = vmatprep.mubr.f32.mxu1 %v7849_v20 }
 0x137   : > { %1081 = vmatprep.mubr.f32.mxu0 %v7849_v20 }
 0x139   : > { %6925 = vmatmul.mubr.msk.f32.gmra.mrb[2].mxu1 %vm141_vm6, %v6921_v29 }
 0x13a   : > { %6955 = vmatmul.mubr.msk.f32.gmra.mrb[2].mxu0 %vm141_vm6, %v6951_v30  ;;  %1686 = vmatprep.mubr.f32.mxu1 %v7849_v20 }
 0x13b   : > { %2979 = vmatprep.mubr.f32.mxu0 %v7849_v20 }
 0x13e   : > { %v1095_v32 = vpop.permute.xlu1 %1094  ;;  %v1100_v42 = vpop.permute.xlu0 %1099 }
 0x208   : > { %v536_v31 = vpop.f32.mrb[0].mxu1 }
 0x209   : > { %v1077_v33 = vpop.f32.mrb[0].mxu0  ;;  %v538_v34 = vpop.f32.mrb[1].mxu1 }
 0x20a   : > { %v7453_v35 = vadd.f32 %v1077_v33, %v536_v31  ;;  %v1079_v36 = vpop.f32.mrb[1].mxu0  ;;  %v1109_v33 = vld [vmem:[%s10444_s4 + $0x8] sm:$0x3f] }
 0x20b   : > { %v7454_v37 = vadd.f32 %v1079_v36, %v538_v34  ;;  %v1107_v34 = vld [vmem:[%s10443_s3 + $0x8] sm:$0x3f] }
 0x20c   : > { %v8224_v40 = vadd.f32 %v7453_v35, %v1095_v32  ;;  %v542_v41 = vpop.f32.mrb[2].mxu1  ;;  %v1108_v35 = vld [vmem:[%s10444_s4] sm:$0xff] }
 0x20d   : > { %v8226_v43 = vadd.f32 %v7454_v37, %v1095_v32  ;;  %v1083_v44 = vpop.f32.mrb[2].mxu0  ;;  %v544_v45 = vpop.f32.mrb[3].mxu1  ;;  %v1106_v32 = vld [vmem:[%s10443_s3] sm:$0xff] }
 0x20e   : > { %v7455_v46 = vadd.f32 %v1083_v44, %v542_v41  ;;  %v1085_v47 = vpop.f32.mrb[3].mxu0  ;;  %v1118_v57 = vmul.f32 %v8224_v40, %v8224_v40 }
 0x20f   : > { %v7456_v48 = vadd.f32 %v1085_v47, %v544_v45  ;;  %v1110_v49 = vadd.f32 %v8226_v43, %v8224_v40  ;;  %v1119_v38 = vmul.f32 %v8226_v43, %v8226_v43 }
 0x210   : > { %v8230_v50 = vadd.f32 %v7455_v46, %v1100_v42 }
 0x211   : > { %v8232_v51 = vadd.f32 %v7456_v48, %v1100_v42  ;;  %1111 = vadd.xlane.f32.xlu1 %v1110_v49  ;;  %v1122_v60 = vadd.f32 %v1119_v38, %v1118_v57 }
 0x212   : > { %v1113_v52 = vsel %vm148_vm5, %v8230_v50, 0.0  ;;  %v1120_v39 = vmul.f32 %v8230_v50, %v8230_v50 }
 0x213   : > { %v1114_v53 = vsel %vm148_vm5, %v8232_v51, 0.0  ;;  %v1121_v54 = vmul.f32 %v8232_v51, %v8232_v51 }
 0x214   : > { %v1115_v55 = vadd.f32 %v1114_v53, %v1113_v52  ;;  %v1125_v56 = vsel %vm148_vm5, %v1120_v39, 0.0 }
 0x215   : > { %v1126_v58 = vsel %vm148_vm5, %v1121_v54, 0.0 }
 0x216   : > { %1116 = vadd.xlane.f32.xlu0 %v1115_v55  ;;  %v1127_v59 = vadd.f32 %v1126_v58, %v1125_v56 }
 0x218   : > { %1128 = vadd.xlane.f32.xlu1 %v1127_v59 }
 0x21a   : > { %1123 = vadd.xlane.f32.xlu0 %v1122_v60 }
 0x29e   : > { %v1112_v61 = vpop.xlane.xlu1 %1111 }
 0x29f   : > { %v1147_v62 = vmul.f32 %v1112_v61, %v7949_v8  ;;  %v1130_v63 = vmul.f32 %v7946_v6, %v1112_v61 }
 0x2a1   : > { %v1149_v4 = vsel %vm1132_vm13, %v1147_v62, 0.0  ;;  %v1133_v19 = vsel %vm1132_vm13, %v1130_v63, 0.0 }
 0x2a3   : > { %v1117_v0 = vpop.xlane.xlu0 %1116 }
 0x2a4   : > { %v1131_v3 = vmul.f32 0.0, %v1117_v0  ;;  %v1150_v5 = vsel %vm1134_vm14, %v1117_v0, 0.0 }
 0x2a5   : > { %v1129_v7 = vpop.xlane.xlu1 %1128  ;;  %v1151_v17 = vadd.f32 %v1150_v5, %v1149_v4 }
 0x2a6   : > { %v1163_v18 = vmul.f32 0.0, %v1129_v7  ;;  %v1135_v21 = vsel %vm1134_vm14, %v1131_v3, 0.0  ;;  %v1183_v29 = vsel %vm1134_vm14, %v1129_v7, 0.0 }
 0x2a7   : > { %1152 = vadd.xlane.f32.xlu1 %v1151_v17  ;;  %v1124_v22 = vpop.xlane.xlu0 %1123  ;;  %v1136_v23 = vadd.f32 %v1135_v21, %v1133_v19 }
 0x2a8   : > { %v1162_v24 = vmul.f32 %v7946_v6, %v1124_v22  ;;  %v1180_v25 = vmul.f32 %v1124_v22, %v7949_v8  ;;  %v1165_v27 = vsel %vm1134_vm14, %v1163_v18, 0.0 }
 0x2a9   : > { %1137 = vadd.xlane.f32.xlu0 %v1136_v23 }
 0x2aa   : > { %v1164_v26 = vsel %vm1132_vm13, %v1162_v24, 0.0  ;;  %v1182_v28 = vsel %vm1132_vm13, %v1180_v25, 0.0 }
 0x2ab   : > { %v1166_v30 = vadd.f32 %v1165_v27, %v1164_v26  ;;  %v1184_v31 = vadd.f32 %v1183_v29, %v1182_v28 }
 0x2ad   : > { %1167 = vadd.xlane.f32.xlu0 %v1166_v30  ;;  %1185 = vadd.xlane.f32.xlu1 %v1184_v31 }
 0x2be   : > { %1232 = vperm.xlu1 %7694, %v1106_v32  }
 0x2c2   : > { %1251 = vperm.xlu1 %7694, %v1109_v33  }
 0x2c3   : > { %1237 = vperm.xlu0 %7693, %v1107_v34  }
 0x2c7   : > { %1246 = vperm.xlu0 %7693, %v1108_v35  }
 0x334   : > { %v1153_v36 = vpop.xlane.xlu1 %1152 }
 0x335   : > { %v1154_v37 = vrot.slane %v1153_v36, 4 }
 0x336   : > { %v1138_v41 = vpop.xlane.xlu0 %1137 }
 0x337   : > { %v1155_v42 = vadd.f32 %v1154_v37, %v1153_v36  ;;  %v1139_v44 = vrot.slane %v1138_v41, 4 }
 0x339   : > { %v1140_v45 = vadd.f32 %v1139_v44, %v1138_v41  ;;  %v1156_v46 = vrot.slane %v1155_v42, 2 }
 0x33a   : > { %v1186_v47 = vpop.xlane.xlu1 %1185  ;;  %v1168_v48 = vpop.xlane.xlu0 %1167 }
 0x33b   : > { %v1187_v49 = vrot.slane %v1186_v47, 4  ;;  %v1169_v52 = vrot.slane %v1168_v48, 4  ;;  %v1141_v39 = vrot.slane %v1140_v45, 2  ;;  %v1157_v53 = vadd.f32 %v1156_v46, %v1155_v42 }
 0x33d   : > { %v1188_v54 = vadd.f32 %v1187_v49, %v1186_v47  ;;  %v1170_v55 = vadd.f32 %v1169_v52, %v1168_v48  ;;  %v1142_v56 = vadd.f32 %v1141_v39, %v1140_v45  ;;  %v1158_v57 = vrot.slane %v1157_v53, 1 }
 0x33e   : > { %v1233_v32 = vpop.permute.xlu1 %1232 }
 0x33f   : > { %v1143_v38 = vrot.slane %v1142_v56, 1  ;;  %v1171_v58 = vrot.slane %v1170_v55, 2  ;;  %v1189_v59 = vrot.slane %v1188_v54, 2  ;;  %v1159_v63 = vadd.f32 %v1158_v57, %v1157_v53 }
 0x341   : > { %v1144_v60 = vadd.f32 %v1143_v38, %v1142_v56  ;;  %v1172_v61 = vadd.f32 %v1171_v58, %v1170_v55  ;;  %v1190_v62 = vadd.f32 %v1189_v59, %v1188_v54 }
 0x342   : > { %v1238_v34 = vpop.permute.xlu0 %1237  ;;  %v1252_v39 = vpop.permute.xlu1 %1251 }
 0x343   : > { %7613 = vpush %v1144_v60  ;;  %v1173_v0 = vrot.slane %v1172_v61, 1  ;;  %v1191_v3 = vrot.slane %v1190_v62, 1 }
 0x344   : > { %7615 = vpush %v1159_v63 }
 0x345   : > { %v1174_v4 = vadd.f32 %v1173_v0, %v1172_v61  ;;  %v1192_v5 = vadd.f32 %v1191_v3, %v1190_v62 }
 0x346   : > { %v1247_v55 = vpop.permute.xlu0 %1246 }
 0x347   : > { %7617 = vpush %v1174_v4 }
 0x348   : > { %7619 = vpush %v1192_v5 }
 0x374   : > { %s7614_s26 = spop %7613 }
 0x375   : > { %s1146_s27 = smul.f32 0.00055803574, %s7614_s26  ;;  %s7616_s19 = spop %7615 }
 0x376   : > { %s1161_s20 = smul.f32 0.00055803574, %s7616_s19  ;;  %s10469_s26 = smov 0.0  }
 0x377   : > { %s1177_s21 = smul.f32 %s1146_s27, %s1146_s27  ;;  %v1198_v7 = vstv %s1146_s27 }
 0x378   : > { %v1199_v17 = vmul.f32 %v7946_v6, %v1198_v7  ;;  %v1200_v18 = vmul.f32 0.0, %v1198_v7  ;;  %s1195_s22 = smul.f32 %s1161_s20, %s1161_s20  ;;  %v1201_v19 = vstv %s1161_s20  ;;  %s7618_s23 = spop %7617 }
 0x379   : > { %v1202_v21 = vmul.f32 %v1201_v19, %v7949_v8  ;;  %s1176_s24 = smul.f32 0.00055803574, %s7618_s23  ;;  %s7620_s14 = spop %7619 }
 0x37a   : > { %v1205_v22 = vadd.f32 %v1201_v19, %v1200_v18  ;;  %s1194_s25 = smul.f32 0.00055803574, %s7620_s14 }
 0x37b   : > { %v1204_v23 = vadd.f32 %v1202_v21, %v1199_v17  ;;  %s1178_s16 = ssub.f32 %s1176_s24, %s1177_s21 }
 0x37c   : > { %s1196_s30 = ssub.f32 %s1194_s25, %s1195_s22  ;;  %v1224_v36 = vsub.f32 %v8230_v50, %v1205_v22  ;;  %v1225_v37 = vsub.f32 %v8232_v51, %v1205_v22 }
 0x37d   : > { %s1179_s19 = smax.f32 %s10469_s26, %s1178_s16  ;;  %v1222_v42 = vsub.f32 %v8224_v40, %v1204_v23  ;;  %v1223_v44 = vsub.f32 %v8226_v43, %v1204_v23 }
 0x37e   : > { %s1206_s18 = sadd.f32 1e-05, %s1179_s19  ;;  %s1197_s27 = smax.f32 %s10469_s26, %s1196_s30 }
 0x37f   : > { %s1213_s17 = sadd.f32 1e-05, %s1197_s27 }
 0x380   : > { %v1207_v24 = vstv %s1206_s18 }
 0x381   : > { %7695 = vrsqrt.f32 %v1207_v24  ;;  %v1214_v25 = vstv %s1213_s17 }
 0x382   : > { %7697 = vrsqrt.f32 %v1214_v25 }
 0x38b   : > { %v7696_v26 = vpop.eup %7695 }
 0x38c   : > { %v7698_v27 = vpop.eup %7697  ;;  %7621 = vpush %v7696_v26 }
 0x38d   : > { %7623 = vpush %v7698_v27 }
 0x3bd   : > { %s7622_s20 = spop %7621 }
 0x3be   : > { %v1210_v28 = vstv %s7622_s20  ;;  %s7624_s23 = spop %7623 }
 0x3bf   : > { %v1211_v29 = vmul.f32 %v7946_v6, %v1210_v28  ;;  %v1212_v30 = vmul.f32 0.0, %v1210_v28  ;;  %v1217_v31 = vstv %s7624_s23 }
 0x3c0   : > { %v1218_v33 = vmul.f32 %v1217_v31, %v7949_v8 }
 0x3c1   : > { %v1221_v35 = vadd.f32 %v1217_v31, %v1212_v30 }
 0x3c2   : > { %v1220_v41 = vadd.f32 %v1218_v33, %v1211_v29 }
 0x3c3   : > { %v1228_v45 = vmul.f32 %v1224_v36, %v1221_v35  ;;  %v1229_v46 = vmul.f32 %v1225_v37, %v1221_v35 }
 0x3c4   : > { %v1226_v47 = vmul.f32 %v1222_v42, %v1220_v41  ;;  %v1227_v48 = vmul.f32 %v1223_v44, %v1220_v41 }
 0x3c5   : > { %v1242_v49 = vmul.f32 %v1238_v34, %v1228_v45  ;;  %v1243_v52 = vmul.f32 %v1238_v34, %v1229_v46 }
 0x3c6   : > { %v1240_v53 = vmul.f32 %v1233_v32, %v1226_v47  ;;  %v1241_v54 = vmul.f32 %v1233_v32, %v1227_v48 }
 0x3c7   : > { %v8282_v56 = vadd.f32 %v1252_v39, %v1242_v49  ;;  %v8284_v50 = vadd.f32 %v1252_v39, %v1243_v52 }
 0x3c8   : > { %v8286_v51 = vadd.f32 %v1247_v55, %v1240_v53  ;;  %v8288_v57 = vadd.f32 %v1247_v55, %v1241_v54 }
 0x3c9   : > { %v8291_v40 = vmul.f32 0.70710677, %v8282_v56  ;;  %v8294_v43 = vmul.f32 0.70710677, %v8284_v50 }
 0x3ca   : > { %v8297_v38 = vmul.f32 0.70710677, %v8286_v51  ;;  %v8300_v58 = vmul.f32 0.70710677, %v8288_v57 }
 0x3cb   : > { %v1268_v59 = vand.u32 2147483647, %v8291_v40  ;;  %v1269_v60 = vand.u32 2147483647, %v8294_v43  ;;  %vm1328_vm15 = vcmp.lt.f32.partialorder %v8291_v40, 0.0  ;;  %vm1324_vm0 = vcmp.gt.f32.partialorder %v8291_v40, 0.0 }
 0x3cc   : > { %v1266_v61 = vand.u32 2147483647, %v8297_v38  ;;  %v1267_v62 = vand.u32 2147483647, %v8300_v58  ;;  %vm1326_vm1 = vcmp.lt.f32.partialorder %v8297_v38, 0.0  ;;  %vm1325_vm2 = vcmp.gt.f32.partialorder %v8294_v43, 0.0 }
 0x3cd   : > { %v1272_v63 = vmul.f32 0.3275911, %v1268_v59  ;;  %v1273_v0 = vmul.f32 0.3275911, %v1269_v60  ;;  %v1340_v19 = vsub.f32 0.0, %v1268_v59  ;;  %v1341_v23 = vsub.f32 0.0, %v1269_v60 }
 0x3ce   : > { %v1270_v3 = vmul.f32 0.3275911, %v1266_v61  ;;  %v1271_v4 = vmul.f32 0.3275911, %v1267_v62  ;;  %v1338_v21 = vsub.f32 0.0, %v1266_v61  ;;  %v1339_v22 = vsub.f32 0.0, %v1267_v62 }
 0x3cf   : > { %v1276_v5 = vadd.f32 1.0, %v1272_v63  ;;  %v1277_v18 = vadd.f32 1.0, %v1273_v0  ;;  %v1344_v25 = vmul.f32 %v1340_v19, %v1268_v59  ;;  %v1345_v33 = vmul.f32 %v1341_v23, %v1269_v60 }
 0x3d0   : > { %v1274_v7 = vadd.f32 1.0, %v1270_v3  ;;  %v1275_v17 = vadd.f32 1.0, %v1271_v4  ;;  %v1342_v27 = vmul.f32 %v1338_v21, %v1266_v61  ;;  %v1343_v30 = vmul.f32 %v1339_v22, %v1267_v62 }
 0x3d1   : > { %7699 = vrcp.f32 %v1276_v5  ;;  %v1350_v36 = vmul.f32 1.442695, %v1344_v25  ;;  %v1352_v49 = vmul.f32 1.442695, %v1345_v33  ;;  %vm1327_vm3 = vcmp.lt.f32.partialorder %v8300_v58, 0.0 }
 0x3d2   : > { %7701 = vrcp.f32 %v1274_v7  ;;  %v1346_v42 = vmul.f32 1.442695, %v1342_v27  ;;  %v1348_v46 = vmul.f32 1.442695, %v1343_v30  ;;  %vm1329_vm4 = vcmp.lt.f32.partialorder %v8294_v43, 0.0 }
 0x3d3   : > { %7703 = vrcp.f32 %v1275_v17  ;;  %vm1322_vm6 = vcmp.gt.f32.partialorder %v8297_v38, 0.0  ;;  %vm1323_vm10 = vcmp.gt.f32.partialorder %v8300_v58, 0.0  ;;  %v1259_v40 = vmul.f32 0.5, %v8288_v57 }
 0x3d4   : > { %7705 = vrcp.f32 %v1277_v18 }
 0x3d5   : > { %7707 = vpow2.f32 %v1350_v36 }
 0x3d6   : > { %7709 = vpow2.f32 %v1346_v42 }
 0x3d7   : > { %7711 = vpow2.f32 %v1348_v46 }
 0x3d8   : > { %7713 = vpow2.f32 %v1352_v49 }
 0x3db   : > { %v7700_v24 = vpop.eup %7699 }
 0x3dc   : > { %v7702_v26 = vpop.eup %7701  ;;  %v1288_v28 = vmul.f32 1.0614054, %v7700_v24 }
 0x3dd   : > { %v7704_v29 = vpop.eup %7703  ;;  %v1286_v31 = vmul.f32 1.0614054, %v7702_v26 }
 0x3de   : > { %v7706_v32 = vpop.eup %7705  ;;  %v1287_v34 = vmul.f32 1.0614054, %v7704_v29  ;;  %v1292_v35 = vadd.f32 -1.4531521, %v1288_v28 }
 0x3df   : > { %v1290_v37 = vadd.f32 -1.4531521, %v1286_v31  ;;  %v1289_v41 = vmul.f32 1.0614054, %v7706_v32  ;;  %v7708_v27 = vpop.eup %7707 }
 0x3e0   : > { %v1291_v44 = vadd.f32 -1.4531521, %v1287_v34  ;;  %v1296_v45 = vmul.f32 %v7700_v24, %v1292_v35  ;;  %v7710_v31 = vpop.eup %7709  ;;  %v1332_v34 = vsel %vm1328_vm15, -1.0, %v7849_v20 }
 0x3e1   : > { %v1294_v47 = vmul.f32 %v7702_v26, %v1290_v37  ;;  %v1293_v48 = vadd.f32 -1.4531521, %v1289_v41  ;;  %v7712_v36 = vpop.eup %7711  ;;  %v1330_v37 = vsel %vm1326_vm1, -1.0, %v7849_v20  ;;  %vm10484_vm1 = vcmp.lt.s32.totalorder %v7939_v1, 15 }
 0x3e2   : > { %v1295_v52 = vmul.f32 %v7704_v29, %v1291_v44  ;;  %v1300_v39 = vadd.f32 1.4214138, %v1296_v45  ;;  %v7714_v42 = vpop.eup %7713  ;;  %v1334_v49 = vsel %vm1322_vm6, 1.0, %v1330_v37  ;;  %vm10488_vm6 = vmmov %vm10484_vm1 }
 0x3e3   : > { %v1298_v53 = vadd.f32 1.4214138, %v1294_v47  ;;  %v1297_v54 = vmul.f32 %v7706_v32, %v1293_v48  ;;  %v1336_v47 = vsel %vm1324_vm0, 1.0, %v1332_v34  ;;  %vm1609_vm0 = vcmask 113664  }
 0x3e4   : > { %v1299_v55 = vadd.f32 1.4214138, %v1295_v52  ;;  %v1304_v59 = vmul.f32 %v7700_v24, %v1300_v39 }
 0x3e5   : > { %v1302_v60 = vmul.f32 %v7702_v26, %v1298_v53  ;;  %v1301_v61 = vadd.f32 1.4214138, %v1297_v54  ;;  %v1260_v54 = vmul.f32 0.5, %v8282_v56 }
 0x3e6   : > { %v1303_v62 = vmul.f32 %v7704_v29, %v1299_v55  ;;  %v1308_v63 = vadd.f32 -0.28449672, %v1304_v59 }
 0x3e7   : > { %v1306_v0 = vadd.f32 -0.28449672, %v1302_v60  ;;  %v1305_v3 = vmul.f32 %v7706_v32, %v1301_v61  ;;  %v1258_v60 = vmul.f32 0.5, %v8286_v51 }
 0x3e8   : > { %v1307_v4 = vadd.f32 -0.28449672, %v1303_v62  ;;  %v1312_v5 = vmul.f32 %v7700_v24, %v1308_v63 }
 0x3e9   : > { %v1310_v7 = vmul.f32 %v7702_v26, %v1306_v0  ;;  %v1309_v17 = vadd.f32 -0.28449672, %v1305_v3  ;;  %v1261_v3 = vmul.f32 0.5, %v8284_v50 }
 0x3ea   : > { %v1311_v18 = vmul.f32 %v7704_v29, %v1307_v4  ;;  %v1316_v19 = vadd.f32 0.2548296, %v1312_v5 }
 0x3eb   : > { %v1314_v21 = vadd.f32 0.2548296, %v1310_v7  ;;  %v1313_v22 = vmul.f32 %v7706_v32, %v1309_v17 }
 0x3ec   : > { %v1315_v23 = vadd.f32 0.2548296, %v1311_v18  ;;  %v1320_v25 = vmul.f32 %v7700_v24, %v1316_v19 }
 0x3ed   : > { %v1318_v28 = vmul.f32 %v7702_v26, %v1314_v21  ;;  %v1317_v30 = vadd.f32 0.2548296, %v1313_v22  ;;  %v1331_v26 = vsel %vm1327_vm3, -1.0, %v7849_v20  ;;  %vm10486_vm3 = vmmov %vm10484_vm1 }
 0x3ee   : > { %v1319_v33 = vmul.f32 %v7704_v29, %v1315_v23  ;;  %v1356_v35 = vmul.f32 %v7708_v27, %v1320_v25  ;;  %v1333_v29 = vsel %vm1329_vm4, -1.0, %v7849_v20  ;;  %v1335_v39 = vsel %vm1323_vm10, 1.0, %v1331_v26  ;;  %vm10487_vm4 = vmmov %vm10484_vm1 }
 0x3ef   : > { %v1354_v24 = vmul.f32 %v7710_v31, %v1318_v28  ;;  %v1321_v41 = vmul.f32 %v7706_v32, %v1317_v30  ;;  %v1337_v55 = vsel %vm1325_vm2, 1.0, %v1333_v29  ;;  %vm7852_vm10 = vmmov 1   ;;  %vm10485_vm2 = vmmov %vm10484_vm1 }
 0x3f0   : > { %v1355_v44 = vmul.f32 %v7712_v36, %v1319_v33  ;;  %v1360_v45 = vsub.f32 1.0, %v1356_v35  ;;  %vm8435_vm15 = vmpackc.low %vm148_vm5, %vm7852_vm10 }
 0x3f1   : > { %v1358_v46 = vsub.f32 1.0, %v1354_v24  ;;  %v1357_v48 = vmul.f32 %v7714_v42, %v1321_v41 }
 0x3f2   : > { %v1359_v38 = vsub.f32 1.0, %v1355_v44  ;;  %v1364_v52 = vmul.f32 %v1360_v45, %v1336_v47 }
 0x3f3   : > { %v1362_v53 = vmul.f32 %v1358_v46, %v1334_v49  ;;  %v1361_v32 = vsub.f32 1.0, %v1357_v48 }
 0x3f4   : > { %v1363_v58 = vmul.f32 %v1359_v38, %v1335_v39  ;;  %v1368_v59 = vadd.f32 1.0, %v1364_v52 }
 0x3f5   : > { %v1366_v61 = vadd.f32 1.0, %v1362_v53  ;;  %v1365_v62 = vmul.f32 %v1361_v32, %v1337_v55  ;;  %v6957_v53 = vld [vmem:[%s10443_s3 + $0x18] sm:$0x3f]  ;;  %v6958_v32 = vld [vmem:[%s10444_s4 + $0x10] sm:$0xff] }
 0x3f6   : > { %v1367_v63 = vadd.f32 1.0, %v1363_v58  ;;  %v8325_v0 = vmul.f32 %v1368_v59, %v1260_v54  ;;  %v6956_v54 = vld [vmem:[%s10443_s3 + $0x10] sm:$0xff]  ;;  %v6959_v58 = vld [vmem:[%s10444_s4 + $0x18] sm:$0x3f] }
 0x3f7   : > { %v8328_v4 = vmul.f32 %v1366_v61, %v1258_v60  ;;  %v1369_v5 = vadd.f32 1.0, %v1365_v62 }
 0x3f8   : > { %v8330_v56 = vmul.f32 %v1367_v63, %v1259_v40  ;;  %v1390_v43 = vmul.f32 %v8325_v0, %v8325_v0  ;;  %v1383_v51 = vsel %vm148_vm5, %v8325_v0, 0.0 }
 0x3f9   : > { %v8334_v7 = vmul.f32 %v1369_v5, %v1261_v3  ;;  %v1388_v21 = vmul.f32 %v8328_v4, %v8328_v4 }
 0x3fa   : > { %v1380_v57 = vadd.f32 %v8330_v56, %v8328_v4  ;;  %v1395_v18 = vsel %vm148_vm5, %v1390_v43, 0.0  ;;  %v1389_v22 = vmul.f32 %v8330_v56, %v8330_v56 }
 0x3fb   : > { %v1384_v17 = vsel %vm148_vm5, %v8334_v7, 0.0  ;;  %v1391_v50 = vmul.f32 %v8334_v7, %v8334_v7 }
 0x3fc   : > { %1381 = vadd.xlane.f32.xlu1 %v1380_v57  ;;  %v1385_v19 = vadd.f32 %v1384_v17, %v1383_v51  ;;  %v1392_v27 = vadd.f32 %v1389_v22, %v1388_v21 }
 0x3fd   : > { %v1396_v23 = vsel %vm148_vm5, %v1391_v50, 0.0 }
 0x3fe   : > { %1386 = vadd.xlane.f32.xlu0 %v1385_v19  ;;  %v1397_v25 = vadd.f32 %v1396_v23, %v1395_v18 }
 0x400   : > { %1398 = vadd.xlane.f32.xlu1 %v1397_v25 }
 0x402   : > { %1393 = vadd.xlane.f32.xlu0 %v1392_v27 }
 0x489   : > { %v1382_v28 = vpop.xlane.xlu1 %1381 }
 0x48a   : > { %v1400_v30 = vmul.f32 %v7946_v6, %v1382_v28  ;;  %v1415_v31 = vmul.f32 %v1382_v28, %v7949_v8 }
 0x48b   : > { %v1387_v33 = vpop.xlane.xlu0 %1386 }
 0x48c   : > { %v1401_v34 = vmul.f32 0.0, %v1387_v33  ;;  %v1417_v35 = vsel %vm1132_vm13, %v1415_v31, 0.0  ;;  %v1418_v36 = vsel %vm1134_vm14, %v1387_v33, 0.0  ;;  %v1402_v37 = vsel %vm1132_vm13, %v1400_v30, 0.0 }
 0x48d   : > { %v1399_v24 = vpop.xlane.xlu1 %1398  ;;  %v1419_v41 = vadd.f32 %v1418_v36, %v1417_v35 }
 0x48e   : > { %v1431_v42 = vmul.f32 0.0, %v1399_v24  ;;  %v1403_v26 = vsel %vm1134_vm14, %v1401_v34, 0.0  ;;  %v1451_v38 = vsel %vm1134_vm14, %v1399_v24, 0.0 }
 0x48f   : > { %v1394_v44 = vpop.xlane.xlu0 %1393  ;;  %1420 = vadd.xlane.f32.xlu1 %v1419_v41  ;;  %v1404_v45 = vadd.f32 %v1403_v26, %v1402_v37 }
 0x490   : > { %v1430_v46 = vmul.f32 %v7946_v6, %v1394_v44  ;;  %v1448_v29 = vmul.f32 %v1394_v44, %v7949_v8  ;;  %v1433_v47 = vsel %vm1134_vm14, %v1431_v42, 0.0 }
 0x491   : > { %1405 = vadd.xlane.f32.xlu0 %v1404_v45 }
 0x492   : > { %v1432_v48 = vsel %vm1132_vm13, %v1430_v46, 0.0  ;;  %v1450_v49 = vsel %vm1132_vm13, %v1448_v29, 0.0 }
 0x493   : > { %v1434_v52 = vadd.f32 %v1433_v47, %v1432_v48  ;;  %v1452_v39 = vadd.f32 %v1451_v38, %v1450_v49 }
 0x495   : > { %1435 = vadd.xlane.f32.xlu0 %v1434_v52  ;;  %1453 = vadd.xlane.f32.xlu1 %v1452_v39 }
 0x4a6   : > { %1505 = vperm.xlu1 %7694, %v6957_v53  }
 0x4aa   : > { %1514 = vperm.xlu1 %7694, %v6958_v32  }
 0x4ab   : > { %1500 = vperm.xlu0 %7693, %v6956_v54  }
 0x4af   : > { %1519 = vperm.xlu0 %7693, %v6959_v58  }
 0x51c   : > { %v1421_v55 = vpop.xlane.xlu1 %1420 }
 0x51d   : > { %v1422_v59 = vrot.slane %v1421_v55, 4 }
 0x51e   : > { %v1406_v60 = vpop.xlane.xlu0 %1405 }
 0x51f   : > { %v1423_v61 = vadd.f32 %v1422_v59, %v1421_v55  ;;  %v1407_v62 = vrot.slane %v1406_v60, 4 }
 0x521   : > { %v1408_v40 = vadd.f32 %v1407_v62, %v1406_v60  ;;  %v1424_v63 = vrot.slane %v1423_v61, 2 }
 0x522   : > { %v1454_v3 = vpop.xlane.xlu1 %1453  ;;  %v1436_v5 = vpop.xlane.xlu0 %1435 }
 0x523   : > { %v1455_v43 = vrot.slane %v1454_v3, 4  ;;  %v1437_v51 = vrot.slane %v1436_v5, 4  ;;  %v1409_v57 = vrot.slane %v1408_v40, 2  ;;  %v1425_v17 = vadd.f32 %v1424_v63, %v1423_v61 }
 0x525   : > { %v1456_v50 = vadd.f32 %v1455_v43, %v1454_v3  ;;  %v1438_v18 = vadd.f32 %v1437_v51, %v1436_v5  ;;  %v1410_v19 = vadd.f32 %v1409_v57, %v1408_v40  ;;  %v1426_v21 = vrot.slane %v1425_v17, 1 }
 0x526   : > { %v1506_v54 = vpop.permute.xlu1 %1505 }
 0x527   : > { %v1411_v22 = vrot.slane %v1410_v19, 1  ;;  %v1439_v23 = vrot.slane %v1438_v18, 2  ;;  %v1457_v25 = vrot.slane %v1456_v50, 2  ;;  %v1427_v27 = vadd.f32 %v1426_v21, %v1425_v17 }
 0x529   : > { %v1412_v28 = vadd.f32 %v1411_v22, %v1410_v19  ;;  %v1440_v30 = vadd.f32 %v1439_v23, %v1438_v18  ;;  %v1458_v31 = vadd.f32 %v1457_v25, %v1456_v50 }
 0x52a   : > { %v1501_v53 = vpop.permute.xlu0 %1500  ;;  %v1515_v18 = vpop.permute.xlu1 %1514 }
 0x52b   : > { %7625 = vpush %v1412_v28  ;;  %v1441_v33 = vrot.slane %v1440_v30, 1  ;;  %v1459_v34 = vrot.slane %v1458_v31, 1 }
 0x52c   : > { %7627 = vpush %v1427_v27 }
 0x52d   : > { %v1442_v35 = vadd.f32 %v1441_v33, %v1440_v30  ;;  %v1460_v36 = vadd.f32 %v1459_v34, %v1458_v31 }
 0x52e   : > { %v1520_v57 = vpop.permute.xlu0 %1519 }
 0x52f   : > { %7629 = vpush %v1442_v35 }
 0x530   : > { %7631 = vpush %v1460_v36 }
 0x55c   : > { %s7626_s25 = spop %7625 }
 0x55d   : > { %s1414_s19 = smul.f32 0.00055803574, %s7626_s25  ;;  %s7628_s27 = spop %7627 }
 0x55e   : > { %s1429_s20 = smul.f32 0.00055803574, %s7628_s27 }
 0x55f   : > { %s1445_s23 = smul.f32 %s1414_s19, %s1414_s19  ;;  %v1466_v37 = vstv %s1414_s19 }
 0x560   : > { %v1467_v24 = vmul.f32 %v7946_v6, %v1466_v37  ;;  %v1468_v41 = vmul.f32 0.0, %v1466_v37  ;;  %s1463_s30 = smul.f32 %s1429_s20, %s1429_s20  ;;  %v1469_v42 = vstv %s1429_s20  ;;  %s7630_s16 = spop %7629 }
 0x561   : > { %v1470_v26 = vmul.f32 %v1469_v42, %v7949_v8  ;;  %s1444_s17 = smul.f32 0.00055803574, %s7630_s16  ;;  %s7632_s18 = spop %7631 }
 0x562   : > { %v1473_v44 = vadd.f32 %v1469_v42, %v1468_v41  ;;  %s1462_s21 = smul.f32 0.00055803574, %s7632_s18 }
 0x563   : > { %v1472_v45 = vadd.f32 %v1470_v26, %v1467_v24  ;;  %s1446_s22 = ssub.f32 %s1444_s17, %s1445_s23  ;;  %s10478_s23 = smov 1  }
 0x564   : > { %s1464_s24 = ssub.f32 %s1462_s21, %s1463_s30  ;;  %v1492_v55 = vsub.f32 %v8325_v0, %v1473_v44  ;;  %v1493_v59 = vsub.f32 %v8334_v7, %v1473_v44  ;;  %s10479_s30 = smov 113  }
 0x565   : > { %s1447_s14 = smax.f32 %s10469_s26, %s1446_s22  ;;  %v1490_v61 = vsub.f32 %v8328_v4, %v1472_v45  ;;  %v1491_v62 = vsub.f32 %v8330_v56, %v1472_v45  ;;  %s10482_s21 = smov 127  }
 0x566   : > { %s1474_s25 = sadd.f32 1e-05, %s1447_s14  ;;  %s1465_s19 = smax.f32 %s10469_s26, %s1464_s24 }
 0x567   : > { %s1481_s27 = sadd.f32 1e-05, %s1465_s19  ;;  %s10483_s14 = smov 15  }
 0x568   : > { %v1475_v46 = vstv %s1474_s25 }
 0x569   : > { %7715 = vrsqrt.f32 %v1475_v46  ;;  %v1482_v29 = vstv %s1481_s27 }
 0x56a   : > { %7717 = vrsqrt.f32 %v1482_v29 }
 0x573   : > { %v7716_v47 = vpop.eup %7715 }
 0x574   : > { %v7718_v48 = vpop.eup %7717  ;;  %7633 = vpush %v7716_v47 }
 0x575   : > { %7635 = vpush %v7718_v48 }
 0x5a5   : > { %s7634_s20 = spop %7633 }
 0x5a6   : > { %v1478_v49 = vstv %s7634_s20  ;;  %s7636_s16 = spop %7635 }
 0x5a7   : > { %v1479_v38 = vmul.f32 %v7946_v6, %v1478_v49  ;;  %v1480_v52 = vmul.f32 0.0, %v1478_v49  ;;  %v1485_v39 = vstv %s7636_s16 }
 0x5a8   : > { %v1486_v32 = vmul.f32 %v1485_v39, %v7949_v8 }
 0x5a9   : > { %v1489_v58 = vadd.f32 %v1485_v39, %v1480_v52 }
 0x5aa   : > { %v1488_v60 = vadd.f32 %v1486_v32, %v1479_v38 }
 0x5ab   : > { %v1496_v40 = vmul.f32 %v1492_v55, %v1489_v58  ;;  %v1497_v63 = vmul.f32 %v1493_v59, %v1489_v58 }
 0x5ac   : > { %v1494_v3 = vmul.f32 %v1490_v61, %v1488_v60  ;;  %v1495_v5 = vmul.f32 %v1491_v62, %v1488_v60 }
 0x5ad   : > { %v1510_v43 = vmul.f32 %v1506_v54, %v1496_v40  ;;  %v1511_v51 = vmul.f32 %v1506_v54, %v1497_v63 }
 0x5ae   : > { %v1508_v17 = vmul.f32 %v1501_v53, %v1494_v3  ;;  %v1509_v50 = vmul.f32 %v1501_v53, %v1495_v5 }
 0x5af   : > { %v1524_v19 = vadd.f32 %v1520_v57, %v1510_v43  ;;  %v1525_v21 = vadd.f32 %v1520_v57, %v1511_v51  ;;  %v6964_v51 = vld [vmem:[%s10445_s5 + $0x10] sm:$0xff]  ;;  %v6965_v57 = vld [vmem:[%s10445_s5 + $0x18] sm:$0x3f] }
 0x5b0   : > { %v1522_v22 = vadd.f32 %v1515_v18, %v1508_v17  ;;  %v1523_v23 = vadd.f32 %v1515_v18, %v1509_v50  ;;  %v1554_v18 = vld [vmem:[%s10446_s6] sm:$0xff] }
 0x5b1   : > { %v6962_v25 = vmul.f32 -1.442695, %v1524_v19  ;;  %v6963_v30 = vmul.f32 -1.442695, %v1525_v21 }
 0x5b2   : > { %v6960_v27 = vmul.f32 -1.442695, %v1522_v22  ;;  %v6961_v28 = vmul.f32 -1.442695, %v1523_v23 }
 0x5b3   : > { %7719 = vpow2.f32 %v6962_v25 }
 0x5b4   : > { %7721 = vpow2.f32 %v6960_v27 }
 0x5b5   : > { %7723 = vpow2.f32 %v6961_v28 }
 0x5b6   : > { %7725 = vpow2.f32 %v6963_v30 }
 0x5bd   : > { %v7720_v31 = vpop.eup %7719 }
 0x5be   : > { %v7722_v33 = vpop.eup %7721  ;;  %v1540_v34 = vadd.f32 1.0, %v7720_v31 }
 0x5bf   : > { %v7724_v35 = vpop.eup %7723  ;;  %v1538_v36 = vadd.f32 1.0, %v7722_v33 }
 0x5c0   : > { %v7726_v37 = vpop.eup %7725  ;;  %v1539_v24 = vadd.f32 1.0, %v7724_v35  ;;  %7727 = vrcp.f32 %v1540_v34 }
 0x5c1   : > { %v1541_v41 = vadd.f32 1.0, %v7726_v37  ;;  %7729 = vrcp.f32 %v1538_v36 }
 0x5c2   : > { %7731 = vrcp.f32 %v1539_v24 }
 0x5c3   : > { %7733 = vrcp.f32 %v1541_v41 }
 0x5ca   : > { %v7728_v42 = vpop.eup %7727 }
 0x5cb   : > { %v7730_v26 = vpop.eup %7729  ;;  %v8384_v44 = vmul.f32 %v7728_v42, %v1524_v19  ;;  %v1555_v19 = vld [vmem:[%s10446_s6 + $0x8] sm:$0x3f] }
 0x5cc   : > { %v7732_v45 = vpop.eup %7731  ;;  %v8386_v46 = vmul.f32 %v7730_v26, %v1522_v22 }
 0x5cd   : > { %v7734_v29 = vpop.eup %7733  ;;  %1558 = vrot.lane.b32.xlu0 %v8384_v44, %s10467_s28  ;;  %v8394_v48 = vmul.f32 %v7732_v45, %v1523_v23 }
 0x5ce   : > { %1556 = vrot.lane.b32.xlu1 %v8386_v46, %s10467_s28  ;;  %v8392_v47 = vmul.f32 %v7734_v29, %v1525_v21 }
 0x5d1   : > { %1562 = vrot.lane.b32.xlu0 %v8392_v47, %s10467_s28 }
 0x5d2   : > { %1560 = vrot.lane.b32.xlu1 %v8394_v48, %s10467_s28 }
 0x5d5   : > { %2282 = vrot.lane.b32.xlu0 %v8384_v44, %s10465_s29 }
 0x5d6   : > { %2280 = vrot.lane.b32.xlu1 %v8386_v46, %s10465_s29 }
 0x5d9   : > { %2286 = vrot.lane.b32.xlu0 %v8392_v47, %s10465_s29 }
 0x5da   : > { %2284 = vrot.lane.b32.xlu1 %v8394_v48, %s10465_s29 }
 0x5dd   : > { %1922 = vrot.lane.b32.xlu0 %v8384_v44, %s10478_s23 }
 0x5de   : > { %1920 = vrot.lane.b32.xlu1 %v8386_v46, %s10478_s23 }
 0x5e1   : > { %1926 = vrot.lane.b32.xlu0 %v8392_v47, %s10478_s23 }
 0x5e2   : > { %1924 = vrot.lane.b32.xlu1 %v8394_v48, %s10478_s23 }
 0x5e5   : > { %1938 = vrot.lane.b32.xlu0 %v8384_v44, %s10479_s30 }
 0x5e6   : > { %1936 = vrot.lane.b32.xlu1 %v8386_v46, %s10479_s30 }
 0x5e9   : > { %1942 = vrot.lane.b32.xlu0 %v8392_v47, %s10479_s30 }
 0x5ea   : > { %1940 = vrot.lane.b32.xlu1 %v8394_v48, %s10479_s30 }
 0x63f   : > { %v1559_v49 = vpop.permute.xlu0 %1558 }
 0x640   : > { %v1557_v38 = vpop.permute.xlu1 %1556 }
 0x643   : > { %v1563_v52 = vpop.permute.xlu0 %1562 }
 0x644   : > { %v1561_v39 = vpop.permute.xlu1 %1560  ;;  %v1565_v53 = vsel %vm113_vm7, %v1559_v49, %v1563_v52  ;;  %v1567_v32 = vsel %vm113_vm7, %v1563_v52, %v1559_v49 }
 0x645   : > { %v1564_v54 = vsel %vm113_vm7, %v1557_v38, %v1561_v39  ;;  %v1566_v58 = vsel %vm113_vm7, %v1561_v39, %v1557_v38  ;;  %1570 = vrot.lane.b32.xlu0 %v1567_v32, %s10478_s23 }
 0x646   : > { %v7234_v59 = vpack.c.bf16 %v1567_v32, %v1566_v58  ;;  %1568 = vrot.lane.b32.xlu1 %v1566_v58, %s10478_s23  ;;  %v7231_v60 = vpack.c.bf16 %v1565_v53, %v1564_v54 }
 0x647   : > { %v2283_v61 = vpop.permute.xlu0 %2282 }
 0x648   : > { %v2281_v62 = vpop.permute.xlu1 %2280  ;;  %7233 = vmatprep.subr.msk.bf16.mxu1 %vm8435_vm15, %v7231_v60 }
 0x649   : > { %7236 = vmatpush1.bf16.msk.msra.mxu1 %vm8435_vm15, %v7234_v59  ;;  %1574 = vrot.lane.b32.xlu0 %v1565_v53, %s10478_s23 }
 0x64a   : > { %1572 = vrot.lane.b32.xlu1 %v1564_v54, %s10478_s23 }
 0x64b   : > { %v2287_v40 = vpop.permute.xlu0 %2286 }
 0x64c   : > { %v2285_v63 = vpop.permute.xlu1 %2284  ;;  %v8448_v3 = vsel %vm765_vm9, %v2283_v61, %v2287_v40  ;;  %6968 = vmatmul.mubr.msk.f32.vlgmr.msra.gmra.mrb[4].mxu1 %vm1609_vm0, %v6964_v51  ;;  %v8500_v17 = vsel %vm765_vm9, %v2287_v40, %v2283_v61 }
 0x64d   : > { %v8452_v5 = vsel %vm765_vm9, %v2281_v62, %v2285_v63  ;;  %1586 = vrot.lane.b32.xlu0 %v1567_v32, %s10479_s30  ;;  %1692 = vmatprep.mubr.f32.mxu1 %v7849_v20  ;;  %v8504_v50 = vsel %vm765_vm9, %v2285_v63, %v2281_v62 }
 0x64e   : > { %v7276_v43 = vpack.c.bf16 %v8448_v3, %v8452_v5  ;;  %1584 = vrot.lane.b32.xlu1 %v1566_v58, %s10479_s30 }
 0x64f   : > { %v1923_v21 = vpop.permute.xlu0 %1922 }
 0x650   : > { %6969 = vmatmul.mubr.msk.f32.gmra.mrb[6].mxu1 %vm1609_vm0, %v6965_v57  ;;  %v1921_v22 = vpop.permute.xlu1 %1920 }
 0x651   : > { %1590 = vrot.lane.b32.xlu0 %v1565_v53, %s10479_s30  ;;  %1775 = vmatprep.mubr.f32.mxu1 %v7849_v20 }
 0x652   : > { %1588 = vrot.lane.b32.xlu1 %v1564_v54, %s10479_s30 }
 0x653   : > { %v1927_v23 = vpop.permute.xlu0 %1926 }
 0x654   : > { %v1925_v25 = vpop.permute.xlu1 %1924 }
 0x655   : > { %1790 = vrot.lane.b32.xlu0 %v1567_v32, %s10482_s21 }
 0x656   : > { %1788 = vrot.lane.b32.xlu1 %v1566_v58, %s10482_s21 }
 0x657   : > { %v1939_v27 = vpop.permute.xlu0 %1938 }
 0x658   : > { %v1937_v28 = vpop.permute.xlu1 %1936 }
 0x659   : > { %1794 = vrot.lane.b32.xlu0 %v1565_v53, %s10482_s21 }
 0x65a   : > { %1792 = vrot.lane.b32.xlu1 %v1564_v54, %s10482_s21 }
 0x65b   : > { %v1943_v30 = vpop.permute.xlu0 %1942 }
 0x65c   : > { %v1941_v31 = vpop.permute.xlu1 %1940 }
 0x65d   : > { %1806 = vrot.lane.b32.xlu0 %v1567_v32, %s10483_s14 }
 0x65e   : > { %1804 = vrot.lane.b32.xlu1 %v1566_v58, %s10483_s14 }
 0x661   : > { %1810 = vrot.lane.b32.xlu0 %v1565_v53, %s10483_s14 }
 0x662   : > { %1808 = vrot.lane.b32.xlu1 %v1564_v54, %s10483_s14 }
 0x665   : > { %2150 = vrot.lane.b32.xlu0 %v8384_v44, %s10482_s21 }
 0x666   : > { %2148 = vrot.lane.b32.xlu1 %v8386_v46, %s10482_s21 }
 0x669   : > { %2154 = vrot.lane.b32.xlu0 %v8392_v47, %s10482_s21 }
 0x66a   : > { %2152 = vrot.lane.b32.xlu1 %v8394_v48, %s10482_s21 }
 0x66d   : > { %2166 = vrot.lane.b32.xlu0 %v8384_v44, %s10483_s14 }
 0x66e   : > { %2164 = vrot.lane.b32.xlu1 %v8386_v46, %s10483_s14 }
 0x671   : > { %2170 = vrot.lane.b32.xlu0 %v8392_v47, %s10483_s14 }
 0x672   : > { %2168 = vrot.lane.b32.xlu1 %v8394_v48, %s10483_s14 }
 0x675   : > { %2294 = vrot.lane.b32.xlu0 %v8448_v3, %s10478_s23 }
 0x676   : > { %2292 = vrot.lane.b32.xlu1 %v8452_v5, %s10478_s23 }
 0x679   : > { %2298 = vrot.lane.b32.xlu0 %v8500_v17, %s10478_s23 }
 0x67a   : > { %2296 = vrot.lane.b32.xlu1 %v8504_v50, %s10478_s23 }
 0x67d   : > { %2310 = vrot.lane.b32.xlu0 %v8448_v3, %s10479_s30 }
 0x67e   : > { %2308 = vrot.lane.b32.xlu1 %v8452_v5, %s10479_s30 }
 0x681   : > { %2314 = vrot.lane.b32.xlu0 %v8500_v17, %s10479_s30 }
 0x682   : > { %2312 = vrot.lane.b32.xlu1 %v8504_v50, %s10479_s30 }
 0x685   : > { %2522 = vrot.lane.b32.xlu0 %v8448_v3, %s10482_s21 }
 0x686   : > { %2520 = vrot.lane.b32.xlu1 %v8452_v5, %s10482_s21 }
 0x689   : > { %2526 = vrot.lane.b32.xlu0 %v8500_v17, %s10482_s21 }
 0x68a   : > { %2524 = vrot.lane.b32.xlu1 %v8504_v50, %s10482_s21 }
 0x68d   : > { %2538 = vrot.lane.b32.xlu0 %v8448_v3, %s10483_s14 }
 0x68e   : > { %2536 = vrot.lane.b32.xlu1 %v8452_v5, %s10483_s14 }
 0x691   : > { %2542 = vrot.lane.b32.xlu0 %v8500_v17, %s10483_s14 }
 0x692   : > { %2540 = vrot.lane.b32.xlu1 %v8504_v50, %s10483_s14 }
 0x695   : > { %2654 = vperm.xlu0 %7693, %v1554_v18  }
 0x696   : > { %2659 = vperm.xlu1 %7694, %v1555_v19  }
 0x6b7   : > { %v1571_v33 = vpop.permute.xlu0 %1570 }
 0x6b8   : > { %v1569_v34 = vpop.permute.xlu1 %1568 }
 0x6bb   : > { %v1575_v35 = vpop.permute.xlu0 %1574 }
 0x6bc   : > { %v1573_v36 = vpop.permute.xlu1 %1572  ;;  %v1577_v41 = vsel %vm120_vm11, %v1571_v33, %v1575_v35  ;;  %v1579_v42 = vsel %vm120_vm11, %v1575_v35, %v1571_v33 }
 0x6bd   : > { %v1576_v26 = vsel %vm120_vm11, %v1569_v34, %v1573_v36  ;;  %v1578_v45 = vsel %vm120_vm11, %v1573_v36, %v1569_v34  ;;  %v1582_v49 = vmul.f32 %v7951_v9, %v1579_v42  ;;  %v1583_v38 = vmul.f32 %v7961_v13, %v1577_v41 }
 0x6be   : > { %v1580_v60 = vmul.f32 %v7951_v9, %v1578_v45  ;;  %v1581_v61 = vmul.f32 %v7961_v13, %v1576_v26  ;;  %v1928_v41 = vsel %vm120_vm11, %v1921_v22, %v1925_v25  ;;  %v1929_v42 = vsel %vm120_vm11, %v1923_v21, %v1927_v23 }
 0x6bf   : > { %v1587_v37 = vpop.permute.xlu0 %1586  ;;  %v1946_v45 = vsel %vm129_vm12, %v1941_v31, %v1937_v28 }
 0x6c0   : > { %v1585_v24 = vpop.permute.xlu1 %1584 }
 0x6c3   : > { %v1591_v29 = vpop.permute.xlu0 %1590 }
 0x6c4   : > { %v1589_v52 = vpop.permute.xlu1 %1588  ;;  %v1593_v39 = vsel %vm129_vm12, %v1587_v37, %v1591_v29  ;;  %v1595_v53 = vsel %vm129_vm12, %v1591_v29, %v1587_v37  ;;  %v1947_v29 = vsel %vm129_vm12, %v1943_v30, %v1939_v27 }
 0x6c5   : > { %v1592_v32 = vsel %vm129_vm12, %v1585_v24, %v1589_v52  ;;  %v1594_v54 = vsel %vm129_vm12, %v1589_v52, %v1585_v24  ;;  %v1598_v58 = vmul.f32 %v1593_v39, %v7956_v11  ;;  %v1599_v59 = vmul.f32 %v1595_v53, %v7966_v15  ;;  %v1604_v24 = vld [vmem:[%s10445_s5] sm:$0xff] }
 0x6c6   : > { %v1596_v62 = vmul.f32 %v1592_v32, %v7956_v11  ;;  %v1597_v40 = vmul.f32 %v1594_v54, %v7966_v15  ;;  %v1931_v52 = vsel %vm120_vm11, %v1927_v23, %v1923_v21  ;;  %v1605_v32 = vld [vmem:[%s10445_s5 + $0x8] sm:$0x3f]  ;;  %v1933_v54 = vmul.f32 %v7961_v13, %v1928_v41 }
 0x6c7   : > { %v1602_v63 = vadd.f32 %v1598_v58, %v1582_v49  ;;  %v1603_v51 = vadd.f32 %v1599_v59, %v1583_v38  ;;  %v1791_v57 = vpop.permute.xlu0 %1790  ;;  %v1930_v38 = vsel %vm120_vm11, %v1925_v25, %v1921_v22  ;;  %v1935_v58 = vmul.f32 %v7961_v13, %v1929_v42 }
 0x6c8   : > { %v1600_v18 = vadd.f32 %v1596_v62, %v1580_v60  ;;  %v1601_v19 = vadd.f32 %v1597_v40, %v1581_v61  ;;  %v1789_v33 = vpop.permute.xlu1 %1788  ;;  %v1944_v22 = vsel %vm129_vm12, %v1937_v28, %v1941_v31  ;;  %v1945_v21 = vsel %vm129_vm12, %v1939_v27, %v1943_v30 }
 0x6c9   : > { %v1949_v23 = vmul.f32 %v1946_v45, %v7966_v15  ;;  %v1951_v25 = vmul.f32 %v1947_v29, %v7966_v15 }
 0x6ca   : > { %v7240_v34 = vpack.c.bf16 %v1602_v63, %v1600_v18  ;;  %v7237_v35 = vpack.c.bf16 %v1603_v51, %v1601_v19 }
 0x6cb   : > { %v1795_v36 = vpop.permute.xlu0 %1794  ;;  %v1953_v42 = vadd.f32 %v1949_v23, %v1933_v54  ;;  %v6974_v54 = vld [vmem:[%s10445_s5 + $0x20] sm:$0xff]  ;;  %v7255_v23 = vpack.c.bf16 %v8392_v47, %v8394_v48 }
 0x6cc   : > { %v1793_v37 = vpop.permute.xlu1 %1792  ;;  %7239 = vmatprep.subr.msk.bf16.mxu1 %vm8435_vm15, %v7237_v35  ;;  %v1797_v39 = vsel %vm325_vm8, %v1791_v57, %v1795_v36  ;;  %v1799_v53 = vsel %vm325_vm8, %v1795_v36, %v1791_v57  ;;  %v1948_v35 = vmul.f32 %v1944_v22, %v7956_v11  ;;  %v1950_v36 = vmul.f32 %v1945_v21, %v7956_v11 }
 0x6cd   : > { %7242 = vmatpush1.bf16.msk.msra.mxu1 %vm8435_vm15, %v7240_v34  ;;  %v1796_v59 = vsel %vm325_vm8, %v1789_v33, %v1793_v37  ;;  %v1798_v60 = vsel %vm325_vm8, %v1793_v37, %v1789_v33  ;;  %v1802_v62 = vmul.f32 %v7953_v10, %v1797_v39  ;;  %v1803_v40 = vmul.f32 %v7963_v14, %v1799_v53 }
 0x6ce   : > { %v1800_v18 = vmul.f32 %v7953_v10, %v1796_v59  ;;  %v1801_v19 = vmul.f32 %v7963_v14, %v1798_v60  ;;  %v1932_v39 = vmul.f32 %v7951_v9, %v1930_v38  ;;  %v1934_v53 = vmul.f32 %v7951_v9, %v1931_v52 }
 0x6cf   : > { %v1807_v26 = vpop.permute.xlu0 %1806 }
 0x6d0   : > { %v1805_v49 = vpop.permute.xlu1 %1804  ;;  %6972 = vmatmul.mubr.msk.f32.vlgmr.msra.gmra.mrb[4].mxu1 %vm1609_vm0, %v1604_v24  ;;  %v1952_v60 = vadd.f32 %v1948_v35, %v1932_v39 }
 0x6d1   : > { %1781 = vmatprep.mubr.f32.mxu1 %v7849_v20 }
 0x6d3   : > { %v1811_v61 = vpop.permute.xlu0 %1810 }
 0x6d4   : > { %v1809_v63 = vpop.permute.xlu1 %1808  ;;  %v1813_v28 = vsel %vm10484_vm1, %v1807_v26, %v1811_v61  ;;  %v1815_v27 = vsel %vm10485_vm2, %v1811_v61, %v1807_v26  ;;  %6973 = vmatmul.mubr.msk.f32.gmra.mrb[6].mxu1 %vm1609_vm0, %v1605_v32  ;;  %v1955_v26 = vadd.f32 %v1951_v25, %v1935_v58  ;;  %v1954_v61 = vadd.f32 %v1950_v36, %v1934_v53  ;;  %v6975_v25 = vld [vmem:[%s10445_s5 + $0x28] sm:$0x3f]  ;;  %vm10489_vm2 = vmmov %vm10484_vm1 }
 0x6d5   : > { %v1812_v30 = vsel %vm10486_vm3, %v1805_v49, %v1809_v63  ;;  %v1814_v31 = vsel %vm10487_vm4, %v1809_v63, %v1805_v49  ;;  %v1818_v51 = vmul.f32 %v1815_v27, %v7959_v12  ;;  %v1819_v57 = vmul.f32 %v1813_v28, %v7969_v16  ;;  %1903 = vmatprep.mubr.f32.mxu1 %v7849_v20  ;;  %vm10490_vm3 = vmmov %vm10484_vm1 }
 0x6d6   : > { %v1816_v33 = vmul.f32 %v1814_v31, %v7959_v12  ;;  %v1817_v34 = vmul.f32 %v1812_v30, %v7969_v16  ;;  %v7249_v21 = vpack.c.bf16 %v1955_v26, %v1953_v42  ;;  %v7252_v38 = vpack.c.bf16 %v1954_v61, %v1952_v60  ;;  %v6986_v60 = vld [vmem:[%s10445_s5 + $0x40] sm:$0xff]  ;;  %vm10491_vm4 = vmmov %vm10484_vm1 }
 0x6d7   : > { %v1822_v37 = vadd.f32 %v1818_v51, %v1802_v62  ;;  %v1823_v24 = vadd.f32 %v1819_v57, %v1803_v40  ;;  %v2151_v41 = vpop.permute.xlu0 %2150  ;;  %v7258_v26 = vpack.c.bf16 %v8384_v44, %v8386_v46 }
 0x6d8   : > { %v1820_v45 = vadd.f32 %v1816_v33, %v1800_v18  ;;  %v1821_v29 = vadd.f32 %v1817_v34, %v1801_v19  ;;  %v2149_v49 = vpop.permute.xlu1 %2148  ;;  %v6980_v18 = vld [vmem:[%s10445_s5 + $0x30] sm:$0xff] }
 0x6da   : > { %v7246_v32 = vpack.c.bf16 %v1822_v37, %v1820_v45  ;;  %v7243_v59 = vpack.c.bf16 %v1823_v24, %v1821_v29 }
 0x6db   : > { %v2155_v63 = vpop.permute.xlu0 %2154 }
 0x6dc   : > { %v2153_v22 = vpop.permute.xlu1 %2152  ;;  %7245 = vmatprep.subr.msk.bf16.mxu1 %vm8435_vm15, %v7243_v59  ;;  %v2159_v62 = vsel %vm325_vm8, %v2155_v63, %v2151_v41  ;;  %v2157_v34 = vsel %vm325_vm8, %v2151_v41, %v2155_v63  ;;  %v6981_v41 = vld [vmem:[%s10445_s5 + $0x38] sm:$0x3f] }
 0x6dd   : > { %7248 = vmatpush1.bf16.msk.msra.mxu1 %vm8435_vm15, %v7246_v32  ;;  %v2158_v40 = vsel %vm325_vm8, %v2153_v22, %v2149_v49  ;;  %v2163_v30 = vmul.f32 %v7963_v14, %v2159_v62  ;;  %v2156_v19 = vsel %vm325_vm8, %v2149_v49, %v2153_v22  ;;  %v2162_v39 = vmul.f32 %v7953_v10, %v2157_v34 }
 0x6de   : > { %7251 = vmatprep.subr.msk.bf16.mxu1 %vm8435_vm15, %v7249_v21  ;;  %v2161_v33 = vmul.f32 %v7963_v14, %v2158_v40  ;;  %v2160_v49 = vmul.f32 %v7953_v10, %v2156_v19 }
 0x6df   : > { %v2167_v52 = vpop.permute.xlu0 %2166 }
 0x6e0   : > { %v2165_v58 = vpop.permute.xlu1 %2164  ;;  %6978 = vmatmul.mubr.msk.f32.vlgmr.msra.gmra.mrb[4].mxu1 %vm1609_vm0, %v6974_v54 }
 0x6e1   : > { %7254 = vmatpush1.bf16.msk.msra.mxu1 %vm8435_vm15, %v7252_v38  ;;  %1909 = vmatprep.mubr.f32.mxu1 %v7849_v20  ;;  %v6987_v38 = vld [vmem:[%s10445_s5 + $0x48] sm:$0x3f] }
 0x6e2   : > { %7257 = vmatprep.subr.msk.bf16.mxu1 %vm8435_vm15, %v7255_v23 }
 0x6e3   : > { %v2171_v28 = vpop.permute.xlu0 %2170 }
 0x6e4   : > { %v2169_v47 = vpop.permute.xlu1 %2168  ;;  %6979 = vmatmul.mubr.msk.f32.gmra.mrb[6].mxu1 %vm1609_vm0, %v6975_v25  ;;  %v2173_v48 = vsel %vm10488_vm6, %v2167_v52, %v2171_v28  ;;  %v2175_v27 = vsel %vm10484_vm1, %v2171_v28, %v2167_v52  ;;  %vm10492_vm6 = vmmov %vm10484_vm1 }
 0x6e5   : > { %v2172_v31 = vsel %vm10489_vm2, %v2165_v58, %v2169_v47  ;;  %v2174_v51 = vsel %vm10490_vm3, %v2169_v47, %v2165_v58  ;;  %v2179_v57 = vmul.f32 %v2173_v48, %v7969_v16  ;;  %2035 = vmatprep.mubr.f32.mxu1 %v7849_v20  ;;  %v2178_v37 = vmul.f32 %v2175_v27, %v7959_v12  ;;  %vm10493_vm2 = vmmov %vm10484_vm1 }
 0x6e6   : > { %v2177_v35 = vmul.f32 %v2172_v31, %v7969_v16  ;;  %v2176_v36 = vmul.f32 %v2174_v51, %v7959_v12  ;;  %v6992_v51 = vld [vmem:[%s10445_s5 + $0x50] sm:$0xff]  ;;  %vm10497_vm3 = vmmov %vm10484_vm1 }
 0x6e7   : > { %v2183_v24 = vadd.f32 %v2179_v57, %v2163_v30  ;;  %v2295_v42 = vpop.permute.xlu0 %2294  ;;  %v2182_v44 = vadd.f32 %v2178_v37, %v2162_v39 }
 0x6e8   : > { %v2181_v45 = vadd.f32 %v2177_v35, %v2161_v33  ;;  %v2293_v29 = vpop.permute.xlu1 %2292  ;;  %6984 = vmatmul.mubr.msk.f32.vlgmr.msra.gmra.mrb[4].mxu1 %vm1609_vm0, %v6980_v18  ;;  %v2180_v32 = vadd.f32 %v2176_v36, %v2160_v49 }
 0x6e9   : > { %7260 = vmatpush1.bf16.msk.msra.mxu1 %vm8435_vm15, %v7258_v26  ;;  %2041 = vmatprep.mubr.f32.mxu1 %v7849_v20  ;;  %v6993_v26 = vld [vmem:[%s10445_s5 + $0x58] sm:$0x3f] }
 0x6ea   : > { %v7261_v53 = vpack.c.bf16 %v2183_v24, %v2181_v45  ;;  %v7264_v61 = vpack.c.bf16 %v2182_v44, %v2180_v32 }
 0x6eb   : > { %v2299_v46 = vpop.permute.xlu0 %2298 }
 0x6ec   : > { %v2297_v59 = vpop.permute.xlu1 %2296  ;;  %6985 = vmatmul.mubr.msk.f32.gmra.mrb[6].mxu1 %vm1609_vm0, %v6981_v41  ;;  %7263 = vmatprep.subr.msk.bf16.mxu1 %vm8435_vm15, %v7261_v53  ;;  %v2301_v21 = vsel %vm120_vm11, %v2295_v42, %v2299_v46  ;;  %v2303_v54 = vsel %vm120_vm11, %v2299_v46, %v2295_v42  ;;  %v7273_v41 = vpack.c.bf16 %v8500_v17, %v8504_v50  ;;  %v6998_v53 = vld [vmem:[%s10445_s5 + $0x60] sm:$0xff]  ;;  %v6999_v50 = vld [vmem:[%s10445_s5 + $0x68] sm:$0x3f] }
 0x6ed   : > { %2131 = vmatprep.mubr.f32.mxu1 %v7849_v20  ;;  %v2300_v52 = vsel %vm120_vm11, %v2293_v29, %v2297_v59  ;;  %v2302_v58 = vsel %vm120_vm11, %v2297_v59, %v2293_v29  ;;  %v2306_v25 = vmul.f32 %v7951_v9, %v2303_v54  ;;  %v2307_v62 = vmul.f32 %v7961_v13, %v2301_v21 }
 0x6ee   : > { %v2304_v57 = vmul.f32 %v7951_v9, %v2302_v58  ;;  %v2305_v18 = vmul.f32 %v7961_v13, %v2300_v52  ;;  %v7004_v58 = vld [vmem:[%s10445_s5 + $0x70] sm:$0xff] }
 0x6ef   : > { %v2311_v63 = vpop.permute.xlu0 %2310 }
 0x6f0   : > { %v2309_v22 = vpop.permute.xlu1 %2308  ;;  %6990 = vmatmul.mubr.msk.f32.vlgmr.msra.gmra.mrb[4].mxu1 %vm1609_vm0, %v6986_v60 }
 0x6f1   : > { %7266 = vmatpush1.bf16.msk.msra.mxu1 %vm8435_vm15, %v7264_v61  ;;  %2137 = vmatprep.mubr.f32.mxu1 %v7849_v20 }
 0x6f3   : > { %v2315_v23 = vpop.permute.xlu0 %2314 }
 0x6f4   : > { %v2313_v40 = vpop.permute.xlu1 %2312  ;;  %v2317_v28 = vsel %vm129_vm12, %v2311_v63, %v2315_v23  ;;  %v2319_v47 = vsel %vm129_vm12, %v2315_v23, %v2311_v63  ;;  %6991 = vmatmul.mubr.msk.f32.gmra.mrb[6].mxu1 %vm1609_vm0, %v6987_v38 }
 0x6f5   : > { %v2316_v48 = vsel %vm129_vm12, %v2309_v22, %v2313_v40  ;;  %v2318_v27 = vsel %vm129_vm12, %v2313_v40, %v2309_v22  ;;  %v2322_v30 = vmul.f32 %v2317_v28, %v7956_v11  ;;  %v2323_v31 = vmul.f32 %v2319_v47, %v7966_v15  ;;  %2263 = vmatprep.mubr.f32.mxu1 %v7849_v20 }
 0x6f6   : > { %v2320_v19 = vmul.f32 %v2316_v48, %v7956_v11  ;;  %v2321_v33 = vmul.f32 %v2318_v27, %v7966_v15 }
 0x6f7   : > { %v2326_v34 = vadd.f32 %v2322_v30, %v2306_v25  ;;  %v2327_v35 = vadd.f32 %v2323_v31, %v2307_v62  ;;  %v2523_v36 = vpop.permute.xlu0 %2522  ;;  %v7005_v30 = vld [vmem:[%s10445_s5 + $0x78] sm:$0x3f] }
 0x6f8   : > { %v2324_v37 = vadd.f32 %v2320_v19, %v2304_v57  ;;  %v2325_v24 = vadd.f32 %v2321_v33, %v2305_v18  ;;  %v2521_v42 = vpop.permute.xlu1 %2520  ;;  %6996 = vmatmul.mubr.msk.f32.vlgmr.msra.gmra.mrb[4].mxu1 %vm1609_vm0, %v6992_v51  ;;  %v7010_v57 = vld [vmem:[%s10445_s5 + $0x80] sm:$0xff]  ;;  %v7011_v18 = vld [vmem:[%s10445_s5 + $0x88] sm:$0x3f] }
 0x6f9   : > { %2269 = vmatprep.mubr.f32.mxu1 %v7849_v20 }
 0x6fa   : > { %v7270_v45 = vpack.c.bf16 %v2326_v34, %v2324_v37  ;;  %v7267_v29 = vpack.c.bf16 %v2327_v35, %v2325_v24 }
 0x6fb   : > { %v2527_v49 = vpop.permute.xlu0 %2526 }
 0x6fc   : > { %v2525_v39 = vpop.permute.xlu1 %2524  ;;  %6997 = vmatmul.mubr.msk.f32.gmra.mrb[6].mxu1 %vm1609_vm0, %v6993_v26  ;;  %7269 = vmatprep.subr.msk.bf16.mxu1 %vm8435_vm15, %v7267_v29  ;;  %v2529_v46 = vsel %vm325_vm8, %v2523_v36, %v2527_v49  ;;  %v2531_v17 = vsel %vm325_vm8, %v2527_v49, %v2523_v36 }
 0x6fd   : > { %7272 = vmatpush1.bf16.msk.msra.mxu1 %vm8435_vm15, %v7270_v45  ;;  %2407 = vmatprep.mubr.f32.mxu1 %v7849_v20  ;;  %v2528_v59 = vsel %vm325_vm8, %v2521_v42, %v2525_v39  ;;  %v2530_v60 = vsel %vm325_vm8, %v2525_v39, %v2521_v42  ;;  %v2534_v63 = vmul.f32 %v7953_v10, %v2529_v46 }
 0x6fe   : > { %7275 = vmatprep.subr.msk.bf16.mxu1 %vm8435_vm15, %v7273_v41  ;;  %v2535_v3 = vmul.f32 %v7963_v14, %v2531_v17  ;;  %v2532_v23 = vmul.f32 %v7953_v10, %v2528_v59  ;;  %v2533_v25 = vmul.f32 %v7963_v14, %v2530_v60 }
 0x6ff   : > { %v2539_v32 = vpop.permute.xlu0 %2538 }
 0x700   : > { %v2537_v44 = vpop.permute.xlu1 %2536  ;;  %7002 = vmatmul.mubr.msk.f32.vlgmr.msra.gmra.mrb[4].mxu1 %vm1609_vm0, %v6998_v53 }
 0x701   : > { %7278 = vmatpush1.bf16.msk.msra.mxu1 %vm8435_vm15, %v7276_v43  ;;  %2413 = vmatprep.mubr.f32.mxu1 %v7849_v20 }
 0x703   : > { %v2543_v61 = vpop.permute.xlu0 %2542 }
 0x704   : > { %v2541_v5 = vpop.permute.xlu1 %2540  ;;  %v2545_v43 = vsel %vm10491_vm4, %v2539_v32, %v2543_v61  ;;  %v2547_v22 = vsel %vm10492_vm6, %v2543_v61, %v2539_v32  ;;  %7003 = vmatmul.mubr.msk.f32.gmra.mrb[6].mxu1 %vm1609_vm0, %v6999_v50  ;;  %vm10498_vm4 = vmmov %vm10484_vm1 }
 0x705   : > { %v2544_v21 = vsel %vm10484_vm1, %v2537_v44, %v2541_v5  ;;  %v2546_v54 = vsel %vm10493_vm2, %v2541_v5, %v2537_v44  ;;  %v2550_v38 = vmul.f32 %v2547_v22, %v7959_v12  ;;  %v2551_v52 = vmul.f32 %v2545_v43, %v7969_v16  ;;  %2503 = vmatprep.mubr.f32.mxu1 %v7849_v20  ;;  %vm10499_vm6 = vmmov %vm10484_vm1 }
 0x706   : > { %v2548_v62 = vmul.f32 %v2546_v54, %v7959_v12  ;;  %v2549_v40 = vmul.f32 %v2544_v21, %v7969_v16  ;;  %vm10500_vm2 = vmmov %vm10484_vm1 }
 0x707   : > { %v2554_v28 = vadd.f32 %v2550_v38, %v2534_v63  ;;  %v2555_v47 = vadd.f32 %v2551_v52, %v2535_v3 }
 0x708   : > { %v2552_v48 = vadd.f32 %v2548_v62, %v2532_v23  ;;  %v2553_v27 = vadd.f32 %v2549_v40, %v2533_v25  ;;  %7008 = vmatmul.mubr.msk.f32.vlgmr.msra.gmra.mrb[4].mxu1 %vm1609_vm0, %v7004_v58 }
 0x709   : > { %2509 = vmatprep.mubr.f32.mxu1 %v7849_v20 }
 0x70a   : > { %v7282_v31 = vpack.c.bf16 %v2554_v28, %v2552_v48  ;;  %v7279_v51 = vpack.c.bf16 %v2555_v47, %v2553_v27 }
 0x70c   : > { %7009 = vmatmul.mubr.msk.f32.gmra.mrb[6].mxu1 %vm1609_vm0, %v7005_v30  ;;  %7281 = vmatprep.subr.msk.bf16.mxu1 %vm8435_vm15, %v7279_v51 }
 0x70d   : > { %7284 = vmatpush1.bf16.msk.msra.mxu1 %vm8435_vm15, %v7282_v31  ;;  %2635 = vmatprep.mubr.f32.mxu1 %v7849_v20 }
 0x710   : > { %7014 = vmatmul.mubr.msk.f32.vlgmr.msra.gmra.mrb[4].mxu1 %vm1609_vm0, %v7010_v57  ;;  %v7017_v57 = vld [vmem:[%s10443_s3 + $0x28] sm:$0x3f] }
 0x711   : > { %2641 = vmatprep.mubr.f32.mxu1 %v7849_v20 }
 0x714   : > { %7015 = vmatmul.mubr.msk.f32.gmra.mrb[6].mxu1 %vm1609_vm0, %v7011_v18  ;;  %v2655_v19 = vpop.permute.xlu0 %2654  ;;  %v7018_v18 = vld [vmem:[%s10444_s4 + $0x20] sm:$0xff] }
 0x715   : > { %4282 = vmatprep.mubr.f32.mxu1 %v7849_v20  ;;  %v2660_v37 = vpop.permute.xlu1 %2659 }
 0x7e3   : > { %v2637_v33 = vpop.f32.mrb[4].mxu1 }
 0x7e4   : > { %v8805_v34 = vadd.f32 %v2655_v19, %v2637_v33  ;;  %v2639_v35 = vpop.f32.mrb[5].mxu1  ;;  %v7019_v33 = vld [vmem:[%s10444_s4 + $0x28] sm:$0x3f] }
 0x7e5   : > { %v8807_v36 = vadd.f32 %v2655_v19, %v2639_v35  ;;  %v7016_v19 = vld [vmem:[%s10443_s3 + $0x20] sm:$0xff] }
 0x7e6   : > { %v2680_v32 = vmul.f32 %v8805_v34, %v8805_v34 }
 0x7e7   : > { %v2643_v24 = vpop.f32.mrb[6].mxu1  ;;  %v2672_v42 = vadd.f32 %v8807_v36, %v8805_v34  ;;  %v2681_v44 = vmul.f32 %v8807_v36, %v8807_v36 }
 0x7e8   : > { %v8811_v26 = vadd.f32 %v2660_v37, %v2643_v24  ;;  %v2645_v45 = vpop.f32.mrb[7].mxu1 }
 0x7e9   : > { %v8813_v29 = vadd.f32 %v2660_v37, %v2645_v45  ;;  %2673 = vadd.xlane.f32.xlu1 %v2672_v42  ;;  %v2684_v60 = vadd.f32 %v2681_v44, %v2680_v32 }
 0x7ea   : > { %v2682_v49 = vmul.f32 %v8811_v26, %v8811_v26  ;;  %v2675_v39 = vsel %vm148_vm5, %v8811_v26, 0.0 }
 0x7eb   : > { %v2683_v41 = vmul.f32 %v8813_v29, %v8813_v29  ;;  %v2676_v53 = vsel %vm148_vm5, %v8813_v29, 0.0 }
 0x7ec   : > { %v2677_v46 = vadd.f32 %v2676_v53, %v2675_v39  ;;  %v2687_v17 = vsel %vm148_vm5, %v2682_v49, 0.0 }
 0x7ed   : > { %v2688_v50 = vsel %vm148_vm5, %v2683_v41, 0.0 }
 0x7ee   : > { %2678 = vadd.xlane.f32.xlu0 %v2677_v46  ;;  %v2689_v59 = vadd.f32 %v2688_v50, %v2687_v17 }
 0x7f0   : > { %2690 = vadd.xlane.f32.xlu1 %v2689_v59 }
 0x7f2   : > { %2685 = vadd.xlane.f32.xlu0 %v2684_v60 }
 0x876   : > { %v2674_v61 = vpop.xlane.xlu1 %2673 }
 0x877   : > { %v2707_v63 = vmul.f32 %v2674_v61, %v7949_v8  ;;  %v2692_v3 = vmul.f32 %v7946_v6, %v2674_v61 }
 0x879   : > { %v2709_v21 = vsel %vm1132_vm13, %v2707_v63, 0.0  ;;  %v2694_v58 = vsel %vm1132_vm13, %v2692_v3, 0.0 }
 0x87b   : > { %v2679_v5 = vpop.xlane.xlu0 %2678 }
 0x87c   : > { %v2693_v43 = vmul.f32 0.0, %v2679_v5  ;;  %v2710_v22 = vsel %vm1134_vm14, %v2679_v5, 0.0 }
 0x87d   : > { %v2691_v54 = vpop.xlane.xlu1 %2690  ;;  %v2711_v38 = vadd.f32 %v2710_v22, %v2709_v21 }
 0x87e   : > { %v2723_v52 = vmul.f32 0.0, %v2691_v54  ;;  %v2695_v23 = vsel %vm1134_vm14, %v2693_v43, 0.0  ;;  %v2743_v47 = vsel %vm1134_vm14, %v2691_v54, 0.0 }
 0x87f   : > { %2712 = vadd.xlane.f32.xlu1 %v2711_v38  ;;  %v2686_v25 = vpop.xlane.xlu0 %2685  ;;  %v2696_v62 = vadd.f32 %v2695_v23, %v2694_v58 }
 0x880   : > { %v2722_v40 = vmul.f32 %v7946_v6, %v2686_v25  ;;  %v2740_v28 = vmul.f32 %v2686_v25, %v7949_v8  ;;  %v2725_v27 = vsel %vm1134_vm14, %v2723_v52, 0.0 }
 0x881   : > { %2697 = vadd.xlane.f32.xlu0 %v2696_v62 }
 0x882   : > { %v2724_v48 = vsel %vm1132_vm13, %v2722_v40, 0.0  ;;  %v2742_v30 = vsel %vm1132_vm13, %v2740_v28, 0.0 }
 0x883   : > { %v2726_v31 = vadd.f32 %v2725_v27, %v2724_v48  ;;  %v2744_v51 = vadd.f32 %v2743_v47, %v2742_v30 }
 0x885   : > { %2727 = vadd.xlane.f32.xlu0 %v2726_v31  ;;  %2745 = vadd.xlane.f32.xlu1 %v2744_v51 }
 0x896   : > { %2797 = vperm.xlu1 %7694, %v7017_v57  }
 0x89a   : > { %2806 = vperm.xlu1 %7694, %v7018_v18  }
 0x89b   : > { %2792 = vperm.xlu0 %7693, %v7016_v19  }
 0x89f   : > { %2811 = vperm.xlu0 %7693, %v7019_v33  }
 0x90c   : > { %v2713_v35 = vpop.xlane.xlu1 %2712 }
 0x90d   : > { %v2714_v37 = vrot.slane %v2713_v35, 4 }
 0x90e   : > { %v2698_v24 = vpop.xlane.xlu0 %2697 }
 0x90f   : > { %v2715_v42 = vadd.f32 %v2714_v37, %v2713_v35  ;;  %v2699_v45 = vrot.slane %v2698_v24, 4 }
 0x911   : > { %v2700_v49 = vadd.f32 %v2699_v45, %v2698_v24  ;;  %v2716_v39 = vrot.slane %v2715_v42, 2 }
 0x912   : > { %v2746_v41 = vpop.xlane.xlu1 %2745  ;;  %v2728_v53 = vpop.xlane.xlu0 %2727 }
 0x913   : > { %v2747_v32 = vrot.slane %v2746_v41, 4  ;;  %v2729_v44 = vrot.slane %v2728_v53, 4  ;;  %v2701_v46 = vrot.slane %v2700_v49, 2  ;;  %v2717_v17 = vadd.f32 %v2716_v39, %v2715_v42 }
 0x915   : > { %v2748_v50 = vadd.f32 %v2747_v32, %v2746_v41  ;;  %v2730_v59 = vadd.f32 %v2729_v44, %v2728_v53  ;;  %v2702_v60 = vadd.f32 %v2701_v46, %v2700_v49  ;;  %v2718_v61 = vrot.slane %v2717_v17, 1 }
 0x916   : > { %v2798_v42 = vpop.permute.xlu1 %2797 }
 0x917   : > { %v2703_v63 = vrot.slane %v2702_v60, 1  ;;  %v2731_v3 = vrot.slane %v2730_v59, 2  ;;  %v2749_v5 = vrot.slane %v2748_v50, 2  ;;  %v2719_v54 = vadd.f32 %v2718_v61, %v2717_v17 }
 0x919   : > { %v2704_v43 = vadd.f32 %v2703_v63, %v2702_v60  ;;  %v2732_v22 = vadd.f32 %v2731_v3, %v2730_v59  ;;  %v2750_v21 = vadd.f32 %v2749_v5, %v2748_v50 }
 0x91a   : > { %v2793_v37 = vpop.permute.xlu0 %2792  ;;  %v2807_v5 = vpop.permute.xlu1 %2806 }
 0x91b   : > { %7637 = vpush %v2704_v43  ;;  %v2733_v38 = vrot.slane %v2732_v22, 1  ;;  %v2751_v52 = vrot.slane %v2750_v21, 1 }
 0x91c   : > { %7639 = vpush %v2719_v54 }
 0x91d   : > { %v2734_v58 = vadd.f32 %v2733_v38, %v2732_v22  ;;  %v2752_v23 = vadd.f32 %v2751_v52, %v2750_v21 }
 0x91e   : > { %v2812_v61 = vpop.permute.xlu0 %2811 }
 0x91f   : > { %7641 = vpush %v2734_v58 }
 0x920   : > { %7643 = vpush %v2752_v23 }
 0x94c   : > { %s7638_s24 = spop %7637 }
 0x94d   : > { %s2706_s25 = smul.f32 0.00055803574, %s7638_s24  ;;  %s7640_s19 = spop %7639 }
 0x94e   : > { %s2721_s27 = smul.f32 0.00055803574, %s7640_s19  ;;  %s10494_s24 = smov 0.0  }
 0x94f   : > { %s2737_s20 = smul.f32 %s2706_s25, %s2706_s25  ;;  %v2758_v25 = vstv %s2706_s25 }
 0x950   : > { %v2759_v62 = vmul.f32 %v7946_v6, %v2758_v25  ;;  %v2760_v40 = vmul.f32 0.0, %v2758_v25  ;;  %s2755_s16 = smul.f32 %s2721_s27, %s2721_s27  ;;  %v2761_v28 = vstv %s2721_s27  ;;  %s7642_s17 = spop %7641 }
 0x951   : > { %v2762_v47 = vmul.f32 %v2761_v28, %v7949_v8  ;;  %s2736_s18 = smul.f32 0.00055803574, %s7642_s17  ;;  %s7644_s22 = spop %7643 }
 0x952   : > { %v2765_v48 = vadd.f32 %v2761_v28, %v2760_v40  ;;  %s2754_s29 = smul.f32 0.00055803574, %s7644_s22 }
 0x953   : > { %v2764_v27 = vadd.f32 %v2762_v47, %v2759_v62  ;;  %s2738_s28 = ssub.f32 %s2736_s18, %s2737_s20 }
 0x954   : > { %s2756_s26 = ssub.f32 %s2754_s29, %s2755_s16  ;;  %v2784_v49 = vsub.f32 %v8811_v26, %v2765_v48  ;;  %v2785_v39 = vsub.f32 %v8813_v29, %v2765_v48 }
 0x955   : > { %s2739_s0 = smax.f32 %s10494_s24, %s2738_s28  ;;  %v2782_v53 = vsub.f32 %v8805_v34, %v2764_v27  ;;  %v2783_v32 = vsub.f32 %v8807_v36, %v2764_v27 }
 0x956   : > { %s2766_s19 = sadd.f32 1e-05, %s2739_s0  ;;  %s2757_s25 = smax.f32 %s10494_s24, %s2756_s26 }
 0x957   : > { %s2773_s1 = sadd.f32 1e-05, %s2757_s25  ;;  %s10495_s0 = smov 16  }
 0x958   : > { %v2767_v30 = vstv %s2766_s19  ;;  %s3959_s19 = sld [smem:[#allocation3]] }
 0x959   : > { %7735 = vrsqrt.f32 %v2767_v30  ;;  %v2774_v31 = vstv %s2773_s1  ;;  %s10496_s1 = smov 112  }
 0x95a   : > { %7737 = vrsqrt.f32 %v2774_v31 }
 0x963   : > { %v7736_v51 = vpop.eup %7735 }
 0x964   : > { %v7738_v57 = vpop.eup %7737  ;;  %7645 = vpush %v7736_v51 }
 0x965   : > { %7647 = vpush %v7738_v57 }
 0x995   : > { %s7646_s27 = spop %7645 }
 0x996   : > { %v2770_v18 = vstv %s7646_s27  ;;  %s7648_s17 = spop %7647 }
 0x997   : > { %v2771_v19 = vmul.f32 %v7946_v6, %v2770_v18  ;;  %v2772_v33 = vmul.f32 0.0, %v2770_v18  ;;  %v2777_v35 = vstv %s7648_s17 }
 0x998   : > { %v2778_v24 = vmul.f32 %v2777_v35, %v7949_v8 }
 0x999   : > { %v2781_v45 = vadd.f32 %v2777_v35, %v2772_v33 }
 0x99a   : > { %v2780_v41 = vadd.f32 %v2778_v24, %v2771_v19 }
 0x99b   : > { %v2788_v44 = vmul.f32 %v2784_v49, %v2781_v45  ;;  %v2789_v46 = vmul.f32 %v2785_v39, %v2781_v45 }
 0x99c   : > { %v2786_v17 = vmul.f32 %v2782_v53, %v2780_v41  ;;  %v2787_v50 = vmul.f32 %v2783_v32, %v2780_v41 }
 0x99d   : > { %v2802_v59 = vmul.f32 %v2798_v42, %v2788_v44  ;;  %v2803_v60 = vmul.f32 %v2798_v42, %v2789_v46 }
 0x99e   : > { %v2800_v63 = vmul.f32 %v2793_v37, %v2786_v17  ;;  %v2801_v3 = vmul.f32 %v2793_v37, %v2787_v50 }
 0x99f   : > { %v2816_v43 = vadd.f32 %v2812_v61, %v2802_v59  ;;  %v2817_v22 = vadd.f32 %v2812_v61, %v2803_v60  ;;  %v7028_v60 = vld [vmem:[%s10445_s5 + $0xa0] sm:$0xff]  ;;  %v7029_v61 = vld [vmem:[%s10445_s5 + $0xa8] sm:$0x3f] }
 0x9a0   : > { %v2814_v26 = vadd.f32 %v2807_v5, %v2800_v63  ;;  %v2815_v21 = vadd.f32 %v2807_v5, %v2801_v3  ;;  %v7024_v5 = vld [vmem:[%s10446_s6 + $0x10] sm:$0xff] }
 0x9a1   : > { %v7022_v29 = vmul.f32 -1.442695, %v2816_v43  ;;  %v7023_v34 = vmul.f32 -1.442695, %v2817_v22 }
 0x9a2   : > { %v7020_v54 = vmul.f32 -1.442695, %v2814_v26  ;;  %v7021_v38 = vmul.f32 -1.442695, %v2815_v21 }
 0x9a3   : > { %7739 = vpow2.f32 %v7022_v29 }
 0x9a4   : > { %7741 = vpow2.f32 %v7020_v54 }
 0x9a5   : > { %7743 = vpow2.f32 %v7021_v38 }
 0x9a6   : > { %7745 = vpow2.f32 %v7023_v34 }
 0x9ad   : > { %v7740_v36 = vpop.eup %7739 }
 0x9ae   : > { %v7742_v52 = vpop.eup %7741  ;;  %v2832_v58 = vadd.f32 1.0, %v7740_v36 }
 0x9af   : > { %v7744_v23 = vpop.eup %7743  ;;  %v2830_v25 = vadd.f32 1.0, %v7742_v52 }
 0x9b0   : > { %v7746_v62 = vpop.eup %7745  ;;  %v2831_v40 = vadd.f32 1.0, %v7744_v23  ;;  %7747 = vrcp.f32 %v2832_v58 }
 0x9b1   : > { %v2833_v28 = vadd.f32 1.0, %v7746_v62  ;;  %7749 = vrcp.f32 %v2830_v25 }
 0x9b2   : > { %7751 = vrcp.f32 %v2831_v40 }
 0x9b3   : > { %7753 = vrcp.f32 %v2833_v28 }
 0x9ba   : > { %v7748_v47 = vpop.eup %7747 }
 0x9bb   : > { %v7750_v48 = vpop.eup %7749  ;;  %v8863_v27 = vmul.f32 %v7748_v47, %v2816_v43  ;;  %v7025_v43 = vld [vmem:[%s10446_s6 + $0x18] sm:$0x3f] }
 0x9bc   : > { %v7752_v30 = vpop.eup %7751  ;;  %v8865_v31 = vmul.f32 %v7750_v48, %v2814_v26 }
 0x9bd   : > { %v7754_v51 = vpop.eup %7753  ;;  %2851 = vrot.lane.b32.xlu0 %v8863_v27, %s10495_s0  ;;  %v8873_v18 = vmul.f32 %v7752_v30, %v2815_v21 }
 0x9be   : > { %2849 = vrot.lane.b32.xlu1 %v8865_v31, %s10495_s0  ;;  %v8871_v57 = vmul.f32 %v7754_v51, %v2817_v22 }
 0x9c1   : > { %2855 = vrot.lane.b32.xlu0 %v8871_v57, %s10495_s0 }
 0x9c2   : > { %2853 = vrot.lane.b32.xlu1 %v8873_v18, %s10495_s0 }
 0x9c5   : > { %3575 = vrot.lane.b32.xlu0 %v8863_v27, %s10496_s1 }
 0x9c6   : > { %3573 = vrot.lane.b32.xlu1 %v8865_v31, %s10496_s1 }
 0x9c9   : > { %3579 = vrot.lane.b32.xlu0 %v8871_v57, %s10496_s1 }
 0x9ca   : > { %3577 = vrot.lane.b32.xlu1 %v8873_v18, %s10496_s1 }
 0x9cd   : > { %3215 = vrot.lane.b32.xlu0 %v8863_v27, %s10478_s23 }
 0x9ce   : > { %3213 = vrot.lane.b32.xlu1 %v8865_v31, %s10478_s23 }
 0x9d1   : > { %3219 = vrot.lane.b32.xlu0 %v8871_v57, %s10478_s23 }
 0x9d2   : > { %3217 = vrot.lane.b32.xlu1 %v8873_v18, %s10478_s23 }
 0x9d5   : > { %3231 = vrot.lane.b32.xlu0 %v8863_v27, %s10479_s30 }
 0x9d6   : > { %3229 = vrot.lane.b32.xlu1 %v8865_v31, %s10479_s30 }
 0x9d9   : > { %3235 = vrot.lane.b32.xlu0 %v8871_v57, %s10479_s30 }
 0x9da   : > { %3233 = vrot.lane.b32.xlu1 %v8873_v18, %s10479_s30 }
 0xa2f   : > { %v2852_v19 = vpop.permute.xlu0 %2851 }
 0xa30   : > { %v2850_v33 = vpop.permute.xlu1 %2849 }
 0xa33   : > { %v2856_v35 = vpop.permute.xlu0 %2855 }
 0xa34   : > { %v2854_v37 = vpop.permute.xlu1 %2853  ;;  %v2858_v24 = vsel %vm113_vm7, %v2852_v19, %v2856_v35  ;;  %v2860_v42 = vsel %vm113_vm7, %v2856_v35, %v2852_v19 }
 0xa35   : > { %v2857_v45 = vsel %vm113_vm7, %v2850_v33, %v2854_v37  ;;  %v2859_v49 = vsel %vm113_vm7, %v2854_v37, %v2850_v33  ;;  %2863 = vrot.lane.b32.xlu0 %v2860_v42, %s10478_s23 }
 0xa36   : > { %v7288_v39 = vpack.c.bf16 %v2860_v42, %v2859_v49  ;;  %2861 = vrot.lane.b32.xlu1 %v2859_v49, %s10478_s23  ;;  %v7285_v41 = vpack.c.bf16 %v2858_v24, %v2857_v45 }
 0xa37   : > { %v3576_v53 = vpop.permute.xlu0 %3575 }
 0xa38   : > { %v3574_v32 = vpop.permute.xlu1 %3573  ;;  %7287 = vmatprep.subr.msk.bf16.mxu0 %vm8435_vm15, %v7285_v41 }
 0xa39   : > { %7290 = vmatpush1.bf16.msk.msra.mxu0 %vm8435_vm15, %v7288_v39  ;;  %2867 = vrot.lane.b32.xlu0 %v2858_v24, %s10478_s23 }
 0xa3a   : > { %2865 = vrot.lane.b32.xlu1 %v2857_v45, %s10478_s23 }
 0xa3b   : > { %v3580_v44 = vpop.permute.xlu0 %3579 }
 0xa3c   : > { %v3578_v46 = vpop.permute.xlu1 %3577  ;;  %v8921_v17 = vsel %vm765_vm9, %v3576_v53, %v3580_v44  ;;  %7032 = vmatmul.mubr.msk.f32.vlgmr.msra.gmra.mrb[4].mxu0 %vm1609_vm0, %v7028_v60  ;;  %v8973_v63 = vsel %vm765_vm9, %v3580_v44, %v3576_v53 }
 0xa3d   : > { %v8925_v50 = vsel %vm765_vm9, %v3574_v32, %v3578_v46  ;;  %2879 = vrot.lane.b32.xlu0 %v2860_v42, %s10479_s30  ;;  %2985 = vmatprep.mubr.f32.mxu0 %v7849_v20  ;;  %v8977_v3 = vsel %vm765_vm9, %v3578_v46, %v3574_v32 }
 0xa3e   : > { %v7330_v59 = vpack.c.bf16 %v8921_v17, %v8925_v50  ;;  %2877 = vrot.lane.b32.xlu1 %v2859_v49, %s10479_s30 }
 0xa3f   : > { %v3216_v22 = vpop.permute.xlu0 %3215 }
 0xa40   : > { %7033 = vmatmul.mubr.msk.f32.gmra.mrb[6].mxu0 %vm1609_vm0, %v7029_v61  ;;  %v3214_v26 = vpop.permute.xlu1 %3213 }
 0xa41   : > { %2883 = vrot.lane.b32.xlu0 %v2858_v24, %s10479_s30  ;;  %3068 = vmatprep.mubr.f32.mxu0 %v7849_v20 }
 0xa42   : > { %2881 = vrot.lane.b32.xlu1 %v2857_v45, %s10479_s30 }
 0xa43   : > { %v3220_v21 = vpop.permute.xlu0 %3219 }
 0xa44   : > { %v3218_v29 = vpop.permute.xlu1 %3217 }
 0xa45   : > { %3083 = vrot.lane.b32.xlu0 %v2860_v42, %s10482_s21 }
 0xa46   : > { %3081 = vrot.lane.b32.xlu1 %v2859_v49, %s10482_s21 }
 0xa47   : > { %v3232_v54 = vpop.permute.xlu0 %3231 }
 0xa48   : > { %v3230_v38 = vpop.permute.xlu1 %3229 }
 0xa49   : > { %3087 = vrot.lane.b32.xlu0 %v2858_v24, %s10482_s21 }
 0xa4a   : > { %3085 = vrot.lane.b32.xlu1 %v2857_v45, %s10482_s21 }
 0xa4b   : > { %v3236_v34 = vpop.permute.xlu0 %3235 }
 0xa4c   : > { %v3234_v36 = vpop.permute.xlu1 %3233 }
 0xa4d   : > { %3099 = vrot.lane.b32.xlu0 %v2860_v42, %s10483_s14 }
 0xa4e   : > { %3097 = vrot.lane.b32.xlu1 %v2859_v49, %s10483_s14 }
 0xa51   : > { %3103 = vrot.lane.b32.xlu0 %v2858_v24, %s10483_s14 }
 0xa52   : > { %3101 = vrot.lane.b32.xlu1 %v2857_v45, %s10483_s14 }
 0xa55   : > { %3443 = vrot.lane.b32.xlu0 %v8863_v27, %s10482_s21 }
 0xa56   : > { %3441 = vrot.lane.b32.xlu1 %v8865_v31, %s10482_s21 }
 0xa59   : > { %3447 = vrot.lane.b32.xlu0 %v8871_v57, %s10482_s21 }
 0xa5a   : > { %3445 = vrot.lane.b32.xlu1 %v8873_v18, %s10482_s21 }
 0xa5d   : > { %3459 = vrot.lane.b32.xlu0 %v8863_v27, %s10483_s14 }
 0xa5e   : > { %3457 = vrot.lane.b32.xlu1 %v8865_v31, %s10483_s14 }
 0xa61   : > { %3463 = vrot.lane.b32.xlu0 %v8871_v57, %s10483_s14 }
 0xa62   : > { %3461 = vrot.lane.b32.xlu1 %v8873_v18, %s10483_s14 }
 0xa65   : > { %3587 = vrot.lane.b32.xlu0 %v8921_v17, %s10478_s23 }
 0xa66   : > { %3585 = vrot.lane.b32.xlu1 %v8925_v50, %s10478_s23 }
 0xa69   : > { %3591 = vrot.lane.b32.xlu0 %v8973_v63, %s10478_s23 }
 0xa6a   : > { %3589 = vrot.lane.b32.xlu1 %v8977_v3, %s10478_s23 }
 0xa6d   : > { %3603 = vrot.lane.b32.xlu0 %v8921_v17, %s10479_s30 }
 0xa6e   : > { %3601 = vrot.lane.b32.xlu1 %v8925_v50, %s10479_s30 }
 0xa71   : > { %3607 = vrot.lane.b32.xlu0 %v8973_v63, %s10479_s30 }
 0xa72   : > { %3605 = vrot.lane.b32.xlu1 %v8977_v3, %s10479_s30 }
 0xa75   : > { %3815 = vrot.lane.b32.xlu0 %v8921_v17, %s10482_s21 }
 0xa76   : > { %3813 = vrot.lane.b32.xlu1 %v8925_v50, %s10482_s21 }
 0xa79   : > { %3819 = vrot.lane.b32.xlu0 %v8973_v63, %s10482_s21 }
 0xa7a   : > { %3817 = vrot.lane.b32.xlu1 %v8977_v3, %s10482_s21 }
 0xa7d   : > { %3831 = vrot.lane.b32.xlu0 %v8921_v17, %s10483_s14 }
 0xa7e   : > { %3829 = vrot.lane.b32.xlu1 %v8925_v50, %s10483_s14 }
 0xa81   : > { %3835 = vrot.lane.b32.xlu0 %v8973_v63, %s10483_s14 }
 0xa82   : > { %3833 = vrot.lane.b32.xlu1 %v8977_v3, %s10483_s14 }
 0xa85   : > { %3947 = vperm.xlu0 %7693, %v7024_v5  }
 0xa86   : > { %3952 = vperm.xlu1 %7694, %v7025_v43  }
 0xaa7   : > { %v2864_v52 = vpop.permute.xlu0 %2863 }
 0xaa8   : > { %v2862_v58 = vpop.permute.xlu1 %2861 }
 0xaab   : > { %v2868_v23 = vpop.permute.xlu0 %2867 }
 0xaac   : > { %v2866_v25 = vpop.permute.xlu1 %2865  ;;  %v2870_v28 = vsel %vm120_vm11, %v2864_v52, %v2868_v23  ;;  %v2872_v47 = vsel %vm120_vm11, %v2868_v23, %v2864_v52 }
 0xaad   : > { %v2869_v48 = vsel %vm120_vm11, %v2862_v58, %v2866_v25  ;;  %v2871_v30 = vsel %vm120_vm11, %v2866_v25, %v2862_v58  ;;  %v2875_v19 = vmul.f32 %v7951_v9, %v2872_v47  ;;  %v2876_v33 = vmul.f32 %v7961_v13, %v2870_v28 }
 0xaae   : > { %v2873_v41 = vmul.f32 %v7951_v9, %v2871_v30  ;;  %v2874_v53 = vmul.f32 %v7961_v13, %v2869_v48  ;;  %v3221_v28 = vsel %vm120_vm11, %v3214_v26, %v3218_v29  ;;  %v3222_v47 = vsel %vm120_vm11, %v3216_v22, %v3220_v21 }
 0xaaf   : > { %v2880_v62 = vpop.permute.xlu0 %2879  ;;  %v3239_v30 = vsel %vm129_vm12, %v3234_v36, %v3230_v38 }
 0xab0   : > { %v2878_v40 = vpop.permute.xlu1 %2877 }
 0xab3   : > { %v2884_v51 = vpop.permute.xlu0 %2883 }
 0xab4   : > { %v2882_v35 = vpop.permute.xlu1 %2881  ;;  %v2886_v37 = vsel %vm129_vm12, %v2880_v62, %v2884_v51  ;;  %v2888_v24 = vsel %vm129_vm12, %v2884_v51, %v2880_v62  ;;  %v3240_v51 = vsel %vm129_vm12, %v3236_v34, %v3232_v54 }
 0xab5   : > { %v2885_v42 = vsel %vm129_vm12, %v2878_v40, %v2882_v35  ;;  %v2887_v45 = vsel %vm129_vm12, %v2882_v35, %v2878_v40  ;;  %v2891_v49 = vmul.f32 %v2886_v37, %v7956_v11  ;;  %v2892_v39 = vmul.f32 %v2888_v24, %v7966_v15  ;;  %v7026_v40 = vld [vmem:[%s10445_s5 + $0x90] sm:$0xff] }
 0xab6   : > { %v2889_v32 = vmul.f32 %v2885_v42, %v7956_v11  ;;  %v2890_v44 = vmul.f32 %v2887_v45, %v7966_v15  ;;  %v3224_v35 = vsel %vm120_vm11, %v3220_v21, %v3216_v22  ;;  %v7027_v42 = vld [vmem:[%s10445_s5 + $0x98] sm:$0x3f]  ;;  %v3226_v45 = vmul.f32 %v7961_v13, %v3221_v28 }
 0xab7   : > { %v2895_v46 = vadd.f32 %v2891_v49, %v2875_v19  ;;  %v2896_v60 = vadd.f32 %v2892_v39, %v2876_v33  ;;  %v3084_v61 = vpop.permute.xlu0 %3083  ;;  %v3223_v33 = vsel %vm120_vm11, %v3218_v29, %v3214_v26  ;;  %v3228_v49 = vmul.f32 %v7961_v13, %v3222_v47 }
 0xab8   : > { %v2893_v5 = vadd.f32 %v2889_v32, %v2873_v41  ;;  %v2894_v43 = vadd.f32 %v2890_v44, %v2874_v53  ;;  %v3082_v52 = vpop.permute.xlu1 %3081  ;;  %v3237_v26 = vsel %vm129_vm12, %v3230_v38, %v3234_v36  ;;  %v3238_v22 = vsel %vm129_vm12, %v3232_v54, %v3236_v34 }
 0xab9   : > { %v3242_v21 = vmul.f32 %v3239_v30, %v7966_v15  ;;  %v3244_v29 = vmul.f32 %v3240_v51, %v7966_v15 }
 0xaba   : > { %v7294_v58 = vpack.c.bf16 %v2895_v46, %v2893_v5  ;;  %v7291_v23 = vpack.c.bf16 %v2896_v60, %v2894_v43 }
 0xabb   : > { %v3088_v25 = vpop.permute.xlu0 %3087  ;;  %v3246_v47 = vadd.f32 %v3242_v21, %v3226_v45  ;;  %v7038_v45 = vld [vmem:[%s10445_s5 + $0xb0] sm:$0xff]  ;;  %v7309_v21 = vpack.c.bf16 %v8871_v57, %v8873_v18 }
 0xabc   : > { %v3086_v62 = vpop.permute.xlu1 %3085  ;;  %7293 = vmatprep.subr.msk.bf16.mxu0 %vm8435_vm15, %v7291_v23  ;;  %v3090_v37 = vsel %vm325_vm8, %v3084_v61, %v3088_v25  ;;  %v3092_v24 = vsel %vm325_vm8, %v3088_v25, %v3084_v61  ;;  %v3241_v23 = vmul.f32 %v3237_v26, %v7956_v11  ;;  %v3243_v25 = vmul.f32 %v3238_v22, %v7956_v11 }
 0xabd   : > { %7296 = vmatpush1.bf16.msk.msra.mxu0 %vm8435_vm15, %v7294_v58  ;;  %v3089_v39 = vsel %vm325_vm8, %v3082_v52, %v3086_v62  ;;  %v3091_v41 = vsel %vm325_vm8, %v3086_v62, %v3082_v52  ;;  %v3095_v32 = vmul.f32 %v7953_v10, %v3090_v37  ;;  %v3096_v44 = vmul.f32 %v7963_v14, %v3092_v24 }
 0xabe   : > { %v3093_v5 = vmul.f32 %v7953_v10, %v3089_v39  ;;  %v3094_v43 = vmul.f32 %v7963_v14, %v3091_v41  ;;  %v3225_v37 = vmul.f32 %v7951_v9, %v3223_v33  ;;  %v3227_v24 = vmul.f32 %v7951_v9, %v3224_v35 }
 0xabf   : > { %v3100_v48 = vpop.permute.xlu0 %3099 }
 0xac0   : > { %v3098_v19 = vpop.permute.xlu1 %3097  ;;  %7036 = vmatmul.mubr.msk.f32.vlgmr.msra.gmra.mrb[4].mxu0 %vm1609_vm0, %v7026_v40  ;;  %v3245_v41 = vadd.f32 %v3241_v23, %v3225_v37 }
 0xac1   : > { %3074 = vmatprep.mubr.f32.mxu0 %v7849_v20 }
 0xac3   : > { %v3104_v53 = vpop.permute.xlu0 %3103 }
 0xac4   : > { %v3102_v46 = vpop.permute.xlu1 %3101  ;;  %v3106_v38 = vsel %vm10497_vm3, %v3100_v48, %v3104_v53  ;;  %v3108_v54 = vsel %vm10498_vm4, %v3104_v53, %v3100_v48  ;;  %7037 = vmatmul.mubr.msk.f32.gmra.mrb[6].mxu0 %vm1609_vm0, %v7027_v42  ;;  %v3248_v48 = vadd.f32 %v3244_v29, %v3228_v49  ;;  %v3247_v53 = vadd.f32 %v3243_v25, %v3227_v24  ;;  %v7039_v29 = vld [vmem:[%s10445_s5 + $0xb8] sm:$0x3f]  ;;  %vm10501_vm3 = vmmov %vm10484_vm1 }
 0xac5   : > { %v3105_v34 = vsel %vm10499_vm6, %v3098_v19, %v3102_v46  ;;  %v3107_v36 = vsel %vm10484_vm1, %v3102_v46, %v3098_v19  ;;  %v3111_v60 = vmul.f32 %v3108_v54, %v7959_v12  ;;  %v3112_v61 = vmul.f32 %v3106_v38, %v7969_v16  ;;  %3196 = vmatprep.mubr.f32.mxu0 %v7849_v20  ;;  %vm10502_vm4 = vmmov %vm10484_vm1 }
 0xac6   : > { %v3109_v52 = vmul.f32 %v3107_v36, %v7959_v12  ;;  %v3110_v58 = vmul.f32 %v3105_v34, %v7969_v16  ;;  %v7303_v22 = vpack.c.bf16 %v3248_v48, %v3246_v47  ;;  %v7306_v33 = vpack.c.bf16 %v3247_v53, %v3245_v41  ;;  %vm10503_vm6 = vmmov %vm10484_vm1  ;;  %v7050_v41 = vld [vmem:[%s10445_s5 + $0xd0] sm:$0xff] }
 0xac7   : > { %v3115_v62 = vadd.f32 %v3111_v60, %v3095_v32  ;;  %v3116_v40 = vadd.f32 %v3112_v61, %v3096_v44  ;;  %v3444_v28 = vpop.permute.xlu0 %3443  ;;  %v7312_v48 = vpack.c.bf16 %v8863_v27, %v8865_v31 }
 0xac8   : > { %v3113_v30 = vadd.f32 %v3109_v52, %v3093_v5  ;;  %v3114_v51 = vadd.f32 %v3110_v58, %v3094_v43  ;;  %v3442_v19 = vpop.permute.xlu1 %3441  ;;  %v7044_v5 = vld [vmem:[%s10445_s5 + $0xc0] sm:$0xff] }
 0xaca   : > { %v7300_v42 = vpack.c.bf16 %v3115_v62, %v3113_v30  ;;  %v7297_v39 = vpack.c.bf16 %v3116_v40, %v3114_v51 }
 0xacb   : > { %v3448_v46 = vpop.permute.xlu0 %3447 }
 0xacc   : > { %v3446_v26 = vpop.permute.xlu1 %3445  ;;  %7299 = vmatprep.subr.msk.bf16.mxu0 %vm8435_vm15, %v7297_v39  ;;  %v3452_v32 = vsel %vm325_vm8, %v3448_v46, %v3444_v28  ;;  %v3450_v58 = vsel %vm325_vm8, %v3444_v28, %v3448_v46  ;;  %v7045_v28 = vld [vmem:[%s10445_s5 + $0xc8] sm:$0x3f] }
 0xacd   : > { %7302 = vmatpush1.bf16.msk.msra.mxu0 %vm8435_vm15, %v7300_v42  ;;  %v3451_v44 = vsel %vm325_vm8, %v3446_v26, %v3442_v19  ;;  %v3456_v34 = vmul.f32 %v7963_v14, %v3452_v32  ;;  %v3449_v43 = vsel %vm325_vm8, %v3442_v19, %v3446_v26  ;;  %v3455_v37 = vmul.f32 %v7953_v10, %v3450_v58 }
 0xace   : > { %7305 = vmatprep.subr.msk.bf16.mxu0 %vm8435_vm15, %v7303_v22  ;;  %v3454_v52 = vmul.f32 %v7963_v14, %v3451_v44  ;;  %v3453_v19 = vmul.f32 %v7953_v10, %v3449_v43 }
 0xacf   : > { %v3460_v35 = vpop.permute.xlu0 %3459 }
 0xad0   : > { %v3458_v49 = vpop.permute.xlu1 %3457  ;;  %7042 = vmatmul.mubr.msk.f32.vlgmr.msra.gmra.mrb[4].mxu0 %vm1609_vm0, %v7038_v45 }
 0xad1   : > { %7308 = vmatpush1.bf16.msk.msra.mxu0 %vm8435_vm15, %v7306_v33  ;;  %3202 = vmatprep.mubr.f32.mxu0 %v7849_v20  ;;  %v7051_v33 = vld [vmem:[%s10445_s5 + $0xd8] sm:$0x3f] }
 0xad2   : > { %7311 = vmatprep.subr.msk.bf16.mxu0 %vm8435_vm15, %v7309_v21 }
 0xad3   : > { %v3464_v38 = vpop.permute.xlu0 %3463 }
 0xad4   : > { %v3462_v57 = vpop.permute.xlu1 %3461  ;;  %7043 = vmatmul.mubr.msk.f32.gmra.mrb[6].mxu0 %vm1609_vm0, %v7039_v29  ;;  %v3466_v18 = vsel %vm10500_vm2, %v3460_v35, %v3464_v38  ;;  %v3468_v54 = vsel %vm10501_vm3, %v3464_v38, %v3460_v35  ;;  %vm10504_vm2 = vmmov %vm10484_vm1 }
 0xad5   : > { %v3465_v36 = vsel %vm10502_vm4, %v3458_v49, %v3462_v57  ;;  %v3467_v60 = vsel %vm10503_vm6, %v3462_v57, %v3458_v49  ;;  %v3472_v61 = vmul.f32 %v3466_v18, %v7969_v16  ;;  %3328 = vmatprep.mubr.f32.mxu0 %v7849_v20  ;;  %v3471_v62 = vmul.f32 %v3468_v54, %v7959_v12  ;;  %vm10505_vm3 = vmmov %vm10484_vm1 }
 0xad6   : > { %v3470_v23 = vmul.f32 %v3465_v36, %v7969_v16  ;;  %v3469_v25 = vmul.f32 %v3467_v60, %v7959_v12  ;;  %v7056_v60 = vld [vmem:[%s10445_s5 + $0xe0] sm:$0xff]  ;;  %vm10506_vm4 = vmmov %vm10484_vm1 }
 0xad7   : > { %v3476_v40 = vadd.f32 %v3472_v61, %v3456_v34  ;;  %v3588_v47 = vpop.permute.xlu0 %3587  ;;  %v3475_v27 = vadd.f32 %v3471_v62, %v3455_v37  ;;  %vm10507_vm6 = vmmov %vm10484_vm1 }
 0xad8   : > { %v3474_v30 = vadd.f32 %v3470_v23, %v3454_v52  ;;  %v3586_v51 = vpop.permute.xlu1 %3585  ;;  %7048 = vmatmul.mubr.msk.f32.vlgmr.msra.gmra.mrb[4].mxu0 %vm1609_vm0, %v7044_v5  ;;  %v3473_v42 = vadd.f32 %v3469_v25, %v3453_v19 }
 0xad9   : > { %7314 = vmatpush1.bf16.msk.msra.mxu0 %vm8435_vm15, %v7312_v48  ;;  %3334 = vmatprep.mubr.f32.mxu0 %v7849_v20  ;;  %v7057_v48 = vld [vmem:[%s10445_s5 + $0xe8] sm:$0x3f] }
 0xada   : > { %v7315_v24 = vpack.c.bf16 %v3476_v40, %v3474_v30  ;;  %v7318_v53 = vpack.c.bf16 %v3475_v27, %v3473_v42 }
 0xadb   : > { %v3592_v31 = vpop.permute.xlu0 %3591 }
 0xadc   : > { %v3590_v39 = vpop.permute.xlu1 %3589  ;;  %7049 = vmatmul.mubr.msk.f32.gmra.mrb[6].mxu0 %vm1609_vm0, %v7045_v28  ;;  %7317 = vmatprep.subr.msk.bf16.mxu0 %vm8435_vm15, %v7315_v24  ;;  %v3594_v22 = vsel %vm120_vm11, %v3588_v47, %v3592_v31  ;;  %v3596_v45 = vsel %vm120_vm11, %v3592_v31, %v3588_v47  ;;  %v7327_v28 = vpack.c.bf16 %v8973_v63, %v8977_v3  ;;  %v7062_v24 = vld [vmem:[%s10445_s5 + $0xf0] sm:$0xff]  ;;  %v7063_v3 = vld [vmem:[%s10445_s5 + $0xf8] sm:$0x3f] }
 0xadd   : > { %3424 = vmatprep.mubr.f32.mxu0 %v7849_v20  ;;  %v3593_v35 = vsel %vm120_vm11, %v3586_v51, %v3590_v39  ;;  %v3595_v49 = vsel %vm120_vm11, %v3590_v39, %v3586_v51  ;;  %v3599_v29 = vmul.f32 %v7951_v9, %v3596_v45  ;;  %v3600_v32 = vmul.f32 %v7961_v13, %v3594_v22 }
 0xade   : > { %v3597_v61 = vmul.f32 %v7951_v9, %v3595_v49  ;;  %v3598_v5 = vmul.f32 %v7961_v13, %v3593_v35  ;;  %v7068_v49 = vld [vmem:[%s10445_s5 + $0x100] sm:$0xff] }
 0xadf   : > { %v3604_v46 = vpop.permute.xlu0 %3603 }
 0xae0   : > { %v3602_v26 = vpop.permute.xlu1 %3601  ;;  %7054 = vmatmul.mubr.msk.f32.vlgmr.msra.gmra.mrb[4].mxu0 %vm1609_vm0, %v7050_v41 }
 0xae1   : > { %7320 = vmatpush1.bf16.msk.msra.mxu0 %vm8435_vm15, %v7318_v53  ;;  %3430 = vmatprep.mubr.f32.mxu0 %v7849_v20 }
 0xae3   : > { %v3608_v21 = vpop.permute.xlu0 %3607 }
 0xae4   : > { %v3606_v44 = vpop.permute.xlu1 %3605  ;;  %v3610_v38 = vsel %vm129_vm12, %v3604_v46, %v3608_v21  ;;  %v3612_v57 = vsel %vm129_vm12, %v3608_v21, %v3604_v46  ;;  %7055 = vmatmul.mubr.msk.f32.gmra.mrb[6].mxu0 %vm1609_vm0, %v7051_v33 }
 0xae5   : > { %v3609_v18 = vsel %vm129_vm12, %v3602_v26, %v3606_v44  ;;  %v3611_v54 = vsel %vm129_vm12, %v3606_v44, %v3602_v26  ;;  %v3615_v34 = vmul.f32 %v3610_v38, %v7956_v11  ;;  %v3616_v36 = vmul.f32 %v3612_v57, %v7966_v15  ;;  %3556 = vmatprep.mubr.f32.mxu0 %v7849_v20 }
 0xae6   : > { %v3613_v43 = vmul.f32 %v3609_v18, %v7956_v11  ;;  %v3614_v52 = vmul.f32 %v3611_v54, %v7966_v15 }
 0xae7   : > { %v3619_v58 = vadd.f32 %v3615_v34, %v3599_v29  ;;  %v3620_v23 = vadd.f32 %v3616_v36, %v3600_v32  ;;  %v3816_v25 = vpop.permute.xlu0 %3815  ;;  %v7069_v34 = vld [vmem:[%s10445_s5 + $0x108] sm:$0x3f] }
 0xae8   : > { %v3617_v62 = vadd.f32 %v3613_v43, %v3597_v61  ;;  %v3618_v40 = vadd.f32 %v3614_v52, %v3598_v5  ;;  %v3814_v47 = vpop.permute.xlu1 %3813  ;;  %7060 = vmatmul.mubr.msk.f32.vlgmr.msra.gmra.mrb[4].mxu0 %vm1609_vm0, %v7056_v60  ;;  %v7074_v61 = vld [vmem:[%s10445_s5 + $0x110] sm:$0xff]  ;;  %v7075_v5 = vld [vmem:[%s10445_s5 + $0x118] sm:$0x3f] }
 0xae9   : > { %3562 = vmatprep.mubr.f32.mxu0 %v7849_v20 }
 0xaea   : > { %v7324_v30 = vpack.c.bf16 %v3619_v58, %v3617_v62  ;;  %v7321_v51 = vpack.c.bf16 %v3620_v23, %v3618_v40  ;;  %v3960_v58 = vstv %s3959_s19 }
 0xaeb   : > { %v3820_v19 = vpop.permute.xlu0 %3819 }
 0xaec   : > { %v3818_v37 = vpop.permute.xlu1 %3817  ;;  %7061 = vmatmul.mubr.msk.f32.gmra.mrb[6].mxu0 %vm1609_vm0, %v7057_v48  ;;  %7323 = vmatprep.subr.msk.bf16.mxu0 %vm8435_vm15, %v7321_v51  ;;  %v3822_v31 = vsel %vm325_vm8, %v3816_v25, %v3820_v19  ;;  %v3824_v63 = vsel %vm325_vm8, %v3820_v19, %v3816_v25 }
 0xaed   : > { %7326 = vmatpush1.bf16.msk.msra.mxu0 %vm8435_vm15, %v7324_v30  ;;  %3700 = vmatprep.mubr.f32.mxu0 %v7849_v20  ;;  %v3821_v39 = vsel %vm325_vm8, %v3814_v47, %v3818_v37  ;;  %v3823_v41 = vsel %vm325_vm8, %v3818_v37, %v3814_v47  ;;  %v3827_v46 = vmul.f32 %v7953_v10, %v3822_v31 }
 0xaee   : > { %7329 = vmatprep.subr.msk.bf16.mxu0 %vm8435_vm15, %v7327_v28  ;;  %v3828_v17 = vmul.f32 %v7963_v14, %v3824_v63  ;;  %v3825_v21 = vmul.f32 %v7953_v10, %v3821_v39  ;;  %v3826_v29 = vmul.f32 %v7963_v14, %v3823_v41 }
 0xaef   : > { %v3832_v42 = vpop.permute.xlu0 %3831 }
 0xaf0   : > { %v3830_v27 = vpop.permute.xlu1 %3829  ;;  %7066 = vmatmul.mubr.msk.f32.vlgmr.msra.gmra.mrb[4].mxu0 %vm1609_vm0, %v7062_v24 }
 0xaf1   : > { %7332 = vmatpush1.bf16.msk.msra.mxu0 %vm8435_vm15, %v7330_v59  ;;  %3706 = vmatprep.mubr.f32.mxu0 %v7849_v20 }
 0xaf3   : > { %v3836_v53 = vpop.permute.xlu0 %3835 }
 0xaf4   : > { %v3834_v50 = vpop.permute.xlu1 %3833  ;;  %v3838_v59 = vsel %vm10484_vm1, %v3832_v42, %v3836_v53  ;;  %v3840_v26 = vsel %vm10504_vm2, %v3836_v53, %v3832_v42  ;;  %7067 = vmatmul.mubr.msk.f32.gmra.mrb[6].mxu0 %vm1609_vm0, %v7063_v3  ;;  %vm10508_vm2 = vmmov %vm10484_vm1 }
 0xaf5   : > { %v3837_v22 = vsel %vm10505_vm3, %v3830_v27, %v3834_v50  ;;  %v3839_v45 = vsel %vm10506_vm4, %v3834_v50, %v3830_v27  ;;  %v3843_v33 = vmul.f32 %v3840_v26, %v7959_v12  ;;  %v3844_v35 = vmul.f32 %v3838_v59, %v7969_v16  ;;  %3796 = vmatprep.mubr.f32.mxu0 %v7849_v20  ;;  %vm10509_vm3 = vmmov %vm10484_vm1 }
 0xaf6   : > { %v3841_v32 = vmul.f32 %v3839_v45, %v7959_v12  ;;  %v3842_v44 = vmul.f32 %v3837_v22, %v7969_v16  ;;  %vm10510_vm4 = vmmov %vm10484_vm1 }
 0xaf7   : > { %v3847_v38 = vadd.f32 %v3843_v33, %v3827_v46  ;;  %v3848_v57 = vadd.f32 %v3844_v35, %v3828_v17 }
 0xaf8   : > { %v3845_v18 = vadd.f32 %v3841_v32, %v3825_v21  ;;  %v3846_v54 = vadd.f32 %v3842_v44, %v3826_v29  ;;  %7072 = vmatmul.mubr.msk.f32.vlgmr.msra.gmra.mrb[4].mxu0 %vm1609_vm0, %v7068_v49 }
 0xaf9   : > { %3802 = vmatprep.mubr.f32.mxu0 %v7849_v20 }
 0xafa   : > { %v7336_v36 = vpack.c.bf16 %v3847_v38, %v3845_v18  ;;  %v7333_v60 = vpack.c.bf16 %v3848_v57, %v3846_v54 }
 0xafc   : > { %7073 = vmatmul.mubr.msk.f32.gmra.mrb[6].mxu0 %vm1609_vm0, %v7069_v34  ;;  %7335 = vmatprep.subr.msk.bf16.mxu0 %vm8435_vm15, %v7333_v60 }
 0xafd   : > { %7338 = vmatpush1.bf16.msk.msra.mxu0 %vm8435_vm15, %v7336_v36  ;;  %3928 = vmatprep.mubr.f32.mxu0 %v7849_v20 }
 0xb00   : > { %7078 = vmatmul.mubr.msk.f32.vlgmr.msra.gmra.mrb[4].mxu0 %vm1609_vm0, %v7074_v61 }
 0xb01   : > { %3934 = vmatprep.mubr.f32.mxu0 %v7849_v20 }
 0xb04   : > { %7079 = vmatmul.mubr.msk.f32.gmra.mrb[6].mxu0 %vm1609_vm0, %v7075_v5  ;;  %v3948_v43 = vpop.permute.xlu0 %3947 }
 0xb05   : > { %5575 = vmatprep.mubr.f32.mxu0 %v7849_v20  ;;  %v3953_v47 = vpop.permute.xlu1 %3952 }
 0xbd3   : > { %v3930_v52 = vpop.f32.mrb[4].mxu0 }
 0xbd4   : > { %v3955_v23 = vadd.f32 %v3948_v43, %v3930_v52  ;;  %v3932_v25 = vpop.f32.mrb[5].mxu0 }
 0xbd5   : > { %v3956_v62 = vadd.f32 %v3948_v43, %v3932_v25  ;;  %v7082_v25 = vld [vmem:[%s10444_s4 + $0x30] sm:$0xff] }
 0xbd6   : > { %v3961_v40 = vmul.f32 %v3960_v58, %v3955_v23  ;;  %v7081_v23 = vld [vmem:[%s10443_s3 + $0x38] sm:$0x3f] }
 0xbd7   : > { %v3962_v48 = vmul.f32 %v3960_v58, %v3956_v62  ;;  %v3936_v30 = vpop.f32.mrb[6].mxu0  ;;  %v7080_v62 = vld [vmem:[%s10443_s3 + $0x30] sm:$0xff] }
 0xbd8   : > { %v9279_v51 = vadd.f32 %v3961_v40, %v8328_v4  ;;  %v3957_v19 = vadd.f32 %v3953_v47, %v3936_v30  ;;  %v3938_v37 = vpop.f32.mrb[7].mxu0  ;;  %v7083_v40 = vld [vmem:[%s10444_s4 + $0x38] sm:$0x3f] }
 0xbd9   : > { %v9282_v28 = vadd.f32 %v3962_v48, %v8330_v56  ;;  %v3958_v24 = vadd.f32 %v3953_v47, %v3938_v37 }
 0xbda   : > { %v3963_v42 = vmul.f32 %v3960_v58, %v3957_v19 }
 0xbdb   : > { %v3964_v27 = vmul.f32 %v3960_v58, %v3958_v24  ;;  %v3975_v31 = vadd.f32 %v9282_v28, %v9279_v51  ;;  %v3984_v46 = vmul.f32 %v9282_v28, %v9282_v28 }
 0xbdc   : > { %v9287_v63 = vadd.f32 %v3963_v42, %v8325_v0 }
 0xbdd   : > { %v9290_v3 = vadd.f32 %v3964_v27, %v8334_v7  ;;  %3976 = vadd.xlane.f32.xlu1 %v3975_v31  ;;  %v3983_v7 = vmul.f32 %v9279_v51, %v9279_v51 }
 0xbde   : > { %v3978_v4 = vsel %vm148_vm5, %v9287_v63, 0.0  ;;  %v3985_v56 = vmul.f32 %v9287_v63, %v9287_v63 }
 0xbdf   : > { %v3979_v39 = vsel %vm148_vm5, %v9290_v3, 0.0  ;;  %v3986_v41 = vmul.f32 %v9290_v3, %v9290_v3  ;;  %v3987_v59 = vadd.f32 %v3984_v46, %v3983_v7 }
 0xbe0   : > { %v3980_v53 = vadd.f32 %v3979_v39, %v3978_v4  ;;  %v3990_v0 = vsel %vm148_vm5, %v3985_v56, 0.0 }
 0xbe1   : > { %v3991_v17 = vsel %vm148_vm5, %v3986_v41, 0.0 }
 0xbe2   : > { %3981 = vadd.xlane.f32.xlu0 %v3980_v53  ;;  %v3992_v50 = vadd.f32 %v3991_v17, %v3990_v0 }
 0xbe4   : > { %3993 = vadd.xlane.f32.xlu1 %v3992_v50 }
 0xbe6   : > { %3988 = vadd.xlane.f32.xlu0 %v3987_v59 }
 0xc6a   : > { %v3977_v26 = vpop.xlane.xlu1 %3976 }
 0xc6b   : > { %v4010_v22 = vmul.f32 %v3977_v26, %v7949_v8  ;;  %v3995_v45 = vmul.f32 %v7946_v6, %v3977_v26 }
 0xc6d   : > { %v4012_v21 = vsel %vm1132_vm13, %v4010_v22, 0.0  ;;  %v3997_v38 = vsel %vm1132_vm13, %v3995_v45, 0.0 }
 0xc6f   : > { %v3982_v33 = vpop.xlane.xlu0 %3981 }
 0xc70   : > { %v3996_v35 = vmul.f32 0.0, %v3982_v33  ;;  %v4013_v49 = vsel %vm1134_vm14, %v3982_v33, 0.0 }
 0xc71   : > { %v3994_v29 = vpop.xlane.xlu1 %3993  ;;  %v4014_v32 = vadd.f32 %v4013_v49, %v4012_v21 }
 0xc72   : > { %v4026_v44 = vmul.f32 0.0, %v3994_v29  ;;  %v3998_v57 = vsel %vm1134_vm14, %v3996_v35, 0.0  ;;  %v4046_v60 = vsel %vm1134_vm14, %v3994_v29, 0.0 }
 0xc73   : > { %4015 = vadd.xlane.f32.xlu1 %v4014_v32  ;;  %v3989_v18 = vpop.xlane.xlu0 %3988  ;;  %v3999_v54 = vadd.f32 %v3998_v57, %v3997_v38 }
 0xc74   : > { %v4025_v34 = vmul.f32 %v7946_v6, %v3989_v18  ;;  %v4043_v36 = vmul.f32 %v3989_v18, %v7949_v8  ;;  %v4028_v5 = vsel %vm1134_vm14, %v4026_v44, 0.0 }
 0xc75   : > { %4000 = vadd.xlane.f32.xlu0 %v3999_v54 }
 0xc76   : > { %v4027_v61 = vsel %vm1132_vm13, %v4025_v34, 0.0  ;;  %v4045_v43 = vsel %vm1132_vm13, %v4043_v36, 0.0 }
 0xc77   : > { %v4029_v52 = vadd.f32 %v4028_v5, %v4027_v61  ;;  %v4047_v58 = vadd.f32 %v4046_v60, %v4045_v43 }
 0xc79   : > { %4030 = vadd.xlane.f32.xlu0 %v4029_v52  ;;  %4048 = vadd.xlane.f32.xlu1 %v4047_v58 }
 0xc8a   : > { %4100 = vperm.xlu1 %7694, %v7081_v23  }
 0xc8e   : > { %4109 = vperm.xlu1 %7694, %v7082_v25  }
 0xc8f   : > { %4095 = vperm.xlu0 %7693, %v7080_v62  }
 0xc93   : > { %4114 = vperm.xlu0 %7693, %v7083_v40  }
 0xd00   : > { %v4016_v47 = vpop.xlane.xlu1 %4015 }
 0xd01   : > { %v4017_v48 = vrot.slane %v4016_v47, 4 }
 0xd02   : > { %v4001_v30 = vpop.xlane.xlu0 %4000 }
 0xd03   : > { %v4018_v19 = vadd.f32 %v4017_v48, %v4016_v47  ;;  %v4002_v37 = vrot.slane %v4001_v30, 4 }
 0xd05   : > { %v4003_v24 = vadd.f32 %v4002_v37, %v4001_v30  ;;  %v4019_v42 = vrot.slane %v4018_v19, 2 }
 0xd06   : > { %v4049_v27 = vpop.xlane.xlu1 %4048  ;;  %v4031_v31 = vpop.xlane.xlu0 %4030 }
 0xd07   : > { %v4050_v4 = vrot.slane %v4049_v27, 4  ;;  %v4032_v56 = vrot.slane %v4031_v31, 4  ;;  %v4004_v39 = vrot.slane %v4003_v24, 2  ;;  %v4020_v41 = vadd.f32 %v4019_v42, %v4018_v19 }
 0xd09   : > { %v4051_v53 = vadd.f32 %v4050_v4, %v4049_v27  ;;  %v4033_v0 = vadd.f32 %v4032_v56, %v4031_v31  ;;  %v4005_v7 = vadd.f32 %v4004_v39, %v4003_v24  ;;  %v4021_v46 = vrot.slane %v4020_v41, 1 }
 0xd0a   : > { %v4101_v40 = vpop.permute.xlu1 %4100 }
 0xd0b   : > { %v4006_v17 = vrot.slane %v4005_v7, 1  ;;  %v4034_v50 = vrot.slane %v4033_v0, 2  ;;  %v4052_v59 = vrot.slane %v4051_v53, 2  ;;  %v4022_v33 = vadd.f32 %v4021_v46, %v4020_v41 }
 0xd0d   : > { %v4007_v26 = vadd.f32 %v4006_v17, %v4005_v7  ;;  %v4035_v22 = vadd.f32 %v4034_v50, %v4033_v0  ;;  %v4053_v45 = vadd.f32 %v4052_v59, %v4051_v53 }
 0xd0e   : > { %v4096_v25 = vpop.permute.xlu0 %4095  ;;  %v4110_v7 = vpop.permute.xlu1 %4109 }
 0xd0f   : > { %7649 = vpush %v4007_v26  ;;  %v4036_v35 = vrot.slane %v4035_v22, 1  ;;  %v4054_v49 = vrot.slane %v4053_v45, 1 }
 0xd10   : > { %7651 = vpush %v4022_v33 }
 0xd11   : > { %v4037_v21 = vadd.f32 %v4036_v35, %v4035_v22  ;;  %v4055_v29 = vadd.f32 %v4054_v49, %v4053_v45 }
 0xd12   : > { %v4115_v41 = vpop.permute.xlu0 %4114 }
 0xd13   : > { %7653 = vpush %v4037_v21 }
 0xd14   : > { %7655 = vpush %v4055_v29 }
 0xd40   : > { %s7650_s18 = spop %7649 }
 0xd41   : > { %s4009_s22 = smul.f32 0.00055803574, %s7650_s18  ;;  %s7652_s19 = spop %7651 }
 0xd42   : > { %s4024_s25 = smul.f32 0.00055803574, %s7652_s19 }
 0xd43   : > { %s4040_s27 = smul.f32 %s4009_s22, %s4009_s22  ;;  %v4061_v32 = vstv %s4009_s22 }
 0xd44   : > { %v4062_v44 = vmul.f32 %v7946_v6, %v4061_v32  ;;  %v4063_v38 = vmul.f32 0.0, %v4061_v32  ;;  %s4058_s17 = smul.f32 %s4024_s25, %s4024_s25  ;;  %v4064_v57 = vstv %s4024_s25  ;;  %s7654_s28 = spop %7653 }
 0xd45   : > { %v4065_v18 = vmul.f32 %v4064_v57, %v7949_v8  ;;  %s4039_s29 = smul.f32 0.00055803574, %s7654_s28  ;;  %s7656_s26 = spop %7655 }
 0xd46   : > { %v4068_v54 = vadd.f32 %v4064_v57, %v4063_v38  ;;  %s4057_s20 = smul.f32 0.00055803574, %s7656_s26 }
 0xd47   : > { %v4067_v34 = vadd.f32 %v4065_v18, %v4062_v44  ;;  %s4041_s16 = ssub.f32 %s4039_s29, %s4040_s27 }
 0xd48   : > { %s4059_s2 = ssub.f32 %s4057_s20, %s4058_s17  ;;  %v4087_v48 = vsub.f32 %v9287_v63, %v4068_v54  ;;  %v4088_v30 = vsub.f32 %v9290_v3, %v4068_v54 }
 0xd49   : > { %s4042_s18 = smax.f32 %s10494_s24, %s4041_s16  ;;  %v4085_v37 = vsub.f32 %v9279_v51, %v4067_v34  ;;  %v4086_v24 = vsub.f32 %v9282_v28, %v4067_v34 }
 0xd4a   : > { %s4069_s19 = sadd.f32 1e-05, %s4042_s18  ;;  %s4060_s22 = smax.f32 %s10494_s24, %s4059_s2 }
 0xd4b   : > { %s4076_s15 = sadd.f32 1e-05, %s4060_s22 }
 0xd4c   : > { %v4070_v36 = vstv %s4069_s19 }
 0xd4d   : > { %7755 = vrsqrt.f32 %v4070_v36  ;;  %v4077_v60 = vstv %s4076_s15 }
 0xd4e   : > { %7757 = vrsqrt.f32 %v4077_v60 }
 0xd57   : > { %v7756_v61 = vpop.eup %7755 }
 0xd58   : > { %v7758_v5 = vpop.eup %7757  ;;  %7657 = vpush %v7756_v61 }
 0xd59   : > { %7659 = vpush %v7758_v5 }
 0xd89   : > { %s7658_s25 = spop %7657 }
 0xd8a   : > { %v4073_v43 = vstv %s7658_s25  ;;  %s7660_s28 = spop %7659 }
 0xd8b   : > { %v4074_v52 = vmul.f32 %v7946_v6, %v4073_v43  ;;  %v4075_v58 = vmul.f32 0.0, %v4073_v43  ;;  %v4080_v23 = vstv %s7660_s28 }
 0xd8c   : > { %v4081_v62 = vmul.f32 %v4080_v23, %v7949_v8 }
 0xd8d   : > { %v4084_v47 = vadd.f32 %v4080_v23, %v4075_v58 }
 0xd8e   : > { %v4083_v19 = vadd.f32 %v4081_v62, %v4074_v52 }
 0xd8f   : > { %v4091_v42 = vmul.f32 %v4087_v48, %v4084_v47  ;;  %v4092_v27 = vmul.f32 %v4088_v30, %v4084_v47 }
 0xd90   : > { %v4089_v31 = vmul.f32 %v4085_v37, %v4083_v19  ;;  %v4090_v4 = vmul.f32 %v4086_v24, %v4083_v19 }
 0xd91   : > { %v4105_v56 = vmul.f32 %v4101_v40, %v4091_v42  ;;  %v4106_v39 = vmul.f32 %v4101_v40, %v4092_v27 }
 0xd92   : > { %v4103_v53 = vmul.f32 %v4096_v25, %v4089_v31  ;;  %v4104_v0 = vmul.f32 %v4096_v25, %v4090_v4 }
 0xd93   : > { %v4119_v46 = vadd.f32 %v4115_v41, %v4105_v56  ;;  %v4120_v17 = vadd.f32 %v4115_v41, %v4106_v39  ;;  %v7092_v39 = vld [vmem:[%s10445_s5 + $0x130] sm:$0xff]  ;;  %v7093_v41 = vld [vmem:[%s10445_s5 + $0x138] sm:$0x3f] }
 0xd94   : > { %v4117_v50 = vadd.f32 %v4110_v7, %v4103_v53  ;;  %v4118_v59 = vadd.f32 %v4110_v7, %v4104_v0  ;;  %v7088_v7 = vld [vmem:[%s10446_s6 + $0x20] sm:$0xff] }
 0xd95   : > { %v7086_v26 = vmul.f32 -1.442695, %v4119_v46  ;;  %v7087_v33 = vmul.f32 -1.442695, %v4120_v17 }
 0xd96   : > { %v7084_v22 = vmul.f32 -1.442695, %v4117_v50  ;;  %v7085_v45 = vmul.f32 -1.442695, %v4118_v59 }
 0xd97   : > { %7759 = vpow2.f32 %v7086_v26 }
 0xd98   : > { %7761 = vpow2.f32 %v7084_v22 }
 0xd99   : > { %7763 = vpow2.f32 %v7085_v45 }
 0xd9a   : > { %7765 = vpow2.f32 %v7087_v33 }
 0xda1   : > { %v7760_v35 = vpop.eup %7759 }
 0xda2   : > { %v7762_v49 = vpop.eup %7761  ;;  %v4135_v21 = vadd.f32 1.0, %v7760_v35 }
 0xda3   : > { %v7764_v29 = vpop.eup %7763  ;;  %v4133_v32 = vadd.f32 1.0, %v7762_v49 }
 0xda4   : > { %v7766_v44 = vpop.eup %7765  ;;  %v4134_v38 = vadd.f32 1.0, %v7764_v29  ;;  %7767 = vrcp.f32 %v4135_v21 }
 0xda5   : > { %v4136_v57 = vadd.f32 1.0, %v7766_v44  ;;  %7769 = vrcp.f32 %v4133_v32 }
 0xda6   : > { %7771 = vrcp.f32 %v4134_v38 }
 0xda7   : > { %7773 = vrcp.f32 %v4136_v57 }
 0xdae   : > { %v7768_v18 = vpop.eup %7767 }
 0xdaf   : > { %v7770_v54 = vpop.eup %7769  ;;  %v9340_v34 = vmul.f32 %v7768_v18, %v4119_v46  ;;  %v7089_v46 = vld [vmem:[%s10446_s6 + $0x28] sm:$0x3f] }
 0xdb0   : > { %v7772_v36 = vpop.eup %7771  ;;  %v9342_v60 = vmul.f32 %v7770_v54, %v4117_v50 }
 0xdb1   : > { %v7774_v61 = vpop.eup %7773  ;;  %4154 = vrot.lane.b32.xlu0 %v9340_v34, %s10495_s0  ;;  %v9350_v43 = vmul.f32 %v7772_v36, %v4118_v59 }
 0xdb2   : > { %4152 = vrot.lane.b32.xlu1 %v9342_v60, %s10495_s0  ;;  %v9348_v5 = vmul.f32 %v7774_v61, %v4120_v17 }
 0xdb5   : > { %4158 = vrot.lane.b32.xlu0 %v9348_v5, %s10495_s0 }
 0xdb6   : > { %4156 = vrot.lane.b32.xlu1 %v9350_v43, %s10495_s0 }
 0xdb9   : > { %4878 = vrot.lane.b32.xlu0 %v9340_v34, %s10496_s1 }
 0xdba   : > { %4876 = vrot.lane.b32.xlu1 %v9342_v60, %s10496_s1 }
 0xdbd   : > { %4882 = vrot.lane.b32.xlu0 %v9348_v5, %s10496_s1 }
 0xdbe   : > { %4880 = vrot.lane.b32.xlu1 %v9350_v43, %s10496_s1 }
 0xdc1   : > { %4518 = vrot.lane.b32.xlu0 %v9340_v34, %s10478_s23 }
 0xdc2   : > { %4516 = vrot.lane.b32.xlu1 %v9342_v60, %s10478_s23 }
 0xdc5   : > { %4522 = vrot.lane.b32.xlu0 %v9348_v5, %s10478_s23 }
 0xdc6   : > { %4520 = vrot.lane.b32.xlu1 %v9350_v43, %s10478_s23 }
 0xdc9   : > { %4534 = vrot.lane.b32.xlu0 %v9340_v34, %s10479_s30 }
 0xdca   : > { %4532 = vrot.lane.b32.xlu1 %v9342_v60, %s10479_s30 }
 0xdcd   : > { %4538 = vrot.lane.b32.xlu0 %v9348_v5, %s10479_s30 }
 0xdce   : > { %4536 = vrot.lane.b32.xlu1 %v9350_v43, %s10479_s30 }
 0xe23   : > { %v4155_v52 = vpop.permute.xlu0 %4154 }
 0xe24   : > { %v4153_v58 = vpop.permute.xlu1 %4152 }
 0xe27   : > { %v4159_v23 = vpop.permute.xlu0 %4158 }
 0xe28   : > { %v4157_v25 = vpop.permute.xlu1 %4156  ;;  %v4161_v62 = vsel %vm113_vm7, %v4155_v52, %v4159_v23  ;;  %v4163_v40 = vsel %vm113_vm7, %v4159_v23, %v4155_v52 }
 0xe29   : > { %v4160_v47 = vsel %vm113_vm7, %v4153_v58, %v4157_v25  ;;  %v4162_v48 = vsel %vm113_vm7, %v4157_v25, %v4153_v58  ;;  %4166 = vrot.lane.b32.xlu0 %v4163_v40, %s10478_s23 }
 0xe2a   : > { %v7342_v30 = vpack.c.bf16 %v4163_v40, %v4162_v48  ;;  %4164 = vrot.lane.b32.xlu1 %v4162_v48, %s10478_s23  ;;  %v7339_v19 = vpack.c.bf16 %v4161_v62, %v4160_v47 }
 0xe2b   : > { %v4879_v37 = vpop.permute.xlu0 %4878 }
 0xe2c   : > { %v4877_v24 = vpop.permute.xlu1 %4876  ;;  %7341 = vmatprep.subr.msk.bf16.mxu1 %vm8435_vm15, %v7339_v19 }
 0xe2d   : > { %7344 = vmatpush1.bf16.msk.msra.mxu1 %vm8435_vm15, %v7342_v30  ;;  %4170 = vrot.lane.b32.xlu0 %v4161_v62, %s10478_s23 }
 0xe2e   : > { %4168 = vrot.lane.b32.xlu1 %v4160_v47, %s10478_s23 }
 0xe2f   : > { %v4883_v42 = vpop.permute.xlu0 %4882 }
 0xe30   : > { %v4881_v27 = vpop.permute.xlu1 %4880  ;;  %v9398_v31 = vsel %vm765_vm9, %v4879_v37, %v4883_v42  ;;  %7096 = vmatmul.mubr.msk.f32.vlgmr.msra.gmra.mrb[8].mxu1 %vm1609_vm0, %v7092_v39  ;;  %v9450_v53 = vsel %vm765_vm9, %v4883_v42, %v4879_v37 }
 0xe31   : > { %v9402_v4 = vsel %vm765_vm9, %v4877_v24, %v4881_v27  ;;  %4182 = vrot.lane.b32.xlu0 %v4163_v40, %s10479_s30  ;;  %4288 = vmatprep.mubr.f32.mxu1 %v7849_v20  ;;  %v9454_v0 = vsel %vm765_vm9, %v4881_v27, %v4877_v24 }
 0xe32   : > { %v7384_v56 = vpack.c.bf16 %v9398_v31, %v9402_v4  ;;  %4180 = vrot.lane.b32.xlu1 %v4162_v48, %s10479_s30 }
 0xe33   : > { %v4519_v17 = vpop.permute.xlu0 %4518 }
 0xe34   : > { %7097 = vmatmul.mubr.msk.f32.gmra.mrb[10].mxu1 %vm1609_vm0, %v7093_v41  ;;  %v4517_v50 = vpop.permute.xlu1 %4516 }
 0xe35   : > { %4186 = vrot.lane.b32.xlu0 %v4161_v62, %s10479_s30  ;;  %4371 = vmatprep.mubr.f32.mxu1 %v7849_v20 }
 0xe36   : > { %4184 = vrot.lane.b32.xlu1 %v4160_v47, %s10479_s30 }
 0xe37   : > { %v4523_v59 = vpop.permute.xlu0 %4522 }
 0xe38   : > { %v4521_v26 = vpop.permute.xlu1 %4520 }
 0xe39   : > { %4386 = vrot.lane.b32.xlu0 %v4163_v40, %s10482_s21 }
 0xe3a   : > { %4384 = vrot.lane.b32.xlu1 %v4162_v48, %s10482_s21 }
 0xe3b   : > { %v4535_v22 = vpop.permute.xlu0 %4534 }
 0xe3c   : > { %v4533_v45 = vpop.permute.xlu1 %4532 }
 0xe3d   : > { %4390 = vrot.lane.b32.xlu0 %v4161_v62, %s10482_s21 }
 0xe3e   : > { %4388 = vrot.lane.b32.xlu1 %v4160_v47, %s10482_s21 }
 0xe3f   : > { %v4539_v33 = vpop.permute.xlu0 %4538 }
 0xe40   : > { %v4537_v35 = vpop.permute.xlu1 %4536 }
 0xe41   : > { %4402 = vrot.lane.b32.xlu0 %v4163_v40, %s10483_s14 }
 0xe42   : > { %4400 = vrot.lane.b32.xlu1 %v4162_v48, %s10483_s14 }
 0xe45   : > { %4406 = vrot.lane.b32.xlu0 %v4161_v62, %s10483_s14 }
 0xe46   : > { %4404 = vrot.lane.b32.xlu1 %v4160_v47, %s10483_s14 }
 0xe49   : > { %4746 = vrot.lane.b32.xlu0 %v9340_v34, %s10482_s21 }
 0xe4a   : > { %4744 = vrot.lane.b32.xlu1 %v9342_v60, %s10482_s21 }
 0xe4d   : > { %4750 = vrot.lane.b32.xlu0 %v9348_v5, %s10482_s21 }
 0xe4e   : > { %4748 = vrot.lane.b32.xlu1 %v9350_v43, %s10482_s21 }
 0xe51   : > { %4762 = vrot.lane.b32.xlu0 %v9340_v34, %s10483_s14 }
 0xe52   : > { %4760 = vrot.lane.b32.xlu1 %v9342_v60, %s10483_s14 }
 0xe55   : > { %4766 = vrot.lane.b32.xlu0 %v9348_v5, %s10483_s14 }
 0xe56   : > { %4764 = vrot.lane.b32.xlu1 %v9350_v43, %s10483_s14 }
 0xe59   : > { %4890 = vrot.lane.b32.xlu0 %v9398_v31, %s10478_s23 }
 0xe5a   : > { %4888 = vrot.lane.b32.xlu1 %v9402_v4, %s10478_s23 }
 0xe5d   : > { %4894 = vrot.lane.b32.xlu0 %v9450_v53, %s10478_s23 }
 0xe5e   : > { %4892 = vrot.lane.b32.xlu1 %v9454_v0, %s10478_s23 }
 0xe61   : > { %4906 = vrot.lane.b32.xlu0 %v9398_v31, %s10479_s30 }
 0xe62   : > { %4904 = vrot.lane.b32.xlu1 %v9402_v4, %s10479_s30 }
 0xe65   : > { %4910 = vrot.lane.b32.xlu0 %v9450_v53, %s10479_s30 }
 0xe66   : > { %4908 = vrot.lane.b32.xlu1 %v9454_v0, %s10479_s30 }
 0xe69   : > { %5118 = vrot.lane.b32.xlu0 %v9398_v31, %s10482_s21 }
 0xe6a   : > { %5116 = vrot.lane.b32.xlu1 %v9402_v4, %s10482_s21 }
 0xe6d   : > { %5122 = vrot.lane.b32.xlu0 %v9450_v53, %s10482_s21 }
 0xe6e   : > { %5120 = vrot.lane.b32.xlu1 %v9454_v0, %s10482_s21 }
 0xe71   : > { %5134 = vrot.lane.b32.xlu0 %v9398_v31, %s10483_s14 }
 0xe72   : > { %5132 = vrot.lane.b32.xlu1 %v9402_v4, %s10483_s14 }
 0xe75   : > { %5138 = vrot.lane.b32.xlu0 %v9450_v53, %s10483_s14 }
 0xe76   : > { %5136 = vrot.lane.b32.xlu1 %v9454_v0, %s10483_s14 }
 0xe79   : > { %5250 = vperm.xlu0 %7693, %v7088_v7  }
 0xe7a   : > { %5255 = vperm.xlu1 %7694, %v7089_v46  }
 0xe9b   : > { %v4167_v49 = vpop.permute.xlu0 %4166 }
 0xe9c   : > { %v4165_v21 = vpop.permute.xlu1 %4164 }
 0xe9f   : > { %v4171_v29 = vpop.permute.xlu0 %4170 }
 0xea0   : > { %v4169_v32 = vpop.permute.xlu1 %4168  ;;  %v4173_v57 = vsel %vm120_vm11, %v4167_v49, %v4171_v29  ;;  %v4175_v18 = vsel %vm120_vm11, %v4171_v29, %v4167_v49 }
 0xea1   : > { %v4172_v54 = vsel %vm120_vm11, %v4165_v21, %v4169_v32  ;;  %v4174_v36 = vsel %vm120_vm11, %v4169_v32, %v4165_v21  ;;  %v4178_v52 = vmul.f32 %v7951_v9, %v4175_v18  ;;  %v4179_v58 = vmul.f32 %v7961_v13, %v4173_v57 }
 0xea2   : > { %v4176_v19 = vmul.f32 %v7951_v9, %v4174_v36  ;;  %v4177_v37 = vmul.f32 %v7961_v13, %v4172_v54  ;;  %v4524_v57 = vsel %vm120_vm11, %v4517_v50, %v4521_v26  ;;  %v4525_v18 = vsel %vm120_vm11, %v4519_v17, %v4523_v59 }
 0xea3   : > { %v4183_v44 = vpop.permute.xlu0 %4182  ;;  %v4542_v36 = vsel %vm129_vm12, %v4537_v35, %v4533_v45 }
 0xea4   : > { %v4181_v38 = vpop.permute.xlu1 %4180 }
 0xea7   : > { %v4187_v61 = vpop.permute.xlu0 %4186 }
 0xea8   : > { %v4185_v23 = vpop.permute.xlu1 %4184  ;;  %v4189_v25 = vsel %vm129_vm12, %v4183_v44, %v4187_v61  ;;  %v4191_v62 = vsel %vm129_vm12, %v4187_v61, %v4183_v44  ;;  %v4543_v61 = vsel %vm129_vm12, %v4539_v33, %v4535_v22 }
 0xea9   : > { %v4188_v40 = vsel %vm129_vm12, %v4181_v38, %v4185_v23  ;;  %v4190_v47 = vsel %vm129_vm12, %v4185_v23, %v4181_v38  ;;  %v4194_v48 = vmul.f32 %v4189_v25, %v7956_v11  ;;  %v4195_v30 = vmul.f32 %v4191_v62, %v7966_v15  ;;  %v7090_v38 = vld [vmem:[%s10445_s5 + $0x120] sm:$0xff] }
 0xeaa   : > { %v4192_v24 = vmul.f32 %v4188_v40, %v7956_v11  ;;  %v4193_v42 = vmul.f32 %v4190_v47, %v7966_v15  ;;  %v4527_v23 = vsel %vm120_vm11, %v4523_v59, %v4519_v17  ;;  %v7091_v40 = vld [vmem:[%s10445_s5 + $0x128] sm:$0x3f]  ;;  %v4529_v47 = vmul.f32 %v7961_v13, %v4524_v57 }
 0xeab   : > { %v4198_v27 = vadd.f32 %v4194_v48, %v4178_v52  ;;  %v4199_v39 = vadd.f32 %v4195_v30, %v4179_v58  ;;  %v4387_v41 = vpop.permute.xlu0 %4386  ;;  %v4526_v58 = vsel %vm120_vm11, %v4521_v26, %v4517_v50  ;;  %v4531_v48 = vmul.f32 %v7961_v13, %v4525_v18 }
 0xeac   : > { %v4196_v7 = vadd.f32 %v4192_v24, %v4176_v19  ;;  %v4197_v46 = vadd.f32 %v4193_v42, %v4177_v37  ;;  %v4385_v49 = vpop.permute.xlu1 %4384  ;;  %v4540_v50 = vsel %vm129_vm12, %v4533_v45, %v4537_v35  ;;  %v4541_v17 = vsel %vm129_vm12, %v4535_v22, %v4539_v33 }
 0xead   : > { %v4545_v59 = vmul.f32 %v4542_v36, %v7966_v15  ;;  %v4547_v26 = vmul.f32 %v4543_v61, %v7966_v15 }
 0xeae   : > { %v7348_v21 = vpack.c.bf16 %v4198_v27, %v4196_v7  ;;  %v7345_v29 = vpack.c.bf16 %v4199_v39, %v4197_v46 }
 0xeaf   : > { %v4391_v32 = vpop.permute.xlu0 %4390  ;;  %v4549_v18 = vadd.f32 %v4545_v59, %v4529_v47  ;;  %v7102_v47 = vld [vmem:[%s10445_s5 + $0x140] sm:$0xff]  ;;  %v7363_v59 = vpack.c.bf16 %v9348_v5, %v9350_v43 }
 0xeb0   : > { %v4389_v44 = vpop.permute.xlu1 %4388  ;;  %7347 = vmatprep.subr.msk.bf16.mxu1 %vm8435_vm15, %v7345_v29  ;;  %v4393_v25 = vsel %vm325_vm8, %v4387_v41, %v4391_v32  ;;  %v4395_v62 = vsel %vm325_vm8, %v4391_v32, %v4387_v41  ;;  %v4544_v29 = vmul.f32 %v4540_v50, %v7956_v11  ;;  %v4546_v32 = vmul.f32 %v4541_v17, %v7956_v11 }
 0xeb1   : > { %7350 = vmatpush1.bf16.msk.msra.mxu1 %vm8435_vm15, %v7348_v21  ;;  %v4392_v30 = vsel %vm325_vm8, %v4385_v49, %v4389_v44  ;;  %v4394_v19 = vsel %vm325_vm8, %v4389_v44, %v4385_v49  ;;  %v4398_v24 = vmul.f32 %v7953_v10, %v4393_v25  ;;  %v4399_v42 = vmul.f32 %v7963_v14, %v4395_v62 }
 0xeb2   : > { %v4396_v7 = vmul.f32 %v7953_v10, %v4392_v30  ;;  %v4397_v46 = vmul.f32 %v7963_v14, %v4394_v19  ;;  %v4528_v25 = vmul.f32 %v7951_v9, %v4526_v58  ;;  %v4530_v62 = vmul.f32 %v7951_v9, %v4527_v23 }
 0xeb3   : > { %v4403_v54 = vpop.permute.xlu0 %4402 }
 0xeb4   : > { %v4401_v52 = vpop.permute.xlu1 %4400  ;;  %7100 = vmatmul.mubr.msk.f32.vlgmr.msra.gmra.mrb[8].mxu1 %vm1609_vm0, %v7090_v38  ;;  %v4548_v19 = vadd.f32 %v4544_v29, %v4528_v25 }
 0xeb5   : > { %4377 = vmatprep.mubr.f32.mxu1 %v7849_v20 }
 0xeb7   : > { %v4407_v37 = vpop.permute.xlu0 %4406 }
 0xeb8   : > { %v4405_v27 = vpop.permute.xlu1 %4404  ;;  %v4409_v45 = vsel %vm10507_vm6, %v4403_v54, %v4407_v37  ;;  %v4411_v22 = vsel %vm10484_vm1, %v4407_v37, %v4403_v54  ;;  %7101 = vmatmul.mubr.msk.f32.gmra.mrb[10].mxu1 %vm1609_vm0, %v7091_v40  ;;  %v4551_v54 = vadd.f32 %v4547_v26, %v4531_v48  ;;  %v4550_v37 = vadd.f32 %v4546_v32, %v4530_v62  ;;  %v7103_v26 = vld [vmem:[%s10445_s5 + $0x148] sm:$0x3f]  ;;  %vm10511_vm6 = vmmov %vm10484_vm1 }
 0xeb9   : > { %v4408_v33 = vsel %vm10508_vm2, %v4401_v52, %v4405_v27  ;;  %v4410_v35 = vsel %vm10509_vm3, %v4405_v27, %v4401_v52  ;;  %v4414_v39 = vmul.f32 %v4411_v22, %v7959_v12  ;;  %v4415_v41 = vmul.f32 %v4409_v45, %v7969_v16  ;;  %4499 = vmatprep.mubr.f32.mxu1 %v7849_v20  ;;  %vm10512_vm2 = vmmov %vm10484_vm1 }
 0xeba   : > { %v4412_v49 = vmul.f32 %v4410_v35, %v7959_v12  ;;  %v4413_v21 = vmul.f32 %v4408_v33, %v7969_v16  ;;  %v7357_v17 = vpack.c.bf16 %v4551_v54, %v4549_v18  ;;  %v7360_v58 = vpack.c.bf16 %v4550_v37, %v4548_v19  ;;  %v7114_v19 = vld [vmem:[%s10445_s5 + $0x160] sm:$0xff]  ;;  %vm10513_vm3 = vmmov %vm10484_vm1 }
 0xebb   : > { %v4418_v44 = vadd.f32 %v4414_v39, %v4398_v24  ;;  %v4419_v38 = vadd.f32 %v4415_v41, %v4399_v42  ;;  %v4747_v57 = vpop.permute.xlu0 %4746  ;;  %v7366_v54 = vpack.c.bf16 %v9340_v34, %v9342_v60 }
 0xebc   : > { %v4416_v36 = vadd.f32 %v4412_v49, %v4396_v7  ;;  %v4417_v61 = vadd.f32 %v4413_v21, %v4397_v46  ;;  %v4745_v52 = vpop.permute.xlu1 %4744  ;;  %v7108_v7 = vld [vmem:[%s10445_s5 + $0x150] sm:$0xff] }
 0xebe   : > { %v7354_v40 = vpack.c.bf16 %v4418_v44, %v4416_v36  ;;  %v7351_v30 = vpack.c.bf16 %v4419_v38, %v4417_v61 }
 0xebf   : > { %v4751_v27 = vpop.permute.xlu0 %4750 }
 0xec0   : > { %v4749_v50 = vpop.permute.xlu1 %4748  ;;  %7353 = vmatprep.subr.msk.bf16.mxu1 %vm8435_vm15, %v7351_v30  ;;  %v4755_v24 = vsel %vm325_vm8, %v4751_v27, %v4747_v57  ;;  %v4753_v21 = vsel %vm325_vm8, %v4747_v57, %v4751_v27  ;;  %v7109_v57 = vld [vmem:[%s10445_s5 + $0x158] sm:$0x3f] }
 0xec1   : > { %7356 = vmatpush1.bf16.msk.msra.mxu1 %vm8435_vm15, %v7354_v40  ;;  %v4754_v42 = vsel %vm325_vm8, %v4749_v50, %v4745_v52  ;;  %v4759_v33 = vmul.f32 %v7963_v14, %v4755_v24  ;;  %v4752_v46 = vsel %vm325_vm8, %v4745_v52, %v4749_v50  ;;  %v4758_v25 = vmul.f32 %v7953_v10, %v4753_v21 }
 0xec2   : > { %7359 = vmatprep.subr.msk.bf16.mxu1 %vm8435_vm15, %v7357_v17  ;;  %v4757_v49 = vmul.f32 %v7963_v14, %v4754_v42  ;;  %v4756_v52 = vmul.f32 %v7953_v10, %v4752_v46 }
 0xec3   : > { %v4763_v23 = vpop.permute.xlu0 %4762 }
 0xec4   : > { %v4761_v48 = vpop.permute.xlu1 %4760  ;;  %7106 = vmatmul.mubr.msk.f32.vlgmr.msra.gmra.mrb[8].mxu1 %vm1609_vm0, %v7102_v47 }
 0xec5   : > { %7362 = vmatpush1.bf16.msk.msra.mxu1 %vm8435_vm15, %v7360_v58  ;;  %4505 = vmatprep.mubr.f32.mxu1 %v7849_v20  ;;  %v7115_v58 = vld [vmem:[%s10445_s5 + $0x168] sm:$0x3f] }
 0xec6   : > { %7365 = vmatprep.subr.msk.bf16.mxu1 %vm8435_vm15, %v7363_v59 }
 0xec7   : > { %v4767_v45 = vpop.permute.xlu0 %4766 }
 0xec8   : > { %v4765_v5 = vpop.permute.xlu1 %4764  ;;  %7107 = vmatmul.mubr.msk.f32.gmra.mrb[10].mxu1 %vm1609_vm0, %v7103_v26  ;;  %v4769_v43 = vsel %vm10510_vm4, %v4763_v23, %v4767_v45  ;;  %v4771_v22 = vsel %vm10511_vm6, %v4767_v45, %v4763_v23  ;;  %vm10514_vm4 = vmmov %vm10484_vm1 }
 0xec9   : > { %v4768_v35 = vsel %vm10484_vm1, %v4761_v48, %v4765_v5  ;;  %v4770_v39 = vsel %vm10512_vm2, %v4765_v5, %v4761_v48  ;;  %v4775_v41 = vmul.f32 %v4769_v43, %v7969_v16  ;;  %4631 = vmatprep.mubr.f32.mxu1 %v7849_v20  ;;  %v4774_v44 = vmul.f32 %v4771_v22, %v7959_v12  ;;  %vm10515_vm6 = vmmov %vm10484_vm1 }
 0xeca   : > { %v4773_v29 = vmul.f32 %v4768_v35, %v7969_v16  ;;  %v4772_v32 = vmul.f32 %v4770_v39, %v7959_v12  ;;  %v7120_v39 = vld [vmem:[%s10445_s5 + $0x170] sm:$0xff]  ;;  %vm10520_vm2 = vmmov %vm10484_vm1 }
 0xecb   : > { %v4779_v38 = vadd.f32 %v4775_v41, %v4759_v33  ;;  %v4891_v18 = vpop.permute.xlu0 %4890  ;;  %v4778_v34 = vadd.f32 %v4774_v44, %v4758_v25 }
 0xecc   : > { %v4777_v36 = vadd.f32 %v4773_v29, %v4757_v49  ;;  %v4889_v61 = vpop.permute.xlu1 %4888  ;;  %7112 = vmatmul.mubr.msk.f32.vlgmr.msra.gmra.mrb[8].mxu1 %vm1609_vm0, %v7108_v7  ;;  %v4776_v40 = vadd.f32 %v4772_v32, %v4756_v52 }
 0xecd   : > { %7368 = vmatpush1.bf16.msk.msra.mxu1 %vm8435_vm15, %v7366_v54  ;;  %4637 = vmatprep.mubr.f32.mxu1 %v7849_v20  ;;  %v7121_v54 = vld [vmem:[%s10445_s5 + $0x178] sm:$0x3f] }
 0xece   : > { %v7369_v62 = vpack.c.bf16 %v4779_v38, %v4777_v36  ;;  %v7372_v37 = vpack.c.bf16 %v4778_v34, %v4776_v40 }
 0xecf   : > { %v4895_v60 = vpop.permute.xlu0 %4894 }
 0xed0   : > { %v4893_v30 = vpop.permute.xlu1 %4892  ;;  %7113 = vmatmul.mubr.msk.f32.gmra.mrb[10].mxu1 %vm1609_vm0, %v7109_v57  ;;  %7371 = vmatprep.subr.msk.bf16.mxu1 %vm8435_vm15, %v7369_v62  ;;  %v4897_v17 = vsel %vm120_vm11, %v4891_v18, %v4895_v60  ;;  %v4899_v47 = vsel %vm120_vm11, %v4895_v60, %v4891_v18  ;;  %v7381_v57 = vpack.c.bf16 %v9450_v53, %v9454_v0  ;;  %v7126_v62 = vld [vmem:[%s10445_s5 + $0x180] sm:$0xff]  ;;  %v7127_v0 = vld [vmem:[%s10445_s5 + $0x188] sm:$0x3f] }
 0xed1   : > { %4727 = vmatprep.mubr.f32.mxu1 %v7849_v20  ;;  %v4896_v23 = vsel %vm120_vm11, %v4889_v61, %v4893_v30  ;;  %v4898_v48 = vsel %vm120_vm11, %v4893_v30, %v4889_v61  ;;  %v4902_v26 = vmul.f32 %v7951_v9, %v4899_v47  ;;  %v4903_v24 = vmul.f32 %v7961_v13, %v4897_v17 }
 0xed2   : > { %v4900_v41 = vmul.f32 %v7951_v9, %v4898_v48  ;;  %v4901_v7 = vmul.f32 %v7961_v13, %v4896_v23  ;;  %v7132_v48 = vld [vmem:[%s10445_s5 + $0x190] sm:$0xff] }
 0xed3   : > { %v4907_v27 = vpop.permute.xlu0 %4906 }
 0xed4   : > { %v4905_v50 = vpop.permute.xlu1 %4904  ;;  %7118 = vmatmul.mubr.msk.f32.vlgmr.msra.gmra.mrb[8].mxu1 %vm1609_vm0, %v7114_v19 }
 0xed5   : > { %7374 = vmatpush1.bf16.msk.msra.mxu1 %vm8435_vm15, %v7372_v37  ;;  %4733 = vmatprep.mubr.f32.mxu1 %v7849_v20 }
 0xed7   : > { %v4911_v59 = vpop.permute.xlu0 %4910 }
 0xed8   : > { %v4909_v42 = vpop.permute.xlu1 %4908  ;;  %v4913_v45 = vsel %vm129_vm12, %v4907_v27, %v4911_v59  ;;  %v4915_v5 = vsel %vm129_vm12, %v4911_v59, %v4907_v27  ;;  %7119 = vmatmul.mubr.msk.f32.gmra.mrb[10].mxu1 %vm1609_vm0, %v7115_v58 }
 0xed9   : > { %v4912_v43 = vsel %vm129_vm12, %v4905_v50, %v4909_v42  ;;  %v4914_v22 = vsel %vm129_vm12, %v4909_v42, %v4905_v50  ;;  %v4918_v33 = vmul.f32 %v4913_v45, %v7956_v11  ;;  %v4919_v35 = vmul.f32 %v4915_v5, %v7966_v15  ;;  %4859 = vmatprep.mubr.f32.mxu1 %v7849_v20 }
 0xeda   : > { %v4916_v46 = vmul.f32 %v4912_v43, %v7956_v11  ;;  %v4917_v49 = vmul.f32 %v4914_v22, %v7966_v15 }
 0xedb   : > { %v4922_v21 = vadd.f32 %v4918_v33, %v4902_v26  ;;  %v4923_v29 = vadd.f32 %v4919_v35, %v4903_v24  ;;  %v5119_v32 = vpop.permute.xlu0 %5118  ;;  %v7133_v33 = vld [vmem:[%s10445_s5 + $0x198] sm:$0x3f] }
 0xedc   : > { %v4920_v44 = vadd.f32 %v4916_v46, %v4900_v41  ;;  %v4921_v38 = vadd.f32 %v4917_v49, %v4901_v7  ;;  %v5117_v18 = vpop.permute.xlu1 %5116  ;;  %7124 = vmatmul.mubr.msk.f32.vlgmr.msra.gmra.mrb[8].mxu1 %vm1609_vm0, %v7120_v39  ;;  %v7138_v41 = vld [vmem:[%s10445_s5 + $0x1a0] sm:$0xff]  ;;  %v7139_v7 = vld [vmem:[%s10445_s5 + $0x1a8] sm:$0x3f] }
 0xedd   : > { %4865 = vmatprep.mubr.f32.mxu1 %v7849_v20 }
 0xede   : > { %v7375_v36 = vpack.c.bf16 %v4923_v29, %v4921_v38  ;;  %v7378_v61 = vpack.c.bf16 %v4922_v21, %v4920_v44 }
 0xedf   : > { %v5123_v52 = vpop.permute.xlu0 %5122 }
 0xee0   : > { %v5121_v25 = vpop.permute.xlu1 %5120  ;;  %7125 = vmatmul.mubr.msk.f32.gmra.mrb[10].mxu1 %vm1609_vm0, %v7121_v54  ;;  %7377 = vmatprep.subr.msk.bf16.mxu1 %vm8435_vm15, %v7375_v36  ;;  %v5125_v60 = vsel %vm325_vm8, %v5119_v32, %v5123_v52  ;;  %v5127_v53 = vsel %vm325_vm8, %v5123_v52, %v5119_v32 }
 0xee1   : > { %7380 = vmatpush1.bf16.msk.msra.mxu1 %vm8435_vm15, %v7378_v61  ;;  %5003 = vmatprep.mubr.f32.mxu1 %v7849_v20  ;;  %v5124_v30 = vsel %vm325_vm8, %v5117_v18, %v5121_v25  ;;  %v5126_v19 = vsel %vm325_vm8, %v5121_v25, %v5117_v18  ;;  %v5130_v27 = vmul.f32 %v7953_v10, %v5125_v60 }
 0xee2   : > { %7383 = vmatprep.subr.msk.bf16.mxu1 %vm8435_vm15, %v7381_v57  ;;  %v5131_v31 = vmul.f32 %v7963_v14, %v5127_v53  ;;  %v5128_v59 = vmul.f32 %v7953_v10, %v5124_v30  ;;  %v5129_v26 = vmul.f32 %v7963_v14, %v5126_v19 }
 0xee3   : > { %v5135_v40 = vpop.permute.xlu0 %5134 }
 0xee4   : > { %v5133_v34 = vpop.permute.xlu1 %5132  ;;  %7130 = vmatmul.mubr.msk.f32.vlgmr.msra.gmra.mrb[8].mxu1 %vm1609_vm0, %v7126_v62 }
 0xee5   : > { %7386 = vmatpush1.bf16.msk.msra.mxu1 %vm8435_vm15, %v7384_v56  ;;  %5009 = vmatprep.mubr.f32.mxu1 %v7849_v20 }
 0xee7   : > { %v5139_v37 = vpop.permute.xlu0 %5138 }
 0xee8   : > { %v5137_v4 = vpop.permute.xlu1 %5136  ;;  %v5141_v56 = vsel %vm10513_vm3, %v5135_v40, %v5139_v37  ;;  %v5143_v50 = vsel %vm10514_vm4, %v5139_v37, %v5135_v40  ;;  %7131 = vmatmul.mubr.msk.f32.gmra.mrb[10].mxu1 %vm1609_vm0, %v7127_v0  ;;  %vm10521_vm3 = vmmov %vm10484_vm1 }
 0xee9   : > { %v5140_v17 = vsel %vm10515_vm6, %v5133_v34, %v5137_v4  ;;  %v5142_v47 = vsel %vm10484_vm1, %v5137_v4, %v5133_v34  ;;  %v5146_v58 = vmul.f32 %v5143_v50, %v7959_v12  ;;  %v5147_v23 = vmul.f32 %v5141_v56, %v7969_v16  ;;  %5099 = vmatprep.mubr.f32.mxu1 %v7849_v20  ;;  %vm10522_vm4 = vmmov %vm10484_vm1 }
 0xeea   : > { %v5144_v24 = vmul.f32 %v5142_v47, %v7959_v12  ;;  %v5145_v42 = vmul.f32 %v5140_v17, %v7969_v16  ;;  %vm10523_vm6 = vmmov %vm10484_vm1 }
 0xeeb   : > { %v5150_v45 = vadd.f32 %v5146_v58, %v5130_v27  ;;  %v5151_v5 = vadd.f32 %v5147_v23, %v5131_v31 }
 0xeec   : > { %v5148_v43 = vadd.f32 %v5144_v24, %v5128_v59  ;;  %v5149_v22 = vadd.f32 %v5145_v42, %v5129_v26  ;;  %7136 = vmatmul.mubr.msk.f32.vlgmr.msra.gmra.mrb[8].mxu1 %vm1609_vm0, %v7132_v48 }
 0xeed   : > { %5105 = vmatprep.mubr.f32.mxu1 %v7849_v20 }
 0xeee   : > { %v7387_v35 = vpack.c.bf16 %v5151_v5, %v5149_v22  ;;  %v7390_v39 = vpack.c.bf16 %v5150_v45, %v5148_v43 }
 0xef0   : > { %7137 = vmatmul.mubr.msk.f32.gmra.mrb[10].mxu1 %vm1609_vm0, %v7133_v33  ;;  %7389 = vmatprep.subr.msk.bf16.mxu1 %vm8435_vm15, %v7387_v35 }
 0xef1   : > { %7392 = vmatpush1.bf16.msk.msra.mxu1 %vm8435_vm15, %v7390_v39  ;;  %5231 = vmatprep.mubr.f32.mxu1 %v7849_v20 }
 0xef4   : > { %7142 = vmatmul.mubr.msk.f32.vlgmr.msra.gmra.mrb[8].mxu1 %vm1609_vm0, %v7138_v41  ;;  %v7145_v41 = vld [vmem:[%s10443_s3 + $0x48] sm:$0x3f] }
 0xef5   : > { %5237 = vmatprep.mubr.f32.mxu1 %v7849_v20 }
 0xef8   : > { %7143 = vmatmul.mubr.msk.f32.gmra.mrb[10].mxu1 %vm1609_vm0, %v7139_v7  ;;  %v5251_v46 = vpop.permute.xlu0 %5250  ;;  %v7146_v7 = vld [vmem:[%s10444_s4 + $0x40] sm:$0xff] }
 0xef9   : > { %6728 = vmatprep.mubr.f32.mxu1 %v7849_v20  ;;  %v5256_v44 = vpop.permute.xlu1 %5255 }
 0xfc7   : > { %v5233_v49 = vpop.f32.mrb[8].mxu1 }
 0xfc8   : > { %v9755_v21 = vadd.f32 %v5251_v46, %v5233_v49  ;;  %v5235_v29 = vpop.f32.mrb[9].mxu1  ;;  %v7147_v49 = vld [vmem:[%s10444_s4 + $0x48] sm:$0x3f] }
 0xfc9   : > { %v9757_v32 = vadd.f32 %v5251_v46, %v5235_v29  ;;  %v7144_v46 = vld [vmem:[%s10443_s3 + $0x40] sm:$0xff] }
 0xfca   : > { %v5276_v40 = vmul.f32 %v9755_v21, %v9755_v21 }
 0xfcb   : > { %v5239_v38 = vpop.f32.mrb[10].mxu1  ;;  %v5268_v18 = vadd.f32 %v9757_v32, %v9755_v21  ;;  %v5277_v34 = vmul.f32 %v9757_v32, %v9757_v32 }
 0xfcc   : > { %v9761_v54 = vadd.f32 %v5256_v44, %v5239_v38  ;;  %v5241_v36 = vpop.f32.mrb[11].mxu1 }
 0xfcd   : > { %v9763_v61 = vadd.f32 %v5256_v44, %v5241_v36  ;;  %5269 = vadd.xlane.f32.xlu1 %v5268_v18  ;;  %v5280_v19 = vadd.f32 %v5277_v34, %v5276_v40 }
 0xfce   : > { %v5278_v52 = vmul.f32 %v9761_v54, %v9761_v54  ;;  %v5271_v25 = vsel %vm148_vm5, %v9761_v54, 0.0 }
 0xfcf   : > { %v5279_v57 = vmul.f32 %v9763_v61, %v9763_v61  ;;  %v5272_v62 = vsel %vm148_vm5, %v9763_v61, 0.0 }
 0xfd0   : > { %v5273_v60 = vadd.f32 %v5272_v62, %v5271_v25  ;;  %v5283_v53 = vsel %vm148_vm5, %v5278_v52, 0.0 }
 0xfd1   : > { %v5284_v0 = vsel %vm148_vm5, %v5279_v57, 0.0 }
 0xfd2   : > { %5274 = vadd.xlane.f32.xlu0 %v5273_v60  ;;  %v5285_v30 = vadd.f32 %v5284_v0, %v5283_v53 }
 0xfd4   : > { %5286 = vadd.xlane.f32.xlu1 %v5285_v30 }
 0xfd6   : > { %5281 = vadd.xlane.f32.xlu0 %v5280_v19 }
0x105a   : > { %v5270_v37 = vpop.xlane.xlu1 %5269 }
0x105b   : > { %v5303_v27 = vmul.f32 %v5270_v37, %v7949_v8  ;;  %v5288_v31 = vmul.f32 %v7946_v6, %v5270_v37 }
0x105d   : > { %v5305_v56 = vsel %vm1132_vm13, %v5303_v27, 0.0  ;;  %v5290_v23 = vsel %vm1132_vm13, %v5288_v31, 0.0 }
0x105f   : > { %v5275_v4 = vpop.xlane.xlu0 %5274 }
0x1060   : > { %v5289_v50 = vmul.f32 0.0, %v5275_v4  ;;  %v5306_v17 = vsel %vm1134_vm14, %v5275_v4, 0.0 }
0x1061   : > { %v5307_v47 = vadd.f32 %v5306_v17, %v5305_v56  ;;  %v5287_v58 = vpop.xlane.xlu1 %5286 }
0x1062   : > { %v5291_v48 = vsel %vm1134_vm14, %v5289_v50, 0.0  ;;  %v5319_v59 = vmul.f32 0.0, %v5287_v58  ;;  %v5339_v43 = vsel %vm1134_vm14, %v5287_v58, 0.0 }
0x1063   : > { %5308 = vadd.xlane.f32.xlu1 %v5307_v47  ;;  %v5282_v26 = vpop.xlane.xlu0 %5281  ;;  %v5292_v24 = vadd.f32 %v5291_v48, %v5290_v23 }
0x1064   : > { %v5318_v42 = vmul.f32 %v7946_v6, %v5282_v26  ;;  %v5336_v45 = vmul.f32 %v5282_v26, %v7949_v8  ;;  %v5321_v5 = vsel %vm1134_vm14, %v5319_v59, 0.0  ;;  %vm10519_vm14 = vmmov %vm10484_vm1 }
0x1065   : > { %5293 = vadd.xlane.f32.xlu0 %v5292_v24 }
0x1066   : > { %v5320_v22 = vsel %vm1132_vm13, %v5318_v42, 0.0  ;;  %v5338_v33 = vsel %vm1132_vm13, %v5336_v45, 0.0  ;;  %vm10518_vm13 = vmmov %vm10484_vm1 }
0x1067   : > { %v5322_v35 = vadd.f32 %v5321_v5, %v5320_v22  ;;  %v5340_v39 = vadd.f32 %v5339_v43, %v5338_v33 }
0x1069   : > { %5323 = vadd.xlane.f32.xlu0 %v5322_v35  ;;  %5341 = vadd.xlane.f32.xlu1 %v5340_v39 }
0x107a   : > { %5393 = vperm.xlu1 %7694, %v7145_v41  }
0x107e   : > { %5402 = vperm.xlu1 %7694, %v7146_v7  }
0x107f   : > { %5388 = vperm.xlu0 %7693, %v7144_v46  }
0x1083   : > { %5407 = vperm.xlu0 %7693, %v7147_v49  }
0x10f0   : > { %v5309_v29 = vpop.xlane.xlu1 %5308 }
0x10f1   : > { %v5310_v44 = vrot.slane %v5309_v29, 4 }
0x10f2   : > { %v5294_v38 = vpop.xlane.xlu0 %5293 }
0x10f3   : > { %v5311_v18 = vadd.f32 %v5310_v44, %v5309_v29  ;;  %v5295_v36 = vrot.slane %v5294_v38, 4 }
0x10f5   : > { %v5312_v52 = vrot.slane %v5311_v18, 2  ;;  %v5296_v25 = vadd.f32 %v5295_v36, %v5294_v38 }
0x10f6   : > { %v5342_v57 = vpop.xlane.xlu1 %5341  ;;  %v5324_v62 = vpop.xlane.xlu0 %5323 }
0x10f7   : > { %v5297_v40 = vrot.slane %v5296_v25, 2  ;;  %v5343_v34 = vrot.slane %v5342_v57, 4  ;;  %v5325_v60 = vrot.slane %v5324_v62, 4  ;;  %v5313_v53 = vadd.f32 %v5312_v52, %v5311_v18 }
0x10f9   : > { %v5344_v0 = vadd.f32 %v5343_v34, %v5342_v57  ;;  %v5326_v30 = vadd.f32 %v5325_v60, %v5324_v62  ;;  %v5298_v19 = vadd.f32 %v5297_v40, %v5296_v25  ;;  %v5314_v37 = vrot.slane %v5313_v53, 1 }
0x10fa   : > { %v5394_v18 = vpop.permute.xlu1 %5393 }
0x10fb   : > { %v5345_v27 = vrot.slane %v5344_v0, 2  ;;  %v5327_v31 = vrot.slane %v5326_v30, 2  ;;  %v5299_v4 = vrot.slane %v5298_v19, 1  ;;  %v5315_v47 = vadd.f32 %v5314_v37, %v5313_v53 }
0x10fd   : > { %v5300_v56 = vadd.f32 %v5299_v4, %v5298_v19  ;;  %v5328_v50 = vadd.f32 %v5327_v31, %v5326_v30  ;;  %v5346_v17 = vadd.f32 %v5345_v27, %v5344_v0 }
0x10fe   : > { %v5389_v44 = vpop.permute.xlu0 %5388  ;;  %v5403_v4 = vpop.permute.xlu1 %5402 }
0x10ff   : > { %7661 = vpush %v5300_v56  ;;  %v5329_v58 = vrot.slane %v5328_v50, 1  ;;  %v5347_v23 = vrot.slane %v5346_v17, 1 }
0x1100   : > { %7663 = vpush %v5315_v47 }
0x1101   : > { %v5330_v48 = vadd.f32 %v5329_v58, %v5328_v50  ;;  %v5348_v59 = vadd.f32 %v5347_v23, %v5346_v17 }
0x1102   : > { %v5408_v37 = vpop.permute.xlu0 %5407 }
0x1103   : > { %7665 = vpush %v5330_v48 }
0x1104   : > { %7667 = vpush %v5348_v59 }
0x1130   : > { %s7662_s19 = spop %7661 }
0x1131   : > { %s5302_s22 = smul.f32 0.00055803574, %s7662_s19  ;;  %s7664_s25 = spop %7663 }
0x1132   : > { %s5317_s28 = smul.f32 0.00055803574, %s7664_s25 }
0x1133   : > { %s5333_s2 = smul.f32 %s5302_s22, %s5302_s22  ;;  %v5354_v26 = vstv %s5302_s22 }
0x1134   : > { %v5355_v24 = vmul.f32 %v7946_v6, %v5354_v26  ;;  %v5356_v42 = vmul.f32 0.0, %v5354_v26  ;;  %s5351_s15 = smul.f32 %s5317_s28, %s5317_s28  ;;  %v5357_v45 = vstv %s5317_s28  ;;  %s7666_s27 = spop %7665 }
0x1135   : > { %v5358_v5 = vmul.f32 %v5357_v45, %v7949_v8  ;;  %s5332_s17 = smul.f32 0.00055803574, %s7666_s27  ;;  %s7668_s29 = spop %7667 }
0x1136   : > { %v5361_v43 = vadd.f32 %v5357_v45, %v5356_v42  ;;  %s5350_s26 = smul.f32 0.00055803574, %s7668_s29 }
0x1137   : > { %v5360_v22 = vadd.f32 %v5358_v5, %v5355_v24  ;;  %s5334_s20 = ssub.f32 %s5332_s17, %s5333_s2  ;;  %s10383_s2 = sld [smem:[#allocation2]] }
0x1138   : > { %s5352_s16 = ssub.f32 %s5350_s26, %s5351_s15  ;;  %v5380_v52 = vsub.f32 %v9761_v54, %v5361_v43  ;;  %v5381_v25 = vsub.f32 %v9763_v61, %v5361_v43 }
0x1139   : > { %s5335_s18 = smax.f32 %s10494_s24, %s5334_s20  ;;  %v5378_v62 = vsub.f32 %v9755_v21, %v5360_v22  ;;  %v5379_v40 = vsub.f32 %v9757_v32, %v5360_v22 }
0x113a   : > { %s5362_s19 = sadd.f32 1e-05, %s5335_s18  ;;  %s5353_s22 = smax.f32 %s10494_s24, %s5352_s16 }
0x113b   : > { %s5369_s25 = sadd.f32 1e-05, %s5353_s22  ;;  %s7208_s24 = sld [smem:[#allocation3 + $0x1]] }
0x113c   : > { %v5363_v33 = vstv %s5362_s19 }
0x113d   : > { %7775 = vrsqrt.f32 %v5363_v33  ;;  %v5370_v35 = vstv %s5369_s25 }
0x113e   : > { %7777 = vrsqrt.f32 %v5370_v35 }
0x1147   : > { %v7776_v39 = vpop.eup %7775 }
0x1148   : > { %v7778_v41 = vpop.eup %7777  ;;  %7669 = vpush %v7776_v39 }
0x1149   : > { %7671 = vpush %v7778_v41 }
0x1179   : > { %s7670_s28 = spop %7669 }
0x117a   : > { %v5366_v7 = vstv %s7670_s28  ;;  %s7672_s27 = spop %7671 }
0x117b   : > { %v5367_v46 = vmul.f32 %v7946_v6, %v5366_v7  ;;  %v5368_v49 = vmul.f32 0.0, %v5366_v7  ;;  %v5373_v29 = vstv %s7672_s27 }
0x117c   : > { %v5374_v38 = vmul.f32 %v5373_v29, %v7949_v8 }
0x117d   : > { %v5377_v36 = vadd.f32 %v5373_v29, %v5368_v49 }
0x117e   : > { %v5376_v57 = vadd.f32 %v5374_v38, %v5367_v46 }
0x117f   : > { %v5384_v34 = vmul.f32 %v5380_v52, %v5377_v36  ;;  %v5385_v60 = vmul.f32 %v5381_v25, %v5377_v36 }
0x1180   : > { %v5382_v53 = vmul.f32 %v5378_v62, %v5376_v57  ;;  %v5383_v0 = vmul.f32 %v5379_v40, %v5376_v57 }
0x1181   : > { %v5398_v30 = vmul.f32 %v5394_v18, %v5384_v34  ;;  %v5399_v19 = vmul.f32 %v5394_v18, %v5385_v60 }
0x1182   : > { %v5396_v27 = vmul.f32 %v5389_v44, %v5382_v53  ;;  %v5397_v31 = vmul.f32 %v5389_v44, %v5383_v0 }
0x1183   : > { %v5412_v56 = vadd.f32 %v5408_v37, %v5398_v30  ;;  %v5413_v50 = vadd.f32 %v5408_v37, %v5399_v19  ;;  %v7156_v19 = vld [vmem:[%s10445_s5 + $0x1c0] sm:$0xff]  ;;  %v7157_v37 = vld [vmem:[%s10445_s5 + $0x1c8] sm:$0x3f] }
0x1184   : > { %v5410_v54 = vadd.f32 %v5403_v4, %v5396_v27  ;;  %v5411_v17 = vadd.f32 %v5403_v4, %v5397_v31  ;;  %v7152_v4 = vld [vmem:[%s10446_s6 + $0x30] sm:$0xff] }
0x1185   : > { %v7150_v61 = vmul.f32 -1.442695, %v5412_v56  ;;  %v7151_v21 = vmul.f32 -1.442695, %v5413_v50 }
0x1186   : > { %v7148_v47 = vmul.f32 -1.442695, %v5410_v54  ;;  %v7149_v58 = vmul.f32 -1.442695, %v5411_v17 }
0x1187   : > { %7779 = vpow2.f32 %v7150_v61 }
0x1188   : > { %7781 = vpow2.f32 %v7148_v47 }
0x1189   : > { %7783 = vpow2.f32 %v7149_v58 }
0x118a   : > { %7785 = vpow2.f32 %v7151_v21 }
0x1191   : > { %v7780_v32 = vpop.eup %7779 }
0x1192   : > { %v7782_v23 = vpop.eup %7781  ;;  %v5428_v48 = vadd.f32 1.0, %v7780_v32 }
0x1193   : > { %v7784_v59 = vpop.eup %7783  ;;  %v5426_v26 = vadd.f32 1.0, %v7782_v23 }
0x1194   : > { %v7786_v24 = vpop.eup %7785  ;;  %v5427_v42 = vadd.f32 1.0, %v7784_v59  ;;  %7787 = vrcp.f32 %v5428_v48 }
0x1195   : > { %v5429_v45 = vadd.f32 1.0, %v7786_v24  ;;  %7789 = vrcp.f32 %v5426_v26 }
0x1196   : > { %7791 = vrcp.f32 %v5427_v42 }
0x1197   : > { %7793 = vrcp.f32 %v5429_v45 }
0x119e   : > { %v7788_v5 = vpop.eup %7787 }
0x119f   : > { %v7790_v43 = vpop.eup %7789  ;;  %v9813_v22 = vmul.f32 %v7788_v5, %v5412_v56  ;;  %v7153_v56 = vld [vmem:[%s10446_s6 + $0x38] sm:$0x3f] }
0x11a0   : > { %v7792_v33 = vpop.eup %7791  ;;  %v9815_v35 = vmul.f32 %v7790_v43, %v5410_v54 }
0x11a1   : > { %v7794_v39 = vpop.eup %7793  ;;  %5447 = vrot.lane.b32.xlu0 %v9813_v22, %s10495_s0  ;;  %v9823_v7 = vmul.f32 %v7792_v33, %v5411_v17 }
0x11a2   : > { %5445 = vrot.lane.b32.xlu1 %v9815_v35, %s10495_s0  ;;  %v9821_v41 = vmul.f32 %v7794_v39, %v5413_v50 }
0x11a5   : > { %5451 = vrot.lane.b32.xlu0 %v9821_v41, %s10495_s0 }
0x11a6   : > { %5449 = vrot.lane.b32.xlu1 %v9823_v7, %s10495_s0 }
0x11a9   : > { %6171 = vrot.lane.b32.xlu0 %v9813_v22, %s10496_s1 }
0x11aa   : > { %6169 = vrot.lane.b32.xlu1 %v9815_v35, %s10496_s1 }
0x11ad   : > { %6175 = vrot.lane.b32.xlu0 %v9821_v41, %s10496_s1 }
0x11ae   : > { %6173 = vrot.lane.b32.xlu1 %v9823_v7, %s10496_s1 }
0x11b1   : > { %5811 = vrot.lane.b32.xlu0 %v9813_v22, %s10478_s23 }
0x11b2   : > { %5809 = vrot.lane.b32.xlu1 %v9815_v35, %s10478_s23 }
0x11b5   : > { %5815 = vrot.lane.b32.xlu0 %v9821_v41, %s10478_s23 }
0x11b6   : > { %5813 = vrot.lane.b32.xlu1 %v9823_v7, %s10478_s23 }
0x11b9   : > { %5827 = vrot.lane.b32.xlu0 %v9813_v22, %s10479_s30 }
0x11ba   : > { %5825 = vrot.lane.b32.xlu1 %v9815_v35, %s10479_s30 }
0x11bd   : > { %5831 = vrot.lane.b32.xlu0 %v9821_v41, %s10479_s30 }
0x11be   : > { %5829 = vrot.lane.b32.xlu1 %v9823_v7, %s10479_s30 }
0x1213   : > { %v5448_v46 = vpop.permute.xlu0 %5447 }
0x1214   : > { %v5446_v49 = vpop.permute.xlu1 %5445 }
0x1217   : > { %v5452_v29 = vpop.permute.xlu0 %5451 }
0x1218   : > { %v5450_v44 = vpop.permute.xlu1 %5449  ;;  %v5454_v38 = vsel %vm113_vm7, %v5448_v46, %v5452_v29  ;;  %v5456_v18 = vsel %vm113_vm7, %v5452_v29, %v5448_v46 }
0x1219   : > { %v5453_v36 = vsel %vm113_vm7, %v5446_v49, %v5450_v44  ;;  %v5455_v52 = vsel %vm113_vm7, %v5450_v44, %v5446_v49  ;;  %5459 = vrot.lane.b32.xlu0 %v5456_v18, %s10478_s23  ;;  %vm10516_vm7 = vmmov %vm10484_vm1 }
0x121a   : > { %v7396_v25 = vpack.c.bf16 %v5456_v18, %v5455_v52  ;;  %5457 = vrot.lane.b32.xlu1 %v5455_v52, %s10478_s23  ;;  %v7393_v57 = vpack.c.bf16 %v5454_v38, %v5453_v36 }
0x121b   : > { %v6172_v62 = vpop.permute.xlu0 %6171 }
0x121c   : > { %v6170_v40 = vpop.permute.xlu1 %6169  ;;  %7395 = vmatprep.subr.msk.bf16.mxu0 %vm8435_vm15, %v7393_v57 }
0x121d   : > { %7398 = vmatpush1.bf16.msk.msra.mxu0 %vm8435_vm15, %v7396_v25  ;;  %5463 = vrot.lane.b32.xlu0 %v5454_v38, %s10478_s23 }
0x121e   : > { %5461 = vrot.lane.b32.xlu1 %v5453_v36, %s10478_s23 }
0x121f   : > { %v6176_v34 = vpop.permute.xlu0 %6175 }
0x1220   : > { %v6174_v60 = vpop.permute.xlu1 %6173  ;;  %v9871_v53 = vsel %vm765_vm9, %v6172_v62, %v6176_v34  ;;  %7160 = vmatmul.mubr.msk.f32.vlgmr.msra.gmra.mrb[8].mxu0 %vm1609_vm0, %v7156_v19  ;;  %v9923_v27 = vsel %vm765_vm9, %v6176_v34, %v6172_v62 }
0x1221   : > { %v9875_v0 = vsel %vm765_vm9, %v6170_v40, %v6174_v60  ;;  %5475 = vrot.lane.b32.xlu0 %v5456_v18, %s10479_s30  ;;  %5581 = vmatprep.mubr.f32.mxu0 %v7849_v20  ;;  %v9927_v31 = vsel %vm765_vm9, %v6174_v60, %v6170_v40  ;;  %vm10517_vm9 = vmmov %vm10484_vm1 }
0x1222   : > { %v7438_v30 = vpack.c.bf16 %v9871_v53, %v9875_v0  ;;  %5473 = vrot.lane.b32.xlu1 %v5455_v52, %s10479_s30 }
0x1223   : > { %v5812_v50 = vpop.permute.xlu0 %5811 }
0x1224   : > { %7161 = vmatmul.mubr.msk.f32.gmra.mrb[10].mxu0 %vm1609_vm0, %v7157_v37  ;;  %v5810_v54 = vpop.permute.xlu1 %5809 }
0x1225   : > { %5479 = vrot.lane.b32.xlu0 %v5454_v38, %s10479_s30  ;;  %5664 = vmatprep.mubr.f32.mxu0 %v7849_v20 }
0x1226   : > { %5477 = vrot.lane.b32.xlu1 %v5453_v36, %s10479_s30 }
0x1227   : > { %v5816_v17 = vpop.permute.xlu0 %5815 }
0x1228   : > { %v5814_v61 = vpop.permute.xlu1 %5813 }
0x1229   : > { %5679 = vrot.lane.b32.xlu0 %v5456_v18, %s10482_s21 }
0x122a   : > { %5677 = vrot.lane.b32.xlu1 %v5455_v52, %s10482_s21 }
0x122b   : > { %v5828_v47 = vpop.permute.xlu0 %5827 }
0x122c   : > { %v5826_v58 = vpop.permute.xlu1 %5825 }
0x122d   : > { %5683 = vrot.lane.b32.xlu0 %v5454_v38, %s10482_s21 }
0x122e   : > { %5681 = vrot.lane.b32.xlu1 %v5453_v36, %s10482_s21 }
0x122f   : > { %v5832_v21 = vpop.permute.xlu0 %5831 }
0x1230   : > { %v5830_v32 = vpop.permute.xlu1 %5829 }
0x1231   : > { %5695 = vrot.lane.b32.xlu0 %v5456_v18, %s10483_s14 }
0x1232   : > { %5693 = vrot.lane.b32.xlu1 %v5455_v52, %s10483_s14 }
0x1235   : > { %5699 = vrot.lane.b32.xlu0 %v5454_v38, %s10483_s14 }
0x1236   : > { %5697 = vrot.lane.b32.xlu1 %v5453_v36, %s10483_s14 }
0x1239   : > { %6039 = vrot.lane.b32.xlu0 %v9813_v22, %s10482_s21 }
0x123a   : > { %6037 = vrot.lane.b32.xlu1 %v9815_v35, %s10482_s21 }
0x123d   : > { %6043 = vrot.lane.b32.xlu0 %v9821_v41, %s10482_s21 }
0x123e   : > { %6041 = vrot.lane.b32.xlu1 %v9823_v7, %s10482_s21 }
0x1241   : > { %6055 = vrot.lane.b32.xlu0 %v9813_v22, %s10483_s14 }
0x1242   : > { %6053 = vrot.lane.b32.xlu1 %v9815_v35, %s10483_s14 }
0x1245   : > { %6059 = vrot.lane.b32.xlu0 %v9821_v41, %s10483_s14 }
0x1246   : > { %6057 = vrot.lane.b32.xlu1 %v9823_v7, %s10483_s14 }
0x1249   : > { %6183 = vrot.lane.b32.xlu0 %v9871_v53, %s10478_s23 }
0x124a   : > { %6181 = vrot.lane.b32.xlu1 %v9875_v0, %s10478_s23 }
0x124d   : > { %6187 = vrot.lane.b32.xlu0 %v9923_v27, %s10478_s23 }
0x124e   : > { %6185 = vrot.lane.b32.xlu1 %v9927_v31, %s10478_s23  ;;  %s6870_s23 = smul.f32 0.15915494, %s10383_s2 }
0x1251   : > { %6199 = vrot.lane.b32.xlu0 %v9871_v53, %s10479_s30 }
0x1252   : > { %6197 = vrot.lane.b32.xlu1 %v9875_v0, %s10479_s30 }
0x1255   : > { %6203 = vrot.lane.b32.xlu0 %v9923_v27, %s10479_s30 }
0x1256   : > { %6201 = vrot.lane.b32.xlu1 %v9927_v31, %s10479_s30  ;;  %s7230_s30 = sshll.u32 %s7839_s7, 5  ;;  %s101_s7 = sadd.s32 1, %s7839_s7  }
0x1257   : > { %p98_p5 = scmp.ge.s32.totalorder %s101_s7, 2  }
0x1259   : > { %6411 = vrot.lane.b32.xlu0 %v9871_v53, %s10482_s21 }
0x125a   : > { %6409 = vrot.lane.b32.xlu1 %v9875_v0, %s10482_s21 }
0x125d   : > { %6415 = vrot.lane.b32.xlu0 %v9923_v27, %s10482_s21 }
0x125e   : > { %6413 = vrot.lane.b32.xlu1 %v9927_v31, %s10482_s21  ;;  %s10535_s21 = sld [smem:[#allocation9_spill]] }
0x1261   : > { %6427 = vrot.lane.b32.xlu0 %v9871_v53, %s10483_s14 }
0x1262   : > { %6425 = vrot.lane.b32.xlu1 %v9875_v0, %s10483_s14 }
0x1265   : > { %6431 = vrot.lane.b32.xlu0 %v9923_v27, %s10483_s14 }
0x1266   : > { %6429 = vrot.lane.b32.xlu1 %v9927_v31, %s10483_s14  ;;  %s6878_s14 = scalar_lea.vmem %s10535_s21, %s7230_s30 }
0x1269   : > { %6543 = vperm.xlu0 %7693, %v7152_v4  }
0x126a   : > { %6548 = vperm.xlu1 %7694, %v7153_v56  }
0x128b   : > { %v5460_v23 = vpop.permute.xlu0 %5459 }
0x128c   : > { %v5458_v48 = vpop.permute.xlu1 %5457 }
0x128f   : > { %v5464_v59 = vpop.permute.xlu0 %5463 }
0x1290   : > { %v5462_v26 = vpop.permute.xlu1 %5461  ;;  %v5466_v45 = vsel %vm120_vm11, %v5460_v23, %v5464_v59  ;;  %v5468_v5 = vsel %vm120_vm11, %v5464_v59, %v5460_v23 }
0x1291   : > { %v5465_v43 = vsel %vm120_vm11, %v5458_v48, %v5462_v26  ;;  %v5467_v33 = vsel %vm120_vm11, %v5462_v26, %v5458_v48  ;;  %v5471_v46 = vmul.f32 %v7951_v9, %v5468_v5  ;;  %v5472_v49 = vmul.f32 %v7961_v13, %v5466_v45 }
0x1292   : > { %v5469_v57 = vmul.f32 %v7951_v9, %v5467_v33  ;;  %v5470_v62 = vmul.f32 %v7961_v13, %v5465_v43  ;;  %v5817_v45 = vsel %vm120_vm11, %v5810_v54, %v5814_v61  ;;  %v5818_v5 = vsel %vm120_vm11, %v5812_v50, %v5816_v17 }
0x1293   : > { %v5476_v24 = vpop.permute.xlu0 %5475  ;;  %v5835_v33 = vsel %vm129_vm12, %v5830_v32, %v5826_v58 }
0x1294   : > { %v5474_v42 = vpop.permute.xlu1 %5473 }
0x1297   : > { %v5480_v39 = vpop.permute.xlu0 %5479 }
0x1298   : > { %v5478_v29 = vpop.permute.xlu1 %5477  ;;  %v5482_v44 = vsel %vm129_vm12, %v5476_v24, %v5480_v39  ;;  %v5484_v38 = vsel %vm129_vm12, %v5480_v39, %v5476_v24  ;;  %v5836_v39 = vsel %vm129_vm12, %v5832_v21, %v5828_v47 }
0x1299   : > { %v5481_v18 = vsel %vm129_vm12, %v5474_v42, %v5478_v29  ;;  %v5483_v36 = vsel %vm129_vm12, %v5478_v29, %v5474_v42  ;;  %v5487_v52 = vmul.f32 %v5482_v44, %v7956_v11  ;;  %v5488_v25 = vmul.f32 %v5484_v38, %v7966_v15  ;;  %v7154_v42 = vld [vmem:[%s10445_s5 + $0x1b0] sm:$0xff] }
0x129a   : > { %v5485_v40 = vmul.f32 %v5481_v18, %v7956_v11  ;;  %v5486_v34 = vmul.f32 %v5483_v36, %v7966_v15  ;;  %v5820_v29 = vsel %vm120_vm11, %v5816_v17, %v5812_v50  ;;  %v7155_v18 = vld [vmem:[%s10445_s5 + $0x1b8] sm:$0x3f]  ;;  %v5822_v36 = vmul.f32 %v7961_v13, %v5817_v45 }
0x129b   : > { %v5491_v60 = vadd.f32 %v5487_v52, %v5471_v46  ;;  %v5492_v19 = vadd.f32 %v5488_v25, %v5472_v49  ;;  %v5680_v37 = vpop.permute.xlu0 %5679  ;;  %v5819_v49 = vsel %vm120_vm11, %v5814_v61, %v5810_v54  ;;  %v5824_v52 = vmul.f32 %v7961_v13, %v5818_v5 }
0x129c   : > { %v5489_v4 = vadd.f32 %v5485_v40, %v5469_v57  ;;  %v5490_v56 = vadd.f32 %v5486_v34, %v5470_v62  ;;  %v5678_v23 = vpop.permute.xlu1 %5677  ;;  %v5833_v54 = vsel %vm129_vm12, %v5826_v58, %v5830_v32  ;;  %v5834_v50 = vsel %vm129_vm12, %v5828_v47, %v5832_v21 }
0x129d   : > { %v5838_v17 = vmul.f32 %v5835_v33, %v7966_v15  ;;  %v5840_v61 = vmul.f32 %v5836_v39, %v7966_v15 }
0x129e   : > { %v7399_v48 = vpack.c.bf16 %v5492_v19, %v5490_v56  ;;  %v7402_v59 = vpack.c.bf16 %v5491_v60, %v5489_v4 }
0x129f   : > { %v5684_v26 = vpop.permute.xlu0 %5683  ;;  %v5842_v5 = vadd.f32 %v5838_v17, %v5822_v36  ;;  %v7166_v36 = vld [vmem:[%s10445_s5 + $0x1d0] sm:$0xff]  ;;  %v7167_v17 = vld [vmem:[%s10445_s5 + $0x1d8] sm:$0x3f] }
0x12a0   : > { %v5682_v24 = vpop.permute.xlu1 %5681  ;;  %7401 = vmatprep.subr.msk.bf16.mxu0 %vm8435_vm15, %v7399_v48  ;;  %v5686_v44 = vsel %vm325_vm8, %v5680_v37, %v5684_v26  ;;  %v5688_v38 = vsel %vm325_vm8, %v5684_v26, %v5680_v37  ;;  %v5839_v26 = vmul.f32 %v5834_v50, %v7956_v11  ;;  %v7417_v50 = vpack.c.bf16 %v9821_v41, %v9823_v7 }
0x12a1   : > { %7404 = vmatpush1.bf16.msk.msra.mxu0 %vm8435_vm15, %v7402_v59  ;;  %v5685_v25 = vsel %vm325_vm8, %v5678_v23, %v5682_v24  ;;  %v5687_v57 = vsel %vm325_vm8, %v5682_v24, %v5678_v23  ;;  %v5691_v40 = vmul.f32 %v7953_v10, %v5686_v44  ;;  %v5692_v34 = vmul.f32 %v7963_v14, %v5688_v38 }
0x12a2   : > { %v5689_v4 = vmul.f32 %v7953_v10, %v5685_v25  ;;  %v5690_v56 = vmul.f32 %v7963_v14, %v5687_v57  ;;  %v5837_v59 = vmul.f32 %v5833_v54, %v7956_v11  ;;  %v5821_v44 = vmul.f32 %v7951_v9, %v5819_v49 }
0x12a3   : > { %v5696_v43 = vpop.permute.xlu0 %5695  ;;  %v5823_v38 = vmul.f32 %v7951_v9, %v5820_v29 }
0x12a4   : > { %v5694_v46 = vpop.permute.xlu1 %5693  ;;  %7164 = vmatmul.mubr.msk.f32.vlgmr.msra.gmra.mrb[8].mxu0 %vm1609_vm0, %v7154_v42  ;;  %v5841_v57 = vadd.f32 %v5837_v59, %v5821_v44 }
0x12a5   : > { %5670 = vmatprep.mubr.f32.mxu0 %v7849_v20 }
0x12a7   : > { %v5700_v62 = vpop.permute.xlu0 %5699 }
0x12a8   : > { %v5698_v60 = vpop.permute.xlu1 %5697  ;;  %v5702_v58 = vsel %vm10516_vm7, %v5696_v43, %v5700_v62  ;;  %v5704_v47 = vsel %vm10517_vm9, %v5700_v62, %v5696_v43  ;;  %7165 = vmatmul.mubr.msk.f32.gmra.mrb[10].mxu0 %vm1609_vm0, %v7155_v18  ;;  %v5844_v43 = vadd.f32 %v5840_v61, %v5824_v52  ;;  %v5843_v62 = vadd.f32 %v5839_v26, %v5823_v38  ;;  %vm10526_vm7 = vmmov %vm10484_vm1 }
0x12a9   : > { %v5701_v21 = vsel %vm10518_vm13, %v5694_v46, %v5698_v60  ;;  %v5703_v32 = vsel %vm10519_vm14, %v5698_v60, %v5694_v46  ;;  %v5707_v19 = vmul.f32 %v5704_v47, %v7959_v12  ;;  %v5708_v37 = vmul.f32 %v5702_v58, %v7969_v16  ;;  %5792 = vmatprep.mubr.f32.mxu0 %v7849_v20 }
0x12aa   : > { %v5705_v23 = vmul.f32 %v5703_v32, %v7959_v12  ;;  %v5706_v48 = vmul.f32 %v5701_v21, %v7969_v16  ;;  %v7411_v54 = vpack.c.bf16 %v5844_v43, %v5842_v5  ;;  %v7414_v49 = vpack.c.bf16 %v5843_v62, %v5841_v57  ;;  %v7178_v57 = vld [vmem:[%s10445_s5 + $0x1f0] sm:$0xff] }
0x12ab   : > { %v5711_v24 = vadd.f32 %v5707_v19, %v5691_v40  ;;  %v5712_v42 = vadd.f32 %v5708_v37, %v5692_v34  ;;  %v6040_v45 = vpop.permute.xlu0 %6039  ;;  %v7420_v43 = vpack.c.bf16 %v9813_v22, %v9815_v35  ;;  %vm6582_vm9 = vcmask 21504  }
0x12ac   : > { %v5709_v33 = vadd.f32 %v5705_v23, %v5689_v4  ;;  %v5710_v39 = vadd.f32 %v5706_v48, %v5690_v56  ;;  %v6038_v46 = vpop.permute.xlu1 %6037  ;;  %v7172_v4 = vld [vmem:[%s10445_s5 + $0x1e0] sm:$0xff] }
0x12ae   : > { %v7405_v18 = vpack.c.bf16 %v5712_v42, %v5710_v39  ;;  %v7408_v25 = vpack.c.bf16 %v5711_v24, %v5709_v33 }
0x12af   : > { %v6044_v60 = vpop.permute.xlu0 %6043 }
0x12b0   : > { %v6042_v58 = vpop.permute.xlu1 %6041  ;;  %7407 = vmatprep.subr.msk.bf16.mxu0 %vm8435_vm15, %v7405_v18  ;;  %v6048_v61 = vsel %vm325_vm8, %v6044_v60, %v6040_v45  ;;  %v6046_v48 = vsel %vm325_vm8, %v6040_v45, %v6044_v60  ;;  %v7173_v45 = vld [vmem:[%s10445_s5 + $0x1e8] sm:$0x3f] }
0x12b1   : > { %7410 = vmatpush1.bf16.msk.msra.mxu0 %vm8435_vm15, %v7408_v25  ;;  %v6047_v40 = vsel %vm325_vm8, %v6042_v58, %v6038_v46  ;;  %v6052_v21 = vmul.f32 %v7963_v14, %v6048_v61  ;;  %v6045_v56 = vsel %vm325_vm8, %v6038_v46, %v6042_v58  ;;  %v6051_v44 = vmul.f32 %v7953_v10, %v6046_v48 }
0x12b2   : > { %7413 = vmatprep.subr.msk.bf16.mxu0 %vm8435_vm15, %v7411_v54  ;;  %v6050_v23 = vmul.f32 %v7963_v14, %v6047_v40  ;;  %v6049_v46 = vmul.f32 %v7953_v10, %v6045_v56 }
0x12b3   : > { %v6056_v29 = vpop.permute.xlu0 %6055 }
0x12b4   : > { %v6054_v52 = vpop.permute.xlu1 %6053  ;;  %7170 = vmatmul.mubr.msk.f32.vlgmr.msra.gmra.mrb[8].mxu0 %vm1609_vm0, %v7166_v36 }
0x12b5   : > { %7416 = vmatpush1.bf16.msk.msra.mxu0 %vm8435_vm15, %v7414_v49  ;;  %5798 = vmatprep.mubr.f32.mxu0 %v7849_v20  ;;  %v7179_v49 = vld [vmem:[%s10445_s5 + $0x1f8] sm:$0x3f] }
0x12b6   : > { %7419 = vmatprep.subr.msk.bf16.mxu0 %vm8435_vm15, %v7417_v50 }
0x12b7   : > { %v6060_v34 = vpop.permute.xlu0 %6059 }
0x12b8   : > { %v6058_v41 = vpop.permute.xlu1 %6057  ;;  %7171 = vmatmul.mubr.msk.f32.gmra.mrb[10].mxu0 %vm1609_vm0, %v7167_v17  ;;  %v6062_v7 = vsel %vm10520_vm2, %v6056_v29, %v6060_v34  ;;  %v6064_v47 = vsel %vm10521_vm3, %v6060_v34, %v6056_v29 }
0x12b9   : > { %v6061_v32 = vsel %vm10522_vm4, %v6054_v52, %v6058_v41  ;;  %v6063_v19 = vsel %vm10523_vm6, %v6058_v41, %v6054_v52  ;;  %v6068_v37 = vmul.f32 %v6062_v7, %v7969_v16  ;;  %5924 = vmatprep.mubr.f32.mxu0 %v7849_v20  ;;  %v6067_v24 = vmul.f32 %v6064_v47, %v7959_v12 }
0x12ba   : > { %v6066_v59 = vmul.f32 %v6061_v32, %v7969_v16  ;;  %v6065_v26 = vmul.f32 %v6063_v19, %v7959_v12  ;;  %v7184_v19 = vld [vmem:[%s10445_s5 + $0x200] sm:$0xff] }
0x12bb   : > { %v6072_v42 = vadd.f32 %v6068_v37, %v6052_v21  ;;  %v6184_v5 = vpop.permute.xlu0 %6183  ;;  %v6071_v22 = vadd.f32 %v6067_v24, %v6051_v44 }
0x12bc   : > { %v6070_v33 = vadd.f32 %v6066_v59, %v6050_v23  ;;  %v6182_v39 = vpop.permute.xlu1 %6181  ;;  %7176 = vmatmul.mubr.msk.f32.vlgmr.msra.gmra.mrb[8].mxu0 %vm1609_vm0, %v7172_v4  ;;  %v6069_v18 = vadd.f32 %v6065_v26, %v6049_v46 }
0x12bd   : > { %7422 = vmatpush1.bf16.msk.msra.mxu0 %vm8435_vm15, %v7420_v43  ;;  %5930 = vmatprep.mubr.f32.mxu0 %v7849_v20  ;;  %v7185_v43 = vld [vmem:[%s10445_s5 + $0x208] sm:$0x3f] }
0x12be   : > { %v7423_v38 = vpack.c.bf16 %v6072_v42, %v6070_v33  ;;  %v7426_v62 = vpack.c.bf16 %v6071_v22, %v6069_v18 }
0x12bf   : > { %v6188_v35 = vpop.permute.xlu0 %6187 }
0x12c0   : > { %v6186_v25 = vpop.permute.xlu1 %6185  ;;  %7177 = vmatmul.mubr.msk.f32.gmra.mrb[10].mxu0 %vm1609_vm0, %v7173_v45  ;;  %7425 = vmatprep.subr.msk.bf16.mxu0 %vm8435_vm15, %v7423_v38  ;;  %v6190_v58 = vsel %vm120_vm11, %v6184_v5, %v6188_v35  ;;  %v6192_v36 = vsel %vm120_vm11, %v6188_v35, %v6184_v5  ;;  %v7435_v45 = vpack.c.bf16 %v9923_v27, %v9927_v31  ;;  %v7190_v38 = vld [vmem:[%s10445_s5 + $0x210] sm:$0xff]  ;;  %v7191_v31 = vld [vmem:[%s10445_s5 + $0x218] sm:$0x3f] }
0x12c1   : > { %6020 = vmatprep.mubr.f32.mxu0 %v7849_v20  ;;  %v6189_v29 = vsel %vm120_vm11, %v6182_v39, %v6186_v25  ;;  %v6191_v52 = vsel %vm120_vm11, %v6186_v25, %v6182_v39  ;;  %v6195_v17 = vmul.f32 %v7951_v9, %v6192_v36  ;;  %v6196_v61 = vmul.f32 %v7961_v13, %v6190_v58  ;;  %vm10524_vm11 = vmmov %vm10484_vm1 }
0x12c2   : > { %v6193_v37 = vmul.f32 %v7951_v9, %v6191_v52  ;;  %v6194_v4 = vmul.f32 %v7961_v13, %v6189_v29  ;;  %v7196_v52 = vld [vmem:[%s10445_s5 + $0x220] sm:$0xff] }
0x12c3   : > { %v6200_v60 = vpop.permute.xlu0 %6199 }
0x12c4   : > { %v6198_v54 = vpop.permute.xlu1 %6197  ;;  %7182 = vmatmul.mubr.msk.f32.vlgmr.msra.gmra.mrb[8].mxu0 %vm1609_vm0, %v7178_v57 }
0x12c5   : > { %7428 = vmatpush1.bf16.msk.msra.mxu0 %vm8435_vm15, %v7426_v62  ;;  %6026 = vmatprep.mubr.f32.mxu0 %v7849_v20 }
0x12c7   : > { %v6204_v50 = vpop.permute.xlu0 %6203 }
0x12c8   : > { %v6202_v40 = vpop.permute.xlu1 %6201  ;;  %v6206_v34 = vsel %vm129_vm12, %v6200_v60, %v6204_v50  ;;  %v6208_v41 = vsel %vm129_vm12, %v6204_v50, %v6200_v60  ;;  %7183 = vmatmul.mubr.msk.f32.gmra.mrb[10].mxu0 %vm1609_vm0, %v7179_v49 }
0x12c9   : > { %v6205_v7 = vsel %vm129_vm12, %v6198_v54, %v6202_v40  ;;  %v6207_v47 = vsel %vm129_vm12, %v6202_v40, %v6198_v54  ;;  %v6211_v21 = vmul.f32 %v6206_v34, %v7956_v11  ;;  %v6212_v32 = vmul.f32 %v6208_v41, %v7966_v15  ;;  %6152 = vmatprep.mubr.f32.mxu0 %v7849_v20  ;;  %vm10525_vm12 = vmmov %vm10484_vm1 }
0x12ca   : > { %v6209_v56 = vmul.f32 %v6205_v7, %v7956_v11  ;;  %v6210_v23 = vmul.f32 %v6207_v47, %v7966_v15 }
0x12cb   : > { %v6215_v48 = vadd.f32 %v6211_v21, %v6195_v17  ;;  %v6216_v59 = vadd.f32 %v6212_v32, %v6196_v61  ;;  %v6412_v26 = vpop.permute.xlu0 %6411  ;;  %v7197_v21 = vld [vmem:[%s10445_s5 + $0x228] sm:$0x3f] }
0x12cc   : > { %v6213_v24 = vadd.f32 %v6209_v56, %v6193_v37  ;;  %v6214_v42 = vadd.f32 %v6210_v23, %v6194_v4  ;;  %v6410_v5 = vpop.permute.xlu1 %6409  ;;  %7188 = vmatmul.mubr.msk.f32.vlgmr.msra.gmra.mrb[8].mxu0 %vm1609_vm0, %v7184_v19  ;;  %v7202_v37 = vld [vmem:[%s10445_s5 + $0x230] sm:$0xff]  ;;  %v7203_v4 = vld [vmem:[%s10445_s5 + $0x238] sm:$0x3f] }
0x12cd   : > { %6158 = vmatprep.mubr.f32.mxu0 %v7849_v20 }
0x12ce   : > { %v7429_v33 = vpack.c.bf16 %v6216_v59, %v6214_v42  ;;  %v7432_v39 = vpack.c.bf16 %v6215_v48, %v6213_v24  ;;  %v6556_v48 = vstv %s7208_s24 }
0x12cf   : > { %v6416_v46 = vpop.permute.xlu0 %6415 }
0x12d0   : > { %v6414_v44 = vpop.permute.xlu1 %6413  ;;  %7189 = vmatmul.mubr.msk.f32.gmra.mrb[10].mxu0 %vm1609_vm0, %v7185_v43  ;;  %7431 = vmatprep.subr.msk.bf16.mxu0 %vm8435_vm15, %v7429_v33  ;;  %v6418_v35 = vsel %vm325_vm8, %v6412_v26, %v6416_v46  ;;  %v6420_v27 = vsel %vm325_vm8, %v6416_v46, %v6412_v26 }
0x12d1   : > { %7434 = vmatpush1.bf16.msk.msra.mxu0 %vm8435_vm15, %v7432_v39  ;;  %6296 = vmatprep.mubr.f32.mxu0 %v7849_v20  ;;  %v6417_v25 = vsel %vm325_vm8, %v6410_v5, %v6414_v44  ;;  %v6419_v57 = vsel %vm325_vm8, %v6414_v44, %v6410_v5  ;;  %v6423_v60 = vmul.f32 %v7953_v10, %v6418_v35  ;;  %vm6580_vm8 = vcmask 23552  }
0x12d2   : > { %7437 = vmatprep.subr.msk.bf16.mxu0 %vm8435_vm15, %v7435_v45  ;;  %v6424_v53 = vmul.f32 %v7963_v14, %v6420_v27  ;;  %v6421_v50 = vmul.f32 %v7953_v10, %v6417_v25  ;;  %v6422_v17 = vmul.f32 %v7963_v14, %v6419_v57 }
0x12d3   : > { %v6428_v18 = vpop.permute.xlu0 %6427 }
0x12d4   : > { %v6426_v22 = vpop.permute.xlu1 %6425  ;;  %7194 = vmatmul.mubr.msk.f32.vlgmr.msra.gmra.mrb[8].mxu0 %vm1609_vm0, %v7190_v38 }
0x12d5   : > { %7440 = vmatpush1.bf16.msk.msra.mxu0 %vm8435_vm15, %v7438_v30  ;;  %6302 = vmatprep.mubr.f32.mxu0 %v7849_v20 }
0x12d7   : > { %v6432_v62 = vpop.permute.xlu0 %6431 }
0x12d8   : > { %v6430_v0 = vpop.permute.xlu1 %6429  ;;  %v6434_v30 = vsel %vm10524_vm11, %v6428_v18, %v6432_v62  ;;  %v6436_v54 = vsel %vm10525_vm12, %v6432_v62, %v6428_v18  ;;  %7195 = vmatmul.mubr.msk.f32.gmra.mrb[10].mxu0 %vm1609_vm0, %v7191_v31 }
0x12d9   : > { %v6433_v58 = vsel %vm10484_vm1, %v6426_v22, %v6430_v0  ;;  %v6435_v36 = vsel %vm10526_vm7, %v6430_v0, %v6426_v22  ;;  %v6439_v49 = vmul.f32 %v6436_v54, %v7959_v12  ;;  %v6440_v29 = vmul.f32 %v6434_v30, %v7969_v16  ;;  %6392 = vmatprep.mubr.f32.mxu0 %v7849_v20 }
0x12da   : > { %v6437_v61 = vmul.f32 %v6435_v36, %v7959_v12  ;;  %v6438_v40 = vmul.f32 %v6433_v58, %v7969_v16 }
0x12db   : > { %v6443_v34 = vadd.f32 %v6439_v49, %v6423_v60  ;;  %v6444_v41 = vadd.f32 %v6440_v29, %v6424_v53  ;;  %v6576_v60 = vld [vmem:[%s10448_s8] sm:$0xff] }
0x12dc   : > { %v6441_v7 = vadd.f32 %v6437_v61, %v6421_v50  ;;  %v6442_v47 = vadd.f32 %v6438_v40, %v6422_v17  ;;  %7200 = vmatmul.mubr.msk.f32.vlgmr.msra.gmra.mrb[8].mxu0 %vm1609_vm0, %v7196_v52  ;;  %v6591_v61 = vld [vmem:[%s10449_s9] sm:$0x1] }
0x12dd   : > { %6398 = vmatprep.mubr.f32.mxu0 %v7849_v20 }
0x12de   : > { %v7441_v32 = vpack.c.bf16 %v6444_v41, %v6442_v47  ;;  %v7444_v19 = vpack.c.bf16 %v6443_v34, %v6441_v7  ;;  %v6598_v41 = vsub.s32 0, %v7941_v2  ;;  %v6595_v47 = vld [vmem:[%s10450_s10 + $0x8] sm:$0x3f] }
0x12e0   : > { %7201 = vmatmul.mubr.msk.f32.gmra.mrb[10].mxu0 %vm1609_vm0, %v7197_v21  ;;  %7443 = vmatprep.subr.msk.bf16.mxu0 %vm8435_vm15, %v7441_v32  ;;  %v6594_v21 = vld [vmem:[%s10450_s10] sm:$0xff] }
0x12e1   : > { %7446 = vmatpush1.bf16.msk.msra.mxu0 %vm8435_vm15, %v7444_v19  ;;  %6524 = vmatprep.mubr.f32.mxu0 %v7849_v20 }
0x12e4   : > { %7206 = vmatmul.mubr.msk.f32.vlgmr.msra.gmra.mrb[8].mxu0 %vm1609_vm0, %v7202_v37 }
0x12e5   : > { %6530 = vmatprep.mubr.f32.mxu0 %v7849_v20 }
0x12e8   : > { %7207 = vmatmul.mubr.msk.f32.gmra.mrb[10].mxu0 %vm1609_vm0, %v7203_v4  ;;  %v6544_v56 = vpop.permute.xlu0 %6543 }
0x12e9   : > { %v6549_v5 = vpop.permute.xlu1 %6548 }
0x13b7   : > { %v6526_v23 = vpop.f32.mrb[8].mxu0 }
0x13b8   : > { %v6551_v59 = vadd.f32 %v6544_v56, %v6526_v23  ;;  %v6528_v26 = vpop.f32.mrb[9].mxu0  ;;  %v6609_v23 = vld [vmem:[%s10451_s11 + $0x8] sm:$0x3f] }
0x13b9   : > { %v6552_v24 = vadd.f32 %v6544_v56, %v6528_v26 }
0x13ba   : > { %v6557_v42 = vmul.f32 %v6556_v48, %v6551_v59 }
0x13bb   : > { %v6558_v43 = vmul.f32 %v6556_v48, %v6552_v24  ;;  %v6532_v33 = vpop.f32.mrb[10].mxu0 }
0x13bc   : > { %v10228_v39 = vadd.f32 %v6557_v42, %v9279_v51  ;;  %v6553_v46 = vadd.f32 %v6549_v5, %v6532_v33  ;;  %v6534_v44 = vpop.f32.mrb[11].mxu0 }
0x13bd   : > { %v10231_v45 = vadd.f32 %v6558_v43, %v9282_v28  ;;  %v6554_v38 = vadd.f32 %v6549_v5, %v6534_v44 }
0x13be   : > { %v6559_v18 = vmul.f32 %v6556_v48, %v6553_v46 }
0x13bf   : > { %v6560_v22 = vmul.f32 %v6556_v48, %v6554_v38  ;;  %v6565_v35 = vadd.f32 %v10231_v45, %v10228_v39  ;;  %v6608_v48 = vld [vmem:[%s10451_s11] sm:$0xff] }
0x13c0   : > { %v10236_v27 = vadd.f32 %v6559_v18, %v9287_v63  ;;  %v6577_v63 = vld [vmem:[%s10448_s8 + $0x8] sm:$0x3f] }
0x13c1   : > { %v10239_v31 = vadd.f32 %v6560_v22, %v9290_v3  ;;  %6566 = vadd.xlane.f32.xlu1 %v6565_v35  ;;  %v6640_v35 = vld [vmem:[%s10453_s13] sm:$0xff] }
0x13c2   : > { %v6568_v51 = vsel %vm148_vm5, %v10236_v27, 0.0 }
0x13c3   : > { %v6569_v28 = vsel %vm148_vm5, %v10239_v31, 0.0 }
0x13c4   : > { %v6570_v25 = vadd.f32 %v6569_v28, %v6568_v51  ;;  %v6641_v51 = vld [vmem:[%s10453_s13 + $0x8] sm:$0xf] }
0x13c6   : > { %6571 = vadd.xlane.f32.xlu0 %v6570_v25 }
0x144e   : > { %v6567_v57 = vpop.xlane.xlu1 %6566 }
0x144f   : > { %v6574_v62 = vmul.f32 0.00390625, %v6567_v57 }
0x1451   : > { %v6578_v53 = vmul.f32 %v6576_v60, %v6574_v62 }
0x1453   : > { %v6572_v3 = vpop.xlane.xlu0 %6571  ;;  %v6581_v54 = vsel %vm6580_vm8, %v6578_v53, 0.0 }
0x1454   : > { %v6575_v0 = vmul.f32 0.00390625, %v6572_v3 }
0x1456   : > { %v6579_v30 = vmul.f32 %v6577_v63, %v6575_v0  ;;  %v6638_v0 = vld [vmem:[%s10452_s12] sm:$0xff] }
0x1458   : > { %v6583_v58 = vsel %vm6582_vm9, %v6579_v30, 0.0 }
0x1459   : > { %v6584_v36 = vadd.f32 %v6583_v58, %v6581_v54 }
0x145b   : > { %v6585_v49 = vrot.slane %v6584_v36, 4 }
0x145d   : > { %v6586_v29 = vadd.f32 %v6585_v49, %v6584_v36 }
0x145f   : > { %v6587_v52 = vrot.slane %v6586_v29, 2 }
0x1461   : > { %v6588_v50 = vadd.f32 %v6587_v52, %v6586_v29 }
0x1463   : > { %v6589_v17 = vrot.slane %v6588_v50, 1 }
0x1465   : > { %v6590_v40 = vadd.f32 %v6589_v17, %v6588_v50 }
0x1467   : > { %v6592_v34 = vadd.f32 %v6591_v61, %v6590_v40 }
0x1469   : > { %v6593_v7 = vmax.f32 %v6592_v34, 0.0 }
0x146b   : > { %v6599_v32 = vrot.slane %v6593_v7, %v6598_v41 }
0x146d   : > { %v6601_v19 = vmul.f32 %v6599_v32, %v6595_v47  ;;  %v6600_v37 = vmul.f32 %v6599_v32, %v6594_v21 }
0x146f   : > { %v6605_v4 = vsel %vm6582_vm9, %v6601_v19, 0.0  ;;  %v6602_v56 = vsel %vm6580_vm8, %v6600_v37, 0.0 }
0x1470   : > { %6606 = vadd.xlane.f32.xlu1 %v6605_v4  ;;  %6603 = vadd.xlane.f32.xlu0 %v6602_v56 }
0x14fd   : > { %v6607_v59 = vpop.xlane.xlu1 %6606  ;;  %v6604_v26 = vpop.xlane.xlu0 %6603 }
0x14fe   : > { %v6611_v24 = vadd.f32 %v6609_v23, %v6607_v59  ;;  %v6610_v42 = vadd.f32 %v6608_v48, %v6604_v26 }
0x1500   : > { %v7210_v5 = vmul.f32 -1.442695, %v6611_v24  ;;  %v7209_v43 = vmul.f32 -1.442695, %v6610_v42 }
0x1502   : > { %7795 = vpow2.f32 %v7210_v5 }
0x1503   : > { %7797 = vpow2.f32 %v7209_v43 }
0x150c   : > { %v7796_v33 = vpop.eup %7795 }
0x150d   : > { %v7798_v46 = vpop.eup %7797  ;;  %v6619_v44 = vadd.f32 1.0, %v7796_v33 }
0x150e   : > { %v6618_v38 = vadd.f32 1.0, %v7798_v46 }
0x150f   : > { %7799 = vrcp.f32 %v6619_v44 }
0x1510   : > { %7801 = vrcp.f32 %v6618_v38 }
0x1519   : > { %v7800_v18 = vpop.eup %7799 }
0x151a   : > { %v7802_v22 = vpop.eup %7801  ;;  %6631 = vperm.xlu1 %7694, %v7800_v18  }
0x151b   : > { %6626 = vperm.xlu0 %7693, %v7802_v22  }
0x151e   : > { %6644 = vperm.xlu1 %7694, %v6640_v35  }
0x151f   : > { %6649 = vperm.xlu0 %7693, %v6641_v51  }
0x1599   : > { %v6632_v28 = vpop.permute.xlu1 %6631 }
0x159a   : > { %v6636_v25 = vmul.f32 %v6632_v28, %v10236_v27  ;;  %v6637_v57 = vmul.f32 %v6632_v28, %v10239_v31  ;;  %v6627_v62 = vpop.permute.xlu0 %6626 }
0x159b   : > { %v6634_v60 = vmul.f32 %v6627_v62, %v10228_v39  ;;  %v6635_v63 = vmul.f32 %v6627_v62, %v10231_v45  ;;  %v6639_v39 = vld [vmem:[%s10452_s12 + $0x8] sm:$0xf] }
0x159d   : > { %v7447_v3 = vpack.c.bf16 %v6637_v57, %v6635_v63  ;;  %v7450_v53 = vpack.c.bf16 %v6636_v25, %v6634_v60  ;;  %v6645_v45 = vpop.permute.xlu1 %6644 }
0x159e   : > { %v6650_v52 = vpop.permute.xlu0 %6649 }
0x159f   : > { %7449 = vmatprep.subr.msk.bf16.mxu1 %vm8435_vm15, %v7447_v3 }
0x15a0   : > { %7452 = vmatpush1.bf16.msk.msra.mxu1 %vm8435_vm15, %v7450_v53 }
0x15a3   : > { %7213 = vmatmul.mubr.msk.f32.vlgmr.msra.gmra.mrb[12].mxu1 %vm1609_vm0, %v6638_v0 }
0x15a4   : > { %6734 = vmatprep.mubr.f32.mxu1 %v7849_v20 }
0x15a7   : > { %7214 = vmatmul.mubr.msk.f32.gmra.mrb[14].mxu1 %vm1609_vm0, %v6639_v39 }
0x1676   : > { %v6730_v27 = vpop.f32.mrb[12].mxu1 }
0x1677   : > { %v10294_v31 = vadd.f32 %v6730_v27, %v6645_v45  ;;  %v6732_v55 = vpop.f32.mrb[13].mxu1 }
0x1678   : > { %v10296_v30 = vadd.f32 %v6732_v55, %v6645_v45 }
0x1679   : > { %v10299_v54 = vand.u32 2147483647, %v10294_v31 }
0x167a   : > { %v10302_v58 = vand.u32 2147483647, %v10296_v30  ;;  %v6736_v36 = vpop.f32.mrb[14].mxu1 }
0x167b   : > { %v6777_v49 = vmax.f32 %v10299_v54, 1e-30  ;;  %v6793_v29 = vadd.f32 1.0, %v10299_v54  ;;  %v10308_v61 = vadd.f32 %v6736_v36, %v6650_v52  ;;  %v6738_v40 = vpop.f32.mrb[15].mxu1  ;;  %vm6761_vm5 = vcmp.gt.f32.partialorder %v10299_v54, 2.4142137 }
0x167c   : > { %v6778_v50 = vmax.f32 %v10302_v58, 1e-30  ;;  %v6794_v17 = vadd.f32 1.0, %v10302_v58  ;;  %v10310_v34 = vadd.f32 %v6738_v40, %v6650_v52  ;;  %vm6762_vm15 = vcmp.gt.f32.partialorder %v10302_v58, 2.4142137  ;;  %vm6769_vm13 = vmxor %vm6761_vm5, %vm7852_vm10 }
0x167d   : > { %7803 = vrcp.f32 %v6777_v49  ;;  %v10313_v41 = vand.u32 2147483647, %v10308_v61  ;;  %vm6765_vm0 = vcmp.gt.f32.partialorder %v10299_v54, 0.41421357  ;;  %v7215_v4 = vadd.f32 -1.0, %v10299_v54  ;;  %vm6770_vm2 = vmxor %vm6762_vm15, %vm7852_vm10 }
0x167e   : > { %7805 = vrcp.f32 %v6793_v29  ;;  %v10316_v7 = vand.u32 2147483647, %v10310_v34  ;;  %vm6766_vm14 = vcmp.gt.f32.partialorder %v10302_v58, 0.41421357  ;;  %v7216_v26 = vadd.f32 -1.0, %v10302_v58  ;;  %vm10334_vm3 = vmand %vm6765_vm0, %vm6769_vm13 }
0x167f   : > { %7807 = vrcp.f32 %v6778_v50  ;;  %v6779_v47 = vmax.f32 %v10313_v41, 1e-30  ;;  %v6795_v21 = vadd.f32 1.0, %v10313_v41  ;;  %vm6763_vm4 = vcmp.gt.f32.partialorder %v10313_v41, 2.4142137  ;;  %vm10344_vm6 = vmand %vm6766_vm14, %vm6770_vm2 }
0x1680   : > { %7809 = vrcp.f32 %v6794_v17  ;;  %v6780_v32 = vmax.f32 %v10316_v7, 1e-30  ;;  %v6796_v19 = vadd.f32 1.0, %v10316_v7  ;;  %vm6764_vm11 = vcmp.gt.f32.partialorder %v10316_v7, 2.4142137  ;;  %vm6771_vm1 = vmxor %vm6763_vm4, %vm7852_vm10 }
0x1681   : > { %7811 = vrcp.f32 %v6779_v47  ;;  %vm6767_vm12 = vcmp.gt.f32.partialorder %v10313_v41, 0.41421357  ;;  %v7217_v51 = vadd.f32 -1.0, %v10313_v41  ;;  %vm6768_vm7 = vcmp.gt.f32.partialorder %v10316_v7, 0.41421357  ;;  %vm6772_vm8 = vmxor %vm6764_vm11, %vm7852_vm10 }
0x1682   : > { %7813 = vrcp.f32 %v6795_v21  ;;  %v7218_v3 = vadd.f32 -1.0, %v10316_v7  ;;  %vm10370_vm9 = vmand %vm6767_vm12, %vm6771_vm1  ;;  %vm6745_vm0 = vcmp.lt.f32.partialorder %v10294_v31, 0.0  ;;  %vm6741_vm13 = vcmp.gt.f32.partialorder %v10294_v31, 0.0 }
0x1683   : > { %7815 = vrcp.f32 %v6780_v32  ;;  %vm10379_vm10 = vmand %vm6768_vm7, %vm6772_vm8  ;;  %vm6746_vm14 = vcmp.lt.f32.partialorder %v10296_v30, 0.0  ;;  %vm6742_vm2 = vcmp.gt.f32.partialorder %v10296_v30, 0.0 }
0x1684   : > { %7817 = vrcp.f32 %v6796_v19 }
0x1687   : > { %v7804_v37 = vpop.eup %7803 }
0x1688   : > { %v7806_v56 = vpop.eup %7805  ;;  %v6782_v23 = vmul.f32 -1.0, %v7804_v37 }
0x1689   : > { %v7808_v48 = vpop.eup %7807  ;;  %v6798_v59 = vmul.f32 %v7806_v56, %v7215_v4 }
0x168a   : > { %v7810_v24 = vpop.eup %7809  ;;  %v6784_v5 = vmul.f32 -1.0, %v7808_v48 }
0x168b   : > { %v6805_v43 = vsel %vm10334_vm3, %v6798_v59, %v10299_v54  ;;  %v6800_v33 = vmul.f32 %v7810_v24, %v7216_v26  ;;  %v7812_v22 = vpop.eup %7811 }
0x168c   : > { %v6809_v46 = vsel %vm6761_vm5, %v6782_v23, %v6805_v43  ;;  %v7814_v28 = vpop.eup %7813  ;;  %v6786_v62 = vmul.f32 -1.0, %v7812_v22 }
0x168d   : > { %v6821_v38 = vmul.f32 %v6809_v46, %v6809_v46  ;;  %v6806_v18 = vsel %vm10344_vm6, %v6800_v33, %v10302_v58  ;;  %v7816_v60 = vpop.eup %7815  ;;  %v6802_v63 = vmul.f32 %v7814_v28, %v7217_v51  ;;  %v6813_v51 = vsel %vm10334_vm3, 0.7853982, %v7849_v20 }
0x168e   : > { %v10354_v35 = vsel %vm6762_vm15, %v6784_v5, %v6806_v18  ;;  %v7818_v53 = vpop.eup %7817  ;;  %v6788_v27 = vmul.f32 -1.0, %v7816_v60  ;;  %v6817_v42 = vsel %vm6761_vm5, 1.5707964, %v6813_v51  ;;  %vm6747_vm5 = vcmp.lt.f32.partialorder %v10308_v61, 0.0 }
0x168f   : > { %v6825_v25 = vmul.f32 0.080537446, %v6821_v38  ;;  %v6822_v57 = vmul.f32 %v10354_v35, %v10354_v35  ;;  %v6807_v55 = vsel %vm10370_vm9, %v6802_v63, %v10313_v41  ;;  %v6804_v36 = vmul.f32 %v7818_v53, %v7218_v3 }
0x1690   : > { %v6811_v52 = vsel %vm6763_vm4, %v6786_v62, %v6807_v55  ;;  %v6814_v3 = vsel %vm10344_vm6, 0.7853982, %v7849_v20  ;;  %v6750_v55 = vsel %vm6746_vm14, -1.0, %v7849_v20  ;;  %vm6748_vm3 = vcmp.lt.f32.partialorder %v10310_v34, 0.0 }
0x1691   : > { %v7219_v0 = vadd.f32 -0.13877685, %v6825_v25  ;;  %v6826_v39 = vmul.f32 0.080537446, %v6822_v57  ;;  %v6823_v17 = vmul.f32 %v6811_v52, %v6811_v52  ;;  %v6808_v40 = vsel %vm10379_vm10, %v6804_v36, %v10316_v7 }
0x1692   : > { %v10390_v32 = vsel %vm6764_vm11, %v6788_v27, %v6808_v40  ;;  %v6818_v36 = vsel %vm6762_vm15, 1.5707964, %v6814_v3  ;;  %v6754_v30 = vsel %vm6742_vm2, 1.0, %v6750_v55  ;;  %vm6743_vm15 = vcmp.gt.f32.partialorder %v10308_v61, 0.0 }
0x1693   : > { %v6833_v49 = vmul.f32 %v7219_v0, %v6821_v38  ;;  %v7220_v29 = vadd.f32 -0.13877685, %v6826_v39  ;;  %v6827_v19 = vmul.f32 0.080537446, %v6823_v17  ;;  %v6824_v37 = vmul.f32 %v10390_v32, %v10390_v32 }
0x1694   : > { %v6871_v0 = vstv %s6870_s23  ;;  %vm6744_vm6 = vcmp.gt.f32.partialorder %v10310_v34, 0.0  ;;  %v6752_v61 = vsel %vm6748_vm3, -1.0, %v7849_v20 }
0x1695   : > { %v6837_v47 = vadd.f32 0.19977711, %v6833_v49  ;;  %v6834_v21 = vmul.f32 %v7220_v29, %v6822_v57  ;;  %v7221_v23 = vadd.f32 -0.13877685, %v6827_v19  ;;  %v6828_v48 = vmul.f32 0.080537446, %v6824_v37 }
0x1697   : > { %v6841_v4 = vmul.f32 %v6837_v47, %v6821_v38  ;;  %v6838_v56 = vadd.f32 0.19977711, %v6834_v21  ;;  %v6835_v24 = vmul.f32 %v7221_v23, %v6823_v17  ;;  %v7222_v5 = vadd.f32 -0.13877685, %v6828_v48 }
0x1699   : > { %v7223_v59 = vadd.f32 -0.3333295, %v6841_v4  ;;  %v6842_v26 = vmul.f32 %v6838_v56, %v6822_v57  ;;  %v6839_v18 = vadd.f32 0.19977711, %v6835_v24  ;;  %v6836_v22 = vmul.f32 %v7222_v5, %v6824_v37 }
0x169a   : > { %v6816_v4 = vsel %vm10379_vm10, 0.7853982, %v7849_v20  ;;  %v6756_v24 = vsel %vm6744_vm6, 1.0, %v6752_v61 }
0x169b   : > { %v6849_v43 = vmul.f32 %v7223_v59, %v6821_v38  ;;  %v7224_v33 = vadd.f32 -0.3333295, %v6842_v26  ;;  %v6843_v62 = vmul.f32 %v6839_v18, %v6823_v17  ;;  %v6840_v60 = vadd.f32 0.19977711, %v6836_v22 }
0x169c   : > { %v6749_v38 = vsel %vm6745_vm0, -1.0, %v7849_v20  ;;  %v6820_v50 = vsel %vm6764_vm11, 1.5707964, %v6816_v4 }
0x169d   : > { %v6853_v28 = vmul.f32 %v6849_v43, %v6809_v46  ;;  %v6850_v25 = vmul.f32 %v7224_v33, %v6822_v57  ;;  %v7225_v57 = vadd.f32 -0.3333295, %v6843_v62  ;;  %v6844_v39 = vmul.f32 %v6840_v60, %v6824_v37 }
0x169e   : > { %v6753_v44 = vsel %vm6741_vm13, 1.0, %v6749_v38 }
0x169f   : > { %v6857_v63 = vadd.f32 %v6853_v28, %v6809_v46  ;;  %v6854_v53 = vmul.f32 %v6850_v25, %v10354_v35  ;;  %v6851_v49 = vmul.f32 %v7225_v57, %v6823_v17  ;;  %v7226_v54 = vadd.f32 -0.3333295, %v6844_v39 }
0x16a0   : > { %v6751_v17 = vsel %vm6747_vm5, -1.0, %v7849_v20 }
0x16a1   : > { %v6861_v27 = vadd.f32 %v6857_v63, %v6817_v42  ;;  %v6858_v46 = vadd.f32 %v6854_v53, %v10354_v35  ;;  %v6815_v35 = vsel %vm10370_vm9, 0.7853982, %v7849_v20  ;;  %v6855_v31 = vmul.f32 %v6851_v49, %v6811_v52 }
0x16a2   : > { %v6852_v47 = vmul.f32 %v7226_v54, %v6824_v37  ;;  %v6819_v37 = vsel %vm6763_vm4, 1.5707964, %v6815_v35 }
0x16a3   : > { %v6865_v29 = vmul.f32 %v6861_v27, %v6753_v44  ;;  %v6862_v40 = vadd.f32 %v6858_v46, %v6818_v36  ;;  %v6859_v19 = vadd.f32 %v6855_v31, %v6811_v52  ;;  %v6755_v52 = vsel %vm6743_vm15, 1.0, %v6751_v17 }
0x16a4   : > { %v6856_v56 = vmul.f32 %v6852_v47, %v10390_v32 }
0x16a5   : > { %v6872_v21 = vmul.f32 %v6871_v0, %v6865_v29  ;;  %v6866_v58 = vmul.f32 %v6862_v40, %v6754_v30  ;;  %v6863_v23 = vadd.f32 %v6859_v19, %v6819_v37 }
0x16a6   : > { %v6860_v48 = vadd.f32 %v6856_v56, %v10390_v32 }
0x16a7   : > { %6879 = vst [vmem:[%s6878_s14] sm:$0xff] %v6872_v21  ;;  %v6873_v45 = vmul.f32 %v6871_v0, %v6866_v58  ;;  %v6867_v59 = vmul.f32 %v6863_v23, %v6755_v52 }
0x16a8   : > { %v6864_v26 = vadd.f32 %v6860_v48, %v6820_v50  ;;  %100 = sbr.rel (!%p98_p5) target bundleno = 31 (0x1f), region = 147 }
0x16a9   : > { %6880 = vst [vmem:[%s6878_s14 + $0x8] sm:$0xff] %v6873_v45  ;;  %v6874_v5 = vmul.f32 %v6871_v0, %v6867_v59 }
0x16aa   : > { %v6868_v43 = vmul.f32 %v6864_v26, %v6756_v24 }
0x16ab   : > { %6881 = vst [vmem:[%s6878_s14 + $0x10] sm:$0xf] %v6874_v5 }
0x16ac   : > { %v6875_v41 = vmul.f32 %v6871_v0, %v6868_v43 }
0x16ae   : > { %6882 = vst [vmem:[%s6878_s14 + $0x18] sm:$0xf] %v6875_v41 }
0x16af   :  { %6887 = vsyncpa [#allocation4], 1 }

</bundles_post_ra>
